<compile_context>
chip_gen: v7x
topology: tpu7x:2x2x1
jax: 0.10.0
libtpu: 0.0.40
codegen_flags: <defaults>
</compile_context>

<pallas_src>
import functools

import numpy as np
import jax
import jax.numpy as jnp
from jax.experimental import pallas as pl
from jax.experimental.pallas import tpu as pltpu

_VMEM_LIMIT = 48 * 1024 * 1024  # above the 32 MiB scoped default, < v7x 64 MiB


# ----------------------------------------------------------------------------
# small helpers
# ----------------------------------------------------------------------------
def _round_up(x, m):
    return ((x + m - 1) // m) * m


def _choose_m(m, max_tile=256):
    """Pick (padded M, M tile)."""
    if m >= max_tile:
        return _round_up(m, max_tile), max_tile
    mp = _round_up(m, 8)
    return mp, mp


def _choose_tile(n, cap=512):
    """Largest tile <= cap that divides n (n <= cap -> full dim)."""
    if n <= cap:
        return n
    t = cap
    while t > 1 and n % t:
        t //= 2
    return t


# ----------------------------------------------------------------------------
# Pallas kernels
# ----------------------------------------------------------------------------
def _mm_kernel(a_ref, w_ref, b_ref, o_ref, acc_ref, *, relu):
    """out = act(A @ W + b); bf16 operands, fp32 accumulation over K grid axis."""
    @pl.when(pl.program_id(2) == 0)
    def _():
        acc_ref[...] = jnp.zeros_like(acc_ref)

    acc_ref[...] += jnp.dot(a_ref[...], w_ref[...],
                            preferred_element_type=jnp.float32)

    @pl.when(pl.program_id(2) == pl.num_programs(2) - 1)
    def _():
        y = acc_ref[...] + b_ref[...]
        if relu:
            y = jnp.maximum(y, 0.0)
        o_ref[...] = y.astype(o_ref.dtype)


def _mm_res_kernel(a_ref, w_ref, b_ref, r_ref, o_ref, acc_ref, *, relu):
    """out = act(A @ W + b + residual)."""
    @pl.when(pl.program_id(2) == 0)
    def _():
        acc_ref[...] = jnp.zeros_like(acc_ref)

    acc_ref[...] += jnp.dot(a_ref[...], w_ref[...],
                            preferred_element_type=jnp.float32)

    @pl.when(pl.program_id(2) == pl.num_programs(2) - 1)
    def _():
        y = acc_ref[...] + b_ref[...] + r_ref[...].astype(jnp.float32)
        if relu:
            y = jnp.maximum(y, 0.0)
        o_ref[...] = y.astype(o_ref.dtype)


def _conv_tap_kernel(x_ref, w_ref, b_ref, o_ref, acc_ref, *, taps, out_len,
                     relu):
    """Implicit-GEMM stride-1 conv: sum over spatial taps of shifted matmuls.

    x_ref : (1, in_len, TK)   flattened (row-major H*W) padded input, one image
    w_ref : (num_taps, TK, TN)
    b_ref : (1, TN)
    o_ref : (1, out_len, TN)  flat output on the input-width grid
    acc_ref: (out_len, TN) fp32 scratch; K (Cin) is the innermost grid axis.
    """
    @pl.when(pl.program_id(2) == 0)
    def _():
        acc_ref[...] = jnp.zeros_like(acc_ref)

    for t, off in enumerate(taps):
        a = x_ref[0, off:off + out_len, :]
        acc_ref[...] += jnp.dot(a, w_ref[t],
                                preferred_element_type=jnp.float32)

    @pl.when(pl.program_id(2) == pl.num_programs(2) - 1)
    def _():
        y = acc_ref[...] + b_ref[...]
        if relu:
            y = jnp.maximum(y, 0.0)
        o_ref[0] = y.astype(o_ref.dtype)


def _maxpool_kernel(p_ref, o_ref):
    """Max over the leading tap axis (pure VPU, lane-aligned)."""
    o_ref[...] = jnp.max(p_ref[...], axis=0).astype(o_ref.dtype)


# ----------------------------------------------------------------------------
# Pallas wrappers
# ----------------------------------------------------------------------------
def matmul_bias_act(a, w, b, *, relu=False, residual=None, max_tm=256):
    """a:(M,K) x w:(K,N) + b:(1,N) [+residual] -> bf16 (M,N); fp32 accumulate."""
    M, K = a.shape
    Nc = w.shape[1]
    Mp, TM = _choose_m(M, max_tm)
    TK = _choose_tile(K, 512)
    TN = _choose_tile(Nc, 512)

    a = a.astype(jnp.bfloat16)
    if Mp != M:
        a = jnp.pad(a, ((0, Mp - M), (0, 0)))

    in_specs = [
        pl.BlockSpec((TM, TK), lambda i, j, k: (i, k)),
        pl.BlockSpec((TK, TN), lambda i, j, k: (k, j)),
        pl.BlockSpec((1, TN), lambda i, j, k: (0, j)),
    ]
    args = [a, w, b]
    if residual is not None:
        r = residual.astype(jnp.bfloat16)
        if Mp != M:
            r = jnp.pad(r, ((0, Mp - M), (0, 0)))
        in_specs.append(pl.BlockSpec((TM, TN), lambda i, j, k: (i, j)))
        args.append(r)
        kernel = functools.partial(_mm_res_kernel, relu=relu)
    else:
        kernel = functools.partial(_mm_kernel, relu=relu)

    out = pl.pallas_call(
        kernel,
        out_shape=jax.ShapeDtypeStruct((Mp, Nc), jnp.bfloat16),
        grid_spec=pltpu.PrefetchScalarGridSpec(
            num_scalar_prefetch=0,
            grid=(Mp // TM, Nc // TN, K // TK),
            in_specs=in_specs,
            out_specs=pl.BlockSpec((TM, TN), lambda i, j, k: (i, j)),
            scratch_shapes=[pltpu.VMEM((TM, TN), jnp.float32)],
        ),
        compiler_params=pltpu.CompilerParams(
            dimension_semantics=("parallel", "parallel", "arbitrary"),
            vmem_limit_bytes=_VMEM_LIMIT),
    )(*args)
    return out[:M]


def conv_tap(xp, w_taps, b, kh, kw, *, relu):
    """Stride-1 kh x kw conv on an already spatially padded NHWC input.

    The (H,W) plane is flattened row-major; tap (i,j) is a flat offset i*Wi+j.
    Rows of the flat output with column index >= OW are garbage and sliced off.
    """
    xp = xp.astype(jnp.bfloat16)
    N, Hi, Wi, C = xp.shape
    OH, OW = Hi - kh + 1, Wi - kw + 1
    Cout = w_taps.shape[-1]

    out_len = _round_up(OH * Wi, 8)
    need = (kh - 1) * Wi + (kw - 1) + out_len
    gap = need - Hi * Wi
    extra_rows = max(0, -(-gap // Wi))
    if extra_rows:
        xp = jnp.pad(xp, ((0, 0), (0, extra_rows), (0, 0), (0, 0)))
    in_len = (Hi + extra_rows) * Wi
    xf = xp.reshape(N, in_len, C)

    TK = _choose_tile(C, 512)
    TN = _choose_tile(Cout, 256)
    taps = tuple(i * Wi + j for i in range(kh) for j in range(kw))

    out = pl.pallas_call(
        functools.partial(_conv_tap_kernel, taps=taps, out_len=out_len,
                          relu=relu),
        out_shape=jax.ShapeDtypeStruct((N, out_len, Cout), jnp.bfloat16),
        grid_spec=pltpu.PrefetchScalarGridSpec(
            num_scalar_prefetch=0,
            grid=(N, Cout // TN, C // TK),
            in_specs=[
                pl.BlockSpec((1, in_len, TK), lambda n, co, k: (n, 0, k)),
                pl.BlockSpec((kh * kw, TK, TN), lambda n, co, k: (0, k, co)),
                pl.BlockSpec((1, TN), lambda n, co, k: (0, co)),
            ],
            out_specs=pl.BlockSpec((1, out_len, TN),
                                   lambda n, co, k: (n, 0, co)),
            scratch_shapes=[pltpu.VMEM((out_len, TN), jnp.float32)],
        ),
        compiler_params=pltpu.CompilerParams(
            dimension_semantics=("parallel", "parallel", "arbitrary"),
            vmem_limit_bytes=_VMEM_LIMIT),
    )(xf, w_taps, b)

    out = out[:, :OH * Wi].reshape(N, OH, Wi, Cout)[:, :, :OW, :]
    return out


def conv_bn(x, p, *, relu, residual=None):
    """Conv + folded eval-mode BN + optional residual + optional ReLU."""
    kind = p["kind"]
    if kind == "1x1":
        s = p["stride"]
        if s != 1:
            x = x[:, ::s, ::s, :]
        N, OH, OW, C = x.shape
        res = residual.reshape(N * OH * OW, -1) if residual is not None else None
        out = matmul_bias_act(x.reshape(N * OH * OW, C), p["w"], p["b"],
                              relu=relu, residual=res)
        return out.reshape(N, OH, OW, -1)

    if kind == "tap":                      # k x k, stride 1
        pad = p["pad"]
        xp = jnp.pad(x, ((0, 0), (pad, pad), (pad, pad), (0, 0)))
        return conv_tap(xp, p["w"], p["b"], p["kh"], p["kw"], relu=relu)

    # "tap_s2": stride-2 k x k conv lowered to a stride-1 conv via space-to-depth
    k, pad, K2 = p["k"], p["pad"], p["K2"]
    N, H, W, C = x.shape
    OH = (H + 2 * pad - k) // 2 + 1
    OW = (W + 2 * pad - k) // 2 + 1
    Hi2, Wi2 = OH + K2 - 1, OW + K2 - 1
    xp = jnp.pad(x, ((0, 0), (pad, 2 * Hi2 - H - pad),
                     (pad, 2 * Wi2 - W - pad), (0, 0)))
    x2 = xp.reshape(N, Hi2, 2, Wi2, 2, C)
    x2 = x2.transpose(0, 1, 3, 2, 4, 5).reshape(N, Hi2, Wi2, 4 * C)
    return conv_tap(x2, p["w"], p["b"], K2, K2, relu=relu)


def max_pool(x, k, stride, pad):
    """nn.MaxPool2d(kernel_size=k, stride, padding=pad) on NHWC (taps-leading)."""
    N, H, W, C = x.shape
    xp = jnp.pad(x, ((0, 0), (pad, pad), (pad, pad), (0, 0)),
                 constant_values=-jnp.inf)
    OH = (H + 2 * pad - k) // stride + 1
    OW = (W + 2 * pad - k) // stride + 1
    cols = [xp[:, i:i + stride * OH:stride, j:j + stride * OW:stride, :]
            for i in range(k) for j in range(k)]
    pat = jnp.stack(cols, axis=0).reshape(k * k, N * OH * OW, C)
    M = N * OH * OW
    Mp, TM = _choose_m(M, 512)
    if Mp != M:
        pat = jnp.pad(pat, ((0, 0), (0, Mp - M), (0, 0)))
    out = pl.pallas_call(
        _maxpool_kernel,
        out_shape=jax.ShapeDtypeStruct((Mp, C), x.dtype),
        grid_spec=pltpu.PrefetchScalarGridSpec(
            num_scalar_prefetch=0,
            grid=(Mp // TM,),
            in_specs=[pl.BlockSpec((k * k, TM, C), lambda i: (0, i, 0))],
            out_specs=pl.BlockSpec((TM, C), lambda i: (i, 0)),
        ),
        compiler_params=pltpu.CompilerParams(
            dimension_semantics=("parallel",)),
    )(pat)
    return out[:M].reshape(N, OH, OW, C)


# ----------------------------------------------------------------------------
# Deterministic parameter initialization (BN folded, layouts pre-baked, bf16)
# ----------------------------------------------------------------------------
def _init_conv_bn(key, cin, cout, kh, kw, stride, pad, conv_bias=True):
    k1, k2, k3, k4, k5, k6 = jax.random.split(key, 6)
    fan_in = cin * kh * kw
    w = jax.random.normal(k1, (kh, kw, cin, cout), jnp.float32) / np.sqrt(fan_in)
    cb = (jax.random.normal(k2, (cout,), jnp.float32) * 0.01
          if conv_bias else jnp.zeros((cout,), jnp.float32))
    gamma = 1.0 + 0.1 * jax.random.normal(k3, (cout,), jnp.float32)
    beta = 0.1 * jax.random.normal(k4, (cout,), jnp.float32)
    mean = 0.1 * jax.random.normal(k5, (cout,), jnp.float32)
    var = jnp.abs(1.0 + 0.1 * jax.random.normal(k6, (cout,), jnp.float32))
    scale = gamma / jnp.sqrt(var + 1e-5)          # eval-mode BN fold
    w_f = w * scale
    b_f = (beta + (cb - mean) * scale).reshape(1, cout)   # fp32 bias

    if kh == 1 and kw == 1:
        return {"kind": "1x1", "stride": stride,
                "w": w_f.reshape(cin, cout).astype(jnp.bfloat16), "b": b_f}
    if stride == 1:
        return {"kind": "tap", "kh": kh, "kw": kw, "pad": pad,
                "w": w_f.reshape(kh * kw, cin, cout).astype(jnp.bfloat16),
                "b": b_f}
    # stride-2 k x k: space-to-depth weight transform (done once, here)
    K2 = (kh + 1) // 2
    wp = jnp.pad(w_f, ((0, 2 * K2 - kh), (0, 2 * K2 - kw), (0, 0), (0, 0)))
    w2 = wp.reshape(K2, 2, K2, 2, cin, cout).transpose(0, 2, 1, 3, 4, 5)
    w2 = w2.reshape(K2 * K2, 4 * cin, cout)
    return {"kind": "tap_s2", "k": kh, "pad": pad, "K2": K2,
            "w": w2.astype(jnp.bfloat16), "b": b_f}


EXPANSION = 4  # Bottleneck block (ResNet-50/101/152 family)


def make_resnet_params(key, layer_list, num_classes, num_channels=3):
    keys = iter(jax.random.split(key, 4096))
    cin_stem = _round_up(num_channels, 4)     # sublane-friendly stem channels
    params = {
        "stem_cin": cin_stem,
        "stem": _init_conv_bn(next(keys), cin_stem, 64, 7, 7, 2, 3,
                              conv_bias=False),
    }
    in_c = 64
    layers = []
    for blocks, planes, stride in zip(layer_list, (64, 128, 256, 512),
                                      (1, 2, 2, 2)):
        blk_params = []
        for bi in range(blocks):
            s = stride if bi == 0 else 1
            blk = {
                "conv1": _init_conv_bn(next(keys), in_c, planes, 1, 1, 1, 0),
                "conv2": _init_conv_bn(next(keys), planes, planes, 3, 3, s, 1),
                "conv3": _init_conv_bn(next(keys), planes,
                                       planes * EXPANSION, 1, 1, 1, 0),
            }
            if s != 1 or in_c != planes * EXPANSION:
                blk["down"] = _init_conv_bn(next(keys), in_c,
                                            planes * EXPANSION, 1, 1, s, 0)
            blk_params.append(blk)
            in_c = planes * EXPANSION
        layers.append(blk_params)
    params["layers"] = layers
    kf1, kf2 = jax.random.split(next(keys))
    fin = 512 * EXPANSION
    params["fc_w"] = (jax.random.normal(kf1, (fin, num_classes), jnp.float32)
                      / np.sqrt(fin)).astype(jnp.bfloat16)
    params["fc_b"] = (jax.random.normal(kf2, (num_classes,), jnp.float32)
                      * 0.01).reshape(1, num_classes)
    return params


# ----------------------------------------------------------------------------
# Forward pass (matches ResNet.forward with Bottleneck blocks)
# ----------------------------------------------------------------------------
def resnet_forward(params, x_nchw):
    # accept NCHW (PyTorch) and compute in NHWC / bf16 internally.
    x = jnp.transpose(x_nchw, (0, 2, 3, 1)).astype(jnp.bfloat16)
    cpad = params["stem_cin"] - x.shape[-1]
    if cpad:
        x = jnp.pad(x, ((0, 0), (0, 0), (0, 0), (0, cpad)))

    # stem: conv7x7/2 + BN + ReLU, then maxpool 3x3/2 pad 1
    x = conv_bn(x, params["stem"], relu=True)
    x = max_pool(x, 3, 2, 1)

    for blk_list in params["layers"]:
        for blk in blk_list:
            identity = x
            y = conv_bn(x, blk["conv1"], relu=True)
            y = conv_bn(y, blk["conv2"], relu=True)
            if "down" in blk:
                identity = conv_bn(x, blk["down"], relu=False)
            # conv3 + BN3 + residual add + final ReLU fused in one kernel
            x = conv_bn(y, blk["conv3"], relu=True, residual=identity)

    # AdaptiveAvgPool2d((1,1)) + flatten  (tiny reduction, plain-JAX glue)
    x = jnp.mean(x.astype(jnp.float32), axis=(1, 2))       # (N, 512*expansion)
    # fc (Pallas matmul + bias) with an 8-row M tile (no 128-row padding)
    logits = matmul_bias_act(x, params["fc_w"], params["fc_b"], relu=False)
    return logits.astype(jnp.float32)


# ----------------------------------------------------------------------------
if __name__ == "__main__":
    # Small, deterministic instantiation of the ResNet class (generic over
    # layer_list; same hot-path structure as resnet152, fewer repeated blocks).
    # TODO(synk): BatchNorm uses eval-mode running statistics (training-mode
    #             batch statistics not reproduced).
    layer_list = [1, 2, 1, 1]
    num_classes = 10
    num_channels = 3

    params = make_resnet_params(jax.random.PRNGKey(42), layer_list,
                                num_classes, num_channels)

    x = jax.random.normal(jax.random.PRNGKey(0), (2, num_channels, 32, 32),
                          jnp.float32)  # NCHW, as in PyTorch

    logits = resnet_forward(params, x)
    logits = jax.block_until_ready(logits)
    assert logits.shape == (2, num_classes)
    assert bool(jnp.all(jnp.isfinite(logits)))
    print("KERNEL_OK")
</pallas_src>

<mosaic_0001>
module attributes {stable_mosaic.version = 11 : i64} {
  func.func @_conv_tap_kernel(%arg0: i32, %arg1: i32, %arg2: i32, %arg3: memref<1x380x16xbf16, #tpu.memory_space<vmem>>, %arg4: memref<16x16x64xbf16, #tpu.memory_space<vmem>>, %arg5: memref<1x64xf32, #tpu.memory_space<vmem>>, %arg6: memref<1x304x64xbf16, #tpu.memory_space<vmem>>, %arg7: memref<304x64xf32, #tpu.memory_space<vmem>>) attributes {dimension_semantics = [#tpu.dimension_semantics<parallel>, #tpu.dimension_semantics<parallel>, #tpu.dimension_semantics<arbitrary>], iteration_bounds = array<i64: 2, 1, 1>, scalar_prefetch = 0 : i64, scratch_operands = 1 : i64, tpu.core_type = #tpu.core_type<tc>, window_params = [{transform_indices = @transform_0, window_bounds = array<i64: 1, 380, 16>}, {transform_indices = @transform_1, window_bounds = array<i64: 16, 16, 64>}, {transform_indices = @transform_2, window_bounds = array<i64: 1, 64>}, {transform_indices = @transform_3, window_bounds = array<i64: 1, 304, 64>}]} {
    %c0_i32 = arith.constant 0 : i32
    %0 = arith.cmpi eq, %arg2, %c0_i32 : i32
    %1 = arith.extui %0 : i1 to i32
    %c0_i32_0 = arith.constant 0 : i32
    %2 = arith.cmpi ne, %1, %c0_i32_0 : i32
    scf.if %2 {
      %cst_150 = arith.constant 0.000000e+00 : f32
      %134 = vector.broadcast %cst_150 : f32 to vector<304x64xf32>
      %c0_151 = arith.constant 0 : index
      %c0_152 = arith.constant 0 : index
      %135 = vector.load %arg7[%c0_151, %c0_152] : memref<304x64xf32, #tpu.memory_space<vmem>>, vector<304x64xf32>
      tpu.vector_store %arg7[%c0_151, %c0_152], %134 {strides = array<i32>} : memref<304x64xf32, #tpu.memory_space<vmem>>, vector<304x64xf32>,
    } else {
    }
    %c0 = arith.constant 0 : index
    %c0_1 = arith.constant 0 : index
    %c0_2 = arith.constant 0 : index
    %3 = vector.load %arg3[%c0, %c0_1, %c0_2] : memref<1x380x16xbf16, #tpu.memory_space<vmem>>, vector<1x304x16xbf16>
    %4 = vector.shape_cast %3 : vector<1x304x16xbf16> to vector<304x16xbf16>
    %c0_3 = arith.constant 0 : index
    %c0_4 = arith.constant 0 : index
    %5 = vector.load %arg7[%c0_3, %c0_4] : memref<304x64xf32, #tpu.memory_space<vmem>>, vector<304x64xf32>
    %c0_5 = arith.constant 0 : index
    %c0_6 = arith.constant 0 : index
    %c0_7 = arith.constant 0 : index
    %6 = vector.load %arg4[%c0_5, %c0_6, %c0_7] : memref<16x16x64xbf16, #tpu.memory_space<vmem>>, vector<1x16x64xbf16>
    %7 = vector.shape_cast %6 : vector<1x16x64xbf16> to vector<16x64xbf16>
    %cst = arith.constant dense<0.000000e+00> : vector<304x64xf32>
    %8 = tpu.matmul %4, %7, %cst {dimension_numbers = #tpu.dot_dimension_numbers<[1], [0], [0], [1], [0, 0, 1, 1], [], []>} : vector<304x16xbf16>, vector<16x64xbf16>, vector<304x64xf32> -> vector<304x64xf32>
    %9 = arith.addf %5, %8 : vector<304x64xf32>
    %c0_8 = arith.constant 0 : index
    %c0_9 = arith.constant 0 : index
    %10 = vector.load %arg7[%c0_8, %c0_9] : memref<304x64xf32, #tpu.memory_space<vmem>>, vector<304x64xf32>
    tpu.vector_store %arg7[%c0_8, %c0_9], %9 {strides = array<i32>} : memref<304x64xf32, #tpu.memory_space<vmem>>, vector<304x64xf32>,
    %c0_10 = arith.constant 0 : index
    %c1 = arith.constant 1 : index
    %c0_11 = arith.constant 0 : index
    %11 = vector.load %arg3[%c0_10, %c1, %c0_11] : memref<1x380x16xbf16, #tpu.memory_space<vmem>>, vector<1x304x16xbf16>
    %12 = vector.shape_cast %11 : vector<1x304x16xbf16> to vector<304x16xbf16>
    %c0_12 = arith.constant 0 : index
    %c0_13 = arith.constant 0 : index
    %13 = vector.load %arg7[%c0_12, %c0_13] : memref<304x64xf32, #tpu.memory_space<vmem>>, vector<304x64xf32>
    %c1_14 = arith.constant 1 : index
    %c0_15 = arith.constant 0 : index
    %c0_16 = arith.constant 0 : index
    %14 = vector.load %arg4[%c1_14, %c0_15, %c0_16] : memref<16x16x64xbf16, #tpu.memory_space<vmem>>, vector<1x16x64xbf16>
    %15 = vector.shape_cast %14 : vector<1x16x64xbf16> to vector<16x64xbf16>
    %cst_17 = arith.constant dense<0.000000e+00> : vector<304x64xf32>
    %16 = tpu.matmul %12, %15, %cst_17 {dimension_numbers = #tpu.dot_dimension_numbers<[1], [0], [0], [1], [0, 0, 1, 1], [], []>} : vector<304x16xbf16>, vector<16x64xbf16>, vector<304x64xf32> -> vector<304x64xf32>
    %17 = arith.addf %13, %16 : vector<304x64xf32>
    %c0_18 = arith.constant 0 : index
    %c0_19 = arith.constant 0 : index
    %18 = vector.load %arg7[%c0_18, %c0_19] : memref<304x64xf32, #tpu.memory_space<vmem>>, vector<304x64xf32>
    tpu.vector_store %arg7[%c0_18, %c0_19], %17 {strides = array<i32>} : memref<304x64xf32, #tpu.memory_space<vmem>>, vector<304x64xf32>,
    %c0_20 = arith.constant 0 : index
    %c2 = arith.constant 2 : index
    %c0_21 = arith.constant 0 : index
    %19 = vector.load %arg3[%c0_20, %c2, %c0_21] : memref<1x380x16xbf16, #tpu.memory_space<vmem>>, vector<1x304x16xbf16>
    %20 = vector.shape_cast %19 : vector<1x304x16xbf16> to vector<304x16xbf16>
    %c0_22 = arith.constant 0 : index
    %c0_23 = arith.constant 0 : index
    %21 = vector.load %arg7[%c0_22, %c0_23] : memref<304x64xf32, #tpu.memory_space<vmem>>, vector<304x64xf32>
    %c2_24 = arith.constant 2 : index
    %c0_25 = arith.constant 0 : index
    %c0_26 = arith.constant 0 : index
    %22 = vector.load %arg4[%c2_24, %c0_25, %c0_26] : memref<16x16x64xbf16, #tpu.memory_space<vmem>>, vector<1x16x64xbf16>
    %23 = vector.shape_cast %22 : vector<1x16x64xbf16> to vector<16x64xbf16>
    %cst_27 = arith.constant dense<0.000000e+00> : vector<304x64xf32>
    %24 = tpu.matmul %20, %23, %cst_27 {dimension_numbers = #tpu.dot_dimension_numbers<[1], [0], [0], [1], [0, 0, 1, 1], [], []>} : vector<304x16xbf16>, vector<16x64xbf16>, vector<304x64xf32> -> vector<304x64xf32>
    %25 = arith.addf %21, %24 : vector<304x64xf32>
    %c0_28 = arith.constant 0 : index
    %c0_29 = arith.constant 0 : index
    %26 = vector.load %arg7[%c0_28, %c0_29] : memref<304x64xf32, #tpu.memory_space<vmem>>, vector<304x64xf32>
    tpu.vector_store %arg7[%c0_28, %c0_29], %25 {strides = array<i32>} : memref<304x64xf32, #tpu.memory_space<vmem>>, vector<304x64xf32>,
    %c0_30 = arith.constant 0 : index
    %c3 = arith.constant 3 : index
    %c0_31 = arith.constant 0 : index
    %27 = vector.load %arg3[%c0_30, %c3, %c0_31] : memref<1x380x16xbf16, #tpu.memory_space<vmem>>, vector<1x304x16xbf16>
    %28 = vector.shape_cast %27 : vector<1x304x16xbf16> to vector<304x16xbf16>
    %c0_32 = arith.constant 0 : index
    %c0_33 = arith.constant 0 : index
    %29 = vector.load %arg7[%c0_32, %c0_33] : memref<304x64xf32, #tpu.memory_space<vmem>>, vector<304x64xf32>
    %c3_34 = arith.constant 3 : index
    %c0_35 = arith.constant 0 : index
    %c0_36 = arith.constant 0 : index
    %30 = vector.load %arg4[%c3_34, %c0_35, %c0_36] : memref<16x16x64xbf16, #tpu.memory_space<vmem>>, vector<1x16x64xbf16>
    %31 = vector.shape_cast %30 : vector<1x16x64xbf16> to vector<16x64xbf16>
    %cst_37 = arith.constant dense<0.000000e+00> : vector<304x64xf32>
    %32 = tpu.matmul %28, %31, %cst_37 {dimension_numbers = #tpu.dot_dimension_numbers<[1], [0], [0], [1], [0, 0, 1, 1], [], []>} : vector<304x16xbf16>, vector<16x64xbf16>, vector<304x64xf32> -> vector<304x64xf32>
    %33 = arith.addf %29, %32 : vector<304x64xf32>
    %c0_38 = arith.constant 0 : index
    %c0_39 = arith.constant 0 : index
    %34 = vector.load %arg7[%c0_38, %c0_39] : memref<304x64xf32, #tpu.memory_space<vmem>>, vector<304x64xf32>
    tpu.vector_store %arg7[%c0_38, %c0_39], %33 {strides = array<i32>} : memref<304x64xf32, #tpu.memory_space<vmem>>, vector<304x64xf32>,
    %c0_40 = arith.constant 0 : index
    %c19 = arith.constant 19 : index
    %c0_41 = arith.constant 0 : index
    %35 = vector.load %arg3[%c0_40, %c19, %c0_41] : memref<1x380x16xbf16, #tpu.memory_space<vmem>>, vector<1x304x16xbf16>
    %36 = vector.shape_cast %35 : vector<1x304x16xbf16> to vector<304x16xbf16>
    %c0_42 = arith.constant 0 : index
    %c0_43 = arith.constant 0 : index
    %37 = vector.load %arg7[%c0_42, %c0_43] : memref<304x64xf32, #tpu.memory_space<vmem>>, vector<304x64xf32>
    %c4 = arith.constant 4 : index
    %c0_44 = arith.constant 0 : index
    %c0_45 = arith.constant 0 : index
    %38 = vector.load %arg4[%c4, %c0_44, %c0_45] : memref<16x16x64xbf16, #tpu.memory_space<vmem>>, vector<1x16x64xbf16>
    %39 = vector.shape_cast %38 : vector<1x16x64xbf16> to vector<16x64xbf16>
    %cst_46 = arith.constant dense<0.000000e+00> : vector<304x64xf32>
    %40 = tpu.matmul %36, %39, %cst_46 {dimension_numbers = #tpu.dot_dimension_numbers<[1], [0], [0], [1], [0, 0, 1, 1], [], []>} : vector<304x16xbf16>, vector<16x64xbf16>, vector<304x64xf32> -> vector<304x64xf32>
    %41 = arith.addf %37, %40 : vector<304x64xf32>
    %c0_47 = arith.constant 0 : index
    %c0_48 = arith.constant 0 : index
    %42 = vector.load %arg7[%c0_47, %c0_48] : memref<304x64xf32, #tpu.memory_space<vmem>>, vector<304x64xf32>
    tpu.vector_store %arg7[%c0_47, %c0_48], %41 {strides = array<i32>} : memref<304x64xf32, #tpu.memory_space<vmem>>, vector<304x64xf32>,
    %c0_49 = arith.constant 0 : index
    %c20 = arith.constant 20 : index
    %c0_50 = arith.constant 0 : index
    %43 = vector.load %arg3[%c0_49, %c20, %c0_50] : memref<1x380x16xbf16, #tpu.memory_space<vmem>>, vector<1x304x16xbf16>
    %44 = vector.shape_cast %43 : vector<1x304x16xbf16> to vector<304x16xbf16>
    %c0_51 = arith.constant 0 : index
    %c0_52 = arith.constant 0 : index
    %45 = vector.load %arg7[%c0_51, %c0_52] : memref<304x64xf32, #tpu.memory_space<vmem>>, vector<304x64xf32>
    %c5 = arith.constant 5 : index
    %c0_53 = arith.constant 0 : index
    %c0_54 = arith.constant 0 : index
    %46 = vector.load %arg4[%c5, %c0_53, %c0_54] : memref<16x16x64xbf16, #tpu.memory_space<vmem>>, vector<1x16x64xbf16>
    %47 = vector.shape_cast %46 : vector<1x16x64xbf16> to vector<16x64xbf16>
    %cst_55 = arith.constant dense<0.000000e+00> : vector<304x64xf32>
    %48 = tpu.matmul %44, %47, %cst_55 {dimension_numbers = #tpu.dot_dimension_numbers<[1], [0], [0], [1], [0, 0, 1, 1], [], []>} : vector<304x16xbf16>, vector<16x64xbf16>, vector<304x64xf32> -> vector<304x64xf32>
    %49 = arith.addf %45, %48 : vector<304x64xf32>
    %c0_56 = arith.constant 0 : index
    %c0_57 = arith.constant 0 : index
    %50 = vector.load %arg7[%c0_56, %c0_57] : memref<304x64xf32, #tpu.memory_space<vmem>>, vector<304x64xf32>
    tpu.vector_store %arg7[%c0_56, %c0_57], %49 {strides = array<i32>} : memref<304x64xf32, #tpu.memory_space<vmem>>, vector<304x64xf32>,
    %c0_58 = arith.constant 0 : index
    %c21 = arith.constant 21 : index
    %c0_59 = arith.constant 0 : index
    %51 = vector.load %arg3[%c0_58, %c21, %c0_59] : memref<1x380x16xbf16, #tpu.memory_space<vmem>>, vector<1x304x16xbf16>
    %52 = vector.shape_cast %51 : vector<1x304x16xbf16> to vector<304x16xbf16>
    %c0_60 = arith.constant 0 : index
    %c0_61 = arith.constant 0 : index
    %53 = vector.load %arg7[%c0_60, %c0_61] : memref<304x64xf32, #tpu.memory_space<vmem>>, vector<304x64xf32>
    %c6 = arith.constant 6 : index
    %c0_62 = arith.constant 0 : index
    %c0_63 = arith.constant 0 : index
    %54 = vector.load %arg4[%c6, %c0_62, %c0_63] : memref<16x16x64xbf16, #tpu.memory_space<vmem>>, vector<1x16x64xbf16>
    %55 = vector.shape_cast %54 : vector<1x16x64xbf16> to vector<16x64xbf16>
    %cst_64 = arith.constant dense<0.000000e+00> : vector<304x64xf32>
    %56 = tpu.matmul %52, %55, %cst_64 {dimension_numbers = #tpu.dot_dimension_numbers<[1], [0], [0], [1], [0, 0, 1, 1], [], []>} : vector<304x16xbf16>, vector<16x64xbf16>, vector<304x64xf32> -> vector<304x64xf32>
    %57 = arith.addf %53, %56 : vector<304x64xf32>
    %c0_65 = arith.constant 0 : index
    %c0_66 = arith.constant 0 : index
    %58 = vector.load %arg7[%c0_65, %c0_66] : memref<304x64xf32, #tpu.memory_space<vmem>>, vector<304x64xf32>
    tpu.vector_store %arg7[%c0_65, %c0_66], %57 {strides = array<i32>} : memref<304x64xf32, #tpu.memory_space<vmem>>, vector<304x64xf32>,
    %c0_67 = arith.constant 0 : index
    %c22 = arith.constant 22 : index
    %c0_68 = arith.constant 0 : index
    %59 = vector.load %arg3[%c0_67, %c22, %c0_68] : memref<1x380x16xbf16, #tpu.memory_space<vmem>>, vector<1x304x16xbf16>
    %60 = vector.shape_cast %59 : vector<1x304x16xbf16> to vector<304x16xbf16>
    %c0_69 = arith.constant 0 : index
    %c0_70 = arith.constant 0 : index
    %61 = vector.load %arg7[%c0_69, %c0_70] : memref<304x64xf32, #tpu.memory_space<vmem>>, vector<304x64xf32>
    %c7 = arith.constant 7 : index
    %c0_71 = arith.constant 0 : index
    %c0_72 = arith.constant 0 : index
    %62 = vector.load %arg4[%c7, %c0_71, %c0_72] : memref<16x16x64xbf16, #tpu.memory_space<vmem>>, vector<1x16x64xbf16>
    %63 = vector.shape_cast %62 : vector<1x16x64xbf16> to vector<16x64xbf16>
    %cst_73 = arith.constant dense<0.000000e+00> : vector<304x64xf32>
    %64 = tpu.matmul %60, %63, %cst_73 {dimension_numbers = #tpu.dot_dimension_numbers<[1], [0], [0], [1], [0, 0, 1, 1], [], []>} : vector<304x16xbf16>, vector<16x64xbf16>, vector<304x64xf32> -> vector<304x64xf32>
    %65 = arith.addf %61, %64 : vector<304x64xf32>
    %c0_74 = arith.constant 0 : index
    %c0_75 = arith.constant 0 : index
    %66 = vector.load %arg7[%c0_74, %c0_75] : memref<304x64xf32, #tpu.memory_space<vmem>>, vector<304x64xf32>
    tpu.vector_store %arg7[%c0_74, %c0_75], %65 {strides = array<i32>} : memref<304x64xf32, #tpu.memory_space<vmem>>, vector<304x64xf32>,
    %c0_76 = arith.constant 0 : index
    %c38 = arith.constant 38 : index
    %c0_77 = arith.constant 0 : index
    %67 = vector.load %arg3[%c0_76, %c38, %c0_77] : memref<1x380x16xbf16, #tpu.memory_space<vmem>>, vector<1x304x16xbf16>
    %68 = vector.shape_cast %67 : vector<1x304x16xbf16> to vector<304x16xbf16>
    %c0_78 = arith.constant 0 : index
    %c0_79 = arith.constant 0 : index
    %69 = vector.load %arg7[%c0_78, %c0_79] : memref<304x64xf32, #tpu.memory_space<vmem>>, vector<304x64xf32>
    %c8 = arith.constant 8 : index
    %c0_80 = arith.constant 0 : index
    %c0_81 = arith.constant 0 : index
    %70 = vector.load %arg4[%c8, %c0_80, %c0_81] : memref<16x16x64xbf16, #tpu.memory_space<vmem>>, vector<1x16x64xbf16>
    %71 = vector.shape_cast %70 : vector<1x16x64xbf16> to vector<16x64xbf16>
    %cst_82 = arith.constant dense<0.000000e+00> : vector<304x64xf32>
    %72 = tpu.matmul %68, %71, %cst_82 {dimension_numbers = #tpu.dot_dimension_numbers<[1], [0], [0], [1], [0, 0, 1, 1], [], []>} : vector<304x16xbf16>, vector<16x64xbf16>, vector<304x64xf32> -> vector<304x64xf32>
    %73 = arith.addf %69, %72 : vector<304x64xf32>
    %c0_83 = arith.constant 0 : index
    %c0_84 = arith.constant 0 : index
    %74 = vector.load %arg7[%c0_83, %c0_84] : memref<304x64xf32, #tpu.memory_space<vmem>>, vector<304x64xf32>
    tpu.vector_store %arg7[%c0_83, %c0_84], %73 {strides = array<i32>} : memref<304x64xf32, #tpu.memory_space<vmem>>, vector<304x64xf32>,
    %c0_85 = arith.constant 0 : index
    %c39 = arith.constant 39 : index
    %c0_86 = arith.constant 0 : index
    %75 = vector.load %arg3[%c0_85, %c39, %c0_86] : memref<1x380x16xbf16, #tpu.memory_space<vmem>>, vector<1x304x16xbf16>
    %76 = vector.shape_cast %75 : vector<1x304x16xbf16> to vector<304x16xbf16>
    %c0_87 = arith.constant 0 : index
    %c0_88 = arith.constant 0 : index
    %77 = vector.load %arg7[%c0_87, %c0_88] : memref<304x64xf32, #tpu.memory_space<vmem>>, vector<304x64xf32>
    %c9 = arith.constant 9 : index
    %c0_89 = arith.constant 0 : index
    %c0_90 = arith.constant 0 : index
    %78 = vector.load %arg4[%c9, %c0_89, %c0_90] : memref<16x16x64xbf16, #tpu.memory_space<vmem>>, vector<1x16x64xbf16>
    %79 = vector.shape_cast %78 : vector<1x16x64xbf16> to vector<16x64xbf16>
    %cst_91 = arith.constant dense<0.000000e+00> : vector<304x64xf32>
    %80 = tpu.matmul %76, %79, %cst_91 {dimension_numbers = #tpu.dot_dimension_numbers<[1], [0], [0], [1], [0, 0, 1, 1], [], []>} : vector<304x16xbf16>, vector<16x64xbf16>, vector<304x64xf32> -> vector<304x64xf32>
    %81 = arith.addf %77, %80 : vector<304x64xf32>
    %c0_92 = arith.constant 0 : index
    %c0_93 = arith.constant 0 : index
    %82 = vector.load %arg7[%c0_92, %c0_93] : memref<304x64xf32, #tpu.memory_space<vmem>>, vector<304x64xf32>
    tpu.vector_store %arg7[%c0_92, %c0_93], %81 {strides = array<i32>} : memref<304x64xf32, #tpu.memory_space<vmem>>, vector<304x64xf32>,
    %c0_94 = arith.constant 0 : index
    %c40 = arith.constant 40 : index
    %c0_95 = arith.constant 0 : index
    %83 = vector.load %arg3[%c0_94, %c40, %c0_95] : memref<1x380x16xbf16, #tpu.memory_space<vmem>>, vector<1x304x16xbf16>
    %84 = vector.shape_cast %83 : vector<1x304x16xbf16> to vector<304x16xbf16>
    %c0_96 = arith.constant 0 : index
    %c0_97 = arith.constant 0 : index
    %85 = vector.load %arg7[%c0_96, %c0_97] : memref<304x64xf32, #tpu.memory_space<vmem>>, vector<304x64xf32>
    %c10 = arith.constant 10 : index
    %c0_98 = arith.constant 0 : index
    %c0_99 = arith.constant 0 : index
    %86 = vector.load %arg4[%c10, %c0_98, %c0_99] : memref<16x16x64xbf16, #tpu.memory_space<vmem>>, vector<1x16x64xbf16>
    %87 = vector.shape_cast %86 : vector<1x16x64xbf16> to vector<16x64xbf16>
    %cst_100 = arith.constant dense<0.000000e+00> : vector<304x64xf32>
    %88 = tpu.matmul %84, %87, %cst_100 {dimension_numbers = #tpu.dot_dimension_numbers<[1], [0], [0], [1], [0, 0, 1, 1], [], []>} : vector<304x16xbf16>, vector<16x64xbf16>, vector<304x64xf32> -> vector<304x64xf32>
    %89 = arith.addf %85, %88 : vector<304x64xf32>
    %c0_101 = arith.constant 0 : index
    %c0_102 = arith.constant 0 : index
    %90 = vector.load %arg7[%c0_101, %c0_102] : memref<304x64xf32, #tpu.memory_space<vmem>>, vector<304x64xf32>
    tpu.vector_store %arg7[%c0_101, %c0_102], %89 {strides = array<i32>} : memref<304x64xf32, #tpu.memory_space<vmem>>, vector<304x64xf32>,
    %c0_103 = arith.constant 0 : index
    %c41 = arith.constant 41 : index
    %c0_104 = arith.constant 0 : index
    %91 = vector.load %arg3[%c0_103, %c41, %c0_104] : memref<1x380x16xbf16, #tpu.memory_space<vmem>>, vector<1x304x16xbf16>
    %92 = vector.shape_cast %91 : vector<1x304x16xbf16> to vector<304x16xbf16>
    %c0_105 = arith.constant 0 : index
    %c0_106 = arith.constant 0 : index
    %93 = vector.load %arg7[%c0_105, %c0_106] : memref<304x64xf32, #tpu.memory_space<vmem>>, vector<304x64xf32>
    %c11 = arith.constant 11 : index
    %c0_107 = arith.constant 0 : index
    %c0_108 = arith.constant 0 : index
    %94 = vector.load %arg4[%c11, %c0_107, %c0_108] : memref<16x16x64xbf16, #tpu.memory_space<vmem>>, vector<1x16x64xbf16>
    %95 = vector.shape_cast %94 : vector<1x16x64xbf16> to vector<16x64xbf16>
    %cst_109 = arith.constant dense<0.000000e+00> : vector<304x64xf32>
    %96 = tpu.matmul %92, %95, %cst_109 {dimension_numbers = #tpu.dot_dimension_numbers<[1], [0], [0], [1], [0, 0, 1, 1], [], []>} : vector<304x16xbf16>, vector<16x64xbf16>, vector<304x64xf32> -> vector<304x64xf32>
    %97 = arith.addf %93, %96 : vector<304x64xf32>
    %c0_110 = arith.constant 0 : index
    %c0_111 = arith.constant 0 : index
    %98 = vector.load %arg7[%c0_110, %c0_111] : memref<304x64xf32, #tpu.memory_space<vmem>>, vector<304x64xf32>
    tpu.vector_store %arg7[%c0_110, %c0_111], %97 {strides = array<i32>} : memref<304x64xf32, #tpu.memory_space<vmem>>, vector<304x64xf32>,
    %c0_112 = arith.constant 0 : index
    %c57 = arith.constant 57 : index
    %c0_113 = arith.constant 0 : index
    %99 = vector.load %arg3[%c0_112, %c57, %c0_113] : memref<1x380x16xbf16, #tpu.memory_space<vmem>>, vector<1x304x16xbf16>
    %100 = vector.shape_cast %99 : vector<1x304x16xbf16> to vector<304x16xbf16>
    %c0_114 = arith.constant 0 : index
    %c0_115 = arith.constant 0 : index
    %101 = vector.load %arg7[%c0_114, %c0_115] : memref<304x64xf32, #tpu.memory_space<vmem>>, vector<304x64xf32>
    %c12 = arith.constant 12 : index
    %c0_116 = arith.constant 0 : index
    %c0_117 = arith.constant 0 : index
    %102 = vector.load %arg4[%c12, %c0_116, %c0_117] : memref<16x16x64xbf16, #tpu.memory_space<vmem>>, vector<1x16x64xbf16>
    %103 = vector.shape_cast %102 : vector<1x16x64xbf16> to vector<16x64xbf16>
    %cst_118 = arith.constant dense<0.000000e+00> : vector<304x64xf32>
    %104 = tpu.matmul %100, %103, %cst_118 {dimension_numbers = #tpu.dot_dimension_numbers<[1], [0], [0], [1], [0, 0, 1, 1], [], []>} : vector<304x16xbf16>, vector<16x64xbf16>, vector<304x64xf32> -> vector<304x64xf32>
    %105 = arith.addf %101, %104 : vector<304x64xf32>
    %c0_119 = arith.constant 0 : index
    %c0_120 = arith.constant 0 : index
    %106 = vector.load %arg7[%c0_119, %c0_120] : memref<304x64xf32, #tpu.memory_space<vmem>>, vector<304x64xf32>
    tpu.vector_store %arg7[%c0_119, %c0_120], %105 {strides = array<i32>} : memref<304x64xf32, #tpu.memory_space<vmem>>, vector<304x64xf32>,
    %c0_121 = arith.constant 0 : index
    %c58 = arith.constant 58 : index
    %c0_122 = arith.constant 0 : index
    %107 = vector.load %arg3[%c0_121, %c58, %c0_122] : memref<1x380x16xbf16, #tpu.memory_space<vmem>>, vector<1x304x16xbf16>
    %108 = vector.shape_cast %107 : vector<1x304x16xbf16> to vector<304x16xbf16>
    %c0_123 = arith.constant 0 : index
    %c0_124 = arith.constant 0 : index
    %109 = vector.load %arg7[%c0_123, %c0_124] : memref<304x64xf32, #tpu.memory_space<vmem>>, vector<304x64xf32>
    %c13 = arith.constant 13 : index
    %c0_125 = arith.constant 0 : index
    %c0_126 = arith.constant 0 : index
    %110 = vector.load %arg4[%c13, %c0_125, %c0_126] : memref<16x16x64xbf16, #tpu.memory_space<vmem>>, vector<1x16x64xbf16>
    %111 = vector.shape_cast %110 : vector<1x16x64xbf16> to vector<16x64xbf16>
    %cst_127 = arith.constant dense<0.000000e+00> : vector<304x64xf32>
    %112 = tpu.matmul %108, %111, %cst_127 {dimension_numbers = #tpu.dot_dimension_numbers<[1], [0], [0], [1], [0, 0, 1, 1], [], []>} : vector<304x16xbf16>, vector<16x64xbf16>, vector<304x64xf32> -> vector<304x64xf32>
    %113 = arith.addf %109, %112 : vector<304x64xf32>
    %c0_128 = arith.constant 0 : index
    %c0_129 = arith.constant 0 : index
    %114 = vector.load %arg7[%c0_128, %c0_129] : memref<304x64xf32, #tpu.memory_space<vmem>>, vector<304x64xf32>
    tpu.vector_store %arg7[%c0_128, %c0_129], %113 {strides = array<i32>} : memref<304x64xf32, #tpu.memory_space<vmem>>, vector<304x64xf32>,
    %c0_130 = arith.constant 0 : index
    %c59 = arith.constant 59 : index
    %c0_131 = arith.constant 0 : index
    %115 = vector.load %arg3[%c0_130, %c59, %c0_131] : memref<1x380x16xbf16, #tpu.memory_space<vmem>>, vector<1x304x16xbf16>
    %116 = vector.shape_cast %115 : vector<1x304x16xbf16> to vector<304x16xbf16>
    %c0_132 = arith.constant 0 : index
    %c0_133 = arith.constant 0 : index
    %117 = vector.load %arg7[%c0_132, %c0_133] : memref<304x64xf32, #tpu.memory_space<vmem>>, vector<304x64xf32>
    %c14 = arith.constant 14 : index
    %c0_134 = arith.constant 0 : index
    %c0_135 = arith.constant 0 : index
    %118 = vector.load %arg4[%c14, %c0_134, %c0_135] : memref<16x16x64xbf16, #tpu.memory_space<vmem>>, vector<1x16x64xbf16>
    %119 = vector.shape_cast %118 : vector<1x16x64xbf16> to vector<16x64xbf16>
    %cst_136 = arith.constant dense<0.000000e+00> : vector<304x64xf32>
    %120 = tpu.matmul %116, %119, %cst_136 {dimension_numbers = #tpu.dot_dimension_numbers<[1], [0], [0], [1], [0, 0, 1, 1], [], []>} : vector<304x16xbf16>, vector<16x64xbf16>, vector<304x64xf32> -> vector<304x64xf32>
    %121 = arith.addf %117, %120 : vector<304x64xf32>
    %c0_137 = arith.constant 0 : index
    %c0_138 = arith.constant 0 : index
    %122 = vector.load %arg7[%c0_137, %c0_138] : memref<304x64xf32, #tpu.memory_space<vmem>>, vector<304x64xf32>
    tpu.vector_store %arg7[%c0_137, %c0_138], %121 {strides = array<i32>} : memref<304x64xf32, #tpu.memory_space<vmem>>, vector<304x64xf32>,
    %c0_139 = arith.constant 0 : index
    %c60 = arith.constant 60 : index
    %c0_140 = arith.constant 0 : index
    %123 = vector.load %arg3[%c0_139, %c60, %c0_140] : memref<1x380x16xbf16, #tpu.memory_space<vmem>>, vector<1x304x16xbf16>
    %124 = vector.shape_cast %123 : vector<1x304x16xbf16> to vector<304x16xbf16>
    %c0_141 = arith.constant 0 : index
    %c0_142 = arith.constant 0 : index
    %125 = vector.load %arg7[%c0_141, %c0_142] : memref<304x64xf32, #tpu.memory_space<vmem>>, vector<304x64xf32>
    %c15 = arith.constant 15 : index
    %c0_143 = arith.constant 0 : index
    %c0_144 = arith.constant 0 : index
    %126 = vector.load %arg4[%c15, %c0_143, %c0_144] : memref<16x16x64xbf16, #tpu.memory_space<vmem>>, vector<1x16x64xbf16>
    %127 = vector.shape_cast %126 : vector<1x16x64xbf16> to vector<16x64xbf16>
    %cst_145 = arith.constant dense<0.000000e+00> : vector<304x64xf32>
    %128 = tpu.matmul %124, %127, %cst_145 {dimension_numbers = #tpu.dot_dimension_numbers<[1], [0], [0], [1], [0, 0, 1, 1], [], []>} : vector<304x16xbf16>, vector<16x64xbf16>, vector<304x64xf32> -> vector<304x64xf32>
    %129 = arith.addf %125, %128 : vector<304x64xf32>
    %c0_146 = arith.constant 0 : index
    %c0_147 = arith.constant 0 : index
    %130 = vector.load %arg7[%c0_146, %c0_147] : memref<304x64xf32, #tpu.memory_space<vmem>>, vector<304x64xf32>
    tpu.vector_store %arg7[%c0_146, %c0_147], %129 {strides = array<i32>} : memref<304x64xf32, #tpu.memory_space<vmem>>, vector<304x64xf32>,
    %c0_i32_148 = arith.constant 0 : i32
    %131 = arith.cmpi eq, %arg2, %c0_i32_148 : i32
    %132 = arith.extui %131 : i1 to i32
    %c0_i32_149 = arith.constant 0 : i32
    %133 = arith.cmpi ne, %132, %c0_i32_149 : i32
    scf.if %133 {
      %c0_150 = arith.constant 0 : index
      %c0_151 = arith.constant 0 : index
      %134 = vector.load %arg7[%c0_150, %c0_151] : memref<304x64xf32, #tpu.memory_space<vmem>>, vector<304x64xf32>
      %c0_152 = arith.constant 0 : index
      %c0_153 = arith.constant 0 : index
      %135 = vector.load %arg5[%c0_152, %c0_153] : memref<1x64xf32, #tpu.memory_space<vmem>>, vector<1x64xf32>
      %136 = vector.broadcast %135 : vector<1x64xf32> to vector<304x64xf32>
      %137 = arith.addf %134, %136 : vector<304x64xf32>
      %cst_154 = arith.constant 0.000000e+00 : f32
      %138 = vector.broadcast %cst_154 : f32 to vector<304x64xf32>
      %139 = arith.maximumf %137, %138 : vector<304x64xf32>
      %140 = arith.truncf %139 : vector<304x64xf32> to vector<304x64xbf16>
      %c0_155 = arith.constant 0 : index
      %c0_156 = arith.constant 0 : index
      %c0_157 = arith.constant 0 : index
      %141 = vector.load %arg6[%c0_155, %c0_156, %c0_157] : memref<1x304x64xbf16, #tpu.memory_space<vmem>>, vector<1x304x64xbf16>
      %142 = vector.shape_cast %141 : vector<1x304x64xbf16> to vector<304x64xbf16>
      %143 = vector.shape_cast %140 : vector<304x64xbf16> to vector<1x304x64xbf16>
      tpu.vector_store %arg6[%c0_155, %c0_156, %c0_157], %143 {strides = array<i32>} : memref<1x304x64xbf16, #tpu.memory_space<vmem>>, vector<1x304x64xbf16>,
    } else {
    }
    return
  }
  func.func @transform_0(%arg0: i32, %arg1: i32, %arg2: i32) -> (i32, i32, i32) {
    %c0_i32 = arith.constant 0 : i32
    %c0_i32_0 = arith.constant 0 : i32
    return %arg0, %c0_i32, %arg2 : i32, i32, i32
  }
  func.func @transform_1(%arg0: i32, %arg1: i32, %arg2: i32) -> (i32, i32, i32) {
    %c0_i32 = arith.constant 0 : i32
    %c0_i32_0 = arith.constant 0 : i32
    return %c0_i32, %arg2, %arg1 : i32, i32, i32
  }
  func.func @transform_2(%arg0: i32, %arg1: i32, %arg2: i32) -> (i32, i32) {
    %c0_i32 = arith.constant 0 : i32
    %c0_i32_0 = arith.constant 0 : i32
    return %c0_i32, %arg1 : i32, i32
  }
  func.func @transform_3(%arg0: i32, %arg1: i32, %arg2: i32) -> (i32, i32, i32) {
    %c0_i32 = arith.constant 0 : i32
    %c0_i32_0 = arith.constant 0 : i32
    return %arg0, %c0_i32, %arg1 : i32, i32, i32
  }
}

</mosaic_0001>

<bundles_post_ra>
// kernel: tpu_custom_call.1
= control target key start
LH: loop header
LB: loop body
LE: loop exit
PB: predicated region body
PF: predicated region fallthrough
CT: control target
= control target key end

     0   :  { %s13094_s12 = smov 0   ;;  %s13096_s13 = smov 0   ;;  %s15923_s0 = inlined_call_operand.vmem [shape: bf16[2,380,16], index: 0, kind: input, shape index: {}]   ;;  %s15924_s1 = inlined_call_operand.vmem [shape: bf16[16,16,64], index: 1, kind: input, shape index: {}]   ;;  %s15925_s2 = inlined_call_operand.vmem [shape: f32[1,64], index: 2, kind: input, shape index: {}]   ;;  %s15926_s3 = inlined_call_operand.vmem [shape: bf16[2,304,64], index: 3, kind: output, shape index: {}]  }
   0x1   :  { %s13098_s14 = smov 0  }
   0x2 LB: > { %s32_s15 = sadd.s32 1, %s13066_s13  ;;  %p10367_p0 = scmp.ge.s32.totalorder %s13070_s14, 1  ;;  %s13070_s14 = sphi %s13098_s14, %s13_s14   ;;  %s13066_s13 = sphi %s13096_s13, %s15928_s13   ;;  %s13062_s12 = sphi %s13094_s12, %s15927_s12  }
   0x3   : > { %p34_p1 = scmp.ge.s32.totalorder %s32_s15, 2  ;;  %p187_p2 = scmp.lt.s32.totalorder %s13070_s14, 3 }
   0x5   : > { %s15930_s15 = smov (%p34_p1, %s32_s15), 0  ;;  %p188_p3 = pnand %p10367_p0, %p187_p2 }
   0x6   : > { %v12713_v0 = vld [vmem:[%s15924_s1] sm:$0xff] (!%p188_p3)   ;;  %v13072_v1 = vmov (!%p188_p3), 0.0   ;;  %p228_p4 = scmp.lt.s32.totalorder (!%p188_p3), %s13062_s12, 1  ;;  %vm13073_vm0 = vmmov (!%p188_p3), 0   ;;  %v12716_v2 = vld [vmem:[%s15924_s1 + $0x8] sm:$0xff] (!%p188_p3)   ;;  %vm479_vm1 = vcmask (!%p188_p3), 130048  }
   0x7   : > { %191 = sbr.rel (%p188_p3) target bundleno = 1468 (0x5bc), region = 32  ;;  %11437 = vmatprep.subr.bf16.mxu0 (!%p188_p3), %v13072_v1  ;;  %11515 = vmatprep.subr.bf16.mxu1 (!%p188_p3), %v13072_v1  ;;  %v12715_v3 = vld [vmem:[%s15924_s1 + $0x10] sm:$0xff] (!%p188_p3)   ;;  %vm977_vm2 = vsmask.f32 (!%p188_p3), 7424  ;;  %v12720_v14 = vld [vmem:[%s15924_s1 + $0x18] sm:$0xff] (!%p188_p3)   ;;  %vm261_vm3 = vcmask (!%p188_p3), 523264  }
   0x8   : > { %11438 = vmatpush3.bf16.msra.mxu0 (!%p188_p3), %v12713_v0  ;;  %11439 = vmatprep.mubr.msk.bf16.mxu0 (!%p188_p3), %vm13073_vm0, %v13072_v1  ;;  %262 = vst.msk [vmem:[#allocation2] sm:$0xff] (!%p188_p3), %vm261_vm3, %v13072_v1  ;;  %263 = vst.msk [vmem:[#allocation2 + $0x8] sm:$0xff] (!%p188_p3), %vm261_vm3, %v13072_v1  ;;  %vm1636_vm4 = vcmask (!%p188_p3), 1046528   ;;  %vm2178_vm5 = vsmask.f32 (!%p188_p3), 6400  ;;  %vm3541_vm6 = vcmask (!%p188_p3), 1045504  }
   0x9   : > { %11593 = vmatprep.subr.bf16.mxu0 (!%p188_p3), %v13072_v1  ;;  %11517 = vmatprep.mubr.msk.bf16.mxu1 (!%p188_p3), %vm13073_vm0, %v13072_v1  ;;  %264 = vst.msk [vmem:[#allocation2 + $0x10] sm:$0xff] (!%p188_p3), %vm261_vm3, %v13072_v1  ;;  %265 = vst.msk [vmem:[#allocation2 + $0x18] sm:$0xff] (!%p188_p3), %vm261_vm3, %v13072_v1  ;;  %vm4083_vm7 = vsmask.f32 (!%p188_p3), 5376  ;;  %vm4765_vm8 = vcmask (!%p188_p3), 1044480   ;;  %vm10205_vm10 = vcmask (!%p188_p3), 519168  }
   0xa   : > { %11516 = vmatpush3.bf16.msra.mxu1 (!%p188_p3), %v12716_v2  ;;  %266 = vst.msk [vmem:[#allocation2 + $0x20] sm:$0xff] (!%p188_p3), %vm261_vm3, %v13072_v1  ;;  %267 = vst.msk [vmem:[#allocation2 + $0x28] sm:$0xff] (!%p188_p3), %vm261_vm3, %v13072_v1  ;;  %vm5848_vm9 = vsmask.f32 (!%p188_p3), 4352 }
   0xb   : > { %11671 = vmatprep.subr.bf16.mxu1 (!%p188_p3), %v13072_v1  ;;  %268 = vst.msk [vmem:[#allocation2 + $0x30] sm:$0xff] (!%p188_p3), %vm261_vm3, %v13072_v1  ;;  %269 = vst.msk [vmem:[#allocation2 + $0x38] sm:$0xff] (!%p188_p3), %vm261_vm3, %v13072_v1 }
   0xc   : > { %270 = vst.msk [vmem:[#allocation2 + $0x40] sm:$0xff] (!%p188_p3), %vm261_vm3, %v13072_v1  ;;  %271 = vst.msk [vmem:[#allocation2 + $0x48] sm:$0xff] (!%p188_p3), %vm261_vm3, %v13072_v1 }
   0xd   : > { %272 = vst.msk [vmem:[#allocation2 + $0x50] sm:$0xff] (!%p188_p3), %vm261_vm3, %v13072_v1  ;;  %273 = vst.msk [vmem:[#allocation2 + $0x58] sm:$0xff] (!%p188_p3), %vm261_vm3, %v13072_v1 }
   0xe   : > { %s15932_s12 = smov (!%p228_p4, %s13062_s12), 1  ;;  %274 = vst.msk [vmem:[#allocation2 + $0x60] sm:$0xff] %vm261_vm3, %v13072_v1  ;;  %275 = vst.msk [vmem:[#allocation2 + $0x68] sm:$0xff] %vm261_vm3, %v13072_v1 }
   0xf   : > { %s12685_s20 = smul.u32 192, %s15932_s12  ;;  %276 = vst.msk [vmem:[#allocation2 + $0x70] sm:$0xff] %vm261_vm3, %v13072_v1  ;;  %277 = vst.msk [vmem:[#allocation2 + $0x78] sm:$0xff] %vm261_vm3, %v13072_v1 }
  0x10   : > { %278 = vst.msk [vmem:[#allocation2 + $0x80] sm:$0xff] %vm261_vm3, %v13072_v1  ;;  %279 = vst.msk [vmem:[#allocation2 + $0x88] sm:$0xff] %vm261_vm3, %v13072_v1  ;;  %s12686_s4 = smul.u32 152, %s15932_s12 }
  0x11   : > { %s13135_s25 = scalar_lea.vmem %s15923_s0, %s12685_s20  ;;  %280 = vst.msk [vmem:[#allocation2 + $0x90] sm:$0xff] %vm261_vm3, %v13072_v1  ;;  %281 = vst.msk [vmem:[#allocation2 + $0x98] sm:$0xff] %vm261_vm3, %v13072_v1 }
  0x12   : > { %v12714_v4 = vld [vmem:[%s13135_s25] sm:$0xff]   ;;  %v12718_v6 = vld [vmem:[%s13135_s25 + $0x8] sm:$0xff]   ;;  %v12721_v10 = vld [vmem:[%s13135_s25 + $0x10] sm:$0xff]   ;;  %282 = vst.msk [vmem:[#allocation2 + $0xa0] sm:$0xff] %vm261_vm3, %v13072_v1  ;;  %s15735_s12 = scalar_lea.vmem %s15926_s3, %s12686_s4 }
  0x13   : > { %11440 = vmatmul.mubr.msk.bf16.vlgmr.msra.gmra.mrb[0].mxu0 %vm479_vm1, %v12714_v4  ;;  %v12717_v5 = vld [vmem:[%s13135_s25] sm:$0xff]   ;;  %v986_v9 = vshll.u32 %v12718_v6, 16  ;;  %v12719_v13 = vld [vmem:[%s13135_s25 + $0x8] sm:$0xff]   ;;  %v990_v16 = vshrl.u32 %v12718_v6, 16  ;;  %v994_v17 = vshll.u32 %v12721_v10, 16  ;;  %v12723_v21 = vld [vmem:[%s13135_s25 + $0x18] sm:$0xff]  }
  0x14   : > { %11594 = vmatpush3.bf16.msra.mxu0 %v12715_v3  ;;  %11443 = vmatprep.mubr.msk.bf16.mxu0 %vm13073_vm0, %v13072_v1  ;;  %v979_v7 = vshrl.u32 %v12717_v5, 16  ;;  %v981_v8 = vshll.u32 %v12717_v5, 16  ;;  %v12722_v22 = vld [vmem:[%s13135_s25 + $0x10] sm:$0xff]   ;;  %v998_v24 = vshrl.u32 %v12721_v10, 16  ;;  %v1002_v25 = vshll.u32 %v12723_v21, 16  ;;  %v12725_v26 = vld [vmem:[%s13135_s25 + $0x20] sm:$0xff]  }
  0x15   : > { %11749 = vmatprep.subr.bf16.mxu0 %v13072_v1  ;;  %v988_v12 = vrot.slane %v986_v9, 1  ;;  %v996_v20 = vrot.slane %v994_v17, 1  ;;  %v12724_v29 = vld [vmem:[%s13135_s25 + $0x18] sm:$0xff]   ;;  %v1010_v30 = vshll.u32 %v12725_v26, 16  ;;  %v1006_v32 = vshrl.u32 %v12723_v21, 16  ;;  %v12727_v34 = vld [vmem:[%s13135_s25 + $0x28] sm:$0xff]  }
  0x16   : > { %v983_v11 = vrot.slane %v981_v8, 1  ;;  %v1004_v28 = vrot.slane %v1002_v25, 1  ;;  %v12726_v36 = vld [vmem:[%s13135_s25 + $0x20] sm:$0xff]   ;;  %v1014_v38 = vshrl.u32 %v12725_v26, 16  ;;  %v1018_v39 = vshll.u32 %v12727_v34, 16  ;;  %v12729_v42 = vld [vmem:[%s13135_s25 + $0x30] sm:$0xff]  }
  0x17   : > { %v992_v19 = vor.u32 %v990_v16, %v988_v12  ;;  %v1000_v27 = vor.u32 %v998_v24, %v996_v20  ;;  %v1012_v33 = vrot.slane %v1010_v30, 1  ;;  %v12728_v43 = vld [vmem:[%s13135_s25 + $0x28] sm:$0xff]   ;;  %v1022_v45 = vshrl.u32 %v12727_v34, 16  ;;  %v12731_v49 = vld [vmem:[%s13135_s25 + $0x38] sm:$0xff]   ;;  %v12730_v50 = vld [vmem:[%s13135_s25 + $0x30] sm:$0xff]   ;;  %283 = vst.msk [vmem:[#allocation2 + $0xa8] sm:$0xff] %vm261_vm3, %v13072_v1 }
  0x18   : > { %v984_v15 = vor.u32 %v983_v11, %v979_v7  ;;  %v1008_v35 = vor.u32 %v1006_v32, %v1004_v28  ;;  %v1020_v41 = vrot.slane %v1018_v39, 1  ;;  %v1026_v46 = vshll.u32 %v12729_v42, 16  ;;  %v12733_v56 = vld [vmem:[%s13135_s25 + $0x40] sm:$0xff]   ;;  %v12732_v57 = vld [vmem:[%s13135_s25 + $0x38] sm:$0xff]   ;;  %v12735_v61 = vld [vmem:[%s13135_s25 + $0x48] sm:$0xff]   ;;  %284 = vst.msk [vmem:[#allocation2 + $0xb0] sm:$0xff] %vm261_vm3, %v13072_v1 }
  0x19   : > { %v997_v23 = vsel %vm977_vm2, %v992_v19, %v996_v20  ;;  %v1005_v31 = vsel %vm977_vm2, %v1000_v27, %v1004_v28  ;;  %v1016_v40 = vor.u32 %v1014_v38, %v1012_v33  ;;  %v1030_v52 = vshrl.u32 %v12729_v42, 16  ;;  %v12734_v0 = vld [vmem:[%s13135_s25 + $0x40] sm:$0xff]   ;;  %v13216_v5 = vld [vmem:[%s13135_s25 + $0x50] sm:$0xff]   ;;  %v12736_v8 = vld [vmem:[%s13135_s25 + $0x48] sm:$0xff]   ;;  %285 = vst.msk [vmem:[#allocation2 + $0xb8] sm:$0xff] %vm261_vm3, %v13072_v1 }
  0x1a   : > { %v989_v18 = vsel %vm977_vm2, %v984_v15, %v988_v12  ;;  %v1013_v37 = vsel %vm977_vm2, %v1008_v35, %v1012_v33  ;;  %v1024_v47 = vor.u32 %v1022_v45, %v1020_v41  ;;  %v1028_v48 = vrot.slane %v1026_v46, 1  ;;  %v13228_v12 = vld [vmem:[%s13135_s25 + $0x58] sm:$0xff]   ;;  %v12738_v15 = vld [vmem:[%s13135_s25 + $0x50] sm:$0xff]   ;;  %286 = vst.msk [vmem:[#allocation2 + $0xc0] sm:$0xff] %vm261_vm3, %v13072_v1  ;;  %287 = vst.msk [vmem:[#allocation2 + $0xc8] sm:$0xff] %vm261_vm3, %v13072_v1 }
  0x1b   : > { %11444 = vmatmul.mubr.msk.bf16.gmra.mrb[4].mxu0 %vm479_vm1, %v12719_v13  ;;  %11518 = vmatmul.mubr.msk.bf16.vlgmr.msra.gmra.mrb[0].mxu1 %vm479_vm1, %v989_v18  ;;  %v1021_v44 = vsel %vm977_vm2, %v1016_v40, %v1020_v41  ;;  %v1034_v53 = vshll.u32 %v12731_v49, 16  ;;  %v1038_v59 = vshrl.u32 %v12731_v49, 16  ;;  %v1042_v60 = vshll.u32 %v12733_v56, 16  ;;  %288 = vst.msk [vmem:[#allocation2 + $0xd0] sm:$0xff] %vm261_vm3, %v13072_v1  ;;  %289 = vst.msk [vmem:[#allocation2 + $0xd8] sm:$0xff] %vm261_vm3, %v13072_v1  ;;  %v12741_v21 = vld [vmem:[%s13135_s25 + $0x60] sm:$0xff]  }
  0x1c   : > { %11447 = vmatprep.mubr.msk.bf16.mxu0 %vm13073_vm0, %v13072_v1  ;;  %11672 = vmatpush3.bf16.msra.mxu1 %v12720_v14  ;;  %v1029_v51 = vsel %vm977_vm2, %v1024_v47, %v1028_v48  ;;  %v1032_v54 = vor.u32 %v1030_v52, %v1028_v48  ;;  %v1046_v2 = vshrl.u32 %v12733_v56, 16  ;;  %v1050_v3 = vshll.u32 %v12735_v61, 16  ;;  %290 = vst.msk [vmem:[#allocation2 + $0xe0] sm:$0xff] %vm261_vm3, %v13072_v1  ;;  %v12743_v26 = vld [vmem:[%s13135_s25 + $0x68] sm:$0xff]   ;;  %v12745_v33 = vld [vmem:[%s13135_s25 + $0x70] sm:$0xff]   ;;  %v12747_v40 = vld [vmem:[%s13135_s25 + $0x78] sm:$0xff]  }
  0x1d   : > { %11521 = vmatprep.mubr.msk.bf16.mxu1 %vm13073_vm0, %v13072_v1  ;;  %11827 = vmatprep.subr.bf16.mxu1 %v13072_v1  ;;  %v1036_v55 = vrot.slane %v1034_v53, 1  ;;  %v1044_v63 = vrot.slane %v1042_v60, 1  ;;  %v1054_v9 = vshrl.u32 %v12735_v61, 16  ;;  %v1058_v10 = vshll.u32 %v13216_v5, 16  ;;  %291 = vst.msk [vmem:[#allocation2 + $0xe8] sm:$0xff] %vm261_vm3, %v13072_v1  ;;  %292 = vst.msk [vmem:[#allocation2 + $0xf0] sm:$0xff] %vm261_vm3, %v13072_v1 }
  0x1e   : > { %v1052_v7 = vrot.slane %v1050_v3, 1  ;;  %v1062_v16 = vshrl.u32 %v13216_v5, 16  ;;  %v1066_v17 = vshll.u32 %v13228_v12, 16  ;;  %293 = vst.msk [vmem:[#allocation2 + $0xf8] sm:$0xff] %vm261_vm3, %v13072_v1  ;;  %294 = vst.msk [vmem:[#allocation2 + $0x100] sm:$0xff] %vm261_vm3, %v13072_v1  ;;  %v1070_v24 = vshrl.u32 %v13228_v12, 16 }
  0x1f   : > { %v1037_v58 = vsel %vm977_vm2, %v1032_v54, %v1036_v55  ;;  %v1040_v62 = vor.u32 %v1038_v59, %v1036_v55  ;;  %v1048_v6 = vor.u32 %v1046_v2, %v1044_v63  ;;  %v1060_v14 = vrot.slane %v1058_v10, 1  ;;  %295 = vst.msk [vmem:[#allocation2 + $0x108] sm:$0xff] %vm261_vm3, %v13072_v1  ;;  %296 = vst.msk [vmem:[#allocation2 + $0x110] sm:$0xff] %vm261_vm3, %v13072_v1  ;;  %v12749_v47 = vld [vmem:[%s13135_s25 + $0x80] sm:$0xff]   ;;  %v12751_v54 = vld [vmem:[%s13135_s25 + $0x88] sm:$0xff]  }
  0x20   : > { %v1056_v13 = vor.u32 %v1054_v9, %v1052_v7  ;;  %297 = vst.msk [vmem:[#allocation2 + $0x118] sm:$0xff] %vm261_vm3, %v13072_v1  ;;  %298 = vst.msk [vmem:[#allocation2 + $0x120] sm:$0xff] %vm261_vm3, %v13072_v1  ;;  %v1068_v20 = vrot.slane %v1066_v17, 1  ;;  %v1074_v25 = vshll.u32 %v12741_v21, 16  ;;  %v1078_v30 = vshrl.u32 %v12741_v21, 16  ;;  %v12753_v61 = vld [vmem:[%s13135_s25 + $0x90] sm:$0xff]  }
  0x21   : > { %v1045_v4 = vsel %vm977_vm2, %v1040_v62, %v1044_v63  ;;  %v1053_v11 = vsel %vm977_vm2, %v1048_v6, %v1052_v7  ;;  %299 = vst.msk [vmem:[#allocation2 + $0x128] sm:$0xff] %vm261_vm3, %v13072_v1  ;;  %v1064_v19 = vor.u32 %v1062_v16, %v1060_v14  ;;  %v1090_v38 = vshll.u32 %v12745_v33, 16  ;;  %v12755_v5 = vld [vmem:[%s13135_s25 + $0x98] ss:$0 sps:$4 sm:$0x11]   ;;  %v12757_v6 = vld [vmem:[%s13135_s25 + $0x8] sm:$0xff]  }
  0x22   : > { %v1061_v18 = vsel %vm977_vm2, %v1056_v13, %v1060_v14  ;;  %v1072_v27 = vor.u32 %v1070_v24, %v1068_v20  ;;  %v1076_v28 = vrot.slane %v1074_v25, 1  ;;  %v1098_v45 = vshll.u32 %v12747_v40, 16  ;;  %v12756_v7 = vld [vmem:[%s13135_s25] sm:$0xfe]   ;;  %v12754_v10 = vld [vmem:[%s13135_s25 + $0x90] sm:$0xff]  }
  0x23   : > { %11448 = vmatmul.mubr.msk.bf16.gmra.mrb[8].mxu0 %vm479_vm1, %v12722_v22  ;;  %11522 = vmatmul.mubr.msk.bf16.gmra.mrb[4].mxu1 %vm479_vm1, %v997_v23  ;;  %v12740_v22 = vld [vmem:[%s13135_s25 + $0x58] sm:$0xff]   ;;  %v1069_v23 = vsel %vm977_vm2, %v1064_v19, %v1068_v20  ;;  %v1092_v42 = vrot.slane %v1090_v38, 1  ;;  %v1106_v52 = vshll.u32 %v12749_v47, 16  ;;  %v1114_v59 = vshll.u32 %v12751_v54, 16  ;;  %v12759_v12 = vld [vmem:[%s13135_s25] sm:$0xfe]  }
  0x24   : > { %11451 = vmatprep.mubr.msk.bf16.mxu0 %vm13073_vm0, %v13072_v1  ;;  %11525 = vmatprep.mubr.msk.bf16.mxu1 %vm13073_vm0, %v13072_v1  ;;  %v1077_v32 = vsel %vm977_vm2, %v1072_v27, %v1076_v28  ;;  %v1080_v34 = vor.u32 %v1078_v30, %v1076_v28  ;;  %v1100_v49 = vrot.slane %v1098_v45, 1  ;;  %v1118_v2 = vshrl.u32 %v12751_v54, 16  ;;  %v12761_v24 = vld [vmem:[%s13135_s25 + $0x10] sm:$0xff]   ;;  %v12758_v25 = vld [vmem:[%s15924_s1 + $0x20] sm:$0xff]   ;;  %v12764_v38 = vld [vmem:[%s13135_s25 + $0x18] sm:$0xff]  }
  0x25   : > { %v1108_v56 = vrot.slane %v1106_v52, 1  ;;  %v1116_v63 = vrot.slane %v1114_v59, 1  ;;  %v1122_v3 = vshll.u32 %v12753_v61, 16  ;;  %v1126_v13 = vshrl.u32 %v12753_v61, 16  ;;  %v12763_v27 = vld [vmem:[%s13135_s25 + $0x10] sm:$0xff]   ;;  %v12766_v52 = vld [vmem:[%s13135_s25 + $0x20] sm:$0xff]  }
  0x26   : > { %v1130_v14 = vshll.u32 %v12755_v5, 16  ;;  %v1638_v16 = vrot.slane %v12757_v6, 1  ;;  %v2180_v20 = vshrl.u32 %v12759_v12, 16  ;;  %v2183_v21 = vshll.u32 %v12759_v12, 16  ;;  %v12770_v6 = vld [vmem:[%s13135_s25 + $0x30] sm:$0xff]  }
  0x27   : > { %v1124_v9 = vrot.slane %v1122_v3, 1  ;;  %v1642_v45 = vrot.slane %v12764_v38, 1  ;;  %v1648_v12 = vrot.slane %v12770_v6, 1  ;;  %v12777_v38 = vld [vmem:[%s13135_s25 + $0x48] sm:$0xff]  }
  0x28   : > { %v2182_v28 = vrot.slane %v2180_v20, 1 }
  0x2b   : > { %11452 = vmatmul.mubr.msk.bf16.gmra.mrb[12].mxu0 %vm479_vm1, %v12724_v29  ;;  %11526 = vmatmul.mubr.msk.bf16.gmra.mrb[8].mxu1 %vm479_vm1, %v1005_v31  ;;  %v12742_v29 = vld [vmem:[%s13135_s25 + $0x60] sm:$0xff]   ;;  %v1082_v31 = vshll.u32 %v12743_v26, 16 }
  0x2c   : > { %11455 = vmatprep.mubr.msk.bf16.mxu0 %vm13073_vm0, %v13072_v1  ;;  %11529 = vmatprep.mubr.msk.bf16.mxu1 %vm13073_vm0, %v13072_v1 }
  0x2d   : > { %v1084_v35 = vrot.slane %v1082_v31, 1 }
  0x2f   : > { %v1085_v39 = vsel %vm977_vm2, %v1080_v34, %v1084_v35  ;;  %v2197_v34 = vshrl.u32 %v12763_v27, 16 }
  0x33   : > { %11456 = vmatmul.mubr.msk.bf16.gmra.mrb[16].mxu0 %vm479_vm1, %v12726_v36  ;;  %11530 = vmatmul.mubr.msk.bf16.gmra.mrb[12].mxu1 %vm479_vm1, %v1013_v37  ;;  %v12744_v36 = vld [vmem:[%s13135_s25 + $0x68] sm:$0xff]   ;;  %v1086_v37 = vshrl.u32 %v12743_v26, 16 }
  0x34   : > { %11459 = vmatprep.mubr.msk.bf16.mxu0 %vm13073_vm0, %v13072_v1  ;;  %11533 = vmatprep.mubr.msk.bf16.mxu1 %vm13073_vm0, %v13072_v1 }
  0x35   : > { %v1088_v41 = vor.u32 %v1086_v37, %v1084_v35  ;;  %v2200_v35 = vshll.u32 %v12763_v27, 16 }
  0x37   : > { %v1093_v46 = vsel %vm977_vm2, %v1088_v41, %v1092_v42  ;;  %v12762_v41 = vld [vmem:[%s15924_s1 + $0x28] sm:$0xff]  }
  0x3b   : > { %11460 = vmatmul.mubr.msk.bf16.gmra.mrb[20].mxu0 %vm479_vm1, %v12728_v43  ;;  %11534 = vmatmul.mubr.msk.bf16.gmra.mrb[16].mxu1 %vm479_vm1, %v1021_v44  ;;  %v12746_v43 = vld [vmem:[%s13135_s25 + $0x70] sm:$0xff]   ;;  %v1094_v44 = vshrl.u32 %v12745_v33, 16  ;;  %v1640_v33 = vrot.slane %v12761_v24, 1 }
  0x3c   : > { %11463 = vmatprep.mubr.msk.bf16.mxu0 %vm13073_vm0, %v13072_v1  ;;  %11537 = vmatprep.mubr.msk.bf16.mxu1 %vm13073_vm0, %v13072_v1 }
  0x3d   : > { %v1096_v48 = vor.u32 %v1094_v44, %v1092_v42  ;;  %v2199_v42 = vrot.slane %v2197_v34, 1 }
  0x3f   : > { %v1101_v53 = vsel %vm977_vm2, %v1096_v48, %v1100_v49 }
  0x43   : > { %11464 = vmatmul.mubr.msk.bf16.gmra.mrb[24].mxu0 %vm479_vm1, %v12730_v50  ;;  %11538 = vmatmul.mubr.msk.bf16.gmra.mrb[20].mxu1 %vm479_vm1, %v1029_v51  ;;  %v12748_v50 = vld [vmem:[%s13135_s25 + $0x78] sm:$0xff]   ;;  %v1102_v51 = vshrl.u32 %v12747_v40, 16  ;;  %v1641_v40 = vsel %vm1636_vm4, %v1638_v16, %v1640_v33 }
  0x44   : > { %11467 = vmatprep.mubr.msk.bf16.mxu0 %vm13073_vm0, %v13072_v1  ;;  %11541 = vmatprep.mubr.msk.bf16.mxu1 %vm13073_vm0, %v13072_v1 }
  0x45   : > { %v1104_v55 = vor.u32 %v1102_v51, %v1100_v49  ;;  %v1643_v49 = vsel %vm1636_vm4, %v1640_v33, %v1642_v45 }
  0x47   : > { %v1109_v60 = vsel %vm977_vm2, %v1104_v55, %v1108_v56  ;;  %v1644_v55 = vrot.slane %v12766_v52, 1 }
  0x49   : > { %v1645_v59 = vsel %vm1636_vm4, %v1642_v45, %v1644_v55  ;;  %v2263_v45 = vshll.u32 %v12777_v38, 16 }
  0x4b   : > { %11468 = vmatmul.mubr.msk.bf16.gmra.mrb[28].mxu0 %vm479_vm1, %v12732_v57  ;;  %11542 = vmatmul.mubr.msk.bf16.gmra.mrb[24].mxu1 %vm479_vm1, %v1037_v58  ;;  %v12750_v57 = vld [vmem:[%s13135_s25 + $0x80] sm:$0xff]   ;;  %v1110_v58 = vshrl.u32 %v12749_v47, 16 }
  0x4c   : > { %11471 = vmatprep.mubr.msk.bf16.mxu0 %vm13073_vm0, %v13072_v1  ;;  %11545 = vmatprep.mubr.msk.bf16.mxu1 %vm13073_vm0, %v13072_v1 }
  0x4d   : > { %v1112_v62 = vor.u32 %v1110_v58, %v1108_v56 }
  0x53   : > { %11472 = vmatmul.mubr.msk.bf16.gmra.mrb[32].mxu0 %vm479_vm1, %v12734_v0  ;;  %11546 = vmatmul.mubr.msk.bf16.gmra.mrb[28].mxu1 %vm479_vm1, %v1045_v4  ;;  %v12752_v0 = vld [vmem:[%s13135_s25 + $0x88] sm:$0xff]   ;;  %v1117_v4 = vsel %vm977_vm2, %v1112_v62, %v1116_v63 }
  0x54   : > { %11475 = vmatprep.mubr.msk.bf16.mxu0 %vm13073_vm0, %v13072_v1  ;;  %11549 = vmatprep.mubr.msk.bf16.mxu1 %vm13073_vm0, %v13072_v1  ;;  %v12768_v62 = vld [vmem:[%s13135_s25 + $0x28] sm:$0xff]  }
  0x5b   : > { %11476 = vmatmul.mubr.msk.bf16.gmra.mrb[36].mxu0 %vm479_vm1, %v12736_v8  ;;  %11550 = vmatmul.mubr.msk.bf16.gmra.mrb[32].mxu1 %vm479_vm1, %v1053_v11  ;;  %v1120_v8 = vor.u32 %v1118_v2, %v1116_v63  ;;  %v12760_v11 = vld [vmem:[%s13135_s25 + $0x8] sm:$0xff]   ;;  %v1646_v2 = vrot.slane %v12768_v62, 1 }
  0x5c   : > { %11479 = vmatprep.mubr.msk.bf16.mxu0 %vm13073_vm0, %v13072_v1  ;;  %11553 = vmatprep.mubr.msk.bf16.mxu1 %vm13073_vm0, %v13072_v1  ;;  %v2191_v19 = vshll.u32 %v12760_v11, 16  ;;  %v12769_v63 = vld [vmem:[%s13135_s25 + $0x28] sm:$0xff]  }
  0x5d   : > { %v1125_v17 = vsel %vm977_vm2, %v1120_v8, %v1124_v9  ;;  %v2227_v5 = vshll.u32 %v12769_v63, 16  ;;  %v12771_v8 = vld [vmem:[%s13135_s25 + $0x30] sm:$0xff]  }
  0x5e   : > { %v2193_v31 = vrot.slane %v2191_v19, 2 }
  0x63   : > { %11480 = vmatmul.mubr.msk.bf16.gmra.mrb[40].mxu0 %vm479_vm1, %v12738_v15  ;;  %11554 = vmatmul.mubr.msk.bf16.gmra.mrb[36].mxu1 %vm479_vm1, %v1061_v18  ;;  %v1637_v15 = vrot.slane %v12756_v7, 1  ;;  %v2188_v18 = vshrl.u32 %v12760_v11, 16  ;;  %v1647_v7 = vsel %vm1636_vm4, %v1644_v55, %v1646_v2  ;;  %v2229_v11 = vrot.slane %v2227_v5, 2  ;;  %v12779_v55 = vld [vmem:[%s13135_s25 + $0x50] sm:$0xff]  }
  0x64   : > { %11483 = vmatprep.mubr.msk.bf16.mxu0 %vm13073_vm0, %v13072_v1  ;;  %11557 = vmatprep.mubr.msk.bf16.mxu1 %vm13073_vm0, %v13072_v1  ;;  %v2269_v62 = vshrl.u32 %v12779_v55, 16 }
  0x65   : > { %v1639_v26 = vsel %vm1636_vm4, %v1637_v15, %v1638_v16  ;;  %v2190_v30 = vrot.slane %v2188_v18, 1  ;;  %v12772_v16 = vld [vmem:[%s13135_s25 + $0x38] sm:$0xff]  }
  0x66   : > { %v12773_v18 = vld [vmem:[%s13135_s25 + $0x38] sm:$0xff]  }
  0x67   : > { %v2194_v37 = vor.u32 %v2193_v31, %v2190_v30  ;;  %v2245_v24 = vshll.u32 %v12773_v18, 16 }
  0x69   : > { %v2247_v31 = vrot.slane %v2245_v24, 2 }
  0x6b   : > { %11484 = vmatmul.mubr.msk.bf16.gmra.mrb[44].mxu0 %vm479_vm1, %v12740_v22  ;;  %11558 = vmatmul.mubr.msk.bf16.gmra.mrb[40].mxu1 %vm479_vm1, %v1069_v23  ;;  %v1128_v22 = vor.u32 %v1126_v13, %v1124_v9  ;;  %v1132_v23 = vrot.slane %v1130_v14, 1  ;;  %v2233_v13 = vshrl.u32 %v12771_v8, 16  ;;  %v2236_v14 = vshll.u32 %v12771_v8, 16 }
  0x6c   : > { %11487 = vmatprep.mubr.msk.bf16.mxu0 %vm13073_vm0, %v13072_v1  ;;  %11561 = vmatprep.mubr.msk.bf16.mxu1 %vm13073_vm0, %v13072_v1 }
  0x6d   : > { %v2235_v20 = vrot.slane %v2233_v13, 1 }
  0x73   : > { %11488 = vmatmul.mubr.msk.bf16.gmra.mrb[48].mxu0 %vm479_vm1, %v12742_v29  ;;  %11562 = vmatmul.mubr.msk.bf16.gmra.mrb[44].mxu1 %vm479_vm1, %v1077_v32  ;;  %v2185_v29 = vrot.slane %v2183_v21, 2  ;;  %v1133_v32 = vsel %vm977_vm2, %v1128_v22, %v1132_v23  ;;  %v2238_v21 = vrot.slane %v2236_v14, 2  ;;  %v1650_v22 = vrot.slane %v12772_v16, 1  ;;  %v12781_v14 = vld [vmem:[%s13135_s25 + $0x58] sm:$0xff]  }
  0x74   : > { %11491 = vmatprep.mubr.msk.bf16.mxu0 %vm13073_vm0, %v13072_v1  ;;  %11565 = vmatprep.mubr.msk.bf16.mxu1 %vm13073_vm0, %v13072_v1  ;;  %v2242_v23 = vshrl.u32 %v12773_v18, 16 }
  0x75   : > { %v1651_v27 = vsel %vm1636_vm4, %v1648_v12, %v1650_v22 }
  0x76   : > { %v2244_v30 = vrot.slane %v2242_v23, 1 }
  0x7b   : > { %11492 = vmatmul.mubr.msk.bf16.gmra.mrb[52].mxu0 %vm479_vm1, %v12744_v36  ;;  %11566 = vmatmul.mubr.msk.bf16.gmra.mrb[48].mxu1 %vm479_vm1, %v1085_v39  ;;  %v2186_v36 = vor.u32 %v2185_v29, %v2182_v28  ;;  %v12765_v39 = vld [vmem:[%s13135_s25 + $0x18] sm:$0xff]   ;;  %v12775_v28 = vld [vmem:[%s13135_s25 + $0x40] sm:$0xff]  }
  0x7c   : > { %11495 = vmatprep.mubr.msk.bf16.mxu0 %vm13073_vm0, %v13072_v1  ;;  %11569 = vmatprep.mubr.msk.bf16.mxu1 %vm13073_vm0, %v13072_v1  ;;  %v2209_v47 = vshll.u32 %v12765_v39, 16  ;;  %v2251_v33 = vshrl.u32 %v12775_v28, 16  ;;  %v2254_v34 = vshll.u32 %v12775_v28, 16 }
  0x7d   : > { %v2195_v44 = vsel %vm2178_vm5, %v2186_v36, %v2194_v37  ;;  %v12776_v36 = vld [vmem:[%s13135_s25 + $0x48] sm:$0xff]  }
  0x7e   : > { %v2211_v51 = vrot.slane %v2209_v47, 2 }
  0x83   : > { %11496 = vmatmul.mubr.msk.bf16.gmra.mrb[56].mxu0 %vm479_vm1, %v12746_v43  ;;  %11570 = vmatmul.mubr.msk.bf16.gmra.mrb[52].mxu1 %vm479_vm1, %v1093_v46  ;;  %v2202_v43 = vrot.slane %v2200_v35, 2  ;;  %v2206_v46 = vshrl.u32 %v12765_v39, 16  ;;  %v2248_v35 = vor.u32 %v2247_v31, %v2244_v30  ;;  %v12783_v30 = vld [vmem:[%s13135_s25 + $0x60] sm:$0xff]  }
  0x84   : > { %11499 = vmatprep.mubr.msk.bf16.mxu0 %vm13073_vm0, %v13072_v1  ;;  %11573 = vmatprep.mubr.msk.bf16.mxu1 %vm13073_vm0, %v13072_v1 }
  0x85   : > { %v2203_v48 = vor.u32 %v2202_v43, %v2199_v42  ;;  %v338_v42 = vld [vmem:[#allocation2] sm:$0xff]  ;;  %v1654_v43 = vrot.slane %v12776_v36, 1 }
  0x87   : > { %v2204_v54 = vsel %vm2178_vm5, %v2194_v37, %v2203_v48 }
  0x8b   : > { %11500 = vmatmul.mubr.msk.bf16.gmra.mrb[60].mxu0 %vm479_vm1, %v12748_v50  ;;  %11574 = vmatmul.mubr.msk.bf16.gmra.mrb[56].mxu1 %vm479_vm1, %v1101_v53  ;;  %v2208_v50 = vrot.slane %v2206_v46, 1  ;;  %v12767_v53 = vld [vmem:[%s13135_s25 + $0x20] sm:$0xff]  }
  0x8c   : > { %11503 = vmatprep.mubr.msk.bf16.mxu0 %vm13073_vm0, %v13072_v1  ;;  %11577 = vmatprep.mubr.msk.bf16.mxu1 %vm13073_vm0, %v13072_v1  ;;  %v2215_v56 = vshrl.u32 %v12767_v53, 16 }
  0x8d   : > { %v2212_v58 = vor.u32 %v2211_v51, %v2208_v50 }
  0x93   : > { %11504 = vmatmul.mubr.msk.bf16.gmra.mrb[64].mxu0 %vm479_vm1, %v12750_v57  ;;  %11578 = vmatmul.mubr.msk.bf16.gmra.mrb[60].mxu1 %vm479_vm1, %v1109_v60  ;;  %v2218_v57 = vshll.u32 %v12767_v53, 16  ;;  %v2217_v60 = vrot.slane %v2215_v56, 1 }
  0x94   : > { %11507 = vmatprep.mubr.msk.bf16.mxu0 %vm13073_vm0, %v13072_v1  ;;  %11581 = vmatprep.mubr.msk.bf16.mxu1 %vm13073_vm0, %v13072_v1 }
  0x95   : > { %v2220_v61 = vrot.slane %v2218_v57, 2 }
  0x97   : > { %v2221_v3 = vor.u32 %v2220_v61, %v2217_v60  ;;  %v340_v60 = vld [vmem:[#allocation2 + $0x10] sm:$0xff] }
  0x99   : > { %v2222_v9 = vsel %vm2178_vm5, %v2212_v58, %v2221_v3 }
  0x9b   : > { %11508 = vmatmul.mubr.msk.bf16.gmra.mrb[68].mxu0 %vm479_vm1, %v12752_v0  ;;  %11582 = vmatmul.mubr.msk.bf16.gmra.mrb[64].mxu1 %vm479_vm1, %v1117_v4  ;;  %v2213_v0 = vsel %vm2178_vm5, %v2203_v48, %v2212_v58  ;;  %v2224_v4 = vshrl.u32 %v12769_v63, 16  ;;  %v339_v48 = vld [vmem:[#allocation2 + $0x8] sm:$0xff]  ;;  %v2272_v63 = vshll.u32 %v12779_v55, 16  ;;  %v345_v55 = vld [vmem:[#allocation2 + $0x38] sm:$0xff] }
  0x9c   : > { %11511 = vmatprep.mubr.msk.bf16.mxu0 %vm13073_vm0, %v13072_v1  ;;  %11585 = vmatprep.mubr.msk.bf16.mxu1 %vm13073_vm0, %v13072_v1 }
  0x9d   : > { %v2274_v13 = vrot.slane %v2272_v63, 2 }
  0xa3   : > { %11512 = vmatmul.mubr.msk.bf16.gmra.mrb[72].mxu0 %vm479_vm1, %v12754_v10  ;;  %11586 = vmatmul.mubr.msk.bf16.gmra.mrb[68].mxu1 %vm479_vm1, %v1125_v17  ;;  %v2226_v10 = vrot.slane %v2224_v4, 1  ;;  %v1649_v17 = vsel %vm1636_vm4, %v1646_v2, %v1648_v12  ;;  %v13502_v4 = vld [vmem:[%s13135_s25 + $0x58] sm:$0xff]   ;;  %v2271_v12 = vrot.slane %v2269_v62, 1 }
  0xa4   : > { %11595 = vmatprep.mubr.msk.bf16.mxu0 %vm13073_vm0, %v13072_v1  ;;  %11589 = vmatprep.mubr.msk.bf16.mxu1 %vm13073_vm0, %v13072_v1  ;;  %v1658_v23 = vrot.slane %v13502_v4, 1 }
  0xa5   : > { %v2230_v15 = vor.u32 %v2229_v11, %v2226_v10 }
  0xa7   : > { %v2231_v19 = vsel %vm2178_vm5, %v2221_v3, %v2230_v15  ;;  %v341_v3 = vld [vmem:[#allocation2 + $0x18] sm:$0xff] }
  0xab   : > { %11596 = vmatmul.mubr.msk.bf16.vlgmr.msra.gmra.mrb[76].mxu0 %vm479_vm1, %v1639_v26  ;;  %11590 = vmatmul.mubr.msk.bf16.gmra.mrb[72].mxu1 %vm479_vm1, %v1133_v32  ;;  %v12774_v26 = vld [vmem:[%s13135_s25 + $0x40] sm:$0xff]  }
  0xac   : > { %11750 = vmatpush3.bf16.msra.mxu0 %v12758_v25  ;;  %11673 = vmatprep.mubr.msk.bf16.mxu1 %vm13073_vm0, %v13072_v1  ;;  %v2239_v25 = vor.u32 %v2238_v21, %v2235_v20  ;;  %v1652_v32 = vrot.slane %v12774_v26, 1  ;;  %v2278_v26 = vshrl.u32 %v12781_v14, 16 }
  0xad   : > { %11599 = vmatprep.mubr.msk.bf16.mxu0 %vm13073_vm0, %v13072_v1  ;;  %11905 = vmatprep.subr.bf16.mxu0 %v13072_v1 }
  0xae   : > { %v2240_v29 = vsel %vm2178_vm5, %v2230_v15, %v2239_v25  ;;  %v1653_v37 = vsel %vm1636_vm4, %v1650_v22, %v1652_v32  ;;  %v2249_v39 = vsel %vm2178_vm5, %v2239_v25, %v2248_v35  ;;  %v1655_v53 = vsel %vm1636_vm4, %v1652_v32, %v1654_v43  ;;  %v342_v22 = vld [vmem:[#allocation2 + $0x20] sm:$0xff] }
  0xaf   : > { %v2275_v25 = vor.u32 %v2274_v13, %v2271_v12  ;;  %v346_v12 = vld [vmem:[#allocation2 + $0x40] sm:$0xff] }
  0xb3   : > { %11600 = vmatmul.mubr.msk.bf16.gmra.mrb[80].mxu0 %vm479_vm1, %v1641_v40  ;;  %11674 = vmatmul.mubr.msk.bf16.vlgmr.msra.gmra.mrb[76].mxu1 %vm479_vm1, %v2195_v44  ;;  %v2253_v40 = vrot.slane %v2251_v33, 1  ;;  %v2260_v44 = vshrl.u32 %v12777_v38, 16 }
  0xb4   : > { %11603 = vmatprep.mubr.msk.bf16.mxu0 %vm13073_vm0, %v13072_v1  ;;  %11828 = vmatpush3.bf16.msra.mxu1 %v12762_v41  ;;  %v2256_v41 = vrot.slane %v2254_v34, 2 }
  0xb5   : > { %11677 = vmatprep.mubr.msk.bf16.mxu1 %vm13073_vm0, %v13072_v1  ;;  %11983 = vmatprep.subr.bf16.mxu1 %v13072_v1 }
  0xb6   : > { %v2257_v46 = vor.u32 %v2256_v41, %v2253_v40 }
  0xb8   : > { %v2258_v58 = vsel %vm2178_vm5, %v2248_v35, %v2257_v46 }
  0xbb   : > { %11604 = vmatmul.mubr.msk.bf16.gmra.mrb[84].mxu0 %vm479_vm1, %v1643_v49  ;;  %11678 = vmatmul.mubr.msk.bf16.gmra.mrb[80].mxu1 %vm479_vm1, %v2204_v54  ;;  %v13487_v49 = vld [vmem:[%s13135_s25 + $0x50] sm:$0xff]   ;;  %v2262_v54 = vrot.slane %v2260_v44, 1  ;;  %v2280_v44 = vrot.slane %v2278_v26, 1 }
  0xbc   : > { %11607 = vmatprep.mubr.msk.bf16.mxu0 %vm13073_vm0, %v13072_v1  ;;  %11681 = vmatprep.mubr.msk.bf16.mxu1 %vm13073_vm0, %v13072_v1  ;;  %v1656_v61 = vrot.slane %v13487_v49, 1 }
  0xbe   : > { %v1657_v11 = vsel %vm1636_vm4, %v1654_v43, %v1656_v61  ;;  %v1659_v38 = vsel %vm1636_vm4, %v1656_v61, %v1658_v23 }
  0xc3   : > { %11608 = vmatmul.mubr.msk.bf16.gmra.mrb[88].mxu0 %vm479_vm1, %v1645_v59  ;;  %11682 = vmatmul.mubr.msk.bf16.gmra.mrb[84].mxu1 %vm479_vm1, %v2213_v0  ;;  %v2265_v59 = vrot.slane %v2263_v45, 2 }
  0xc4   : > { %11611 = vmatprep.mubr.msk.bf16.mxu0 %vm13073_vm0, %v13072_v1  ;;  %11685 = vmatprep.mubr.msk.bf16.mxu1 %vm13073_vm0, %v13072_v1 }
  0xc5   : > { %v2266_v0 = vor.u32 %v2265_v59, %v2262_v54 }
  0xcb   : > { %11612 = vmatmul.mubr.msk.bf16.gmra.mrb[92].mxu0 %vm479_vm1, %v1647_v7  ;;  %11686 = vmatmul.mubr.msk.bf16.gmra.mrb[88].mxu1 %vm479_vm1, %v2222_v9 }
  0xcc   : > { %11615 = vmatprep.mubr.msk.bf16.mxu0 %vm13073_vm0, %v13072_v1  ;;  %11689 = vmatprep.mubr.msk.bf16.mxu1 %vm13073_vm0, %v13072_v1 }
  0xd3   : > { %11616 = vmatmul.mubr.msk.bf16.gmra.mrb[96].mxu0 %vm479_vm1, %v1649_v17  ;;  %11690 = vmatmul.mubr.msk.bf16.gmra.mrb[92].mxu1 %vm479_vm1, %v2231_v19  ;;  %v2267_v19 = vsel %vm2178_vm5, %v2257_v46, %v2266_v0 }
  0xd4   : > { %11619 = vmatprep.mubr.msk.bf16.mxu0 %vm13073_vm0, %v13072_v1  ;;  %11693 = vmatprep.mubr.msk.bf16.mxu1 %vm13073_vm0, %v13072_v1 }
  0xdb   : > { %11620 = vmatmul.mubr.msk.bf16.gmra.mrb[100].mxu0 %vm479_vm1, %v1651_v27  ;;  %11694 = vmatmul.mubr.msk.bf16.gmra.mrb[96].mxu1 %vm479_vm1, %v2240_v29  ;;  %v2281_v27 = vshll.u32 %v12781_v14, 16  ;;  %v343_v29 = vld [vmem:[#allocation2 + $0x28] sm:$0xff] }
  0xdc   : > { %11623 = vmatprep.mubr.msk.bf16.mxu0 %vm13073_vm0, %v13072_v1  ;;  %11697 = vmatprep.mubr.msk.bf16.mxu1 %vm13073_vm0, %v13072_v1 }
  0xdd   : > { %v2283_v45 = vrot.slane %v2281_v27, 2 }
  0xe3   : > { %11624 = vmatmul.mubr.msk.bf16.gmra.mrb[104].mxu0 %vm479_vm1, %v1653_v37  ;;  %11698 = vmatmul.mubr.msk.bf16.gmra.mrb[100].mxu1 %vm479_vm1, %v2249_v39  ;;  %v2276_v37 = vsel %vm2178_vm5, %v2266_v0, %v2275_v25  ;;  %v13522_v39 = vld [vmem:[%s13135_s25 + $0x60] sm:$0xff]  }
  0xe4   : > { %11627 = vmatprep.mubr.msk.bf16.mxu0 %vm13073_vm0, %v13072_v1  ;;  %11701 = vmatprep.mubr.msk.bf16.mxu1 %vm13073_vm0, %v13072_v1 }
  0xe6   : > { %v571_v47 = vpop.f32.mrb[0].mxu0 }
  0xe7   : > { %v722_v50 = vadd.f32 %v571_v47, %v338_v42  ;;  %v11441_v51 = vpop.f32.mrb[1].mxu0 }
  0xe8   : > { %v574_v52 = vpop.f32.mrb[2].mxu0  ;;  %v1660_v51 = vrot.slane %v13522_v39, 1  ;;  %v348_v39 = vld [vmem:[#allocation2 + $0x50] sm:$0xff] }
  0xe9   : > { %761 = vst.msk [vmem:[#allocation2] sm:$0xff] %vm261_vm3, %v722_v50  ;;  %v723_v56 = vadd.f32 %v574_v52, %v339_v48  ;;  %v11442_v57 = vpop.f32.mrb[3].mxu0  ;;  %v2287_v48 = vshrl.u32 %v12783_v30, 16  ;;  %v344_v50 = vld [vmem:[#allocation2 + $0x30] sm:$0xff]  ;;  %v2290_v52 = vshll.u32 %v12783_v30, 16 }
  0xea   : > { %v1661_v63 = vsel %vm1636_vm4, %v1658_v23, %v1660_v51 }
  0xeb   : > { %762 = vst.msk [vmem:[#allocation2 + $0x8] sm:$0xff] %vm261_vm3, %v723_v56  ;;  %11628 = vmatmul.mubr.msk.bf16.gmra.mrb[108].mxu0 %vm479_vm1, %v1655_v53  ;;  %11702 = vmatmul.mubr.msk.bf16.gmra.mrb[104].mxu1 %vm479_vm1, %v2258_v58  ;;  %v2284_v53 = vor.u32 %v2283_v45, %v2280_v44  ;;  %v2289_v59 = vrot.slane %v2287_v48, 1  ;;  %v2292_v0 = vrot.slane %v2290_v52, 2  ;;  %v349_v44 = vld [vmem:[#allocation2 + $0x58] sm:$0xff] }
  0xec   : > { %11631 = vmatprep.mubr.msk.bf16.mxu0 %vm13073_vm0, %v13072_v1  ;;  %11705 = vmatprep.mubr.msk.bf16.mxu1 %vm13073_vm0, %v13072_v1 }
  0xed   : > { %v2293_v13 = vor.u32 %v2292_v0, %v2289_v59  ;;  %v350_v0 = vld [vmem:[#allocation2 + $0x60] sm:$0xff] }
  0xee   : > { %v579_v2 = vpop.f32.mrb[4].mxu0  ;;  %v1231_v5 = vpop.f32.mrb[0].mxu1 }
  0xef   : > { %v724_v6 = vadd.f32 %v579_v2, %v340_v60  ;;  %v11445_v7 = vpop.f32.mrb[5].mxu0  ;;  %v11519_v9 = vpop.f32.mrb[1].mxu1  ;;  %v13537_v2 = vld [vmem:[%s13135_s25 + $0x68] sm:$0xff]   ;;  %v2294_v26 = vsel %vm2178_vm5, %v2284_v53, %v2293_v13 }
  0xf0   : > { %v838_v8 = vld [vmem:[#allocation2] sm:$0xff]  ;;  %v582_v10 = vpop.f32.mrb[6].mxu0  ;;  %v1234_v16 = vpop.f32.mrb[2].mxu1  ;;  %v1662_v14 = vrot.slane %v13537_v2, 1 }
  0xf1   : > { %v1382_v15 = vadd.f32 %v1231_v5, %v838_v8  ;;  %763 = vst.msk [vmem:[#allocation2 + $0x10] sm:$0xff] %vm261_vm3, %v724_v6  ;;  %v725_v17 = vadd.f32 %v582_v10, %v341_v3  ;;  %v11446_v18 = vpop.f32.mrb[7].mxu0  ;;  %v11520_v21 = vpop.f32.mrb[3].mxu1  ;;  %v12785_v3 = vld [vmem:[%s13135_s25 + $0x68] sm:$0xff]   ;;  %v2285_v8 = vsel %vm2178_vm5, %v2275_v25, %v2284_v53 }
  0xf2   : > { %v839_v20 = vld [vmem:[#allocation2 + $0x8] sm:$0xff]  ;;  %v1663_v27 = vsel %vm1636_vm4, %v1660_v51, %v1662_v14 }
  0xf3   : > { %1420 = vst.msk [vmem:[#allocation2] sm:$0xff] %vm261_vm3, %v1382_v15  ;;  %v1383_v24 = vadd.f32 %v1234_v16, %v839_v20  ;;  %764 = vst.msk [vmem:[#allocation2 + $0x18] sm:$0xff] %vm261_vm3, %v725_v17  ;;  %11632 = vmatmul.mubr.msk.bf16.gmra.mrb[112].mxu0 %vm479_vm1, %v1657_v11  ;;  %11706 = vmatmul.mubr.msk.bf16.gmra.mrb[108].mxu1 %vm479_vm1, %v2267_v19  ;;  %v2296_v15 = vshrl.u32 %v12785_v3, 16  ;;  %v2299_v16 = vshll.u32 %v12785_v3, 16  ;;  %v347_v18 = vld [vmem:[#allocation2 + $0x48] sm:$0xff]  ;;  %v12787_v19 = vld [vmem:[%s13135_s25 + $0x70] sm:$0xff]  }
  0xf4   : > { %11635 = vmatprep.mubr.msk.bf16.mxu0 %vm13073_vm0, %v13072_v1  ;;  %11709 = vmatprep.mubr.msk.bf16.mxu1 %vm13073_vm0, %v13072_v1 }
  0xf5   : > { %1421 = vst.msk [vmem:[#allocation2 + $0x8] sm:$0xff] %vm261_vm3, %v1383_v24 }
  0xf6   : > { %v587_v28 = vpop.f32.mrb[8].mxu0  ;;  %v1239_v31 = vpop.f32.mrb[4].mxu1 }
  0xf7   : > { %v726_v32 = vadd.f32 %v587_v28, %v342_v22  ;;  %v11449_v33 = vpop.f32.mrb[9].mxu0  ;;  %v11523_v35 = vpop.f32.mrb[5].mxu1  ;;  %v13556_v28 = vld [vmem:[%s13135_s25 + $0x70] sm:$0xff]  }
  0xf8   : > { %v840_v34 = vld [vmem:[#allocation2 + $0x10] sm:$0xff]  ;;  %v590_v36 = vpop.f32.mrb[10].mxu0  ;;  %v1242_v41 = vpop.f32.mrb[6].mxu1  ;;  %v2298_v33 = vrot.slane %v2296_v15, 1 }
  0xf9   : > { %v1384_v40 = vadd.f32 %v1239_v31, %v840_v34  ;;  %765 = vst.msk [vmem:[#allocation2 + $0x20] sm:$0xff] %vm261_vm3, %v726_v32  ;;  %v727_v42 = vadd.f32 %v590_v36, %v343_v29  ;;  %v11450_v43 = vpop.f32.mrb[11].mxu0  ;;  %v11524_v47 = vpop.f32.mrb[7].mxu1  ;;  %v2301_v34 = vrot.slane %v2299_v16, 2 }
  0xfa   : > { %v841_v46 = vld [vmem:[#allocation2 + $0x18] sm:$0xff] }
  0xfb   : > { %1422 = vst.msk [vmem:[#allocation2 + $0x10] sm:$0xff] %vm261_vm3, %v1384_v40  ;;  %v1385_v49 = vadd.f32 %v1242_v41, %v841_v46  ;;  %766 = vst.msk [vmem:[#allocation2 + $0x28] sm:$0xff] %vm261_vm3, %v727_v42  ;;  %11636 = vmatmul.mubr.msk.bf16.gmra.mrb[116].mxu0 %vm479_vm1, %v1659_v38  ;;  %11710 = vmatmul.mubr.msk.bf16.gmra.mrb[112].mxu1 %vm479_vm1, %v2276_v37  ;;  %v2305_v37 = vshrl.u32 %v12787_v19, 16  ;;  %v1664_v40 = vrot.slane %v13556_v28, 1  ;;  %v2308_v41 = vshll.u32 %v12787_v19, 16  ;;  %v352_v28 = vld [vmem:[#allocation2 + $0x70] sm:$0xff] }
  0xfc   : > { %11639 = vmatprep.mubr.msk.bf16.mxu0 %vm13073_vm0, %v13072_v1  ;;  %11713 = vmatprep.mubr.msk.bf16.mxu1 %vm13073_vm0, %v13072_v1  ;;  %v2302_v42 = vor.u32 %v2301_v34, %v2298_v33  ;;  %v353_v33 = vld [vmem:[#allocation2 + $0x78] sm:$0xff] }
  0xfd   : > { %1423 = vst.msk [vmem:[#allocation2 + $0x18] sm:$0xff] %vm261_vm3, %v1385_v49  ;;  %v2307_v48 = vrot.slane %v2305_v37, 1  ;;  %v1665_v52 = vsel %vm1636_vm4, %v1662_v14, %v1664_v40  ;;  %v2310_v53 = vrot.slane %v2308_v41, 2 }
  0xfe   : > { %v595_v54 = vpop.f32.mrb[12].mxu0  ;;  %v1247_v56 = vpop.f32.mrb[8].mxu1 }
  0xff   : > { %v728_v57 = vadd.f32 %v595_v54, %v344_v50  ;;  %v11453_v58 = vpop.f32.mrb[13].mxu0  ;;  %v11527_v61 = vpop.f32.mrb[9].mxu1  ;;  %v13571_v54 = vld [vmem:[%s13135_s25 + $0x78] sm:$0xff]   ;;  %v2311_v2 = vor.u32 %v2310_v53, %v2307_v48  ;;  %v354_v53 = vld [vmem:[#allocation2 + $0x80] sm:$0xff] }
 0x100   : > { %v842_v60 = vld [vmem:[#allocation2 + $0x20] sm:$0xff]  ;;  %v598_v62 = vpop.f32.mrb[14].mxu0  ;;  %v1250_v5 = vpop.f32.mrb[10].mxu1  ;;  %v1666_v3 = vrot.slane %v13571_v54, 1 }
 0x101   : > { %v1386_v4 = vadd.f32 %v1247_v56, %v842_v60  ;;  %767 = vst.msk [vmem:[#allocation2 + $0x30] sm:$0xff] %vm261_vm3, %v728_v57  ;;  %v729_v6 = vadd.f32 %v598_v62, %v345_v55  ;;  %v11454_v7 = vpop.f32.mrb[15].mxu0  ;;  %v11528_v10 = vpop.f32.mrb[11].mxu1  ;;  %v12789_v55 = vld [vmem:[%s13135_s25 + $0x78] sm:$0xff]   ;;  %v2303_v60 = vsel %vm2178_vm5, %v2293_v13, %v2302_v42  ;;  %v2312_v15 = vsel %vm2178_vm5, %v2302_v42, %v2311_v2 }
 0x102   : > { %v843_v9 = vld [vmem:[#allocation2 + $0x28] sm:$0xff]  ;;  %v1667_v16 = vsel %vm1636_vm4, %v1664_v40, %v1666_v3 }
 0x103   : > { %1424 = vst.msk [vmem:[#allocation2 + $0x20] sm:$0xff] %vm261_vm3, %v1386_v4  ;;  %v1387_v11 = vadd.f32 %v1250_v5, %v843_v9  ;;  %768 = vst.msk [vmem:[#allocation2 + $0x38] sm:$0xff] %vm261_vm3, %v729_v6  ;;  %11640 = vmatmul.mubr.msk.bf16.gmra.mrb[120].mxu0 %vm479_vm1, %v1661_v63  ;;  %11714 = vmatmul.mubr.msk.bf16.gmra.mrb[116].mxu1 %vm479_vm1, %v2285_v8  ;;  %v2314_v4 = vshrl.u32 %v12789_v55, 16  ;;  %v2317_v5 = vshll.u32 %v12789_v55, 16  ;;  %v351_v7 = vld [vmem:[#allocation2 + $0x68] sm:$0xff]  ;;  %v12791_v8 = vld [vmem:[%s13135_s25 + $0x80] sm:$0xff]  }
 0x104   : > { %11643 = vmatprep.mubr.msk.bf16.mxu0 %vm13073_vm0, %v13072_v1  ;;  %11717 = vmatprep.mubr.msk.bf16.mxu1 %vm13073_vm0, %v13072_v1 }
 0x105   : > { %1425 = vst.msk [vmem:[#allocation2 + $0x28] sm:$0xff] %vm261_vm3, %v1387_v11 }
 0x106   : > { %v603_v17 = vpop.f32.mrb[16].mxu0  ;;  %v1255_v20 = vpop.f32.mrb[12].mxu1 }
 0x107   : > { %v730_v21 = vadd.f32 %v603_v17, %v346_v12  ;;  %v11457_v22 = vpop.f32.mrb[17].mxu0  ;;  %v11531_v24 = vpop.f32.mrb[13].mxu1  ;;  %v13590_v17 = vld [vmem:[%s13135_s25 + $0x80] sm:$0xff]  }
 0x108   : > { %v844_v23 = vld [vmem:[#allocation2 + $0x30] sm:$0xff]  ;;  %v606_v25 = vpop.f32.mrb[18].mxu0  ;;  %v1258_v30 = vpop.f32.mrb[14].mxu1  ;;  %v2316_v22 = vrot.slane %v2314_v4, 1 }
 0x109   : > { %v1388_v29 = vadd.f32 %v1255_v20, %v844_v23  ;;  %769 = vst.msk [vmem:[#allocation2 + $0x40] sm:$0xff] %vm261_vm3, %v730_v21  ;;  %v731_v31 = vadd.f32 %v606_v25, %v347_v18  ;;  %v11458_v32 = vpop.f32.mrb[19].mxu0  ;;  %v11532_v36 = vpop.f32.mrb[15].mxu1  ;;  %v2319_v23 = vrot.slane %v2317_v5, 2 }
 0x10a   : > { %v845_v35 = vld [vmem:[#allocation2 + $0x38] sm:$0xff] }
 0x10b   : > { %1426 = vst.msk [vmem:[#allocation2 + $0x30] sm:$0xff] %vm261_vm3, %v1388_v29  ;;  %v1389_v38 = vadd.f32 %v1258_v30, %v845_v35  ;;  %770 = vst.msk [vmem:[#allocation2 + $0x48] sm:$0xff] %vm261_vm3, %v731_v31  ;;  %11644 = vmatmul.mubr.msk.bf16.gmra.mrb[124].mxu0 %vm479_vm1, %v1663_v27  ;;  %11718 = vmatmul.mubr.msk.bf16.gmra.mrb[120].mxu1 %vm479_vm1, %v2294_v26  ;;  %v2323_v26 = vshrl.u32 %v12791_v8, 16  ;;  %v1668_v29 = vrot.slane %v13590_v17, 1  ;;  %v2326_v30 = vshll.u32 %v12791_v8, 16 }
 0x10c   : > { %11647 = vmatprep.mubr.msk.bf16.mxu0 %vm13073_vm0, %v13072_v1  ;;  %11721 = vmatprep.mubr.msk.bf16.mxu1 %vm13073_vm0, %v13072_v1  ;;  %v2320_v31 = vor.u32 %v2319_v23, %v2316_v22  ;;  %v357_v23 = vld [vmem:[#allocation2 + $0x98] sm:$0xff] }
 0x10d   : > { %1427 = vst.msk [vmem:[#allocation2 + $0x38] sm:$0xff] %vm261_vm3, %v1389_v38  ;;  %v2325_v37 = vrot.slane %v2323_v26, 1  ;;  %v1669_v41 = vsel %vm1636_vm4, %v1666_v3, %v1668_v29  ;;  %v2328_v42 = vrot.slane %v2326_v30, 2 }
 0x10e   : > { %v611_v43 = vpop.f32.mrb[20].mxu0  ;;  %v1263_v45 = vpop.f32.mrb[16].mxu1 }
 0x10f   : > { %v732_v46 = vadd.f32 %v611_v43, %v348_v39  ;;  %v11461_v47 = vpop.f32.mrb[21].mxu0  ;;  %v11535_v50 = vpop.f32.mrb[17].mxu1  ;;  %v13605_v43 = vld [vmem:[%s13135_s25 + $0x88] sm:$0xff]   ;;  %v2329_v54 = vor.u32 %v2328_v42, %v2325_v37 }
 0x110   : > { %v846_v49 = vld [vmem:[#allocation2 + $0x40] sm:$0xff]  ;;  %v614_v51 = vpop.f32.mrb[22].mxu0  ;;  %v1266_v57 = vpop.f32.mrb[18].mxu1  ;;  %v1670_v55 = vrot.slane %v13605_v43, 1 }
 0x111   : > { %v1390_v56 = vadd.f32 %v1263_v45, %v846_v49  ;;  %771 = vst.msk [vmem:[#allocation2 + $0x50] sm:$0xff] %vm261_vm3, %v732_v46  ;;  %v733_v58 = vadd.f32 %v614_v51, %v349_v44  ;;  %v11462_v59 = vpop.f32.mrb[23].mxu0  ;;  %v11536_v62 = vpop.f32.mrb[19].mxu1  ;;  %v12793_v44 = vld [vmem:[%s13135_s25 + $0x88] sm:$0xff]   ;;  %v2321_v49 = vsel %vm2178_vm5, %v2311_v2, %v2320_v31  ;;  %v2330_v4 = vsel %vm2178_vm5, %v2320_v31, %v2329_v54 }
 0x112   : > { %v847_v61 = vld [vmem:[#allocation2 + $0x48] sm:$0xff]  ;;  %v1671_v5 = vsel %vm1636_vm4, %v1668_v29, %v1670_v55 }
 0x113   : > { %1428 = vst.msk [vmem:[#allocation2 + $0x40] sm:$0xff] %vm261_vm3, %v1390_v56  ;;  %v1391_v63 = vadd.f32 %v1266_v57, %v847_v61  ;;  %772 = vst.msk [vmem:[#allocation2 + $0x58] sm:$0xff] %vm261_vm3, %v733_v58  ;;  %11648 = vmatmul.mubr.msk.bf16.gmra.mrb[128].mxu0 %vm479_vm1, %v1665_v52  ;;  %11722 = vmatmul.mubr.msk.bf16.gmra.mrb[124].mxu1 %vm479_vm1, %v2303_v60  ;;  %v2332_v56 = vshrl.u32 %v12793_v44, 16  ;;  %v2335_v57 = vshll.u32 %v12793_v44, 16  ;;  %v355_v59 = vld [vmem:[#allocation2 + $0x88] sm:$0xff]  ;;  %v12795_v60 = vld [vmem:[%s13135_s25 + $0x90] sm:$0xff]  }
 0x114   : > { %11651 = vmatprep.mubr.msk.bf16.mxu0 %vm13073_vm0, %v13072_v1  ;;  %11725 = vmatprep.mubr.msk.bf16.mxu1 %vm13073_vm0, %v13072_v1  ;;  %v2344_v17 = vshll.u32 %v12795_v60, 16  ;;  %v358_v44 = vld [vmem:[#allocation2 + $0xa0] sm:$0xff] }
 0x115   : > { %1429 = vst.msk [vmem:[#allocation2 + $0x48] sm:$0xff] %vm261_vm3, %v1391_v63 }
 0x116   : > { %v619_v6 = vpop.f32.mrb[24].mxu0  ;;  %v1271_v9 = vpop.f32.mrb[20].mxu1  ;;  %v2346_v30 = vrot.slane %v2344_v17, 2 }
 0x117   : > { %v734_v10 = vadd.f32 %v619_v6, %v350_v0  ;;  %v11465_v11 = vpop.f32.mrb[25].mxu0  ;;  %v11539_v13 = vpop.f32.mrb[21].mxu1  ;;  %v13624_v6 = vld [vmem:[%s13135_s25 + $0x90] sm:$0xff]  }
 0x118   : > { %v848_v12 = vld [vmem:[#allocation2 + $0x50] sm:$0xff]  ;;  %v622_v14 = vpop.f32.mrb[26].mxu0  ;;  %v1274_v19 = vpop.f32.mrb[22].mxu1  ;;  %v2334_v11 = vrot.slane %v2332_v56, 1 }
 0x119   : > { %v1392_v18 = vadd.f32 %v1271_v9, %v848_v12  ;;  %773 = vst.msk [vmem:[#allocation2 + $0x60] sm:$0xff] %vm261_vm3, %v734_v10  ;;  %v735_v20 = vadd.f32 %v622_v14, %v351_v7  ;;  %v11466_v21 = vpop.f32.mrb[27].mxu0  ;;  %v11540_v25 = vpop.f32.mrb[23].mxu1  ;;  %v2337_v12 = vrot.slane %v2335_v57, 2 }
 0x11a   : > { %v849_v24 = vld [vmem:[#allocation2 + $0x58] sm:$0xff]  ;;  %v12798_v25 = vld [vmem:[%s13135_s25 + $0x8] sm:$0xfe]  }
 0x11b   : > { %1430 = vst.msk [vmem:[#allocation2 + $0x50] sm:$0xff] %vm261_vm3, %v1392_v18  ;;  %v1393_v27 = vadd.f32 %v1274_v19, %v849_v24  ;;  %774 = vst.msk [vmem:[#allocation2 + $0x68] sm:$0xff] %vm261_vm3, %v735_v20  ;;  %11652 = vmatmul.mubr.msk.bf16.gmra.mrb[132].mxu0 %vm479_vm1, %v1667_v16  ;;  %11726 = vmatmul.mubr.msk.bf16.gmra.mrb[128].mxu1 %vm479_vm1, %v2312_v15  ;;  %v356_v15 = vld [vmem:[#allocation2 + $0x90] sm:$0xff]  ;;  %v2341_v16 = vshrl.u32 %v12795_v60, 16  ;;  %v1672_v19 = vrot.slane %v13624_v6, 1 }
 0x11c   : > { %11655 = vmatprep.mubr.msk.bf16.mxu0 %vm13073_vm0, %v13072_v1  ;;  %11729 = vmatprep.mubr.msk.bf16.mxu1 %vm13073_vm0, %v13072_v1  ;;  %v12796_v20 = vld [vmem:[%s13135_s25 + $0x98] ss:$0 sps:$4 sm:$0x11]   ;;  %v2338_v21 = vor.u32 %v2337_v12, %v2334_v11 }
 0x11d   : > { %1431 = vst.msk [vmem:[#allocation2 + $0x58] sm:$0xff] %vm261_vm3, %v1393_v27  ;;  %v12797_v24 = vld [vmem:[%s13135_s25 + $0x98] ss:$0 sps:$4 sm:$0x33]   ;;  %v2343_v29 = vrot.slane %v2341_v16, 1 }
 0x11e   : > { %v627_v32 = vpop.f32.mrb[28].mxu0  ;;  %v1279_v34 = vpop.f32.mrb[24].mxu1 }
 0x11f   : > { %v736_v35 = vadd.f32 %v627_v32, %v352_v28  ;;  %v11469_v36 = vpop.f32.mrb[29].mxu0  ;;  %v11543_v39 = vpop.f32.mrb[25].mxu1 }
 0x120   : > { %v850_v38 = vld [vmem:[#allocation2 + $0x60] sm:$0xff]  ;;  %v630_v40 = vpop.f32.mrb[30].mxu0  ;;  %v1282_v46 = vpop.f32.mrb[26].mxu1 }
 0x121   : > { %v1394_v45 = vadd.f32 %v1279_v34, %v850_v38  ;;  %775 = vst.msk [vmem:[#allocation2 + $0x70] sm:$0xff] %vm261_vm3, %v736_v35  ;;  %v737_v47 = vadd.f32 %v630_v40, %v353_v33  ;;  %v11470_v48 = vpop.f32.mrb[31].mxu0  ;;  %v11544_v51 = vpop.f32.mrb[27].mxu1  ;;  %v1673_v34 = vsel %vm1636_vm4, %v1670_v55, %v1672_v19  ;;  %v12799_v35 = vld [vmem:[%s13135_s25 + $0x10] sm:$0xff]   ;;  %v2339_v40 = vsel %vm2178_vm5, %v2329_v54, %v2338_v21  ;;  %v359_v54 = vld [vmem:[#allocation2 + $0xa8] sm:$0xff] }
 0x122   : > { %v851_v50 = vld [vmem:[#allocation2 + $0x68] sm:$0xff]  ;;  %v13647_v48 = vor.u32 %v2346_v30, %v2343_v29  ;;  %v2869_v51 = vshrl.u32 %v12799_v35, 16 }
 0x123   : > { %1432 = vst.msk [vmem:[#allocation2 + $0x60] sm:$0xff] %vm261_vm3, %v1394_v45  ;;  %v1395_v52 = vadd.f32 %v1282_v46, %v851_v50  ;;  %776 = vst.msk [vmem:[#allocation2 + $0x78] sm:$0xff] %vm261_vm3, %v737_v47  ;;  %11656 = vmatmul.mubr.msk.bf16.gmra.mrb[136].mxu0 %vm479_vm1, %v1669_v41  ;;  %11730 = vmatmul.mubr.msk.bf16.gmra.mrb[132].mxu1 %vm479_vm1, %v2321_v49  ;;  %v1674_v41 = vrot.slane %v12796_v20, 1  ;;  %v2861_v45 = vshrl.u32 %v12798_v25, 16  ;;  %v2864_v46 = vshll.u32 %v12798_v25, 16 }
 0x124   : > { %11659 = vmatprep.mubr.msk.bf16.mxu0 %vm13073_vm0, %v13072_v1  ;;  %11733 = vmatprep.mubr.msk.bf16.mxu1 %vm13073_vm0, %v13072_v1  ;;  %v2350_v49 = vshrl.u32 %v12797_v24, 16  ;;  %v2353_v50 = vshll.u32 %v12797_v24, 16 }
 0x125   : > { %1433 = vst.msk [vmem:[#allocation2 + $0x68] sm:$0xff] %vm261_vm3, %v1395_v52  ;;  %v2872_v52 = vshll.u32 %v12799_v35, 16 }
 0x126   : > { %v635_v58 = vpop.f32.mrb[32].mxu0  ;;  %v1287_v61 = vpop.f32.mrb[28].mxu1 }
 0x127   : > { %v738_v62 = vadd.f32 %v635_v58, %v354_v53  ;;  %v11473_v63 = vpop.f32.mrb[33].mxu0  ;;  %v11547_v2 = vpop.f32.mrb[29].mxu1  ;;  %v2863_v58 = vrot.slane %v2861_v45, 1 }
 0x128   : > { %v852_v0 = vld [vmem:[#allocation2 + $0x70] sm:$0xff]  ;;  %v638_v3 = vpop.f32.mrb[34].mxu0  ;;  %v1290_v8 = vpop.f32.mrb[30].mxu1  ;;  %v2348_v63 = vsel %vm2178_vm5, %v2338_v21, %v13647_v48  ;;  %v2871_v2 = vrot.slane %v2869_v51, 1  ;;  %v361_v21 = vld [vmem:[#allocation2 + $0xb8] sm:$0xff] }
 0x129   : > { %v1396_v7 = vadd.f32 %v1287_v61, %v852_v0  ;;  %777 = vst.msk [vmem:[#allocation2 + $0x80] sm:$0xff] %vm261_vm3, %v738_v62  ;;  %v739_v9 = vadd.f32 %v638_v3, %v355_v59  ;;  %v11474_v10 = vpop.f32.mrb[35].mxu0  ;;  %v11548_v14 = vpop.f32.mrb[31].mxu1  ;;  %v2866_v59 = vrot.slane %v2864_v46, 2  ;;  %v1675_v0 = vsel %vm1636_vm4, %v1672_v19, %v1674_v41 }
 0x12a   : > { %v853_v13 = vld [vmem:[#allocation2 + $0x78] sm:$0xff]  ;;  %v2874_v3 = vrot.slane %v2872_v52, 2  ;;  %v2355_v10 = vrot.slane %v2353_v50, 2  ;;  %v360_v14 = vld [vmem:[#allocation2 + $0xb0] sm:$0xff]  ;;  %v363_v50 = vld [vmem:[#allocation2 + $0xc8] sm:$0xff] }
 0x12b   : > { %1434 = vst.msk [vmem:[#allocation2 + $0x70] sm:$0xff] %vm261_vm3, %v1396_v7  ;;  %v1397_v18 = vadd.f32 %v1290_v8, %v853_v13  ;;  %778 = vst.msk [vmem:[#allocation2 + $0x88] sm:$0xff] %vm261_vm3, %v739_v9  ;;  %11660 = vmatmul.mubr.msk.bf16.gmra.mrb[140].mxu0 %vm479_vm1, %v1671_v5  ;;  %11734 = vmatmul.mubr.msk.bf16.gmra.mrb[136].mxu1 %vm479_vm1, %v2330_v4  ;;  %v12803_v4 = vld [vmem:[%s13135_s25 + $0x18] sm:$0xff]   ;;  %v2352_v9 = vrot.slane %v2350_v49, 1 }
 0x12c   : > { %11663 = vmatprep.mubr.msk.bf16.mxu0 %vm13073_vm0, %v13072_v1  ;;  %11737 = vmatprep.mubr.msk.bf16.mxu1 %vm13073_vm0, %v13072_v1  ;;  %v2875_v16 = vor.u32 %v2874_v3, %v2871_v2  ;;  %v2878_v17 = vshrl.u32 %v12803_v4, 16 }
 0x12d   : > { %1435 = vst.msk [vmem:[#allocation2 + $0x78] sm:$0xff] %vm261_vm3, %v1397_v18  ;;  %v2881_v18 = vshll.u32 %v12803_v4, 16  ;;  %v2356_v19 = vor.u32 %v2355_v10, %v2352_v9  ;;  %v12804_v4 = vld [vmem:[%s15924_s1 + $0x38] sm:$0xff]  }
 0x12e   : > { %v643_v22 = vpop.f32.mrb[36].mxu0  ;;  %v1295_v26 = vpop.f32.mrb[32].mxu1 }
 0x12f   : > { %v740_v27 = vadd.f32 %v643_v22, %v356_v15  ;;  %v11477_v28 = vpop.f32.mrb[37].mxu0  ;;  %v11551_v32 = vpop.f32.mrb[33].mxu1  ;;  %v2867_v15 = vor.u32 %v2866_v59, %v2863_v58  ;;  %v12801_v22 = vld [vmem:[%s13135_s25 + $0x8] sm:$0xfc]  }
 0x130   : > { %v854_v31 = vld [vmem:[#allocation2 + $0x80] sm:$0xff]  ;;  %v646_v33 = vpop.f32.mrb[38].mxu0  ;;  %v1298_v37 = vpop.f32.mrb[34].mxu1  ;;  %v2880_v32 = vrot.slane %v2878_v17, 1 }
 0x131   : > { %v1398_v36 = vadd.f32 %v1295_v26, %v854_v31  ;;  %779 = vst.msk [vmem:[#allocation2 + $0x90] sm:$0xff] %vm261_vm3, %v740_v27  ;;  %v741_v38 = vadd.f32 %v646_v33, %v357_v23  ;;  %v11478_v39 = vpop.f32.mrb[39].mxu0  ;;  %v11552_v43 = vpop.f32.mrb[35].mxu1  ;;  %v12800_v26 = vld [vmem:[%s15924_s1 + $0x30] sm:$0xff]   ;;  %v2876_v31 = vsel %vm2178_vm5, %v2867_v15, %v2875_v16  ;;  %v2883_v33 = vrot.slane %v2881_v18, 2  ;;  %v13716_v18 = vld [vmem:[%s13135_s25 + $0x20] sm:$0xff]  }
 0x132   : > { %v855_v42 = vld [vmem:[#allocation2 + $0x88] sm:$0xff]  ;;  %v13674_v27 = vld [vmem:[%s13135_s25 + $0x10] sm:$0xff]   ;;  %v2357_v39 = vsel %vm2178_vm5, %v13647_v48, %v2356_v19 }
 0x133   : > { %1436 = vst.msk [vmem:[#allocation2 + $0x80] sm:$0xff] %vm261_vm3, %v1398_v36  ;;  %v1399_v47 = vadd.f32 %v1298_v37, %v855_v42  ;;  %780 = vst.msk [vmem:[#allocation2 + $0x98] sm:$0xff] %vm261_vm3, %v741_v38  ;;  %11664 = vmatmul.mubr.msk.bf16.gmra.mrb[144].mxu0 %vm479_vm1, %v1673_v34  ;;  %11738 = vmatmul.mubr.msk.bf16.gmra.mrb[140].mxu1 %vm479_vm1, %v2339_v40  ;;  %v12806_v34 = vld [vmem:[%s13135_s25 + $0x20] sm:$0xff]   ;;  %v3542_v42 = vrot.slane %v12801_v22, 2  ;;  %v3543_v45 = vrot.slane %v13674_v27, 2 }
 0x134   : > { %11667 = vmatprep.mubr.msk.bf16.mxu0 %vm13073_vm0, %v13072_v1  ;;  %11741 = vmatprep.mubr.msk.bf16.mxu1 %vm13073_vm0, %v13072_v1  ;;  %v2884_v46 = vor.u32 %v2883_v33, %v2880_v32  ;;  %v2890_v48 = vshll.u32 %v12806_v34, 16 }
 0x135   : > { %1437 = vst.msk [vmem:[#allocation2 + $0x88] sm:$0xff] %vm261_vm3, %v1399_v47  ;;  %v2887_v47 = vshrl.u32 %v12806_v34, 16  ;;  %v3544_v3 = vsel %vm3541_vm6, %v3542_v42, %v3543_v45 }
 0x136   : > { %v651_v53 = vpop.f32.mrb[40].mxu0  ;;  %v1303_v55 = vpop.f32.mrb[36].mxu1  ;;  %v2885_v58 = vsel %vm2178_vm5, %v2875_v16, %v2884_v46 }
 0x137   : > { %v742_v56 = vadd.f32 %v651_v53, %v358_v44  ;;  %v11481_v57 = vpop.f32.mrb[41].mxu0  ;;  %v11555_v61 = vpop.f32.mrb[37].mxu1  ;;  %v362_v44 = vld [vmem:[#allocation2 + $0xc0] sm:$0xff]  ;;  %v2889_v59 = vrot.slane %v2887_v47, 1 }
 0x138   : > { %v856_v60 = vld [vmem:[#allocation2 + $0x90] sm:$0xff]  ;;  %v654_v62 = vpop.f32.mrb[42].mxu0  ;;  %v1306_v6 = vpop.f32.mrb[38].mxu1  ;;  %v12808_v61 = vld [vmem:[%s13135_s25 + $0x28] sm:$0xff]  }
 0x139   : > { %v1400_v5 = vadd.f32 %v1303_v55, %v856_v60  ;;  %781 = vst.msk [vmem:[#allocation2 + $0xa0] sm:$0xff] %vm261_vm3, %v742_v56  ;;  %v743_v7 = vadd.f32 %v654_v62, %v359_v54  ;;  %v11482_v8 = vpop.f32.mrb[43].mxu0  ;;  %v11556_v12 = vpop.f32.mrb[39].mxu1  ;;  %v13693_v54 = vld [vmem:[%s13135_s25 + $0x18] sm:$0xff]   ;;  %v2892_v60 = vrot.slane %v2890_v48, 2 }
 0x13a   : > { %v857_v11 = vld [vmem:[#allocation2 + $0x98] sm:$0xff]  ;;  %v364_v8 = vld [vmem:[#allocation2 + $0xd0] sm:$0xff]  ;;  %v3545_v9 = vrot.slane %v13693_v54, 2  ;;  %v2899_v12 = vshll.u32 %v12808_v61, 16 }
 0x13b   : > { %1438 = vst.msk [vmem:[#allocation2 + $0x90] sm:$0xff] %vm261_vm3, %v1400_v5  ;;  %v1401_v13 = vadd.f32 %v1306_v6, %v857_v11  ;;  %782 = vst.msk [vmem:[#allocation2 + $0xa8] sm:$0xff] %vm261_vm3, %v743_v7  ;;  %11668 = vmatmul.mubr.msk.bf16.gmra.mrb[148].mxu0 %vm479_vm1, %v1675_v0  ;;  %11742 = vmatmul.mubr.msk.bf16.gmra.mrb[144].mxu1 %vm479_vm1, %v2348_v63  ;;  %v2893_v10 = vor.u32 %v2892_v60, %v2889_v59  ;;  %v2896_v11 = vshrl.u32 %v12808_v61, 16  ;;  %v368_v60 = vld [vmem:[#allocation2 + $0xf0] sm:$0xff] }
 0x13c   : > { %11751 = vmatprep.mubr.msk.bf16.mxu0 %vm13073_vm0, %v13072_v1  ;;  %11745 = vmatprep.mubr.msk.bf16.mxu1 %vm13073_vm0, %v13072_v1 }
 0x13d   : > { %1439 = vst.msk [vmem:[#allocation2 + $0x98] sm:$0xff] %vm261_vm3, %v1401_v13  ;;  %v2894_v22 = vsel %vm2178_vm5, %v2884_v46, %v2893_v10 }
 0x13e   : > { %v659_v20 = vpop.f32.mrb[44].mxu0  ;;  %v1311_v23 = vpop.f32.mrb[40].mxu1 }
 0x13f   : > { %v744_v24 = vadd.f32 %v659_v20, %v360_v14  ;;  %v11485_v25 = vpop.f32.mrb[45].mxu0  ;;  %v11559_v29 = vpop.f32.mrb[41].mxu1  ;;  %v365_v14 = vld [vmem:[#allocation2 + $0xd8] sm:$0xff] }
 0x140   : > { %v858_v28 = vld [vmem:[#allocation2 + $0xa0] sm:$0xff]  ;;  %v662_v30 = vpop.f32.mrb[46].mxu0  ;;  %v1314_v36 = vpop.f32.mrb[42].mxu1  ;;  %v12810_v25 = vld [vmem:[%s13135_s25 + $0x30] sm:$0xff]  }
 0x141   : > { %v1402_v35 = vadd.f32 %v1311_v23, %v858_v28  ;;  %783 = vst.msk [vmem:[#allocation2 + $0xb0] sm:$0xff] %vm261_vm3, %v744_v24  ;;  %v745_v37 = vadd.f32 %v662_v30, %v361_v21  ;;  %v11486_v38 = vpop.f32.mrb[47].mxu0  ;;  %v11560_v41 = vpop.f32.mrb[43].mxu1  ;;  %v2898_v23 = vrot.slane %v2896_v11, 1  ;;  %v2901_v24 = vrot.slane %v2899_v12, 2 }
 0x142   : > { %v859_v40 = vld [vmem:[#allocation2 + $0xa8] sm:$0xff]  ;;  %v2908_v38 = vshll.u32 %v12810_v25, 16 }
 0x143   : > { %1440 = vst.msk [vmem:[#allocation2 + $0xa0] sm:$0xff] %vm261_vm3, %v1402_v35  ;;  %v1403_v43 = vadd.f32 %v1314_v36, %v859_v40  ;;  %784 = vst.msk [vmem:[#allocation2 + $0xb8] sm:$0xff] %vm261_vm3, %v745_v37  ;;  %11752 = vmatmul.mubr.msk.bf16.vlgmr.msra.gmra.mrb[152].mxu0 %vm479_vm1, %v2876_v31  ;;  %11746 = vmatmul.mubr.msk.bf16.gmra.mrb[148].mxu1 %vm479_vm1, %v2357_v39  ;;  %v3546_v31 = vsel %vm3541_vm6, %v3543_v45, %v3545_v9  ;;  %v366_v35 = vld [vmem:[#allocation2 + $0xe0] sm:$0xff]  ;;  %v3547_v36 = vrot.slane %v13716_v18, 2  ;;  %v367_v40 = vld [vmem:[#allocation2 + $0xe8] sm:$0xff] }
 0x144   : > { %11906 = vmatpush3.bf16.msra.mxu0 %v12800_v26  ;;  %11829 = vmatprep.mubr.msk.bf16.mxu1 %vm13073_vm0, %v13072_v1  ;;  %v2902_v27 = vor.u32 %v2901_v24, %v2898_v23  ;;  %v2905_v37 = vshrl.u32 %v12810_v25, 16  ;;  %v370_v23 = vld [vmem:[#allocation2 + $0x100] sm:$0xff] }
 0x145   : > { %1441 = vst.msk [vmem:[#allocation2 + $0xa8] sm:$0xff] %vm261_vm3, %v1403_v43  ;;  %11755 = vmatprep.mubr.msk.bf16.mxu0 %vm13073_vm0, %v13072_v1  ;;  %12061 = vmatprep.subr.bf16.mxu0 %v13072_v1 }
 0x146   : > { %v667_v49 = vpop.f32.mrb[48].mxu0  ;;  %v1319_v51 = vpop.f32.mrb[44].mxu1  ;;  %v2903_v47 = vsel %vm2178_vm5, %v2893_v10, %v2902_v27  ;;  %v2907_v48 = vrot.slane %v2905_v37, 1 }
 0x147   : > { %v746_v52 = vadd.f32 %v667_v49, %v362_v44  ;;  %v11489_v53 = vpop.f32.mrb[49].mxu0  ;;  %v11563_v56 = vpop.f32.mrb[45].mxu1  ;;  %v2910_v49 = vrot.slane %v2908_v38, 2 }
 0x148   : > { %v860_v55 = vld [vmem:[#allocation2 + $0xb0] sm:$0xff]  ;;  %v670_v57 = vpop.f32.mrb[50].mxu0  ;;  %v1322_v63 = vpop.f32.mrb[46].mxu1  ;;  %v13739_v56 = vld [vmem:[%s13135_s25 + $0x28] sm:$0xff]  }
 0x149   : > { %v1404_v62 = vadd.f32 %v1319_v51, %v860_v55  ;;  %785 = vst.msk [vmem:[#allocation2 + $0xc0] sm:$0xff] %vm261_vm3, %v746_v52  ;;  %v747_v0 = vadd.f32 %v670_v57, %v363_v50  ;;  %v11490_v2 = vpop.f32.mrb[51].mxu0  ;;  %v11564_v6 = vpop.f32.mrb[47].mxu1  ;;  %v12812_v50 = vld [vmem:[%s13135_s25 + $0x38] sm:$0xff]   ;;  %v3548_v55 = vsel %vm3541_vm6, %v3545_v9, %v3547_v36  ;;  %v2911_v61 = vor.u32 %v2910_v49, %v2907_v48  ;;  %v372_v49 = vld [vmem:[#allocation2 + $0x110] sm:$0xff] }
 0x14a   : > { %v861_v5 = vld [vmem:[#allocation2 + $0xb8] sm:$0xff] }
 0x14b   : > { %1442 = vst.msk [vmem:[#allocation2 + $0xb0] sm:$0xff] %vm261_vm3, %v1404_v62  ;;  %v1405_v7 = vadd.f32 %v1322_v63, %v861_v5  ;;  %786 = vst.msk [vmem:[#allocation2 + $0xc8] sm:$0xff] %vm261_vm3, %v747_v0  ;;  %11756 = vmatmul.mubr.msk.bf16.gmra.mrb[156].mxu0 %vm479_vm1, %v2885_v58  ;;  %11830 = vmatmul.mubr.msk.bf16.vlgmr.msra.gmra.mrb[152].mxu1 %vm479_vm1, %v3544_v3  ;;  %v2914_v62 = vshrl.u32 %v12812_v50, 16  ;;  %v2917_v63 = vshll.u32 %v12812_v50, 16  ;;  %v3549_v0 = vrot.slane %v13739_v56, 2  ;;  %v369_v3 = vld [vmem:[#allocation2 + $0xf8] sm:$0xff] }
 0x14c   : > { %11759 = vmatprep.mubr.msk.bf16.mxu0 %vm13073_vm0, %v13072_v1  ;;  %11984 = vmatpush3.bf16.msra.mxu1 %v12804_v4  ;;  %v2912_v11 = vsel %vm2178_vm5, %v2902_v27, %v2911_v61 }
 0x14d   : > { %1443 = vst.msk [vmem:[#allocation2 + $0xb8] sm:$0xff] %vm261_vm3, %v1405_v7  ;;  %11833 = vmatprep.mubr.msk.bf16.mxu1 %vm13073_vm0, %v13072_v1  ;;  %12139 = vmatprep.subr.bf16.mxu1 %v13072_v1  ;;  %v13752_v7 = vld [vmem:[%s13135_s25 + $0x30] sm:$0xff]   ;;  %v2916_v12 = vrot.slane %v2914_v62, 1 }
 0x14e   : > { %v675_v13 = vpop.f32.mrb[52].mxu0  ;;  %v1327_v15 = vpop.f32.mrb[48].mxu1  ;;  %v3551_v24 = vrot.slane %v13752_v7, 2 }
 0x14f   : > { %v748_v16 = vadd.f32 %v675_v13, %v364_v8  ;;  %v11493_v17 = vpop.f32.mrb[53].mxu0  ;;  %v11567_v20 = vpop.f32.mrb[49].mxu1  ;;  %v2919_v13 = vrot.slane %v2917_v63, 2 }
 0x150   : > { %v862_v19 = vld [vmem:[#allocation2 + $0xc0] sm:$0xff]  ;;  %v678_v21 = vpop.f32.mrb[54].mxu0  ;;  %v1330_v28 = vpop.f32.mrb[50].mxu1 }
 0x151   : > { %v1406_v26 = vadd.f32 %v1327_v15, %v862_v19  ;;  %787 = vst.msk [vmem:[#allocation2 + $0xd0] sm:$0xff] %vm261_vm3, %v748_v16  ;;  %v749_v29 = vadd.f32 %v678_v21, %v365_v14  ;;  %v11494_v30 = vpop.f32.mrb[55].mxu0  ;;  %v11568_v33 = vpop.f32.mrb[51].mxu1  ;;  %v12814_v14 = vld [vmem:[%s13135_s25 + $0x40] sm:$0xff]   ;;  %v3550_v19 = vsel %vm3541_vm6, %v3547_v36, %v3549_v0  ;;  %v2920_v25 = vor.u32 %v2919_v13, %v2916_v12 }
 0x152   : > { %v863_v32 = vld [vmem:[#allocation2 + $0xc8] sm:$0xff]  ;;  %v374_v12 = vld [vmem:[#allocation2 + $0x120] sm:$0xff] }
 0x153   : > { %1444 = vst.msk [vmem:[#allocation2 + $0xc0] sm:$0xff] %vm261_vm3, %v1406_v26  ;;  %v1407_v34 = vadd.f32 %v1330_v28, %v863_v32  ;;  %788 = vst.msk [vmem:[#allocation2 + $0xd8] sm:$0xff] %vm261_vm3, %v749_v29  ;;  %11760 = vmatmul.mubr.msk.bf16.gmra.mrb[160].mxu0 %vm479_vm1, %v2894_v22  ;;  %11834 = vmatmul.mubr.msk.bf16.gmra.mrb[156].mxu1 %vm479_vm1, %v3546_v31  ;;  %v2923_v26 = vshrl.u32 %v12814_v14, 16  ;;  %v2926_v28 = vshll.u32 %v12814_v14, 16  ;;  %v371_v30 = vld [vmem:[#allocation2 + $0x108] sm:$0xff] }
 0x154   : > { %11763 = vmatprep.mubr.msk.bf16.mxu0 %vm13073_vm0, %v13072_v1  ;;  %11837 = vmatprep.mubr.msk.bf16.mxu1 %vm13073_vm0, %v13072_v1  ;;  %v2921_v37 = vsel %vm2178_vm5, %v2911_v61, %v2920_v25 }
 0x155   : > { %1445 = vst.msk [vmem:[#allocation2 + $0xc8] sm:$0xff] %vm261_vm3, %v1407_v34  ;;  %v13769_v34 = vld [vmem:[%s13135_s25 + $0x38] sm:$0xff]   ;;  %v2925_v38 = vrot.slane %v2923_v26, 1 }
 0x156   : > { %v683_v39 = vpop.f32.mrb[56].mxu0  ;;  %v1335_v41 = vpop.f32.mrb[52].mxu1  ;;  %v3553_v50 = vrot.slane %v13769_v34, 2 }
 0x157   : > { %v750_v42 = vadd.f32 %v683_v39, %v366_v35  ;;  %v11497_v43 = vpop.f32.mrb[57].mxu0  ;;  %v11571_v45 = vpop.f32.mrb[53].mxu1  ;;  %v2928_v39 = vrot.slane %v2926_v28, 2 }
 0x158   : > { %v864_v44 = vld [vmem:[#allocation2 + $0xd0] sm:$0xff]  ;;  %v686_v46 = vpop.f32.mrb[58].mxu0  ;;  %v1338_v52 = vpop.f32.mrb[54].mxu1  ;;  %v3552_v45 = vsel %vm3541_vm6, %v3549_v0, %v3551_v24 }
 0x159   : > { %v1408_v51 = vadd.f32 %v1335_v41, %v864_v44  ;;  %789 = vst.msk [vmem:[#allocation2 + $0xe0] sm:$0xff] %vm261_vm3, %v750_v42  ;;  %v751_v53 = vadd.f32 %v686_v46, %v367_v40  ;;  %v11498_v54 = vpop.f32.mrb[59].mxu0  ;;  %v11572_v58 = vpop.f32.mrb[55].mxu1  ;;  %v12816_v40 = vld [vmem:[%s13135_s25 + $0x48] sm:$0xff]  }
 0x15a   : > { %v865_v57 = vld [vmem:[#allocation2 + $0xd8] sm:$0xff] }
 0x15b   : > { %1446 = vst.msk [vmem:[#allocation2 + $0xd0] sm:$0xff] %vm261_vm3, %v1408_v51  ;;  %v1409_v59 = vadd.f32 %v1338_v52, %v865_v57  ;;  %790 = vst.msk [vmem:[#allocation2 + $0xe8] sm:$0xff] %vm261_vm3, %v751_v53  ;;  %11764 = vmatmul.mubr.msk.bf16.gmra.mrb[164].mxu0 %vm479_vm1, %v2903_v47  ;;  %11838 = vmatmul.mubr.msk.bf16.gmra.mrb[160].mxu1 %vm479_vm1, %v3548_v55  ;;  %v2929_v51 = vor.u32 %v2928_v39, %v2925_v38  ;;  %v2932_v52 = vshrl.u32 %v12816_v40, 16  ;;  %v373_v55 = vld [vmem:[#allocation2 + $0x118] sm:$0xff] }
 0x15c   : > { %11767 = vmatprep.mubr.msk.bf16.mxu0 %vm13073_vm0, %v13072_v1  ;;  %11841 = vmatprep.mubr.msk.bf16.mxu1 %vm13073_vm0, %v13072_v1  ;;  %v2935_v53 = vshll.u32 %v12816_v40, 16 }
 0x15d   : > { %1447 = vst.msk [vmem:[#allocation2 + $0xd8] sm:$0xff] %vm261_vm3, %v1409_v59  ;;  %v13786_v59 = vld [vmem:[%s13135_s25 + $0x40] sm:$0xff]   ;;  %v2930_v63 = vsel %vm2178_vm5, %v2920_v25, %v2929_v51  ;;  %v2934_v0 = vrot.slane %v2932_v52, 1 }
 0x15e   : > { %v691_v2 = vpop.f32.mrb[60].mxu0  ;;  %v1343_v4 = vpop.f32.mrb[56].mxu1  ;;  %v3555_v13 = vrot.slane %v13786_v59, 2 }
 0x15f   : > { %v752_v5 = vadd.f32 %v691_v2, %v368_v60  ;;  %v11501_v6 = vpop.f32.mrb[61].mxu0  ;;  %v11575_v9 = vpop.f32.mrb[57].mxu1  ;;  %v2937_v2 = vrot.slane %v2935_v53, 2 }
 0x160   : > { %v866_v8 = vld [vmem:[#allocation2 + $0xe0] sm:$0xff]  ;;  %v694_v10 = vpop.f32.mrb[62].mxu0  ;;  %v1346_v16 = vpop.f32.mrb[58].mxu1  ;;  %v3556_v34 = vsel %vm3541_vm6, %v3553_v50, %v3555_v13 }
 0x161   : > { %v1410_v15 = vadd.f32 %v1343_v4, %v866_v8  ;;  %791 = vst.msk [vmem:[#allocation2 + $0xf0] sm:$0xff] %vm261_vm3, %v752_v5  ;;  %v753_v17 = vadd.f32 %v694_v10, %v369_v3  ;;  %v11502_v18 = vpop.f32.mrb[63].mxu0  ;;  %v11576_v21 = vpop.f32.mrb[59].mxu1  ;;  %v12818_v3 = vld [vmem:[%s13135_s25 + $0x50] sm:$0xff]   ;;  %v3554_v8 = vsel %vm3541_vm6, %v3551_v24, %v3553_v50  ;;  %v2938_v14 = vor.u32 %v2937_v2, %v2934_v0 }
 0x162   : > { %v867_v20 = vld [vmem:[#allocation2 + $0xe8] sm:$0xff] }
 0x163   : > { %1448 = vst.msk [vmem:[#allocation2 + $0xe0] sm:$0xff] %vm261_vm3, %v1410_v15  ;;  %v1411_v22 = vadd.f32 %v1346_v16, %v867_v20  ;;  %792 = vst.msk [vmem:[#allocation2 + $0xf8] sm:$0xff] %vm261_vm3, %v753_v17  ;;  %11768 = vmatmul.mubr.msk.bf16.gmra.mrb[168].mxu0 %vm479_vm1, %v2912_v11  ;;  %11842 = vmatmul.mubr.msk.bf16.gmra.mrb[164].mxu1 %vm479_vm1, %v3550_v19  ;;  %v2941_v15 = vshrl.u32 %v12818_v3, 16  ;;  %v2944_v16 = vshll.u32 %v12818_v3, 16  ;;  %v375_v18 = vld [vmem:[#allocation2 + $0x128] sm:$0xff] }
 0x164   : > { %11771 = vmatprep.mubr.msk.bf16.mxu0 %vm13073_vm0, %v13072_v1  ;;  %11845 = vmatprep.mubr.msk.bf16.mxu1 %vm13073_vm0, %v13072_v1  ;;  %v2939_v25 = vsel %vm2178_vm5, %v2929_v51, %v2938_v14 }
 0x165   : > { %1449 = vst.msk [vmem:[#allocation2 + $0xe8] sm:$0xff] %vm261_vm3, %v1411_v22  ;;  %v2943_v26 = vrot.slane %v2941_v15, 1  ;;  %v2946_v28 = vrot.slane %v2944_v16, 2 }
 0x166   : > { %v699_v29 = vpop.f32.mrb[64].mxu0  ;;  %v1351_v31 = vpop.f32.mrb[60].mxu1 }
 0x167   : > { %v754_v32 = vadd.f32 %v699_v29, %v370_v23  ;;  %v11505_v33 = vpop.f32.mrb[65].mxu0  ;;  %v11579_v36 = vpop.f32.mrb[61].mxu1  ;;  %v12820_v29 = vld [vmem:[%s13135_s25 + $0x58] sm:$0xff]   ;;  %v2947_v38 = vor.u32 %v2946_v28, %v2943_v26 }
 0x168   : > { %v868_v35 = vld [vmem:[#allocation2 + $0xf0] sm:$0xff]  ;;  %v702_v27 = vpop.f32.mrb[66].mxu0  ;;  %v1354_v42 = vpop.f32.mrb[62].mxu1  ;;  %v2950_v39 = vshrl.u32 %v12820_v29, 16  ;;  %v2953_v40 = vshll.u32 %v12820_v29, 16 }
 0x169   : > { %v1412_v41 = vadd.f32 %v1351_v31, %v868_v35  ;;  %793 = vst.msk [vmem:[#allocation2 + $0x100] sm:$0xff] %vm261_vm3, %v754_v32  ;;  %v755_v43 = vadd.f32 %v702_v27, %v371_v30  ;;  %v11506_v44 = vpop.f32.mrb[67].mxu0  ;;  %v11580_v47 = vpop.f32.mrb[63].mxu1  ;;  %v13807_v35 = vld [vmem:[%s13135_s25 + $0x48] sm:$0xff]   ;;  %v2948_v51 = vsel %vm2178_vm5, %v2938_v14, %v2947_v38 }
 0x16a   : > { %v869_v46 = vld [vmem:[#allocation2 + $0xf8] sm:$0xff]  ;;  %v1498_v47 = vld [vmem:[#allocation2 + $0x8] sm:$0xff]  ;;  %v2952_v52 = vrot.slane %v2950_v39, 1  ;;  %v2955_v53 = vrot.slane %v2953_v40, 2 }
 0x16b   : > { %1450 = vst.msk [vmem:[#allocation2 + $0xf0] sm:$0xff] %vm261_vm3, %v1412_v41  ;;  %v1413_v48 = vadd.f32 %v1354_v42, %v869_v46  ;;  %794 = vst.msk [vmem:[#allocation2 + $0x108] sm:$0xff] %vm261_vm3, %v755_v43  ;;  %11772 = vmatmul.mubr.msk.bf16.gmra.mrb[172].mxu0 %vm479_vm1, %v2921_v37  ;;  %11846 = vmatmul.mubr.msk.bf16.gmra.mrb[168].mxu1 %vm479_vm1, %v3552_v45  ;;  %v3557_v41 = vrot.slane %v13807_v35, 2  ;;  %v1497_v42 = vld [vmem:[#allocation2] sm:$0xff] }
 0x16c   : > { %11775 = vmatprep.mubr.msk.bf16.mxu0 %vm13073_vm0, %v13072_v1  ;;  %11849 = vmatprep.mubr.msk.bf16.mxu1 %vm13073_vm0, %v13072_v1  ;;  %v2956_v0 = vor.u32 %v2955_v53, %v2952_v52 }
 0x16d   : > { %1451 = vst.msk [vmem:[#allocation2 + $0xf8] sm:$0xff] %vm261_vm3, %v1413_v48  ;;  %v3558_v59 = vsel %vm3541_vm6, %v3555_v13, %v3557_v41 }
 0x16e   : > { %v707_v54 = vpop.f32.mrb[68].mxu0  ;;  %v1359_v56 = vpop.f32.mrb[64].mxu1  ;;  %v2957_v14 = vsel %vm2178_vm5, %v2947_v38, %v2956_v0 }
 0x16f   : > { %v756_v57 = vadd.f32 %v707_v54, %v372_v49  ;;  %v11509_v58 = vpop.f32.mrb[69].mxu0  ;;  %v11583_v61 = vpop.f32.mrb[65].mxu1  ;;  %v12822_v54 = vld [vmem:[%s13135_s25 + $0x60] sm:$0xff]  }
 0x170   : > { %v870_v60 = vld [vmem:[#allocation2 + $0x100] sm:$0xff]  ;;  %v710_v62 = vpop.f32.mrb[70].mxu0  ;;  %v1362_v5 = vpop.f32.mrb[66].mxu1  ;;  %v2959_v2 = vshrl.u32 %v12822_v54, 16  ;;  %v2962_v3 = vshll.u32 %v12822_v54, 16 }
 0x171   : > { %v1414_v4 = vadd.f32 %v1359_v56, %v870_v60  ;;  %795 = vst.msk [vmem:[#allocation2 + $0x110] sm:$0xff] %vm261_vm3, %v756_v57  ;;  %v757_v6 = vadd.f32 %v710_v62, %v373_v55  ;;  %v11510_v7 = vpop.f32.mrb[71].mxu0  ;;  %v11584_v10 = vpop.f32.mrb[67].mxu1  ;;  %v13824_v60 = vld [vmem:[%s13135_s25 + $0x50] sm:$0xff]  }
 0x172   : > { %v871_v9 = vld [vmem:[#allocation2 + $0x108] sm:$0xff]  ;;  %v1500_v10 = vld [vmem:[#allocation2 + $0x18] sm:$0xff]  ;;  %v2961_v15 = vrot.slane %v2959_v2, 1  ;;  %v2964_v16 = vrot.slane %v2962_v3, 2 }
 0x173   : > { %1452 = vst.msk [vmem:[#allocation2 + $0x100] sm:$0xff] %vm261_vm3, %v1414_v4  ;;  %v1415_v11 = vadd.f32 %v1362_v5, %v871_v9  ;;  %796 = vst.msk [vmem:[#allocation2 + $0x118] sm:$0xff] %vm261_vm3, %v757_v6  ;;  %11776 = vmatmul.mubr.msk.bf16.gmra.mrb[176].mxu0 %vm479_vm1, %v2930_v63  ;;  %11850 = vmatmul.mubr.msk.bf16.gmra.mrb[172].mxu1 %vm479_vm1, %v3554_v8  ;;  %v3559_v4 = vrot.slane %v13824_v60, 2  ;;  %v1499_v5 = vld [vmem:[#allocation2 + $0x10] sm:$0xff] }
 0x174   : > { %11779 = vmatprep.mubr.msk.bf16.mxu0 %vm13073_vm0, %v13072_v1  ;;  %11853 = vmatprep.mubr.msk.bf16.mxu1 %vm13073_vm0, %v13072_v1  ;;  %v2965_v28 = vor.u32 %v2964_v16, %v2961_v15 }
 0x175   : > { %1453 = vst.msk [vmem:[#allocation2 + $0x108] sm:$0xff] %vm261_vm3, %v1415_v11 }
 0x176   : > { %v715_v17 = vpop.f32.mrb[72].mxu0  ;;  %v1367_v19 = vpop.f32.mrb[68].mxu1  ;;  %v2966_v40 = vsel %vm2178_vm5, %v2956_v0, %v2965_v28 }
 0x177   : > { %v758_v20 = vadd.f32 %v715_v17, %v374_v12  ;;  %v11513_v21 = vpop.f32.mrb[73].mxu0  ;;  %v11587_v23 = vpop.f32.mrb[69].mxu1  ;;  %v12824_v17 = vld [vmem:[%s13135_s25 + $0x68] sm:$0xff]  }
 0x178   : > { %v872_v22 = vld [vmem:[#allocation2 + $0x110] sm:$0xff]  ;;  %v718_v24 = vpop.f32.mrb[74].mxu0  ;;  %v1370_v31 = vpop.f32.mrb[70].mxu1  ;;  %v13841_v23 = vld [vmem:[%s13135_s25 + $0x58] sm:$0xff]   ;;  %v2968_v29 = vshrl.u32 %v12824_v17, 16 }
 0x179   : > { %v1416_v30 = vadd.f32 %v1367_v19, %v872_v22  ;;  %797 = vst.msk [vmem:[#allocation2 + $0x120] sm:$0xff] %vm261_vm3, %v758_v20  ;;  %v759_v32 = vadd.f32 %v718_v24, %v375_v18  ;;  %v11514_v33 = vpop.f32.mrb[75].mxu0  ;;  %v11588_v27 = vpop.f32.mrb[71].mxu1  ;;  %v3560_v22 = vsel %vm3541_vm6, %v3557_v41, %v3559_v4 }
 0x17a   : > { %v873_v36 = vld [vmem:[#allocation2 + $0x118] sm:$0xff]  ;;  %v1502_v27 = vld [vmem:[#allocation2 + $0x28] sm:$0xff]  ;;  %v2970_v41 = vrot.slane %v2968_v29, 1 }
 0x17b   : > { %1454 = vst.msk [vmem:[#allocation2 + $0x110] sm:$0xff] %vm261_vm3, %v1416_v30  ;;  %v1417_v37 = vadd.f32 %v1370_v31, %v873_v36  ;;  %798 = vst.msk [vmem:[#allocation2 + $0x128] sm:$0xff] %vm261_vm3, %v759_v32  ;;  %11780 = vmatmul.mubr.msk.bf16.gmra.mrb[180].mxu0 %vm479_vm1, %v2939_v25  ;;  %11854 = vmatmul.mubr.msk.bf16.gmra.mrb[176].mxu1 %vm479_vm1, %v3556_v34  ;;  %v2971_v30 = vshll.u32 %v12824_v17, 16  ;;  %v3561_v31 = vrot.slane %v13841_v23, 2  ;;  %v1501_v32 = vld [vmem:[#allocation2 + $0x20] sm:$0xff] }
 0x17c   : > { %11783 = vmatprep.mubr.msk.bf16.mxu0 %vm13073_vm0, %v13072_v1  ;;  %11857 = vmatprep.mubr.msk.bf16.mxu1 %vm13073_vm0, %v13072_v1 }
 0x17d   : > { %1455 = vst.msk [vmem:[#allocation2 + $0x118] sm:$0xff] %vm261_vm3, %v1417_v37 }
 0x17e   : > { %v1773_v43 = vpop.f32.mrb[76].mxu0  ;;  %v1375_v44 = vpop.f32.mrb[72].mxu1 }
 0x17f   : > { %v1924_v45 = vadd.f32 %v1773_v43, %v1497_v42  ;;  %v11597_v46 = vpop.f32.mrb[77].mxu0  ;;  %v11591_v49 = vpop.f32.mrb[73].mxu1  ;;  %v2973_v42 = vrot.slane %v2971_v30, 2  ;;  %v12826_v43 = vld [vmem:[%s13135_s25 + $0x70] sm:$0xff]  }
 0x180   : > { %v874_v48 = vld [vmem:[#allocation2 + $0x120] sm:$0xff]  ;;  %v1776_v50 = vpop.f32.mrb[78].mxu0  ;;  %v1378_v56 = vpop.f32.mrb[74].mxu1  ;;  %v2977_v54 = vshrl.u32 %v12826_v43, 16 }
 0x181   : > { %v1418_v55 = vadd.f32 %v1375_v44, %v874_v48  ;;  %1962 = vst.msk [vmem:[#allocation2] sm:$0xff] %vm261_vm3, %v1924_v45  ;;  %v1925_v57 = vadd.f32 %v1776_v50, %v1498_v47  ;;  %v11598_v58 = vpop.f32.mrb[79].mxu0  ;;  %v11592_v62 = vpop.f32.mrb[75].mxu1  ;;  %v3562_v48 = vsel %vm3541_vm6, %v3559_v4, %v3561_v31  ;;  %v13858_v49 = vld [vmem:[%s13135_s25 + $0x60] sm:$0xff]   ;;  %v2974_v53 = vor.u32 %v2973_v42, %v2970_v41 }
 0x182   : > { %v875_v61 = vld [vmem:[#allocation2 + $0x128] sm:$0xff]  ;;  %v1504_v62 = vld [vmem:[#allocation2 + $0x38] sm:$0xff]  ;;  %v2979_v4 = vrot.slane %v2977_v54, 1 }
 0x183   : > { %1456 = vst.msk [vmem:[#allocation2 + $0x120] sm:$0xff] %vm261_vm3, %v1418_v55  ;;  %v1419_v63 = vadd.f32 %v1378_v56, %v875_v61  ;;  %1963 = vst.msk [vmem:[#allocation2 + $0x8] sm:$0xff] %vm261_vm3, %v1925_v57  ;;  %11784 = vmatmul.mubr.msk.bf16.gmra.mrb[184].mxu0 %vm479_vm1, %v2948_v51  ;;  %11858 = vmatmul.mubr.msk.bf16.gmra.mrb[180].mxu1 %vm479_vm1, %v3558_v59  ;;  %v2980_v55 = vshll.u32 %v12826_v43, 16  ;;  %v3563_v56 = vrot.slane %v13858_v49, 2  ;;  %v1503_v57 = vld [vmem:[#allocation2 + $0x30] sm:$0xff] }
 0x184   : > { %11787 = vmatprep.mubr.msk.bf16.mxu0 %vm13073_vm0, %v13072_v1  ;;  %11861 = vmatprep.mubr.msk.bf16.mxu1 %vm13073_vm0, %v13072_v1  ;;  %v2975_v3 = vsel %vm2178_vm5, %v2965_v28, %v2974_v53 }
 0x185   : > { %1457 = vst.msk [vmem:[#allocation2 + $0x128] sm:$0xff] %vm261_vm3, %v1419_v63 }
 0x186   : > { %v1781_v6 = vpop.f32.mrb[80].mxu0  ;;  %v2455_v7 = vpop.f32.mrb[76].mxu1 }
 0x187   : > { %v1926_v8 = vadd.f32 %v1781_v6, %v1499_v5  ;;  %v11601_v9 = vpop.f32.mrb[81].mxu0  ;;  %v11675_v12 = vpop.f32.mrb[77].mxu1  ;;  %v2982_v5 = vrot.slane %v2980_v55, 2  ;;  %v12828_v6 = vld [vmem:[%s13135_s25 + $0x78] sm:$0xff]  }
 0x188   : > { %v2039_v11 = vld [vmem:[#allocation2] sm:$0xff]  ;;  %v1784_v13 = vpop.f32.mrb[82].mxu0  ;;  %v2458_v19 = vpop.f32.mrb[78].mxu1  ;;  %v13875_v12 = vld [vmem:[%s13135_s25 + $0x68] sm:$0xff]   ;;  %v2986_v17 = vshrl.u32 %v12828_v6, 16 }
 0x189   : > { %v2606_v18 = vadd.f32 %v2455_v7, %v2039_v11  ;;  %1964 = vst.msk [vmem:[#allocation2 + $0x10] sm:$0xff] %vm261_vm3, %v1926_v8  ;;  %v1927_v20 = vadd.f32 %v1784_v13, %v1500_v10  ;;  %v11602_v21 = vpop.f32.mrb[83].mxu0  ;;  %v11676_v25 = vpop.f32.mrb[79].mxu1  ;;  %v3564_v11 = vsel %vm3541_vm6, %v3561_v31, %v3563_v56  ;;  %v2983_v16 = vor.u32 %v2982_v5, %v2979_v4 }
 0x18a   : > { %v2040_v24 = vld [vmem:[#allocation2 + $0x8] sm:$0xff]  ;;  %v2988_v31 = vrot.slane %v2986_v17, 1 }
 0x18b   : > { %2644 = vst.msk [vmem:[#allocation2] sm:$0xff] %vm261_vm3, %v2606_v18  ;;  %v2607_v26 = vadd.f32 %v2458_v19, %v2040_v24  ;;  %1965 = vst.msk [vmem:[#allocation2 + $0x18] sm:$0xff] %vm261_vm3, %v1927_v20  ;;  %11788 = vmatmul.mubr.msk.bf16.gmra.mrb[188].mxu0 %vm479_vm1, %v2957_v14  ;;  %11862 = vmatmul.mubr.msk.bf16.gmra.mrb[184].mxu1 %vm479_vm1, %v3560_v22  ;;  %v2989_v18 = vshll.u32 %v12828_v6, 16  ;;  %v3565_v19 = vrot.slane %v13875_v12, 2  ;;  %v1505_v20 = vld [vmem:[#allocation2 + $0x40] sm:$0xff]  ;;  %v1506_v25 = vld [vmem:[#allocation2 + $0x48] sm:$0xff] }
 0x18c   : > { %11791 = vmatprep.mubr.msk.bf16.mxu0 %vm13073_vm0, %v13072_v1  ;;  %11865 = vmatprep.mubr.msk.bf16.mxu1 %vm13073_vm0, %v13072_v1  ;;  %v2984_v30 = vsel %vm2178_vm5, %v2974_v53, %v2983_v16 }
 0x18d   : > { %2645 = vst.msk [vmem:[#allocation2 + $0x8] sm:$0xff] %vm261_vm3, %v2607_v26 }
 0x18e   : > { %v1789_v33 = vpop.f32.mrb[84].mxu0  ;;  %v2463_v34 = vpop.f32.mrb[80].mxu1 }
 0x18f   : > { %v1928_v35 = vadd.f32 %v1789_v33, %v1501_v32  ;;  %v11605_v36 = vpop.f32.mrb[85].mxu0  ;;  %v11679_v38 = vpop.f32.mrb[81].mxu1  ;;  %v2991_v32 = vrot.slane %v2989_v18, 2  ;;  %v12830_v33 = vld [vmem:[%s13135_s25 + $0x80] sm:$0xff]  }
 0x190   : > { %v2041_v37 = vld [vmem:[#allocation2 + $0x10] sm:$0xff]  ;;  %v1792_v39 = vpop.f32.mrb[86].mxu0  ;;  %v2466_v45 = vpop.f32.mrb[82].mxu1  ;;  %v2995_v43 = vshrl.u32 %v12830_v33, 16 }
 0x191   : > { %v2608_v44 = vadd.f32 %v2463_v34, %v2041_v37  ;;  %1966 = vst.msk [vmem:[#allocation2 + $0x20] sm:$0xff] %vm261_vm3, %v1928_v35  ;;  %v1929_v46 = vadd.f32 %v1792_v39, %v1502_v27  ;;  %v11606_v47 = vpop.f32.mrb[87].mxu0  ;;  %v11680_v51 = vpop.f32.mrb[83].mxu1  ;;  %v3566_v37 = vsel %vm3541_vm6, %v3563_v56, %v3565_v19  ;;  %v13892_v38 = vld [vmem:[%s13135_s25 + $0x70] sm:$0xff]   ;;  %v2992_v42 = vor.u32 %v2991_v32, %v2988_v31 }
 0x192   : > { %v2042_v50 = vld [vmem:[#allocation2 + $0x18] sm:$0xff]  ;;  %v2997_v56 = vrot.slane %v2995_v43, 1 }
 0x193   : > { %2646 = vst.msk [vmem:[#allocation2 + $0x10] sm:$0xff] %vm261_vm3, %v2608_v44  ;;  %v2609_v52 = vadd.f32 %v2466_v45, %v2042_v50  ;;  %1967 = vst.msk [vmem:[#allocation2 + $0x28] sm:$0xff] %vm261_vm3, %v1929_v46  ;;  %11792 = vmatmul.mubr.msk.bf16.gmra.mrb[192].mxu0 %vm479_vm1, %v2966_v40  ;;  %11866 = vmatmul.mubr.msk.bf16.gmra.mrb[188].mxu1 %vm479_vm1, %v3562_v48  ;;  %v2998_v44 = vshll.u32 %v12830_v33, 16  ;;  %v3567_v45 = vrot.slane %v13892_v38, 2  ;;  %v1507_v46 = vld [vmem:[#allocation2 + $0x50] sm:$0xff]  ;;  %v1508_v51 = vld [vmem:[#allocation2 + $0x58] sm:$0xff] }
 0x194   : > { %11795 = vmatprep.mubr.msk.bf16.mxu0 %vm13073_vm0, %v13072_v1  ;;  %11869 = vmatprep.mubr.msk.bf16.mxu1 %vm13073_vm0, %v13072_v1  ;;  %v2993_v55 = vsel %vm2178_vm5, %v2983_v16, %v2992_v42  ;;  %v1512_v43 = vld [vmem:[#allocation2 + $0x78] sm:$0xff] }
 0x195   : > { %2647 = vst.msk [vmem:[#allocation2 + $0x18] sm:$0xff] %vm261_vm3, %v2609_v52 }
 0x196   : > { %v1797_v58 = vpop.f32.mrb[88].mxu0  ;;  %v2471_v59 = vpop.f32.mrb[84].mxu1 }
 0x197   : > { %v1930_v60 = vadd.f32 %v1797_v58, %v1503_v57  ;;  %v11609_v61 = vpop.f32.mrb[89].mxu0  ;;  %v11683_v0 = vpop.f32.mrb[85].mxu1  ;;  %v3000_v57 = vrot.slane %v2998_v44, 2  ;;  %v12832_v58 = vld [vmem:[%s13135_s25 + $0x88] sm:$0xff]  }
 0x198   : > { %v2043_v63 = vld [vmem:[#allocation2 + $0x20] sm:$0xff]  ;;  %v1800_v2 = vpop.f32.mrb[90].mxu0  ;;  %v2474_v8 = vpop.f32.mrb[86].mxu1  ;;  %v13909_v0 = vld [vmem:[%s13135_s25 + $0x78] sm:$0xff]   ;;  %v3004_v6 = vshrl.u32 %v12832_v58, 16 }
 0x199   : > { %v2610_v7 = vadd.f32 %v2471_v59, %v2043_v63  ;;  %1968 = vst.msk [vmem:[#allocation2 + $0x30] sm:$0xff] %vm261_vm3, %v1930_v60  ;;  %v1931_v9 = vadd.f32 %v1800_v2, %v1504_v62  ;;  %v11610_v10 = vpop.f32.mrb[91].mxu0  ;;  %v11684_v14 = vpop.f32.mrb[87].mxu1  ;;  %v3568_v63 = vsel %vm3541_vm6, %v3565_v19, %v3567_v45  ;;  %v3001_v5 = vor.u32 %v3000_v57, %v2997_v56 }
 0x19a   : > { %v2044_v13 = vld [vmem:[#allocation2 + $0x28] sm:$0xff]  ;;  %v3006_v19 = vrot.slane %v3004_v6, 1 }
 0x19b   : > { %2648 = vst.msk [vmem:[#allocation2 + $0x20] sm:$0xff] %vm261_vm3, %v2610_v7  ;;  %v2611_v15 = vadd.f32 %v2474_v8, %v2044_v13  ;;  %1969 = vst.msk [vmem:[#allocation2 + $0x38] sm:$0xff] %vm261_vm3, %v1931_v9  ;;  %11796 = vmatmul.mubr.msk.bf16.gmra.mrb[196].mxu0 %vm479_vm1, %v2975_v3  ;;  %11870 = vmatmul.mubr.msk.bf16.gmra.mrb[192].mxu1 %vm479_vm1, %v3564_v11  ;;  %v3007_v7 = vshll.u32 %v12832_v58, 16  ;;  %v3569_v8 = vrot.slane %v13909_v0, 2  ;;  %v1509_v9 = vld [vmem:[#allocation2 + $0x60] sm:$0xff]  ;;  %v1510_v14 = vld [vmem:[#allocation2 + $0x68] sm:$0xff] }
 0x19c   : > { %11799 = vmatprep.mubr.msk.bf16.mxu0 %vm13073_vm0, %v13072_v1  ;;  %11873 = vmatprep.mubr.msk.bf16.mxu1 %vm13073_vm0, %v13072_v1  ;;  %v3002_v18 = vsel %vm2178_vm5, %v2992_v42, %v3001_v5 }
 0x19d   : > { %2649 = vst.msk [vmem:[#allocation2 + $0x28] sm:$0xff] %vm261_vm3, %v2611_v15 }
 0x19e   : > { %v1805_v21 = vpop.f32.mrb[92].mxu0  ;;  %v2479_v22 = vpop.f32.mrb[88].mxu1 }
 0x19f   : > { %v1932_v23 = vadd.f32 %v1805_v21, %v1505_v20  ;;  %v11613_v24 = vpop.f32.mrb[93].mxu0  ;;  %v11687_v28 = vpop.f32.mrb[89].mxu1  ;;  %v3009_v20 = vrot.slane %v3007_v7, 2  ;;  %v12834_v21 = vld [vmem:[%s13135_s25 + $0x90] sm:$0xff]  }
 0x1a0   : > { %v2045_v26 = vld [vmem:[#allocation2 + $0x30] sm:$0xff]  ;;  %v1808_v29 = vpop.f32.mrb[94].mxu0  ;;  %v2482_v35 = vpop.f32.mrb[90].mxu1  ;;  %v13926_v28 = vld [vmem:[%s13135_s25 + $0x80] sm:$0xff]   ;;  %v3013_v33 = vshrl.u32 %v12834_v21, 16 }
 0x1a1   : > { %v2612_v34 = vadd.f32 %v2479_v22, %v2045_v26  ;;  %1970 = vst.msk [vmem:[#allocation2 + $0x40] sm:$0xff] %vm261_vm3, %v1932_v23  ;;  %v1933_v36 = vadd.f32 %v1808_v29, %v1506_v25  ;;  %v11614_v27 = vpop.f32.mrb[95].mxu0  ;;  %v11688_v40 = vpop.f32.mrb[91].mxu1  ;;  %v3570_v26 = vsel %vm3541_vm6, %v3567_v45, %v3569_v8  ;;  %v3010_v32 = vor.u32 %v3009_v20, %v3006_v19 }
 0x1a2   : > { %v2046_v39 = vld [vmem:[#allocation2 + $0x38] sm:$0xff] }
 0x1a3   : > { %2650 = vst.msk [vmem:[#allocation2 + $0x30] sm:$0xff] %vm261_vm3, %v2612_v34  ;;  %v2613_v41 = vadd.f32 %v2482_v35, %v2046_v39  ;;  %1971 = vst.msk [vmem:[#allocation2 + $0x48] sm:$0xff] %vm261_vm3, %v1933_v36  ;;  %11800 = vmatmul.mubr.msk.bf16.gmra.mrb[200].mxu0 %vm479_vm1, %v2984_v30  ;;  %11874 = vmatmul.mubr.msk.bf16.gmra.mrb[196].mxu1 %vm479_vm1, %v3566_v37  ;;  %v3016_v34 = vshll.u32 %v12834_v21, 16  ;;  %v3571_v35 = vrot.slane %v13926_v28, 2  ;;  %v1511_v36 = vld [vmem:[#allocation2 + $0x70] sm:$0xff]  ;;  %v12836_v40 = vld [vmem:[%s13135_s25 + $0x98] sm:$0xff]  }
 0x1a4   : > { %11803 = vmatprep.mubr.msk.bf16.mxu0 %vm13073_vm0, %v13072_v1  ;;  %11877 = vmatprep.mubr.msk.bf16.mxu1 %vm13073_vm0, %v13072_v1  ;;  %v3011_v45 = vsel %vm2178_vm5, %v3001_v5, %v3010_v32  ;;  %v3022_v57 = vshrl.u32 %v12836_v40, 16  ;;  %v3025_v58 = vshll.u32 %v12836_v40, 16 }
 0x1a5   : > { %2651 = vst.msk [vmem:[#allocation2 + $0x38] sm:$0xff] %vm261_vm3, %v2613_v41 }
 0x1a6   : > { %v1813_v47 = vpop.f32.mrb[96].mxu0  ;;  %v2487_v48 = vpop.f32.mrb[92].mxu1  ;;  %v3027_v5 = vrot.slane %v3025_v58, 2  ;;  %v1518_v58 = vld [vmem:[#allocation2 + $0xa8] sm:$0xff] }
 0x1a7   : > { %v1934_v49 = vadd.f32 %v1813_v47, %v1507_v46  ;;  %v11617_v50 = vpop.f32.mrb[97].mxu0  ;;  %v11691_v53 = vpop.f32.mrb[93].mxu1  ;;  %v3015_v46 = vrot.slane %v3013_v33, 1  ;;  %v3018_v47 = vrot.slane %v3016_v34, 2 }
 0x1a8   : > { %v2047_v52 = vld [vmem:[#allocation2 + $0x40] sm:$0xff]  ;;  %v1816_v54 = vpop.f32.mrb[98].mxu0  ;;  %v2490_v60 = vpop.f32.mrb[94].mxu1  ;;  %v13943_v53 = vld [vmem:[%s13135_s25 + $0x88] sm:$0xff]  }
 0x1a9   : > { %v2614_v59 = vadd.f32 %v2487_v48, %v2047_v52  ;;  %1972 = vst.msk [vmem:[#allocation2 + $0x50] sm:$0xff] %vm261_vm3, %v1934_v49  ;;  %v1935_v61 = vadd.f32 %v1816_v54, %v1508_v51  ;;  %v11618_v62 = vpop.f32.mrb[99].mxu0  ;;  %v11692_v3 = vpop.f32.mrb[95].mxu1  ;;  %v3572_v52 = vsel %vm3541_vm6, %v3569_v8, %v3571_v35 }
 0x1aa   : > { %v2048_v2 = vld [vmem:[#allocation2 + $0x48] sm:$0xff] }
 0x1ab   : > { %2652 = vst.msk [vmem:[#allocation2 + $0x40] sm:$0xff] %vm261_vm3, %v2614_v59  ;;  %v2615_v4 = vadd.f32 %v2490_v60, %v2048_v2  ;;  %1973 = vst.msk [vmem:[#allocation2 + $0x58] sm:$0xff] %vm261_vm3, %v1935_v61  ;;  %11804 = vmatmul.mubr.msk.bf16.gmra.mrb[204].mxu0 %vm479_vm1, %v2993_v55  ;;  %11878 = vmatmul.mubr.msk.bf16.gmra.mrb[200].mxu1 %vm479_vm1, %v3568_v63  ;;  %v3019_v59 = vor.u32 %v3018_v47, %v3015_v46  ;;  %v3573_v60 = vrot.slane %v13943_v53, 2  ;;  %v1513_v61 = vld [vmem:[#allocation2 + $0x80] sm:$0xff]  ;;  %v1514_v3 = vld [vmem:[#allocation2 + $0x88] sm:$0xff] }
 0x1ac   : > { %11807 = vmatprep.mubr.msk.bf16.mxu0 %vm13073_vm0, %v13072_v1  ;;  %11881 = vmatprep.mubr.msk.bf16.mxu1 %vm13073_vm0, %v13072_v1  ;;  %v1517_v53 = vld [vmem:[#allocation2 + $0xa0] sm:$0xff] }
 0x1ad   : > { %2653 = vst.msk [vmem:[#allocation2 + $0x48] sm:$0xff] %vm261_vm3, %v2615_v4  ;;  %v3024_v4 = vrot.slane %v3022_v57, 1 }
 0x1ae   : > { %v1821_v10 = vpop.f32.mrb[100].mxu0  ;;  %v2495_v11 = vpop.f32.mrb[96].mxu1 }
 0x1af   : > { %v1936_v12 = vadd.f32 %v1821_v10, %v1509_v9  ;;  %v11621_v13 = vpop.f32.mrb[101].mxu0  ;;  %v11695_v16 = vpop.f32.mrb[97].mxu1  ;;  %v3020_v9 = vsel %vm2178_vm5, %v3010_v32, %v3019_v59  ;;  %v12838_v10 = vld [vmem:[%s13135_s25 + $0xa0] ss:$0 sps:$4 sm:$0x33]   ;;  %v3028_v20 = vor.u32 %v3027_v5, %v3024_v4  ;;  %v12845_v4 = vld [vmem:[%s13135_s25 + $0x18] sm:$0xff]  }
 0x1b0   : > { %v2049_v15 = vld [vmem:[#allocation2 + $0x50] sm:$0xff]  ;;  %v1824_v17 = vpop.f32.mrb[102].mxu0  ;;  %v2498_v23 = vpop.f32.mrb[98].mxu1  ;;  %v3031_v21 = vshrl.u32 %v12838_v10, 16 }
 0x1b1   : > { %v2616_v22 = vadd.f32 %v2495_v11, %v2049_v15  ;;  %1974 = vst.msk [vmem:[#allocation2 + $0x60] sm:$0xff] %vm261_vm3, %v1936_v12  ;;  %v1937_v24 = vadd.f32 %v1824_v17, %v1510_v14  ;;  %v11622_v25 = vpop.f32.mrb[103].mxu0  ;;  %v11696_v30 = vpop.f32.mrb[99].mxu1  ;;  %v3574_v15 = vsel %vm3541_vm6, %v3571_v35, %v3573_v60  ;;  %v13960_v16 = vld [vmem:[%s13135_s25 + $0x90] sm:$0xff]   ;;  %v3029_v35 = vsel %vm2178_vm5, %v3019_v59, %v3028_v20 }
 0x1b2   : > { %v2050_v29 = vld [vmem:[#allocation2 + $0x58] sm:$0xff] }
 0x1b3   : > { %2654 = vst.msk [vmem:[#allocation2 + $0x50] sm:$0xff] %vm261_vm3, %v2616_v22  ;;  %v2617_v31 = vadd.f32 %v2498_v23, %v2050_v29  ;;  %1975 = vst.msk [vmem:[#allocation2 + $0x68] sm:$0xff] %vm261_vm3, %v1937_v24  ;;  %11808 = vmatmul.mubr.msk.bf16.gmra.mrb[208].mxu0 %vm479_vm1, %v3002_v18  ;;  %11882 = vmatmul.mubr.msk.bf16.gmra.mrb[204].mxu1 %vm479_vm1, %v3570_v26  ;;  %v3034_v22 = vshll.u32 %v12838_v10, 16  ;;  %v3575_v23 = vrot.slane %v13960_v16, 2  ;;  %v1515_v24 = vld [vmem:[#allocation2 + $0x90] sm:$0xff]  ;;  %v1516_v30 = vld [vmem:[#allocation2 + $0x98] sm:$0xff] }
 0x1b4   : > { %11811 = vmatprep.mubr.msk.bf16.mxu0 %vm13073_vm0, %v13072_v1  ;;  %11885 = vmatprep.mubr.msk.bf16.mxu1 %vm13073_vm0, %v13072_v1  ;;  %v12839_v10 = vld [vmem:[%s13135_s25 + $0xa0] ss:$0 sps:$4 sm:$0x33]   ;;  %v4102_v16 = vshrl.u32 %v12845_v4, 16 }
 0x1b5   : > { %2655 = vst.msk [vmem:[#allocation2 + $0x58] sm:$0xff] %vm261_vm3, %v2617_v31  ;;  %v12840_v31 = vld [vmem:[%s13135_s25 + $0x8] sm:$0xfc]  }
 0x1b6   : > { %v1829_v27 = vpop.f32.mrb[104].mxu0  ;;  %v2503_v37 = vpop.f32.mrb[100].mxu1  ;;  %v4085_v47 = vshrl.u32 %v12840_v31, 16 }
 0x1b7   : > { %v1938_v38 = vadd.f32 %v1829_v27, %v1511_v36  ;;  %v11625_v39 = vpop.f32.mrb[105].mxu0  ;;  %v11699_v42 = vpop.f32.mrb[101].mxu1  ;;  %v3033_v36 = vrot.slane %v3031_v21, 1  ;;  %v3036_v27 = vrot.slane %v3034_v22, 2 }
 0x1b8   : > { %v2051_v41 = vld [vmem:[#allocation2 + $0x60] sm:$0xff]  ;;  %v1832_v44 = vpop.f32.mrb[106].mxu0  ;;  %v2506_v49 = vpop.f32.mrb[102].mxu1  ;;  %v3576_v42 = vsel %vm3541_vm6, %v3573_v60, %v3575_v23  ;;  %v4087_v59 = vrot.slane %v4085_v47, 2 }
 0x1b9   : > { %v2618_v48 = vadd.f32 %v2503_v37, %v2051_v41  ;;  %1976 = vst.msk [vmem:[#allocation2 + $0x70] sm:$0xff] %vm261_vm3, %v1938_v38  ;;  %v1939_v50 = vadd.f32 %v1832_v44, %v1512_v43  ;;  %v11626_v51 = vpop.f32.mrb[107].mxu0  ;;  %v11700_v55 = vpop.f32.mrb[103].mxu1  ;;  %v12841_v37 = vld [vmem:[%s13135_s25 + $0x10] sm:$0xff]   ;;  %v13978_v43 = vld [vmem:[%s13135_s25 + $0x98] sm:$0xff]  }
 0x1ba   : > { %v2052_v54 = vld [vmem:[#allocation2 + $0x68] sm:$0xff]  ;;  %v4096_v51 = vshll.u32 %v12841_v37, 16 }
 0x1bb   : > { %2656 = vst.msk [vmem:[#allocation2 + $0x60] sm:$0xff] %vm261_vm3, %v2618_v48  ;;  %v2619_v56 = vadd.f32 %v2506_v49, %v2052_v54  ;;  %1977 = vst.msk [vmem:[#allocation2 + $0x78] sm:$0xff] %vm261_vm3, %v1939_v50  ;;  %11812 = vmatmul.mubr.msk.bf16.gmra.mrb[212].mxu0 %vm479_vm1, %v3011_v45  ;;  %11886 = vmatmul.mubr.msk.bf16.gmra.mrb[208].mxu1 %vm479_vm1, %v3572_v52  ;;  %v4088_v48 = vshll.u32 %v12840_v31, 16  ;;  %v3037_v49 = vor.u32 %v3036_v27, %v3033_v36 }
 0x1bc   : > { %11815 = vmatprep.mubr.msk.bf16.mxu0 %vm13073_vm0, %v13072_v1  ;;  %11889 = vmatprep.mubr.msk.bf16.mxu1 %vm13073_vm0, %v13072_v1  ;;  %v4093_v50 = vshrl.u32 %v12841_v37, 16  ;;  %v3577_v52 = vrot.slane %v13978_v43, 2  ;;  %v4104_v31 = vrot.slane %v4102_v16, 2 }
 0x1bd   : > { %2657 = vst.msk [vmem:[#allocation2 + $0x68] sm:$0xff] %vm261_vm3, %v2619_v56  ;;  %v4090_v60 = vrot.slane %v4088_v48, 3  ;;  %v1521_v48 = vld [vmem:[#allocation2 + $0xc0] sm:$0xff] }
 0x1be   : > { %v1837_v62 = vpop.f32.mrb[108].mxu0  ;;  %v2511_v63 = vpop.f32.mrb[104].mxu1 }
 0x1bf   : > { %v1940_v0 = vadd.f32 %v1837_v62, %v1513_v61  ;;  %v11629_v2 = vpop.f32.mrb[109].mxu0  ;;  %v11703_v7 = vpop.f32.mrb[105].mxu1 }
 0x1c0   : > { %v2053_v6 = vld [vmem:[#allocation2 + $0x70] sm:$0xff]  ;;  %v1840_v8 = vpop.f32.mrb[110].mxu0  ;;  %v2514_v12 = vpop.f32.mrb[106].mxu1  ;;  %v4095_v2 = vrot.slane %v4093_v50, 2 }
 0x1c1   : > { %v2620_v11 = vadd.f32 %v2511_v63, %v2053_v6  ;;  %1978 = vst.msk [vmem:[#allocation2 + $0x80] sm:$0xff] %vm261_vm3, %v1940_v0  ;;  %v1941_v13 = vadd.f32 %v1840_v8, %v1514_v3  ;;  %v11630_v14 = vpop.f32.mrb[111].mxu0  ;;  %v11704_v18 = vpop.f32.mrb[107].mxu1  ;;  %v3038_v0 = vsel %vm2178_vm5, %v3028_v20, %v3037_v49  ;;  %v4098_v3 = vrot.slane %v4096_v51, 3 }
 0x1c2   : > { %v2054_v17 = vld [vmem:[#allocation2 + $0x78] sm:$0xff]  ;;  %v4091_v14 = vor.u32 %v4090_v60, %v4087_v59  ;;  %v3579_v18 = vrot.slane %v12839_v10, 2  ;;  %v12850_v60 = vld [vmem:[%s13135_s25 + $0x28] sm:$0xff]  }
 0x1c3   : > { %2658 = vst.msk [vmem:[#allocation2 + $0x70] sm:$0xff] %vm261_vm3, %v2620_v11  ;;  %v2621_v19 = vadd.f32 %v2514_v12, %v2054_v17  ;;  %1979 = vst.msk [vmem:[#allocation2 + $0x88] sm:$0xff] %vm261_vm3, %v1941_v13  ;;  %11816 = vmatmul.mubr.msk.bf16.gmra.mrb[216].mxu0 %vm479_vm1, %v3020_v9  ;;  %11890 = vmatmul.mubr.msk.bf16.gmra.mrb[212].mxu1 %vm479_vm1, %v3574_v15  ;;  %v3578_v9 = vsel %vm3541_vm6, %v3575_v23, %v3577_v52  ;;  %v4105_v17 = vshll.u32 %v12845_v4, 16  ;;  %v14034_v4 = vld [vmem:[%s13135_s25 + $0x18] sm:$0xff]  }
 0x1c4   : > { %11819 = vmatprep.mubr.msk.bf16.mxu0 %vm13073_vm0, %v13072_v1  ;;  %11893 = vmatprep.mubr.msk.bf16.mxu1 %vm13073_vm0, %v13072_v1  ;;  %v4099_v15 = vor.u32 %v4098_v3, %v4095_v2  ;;  %v3580_v37 = vsel %vm3541_vm6, %v3577_v52, %v3579_v18  ;;  %v12846_v3 = vld [vmem:[%s15924_s1 + $0x48] sm:$0xff]   ;;  %v4123_v10 = vshll.u32 %v12850_v60, 16 }
 0x1c5   : > { %2659 = vst.msk [vmem:[#allocation2 + $0x78] sm:$0xff] %vm261_vm3, %v2621_v19  ;;  %v1519_v19 = vld [vmem:[#allocation2 + $0xb0] sm:$0xff] }
 0x1c6   : > { %v1845_v25 = vpop.f32.mrb[112].mxu0  ;;  %v2519_v26 = vpop.f32.mrb[108].mxu1 }
 0x1c7   : > { %v1942_v28 = vadd.f32 %v1845_v25, %v1515_v24  ;;  %v11633_v29 = vpop.f32.mrb[113].mxu0  ;;  %v11707_v33 = vpop.f32.mrb[109].mxu1  ;;  %v1520_v24 = vld [vmem:[#allocation2 + $0xb8] sm:$0xff]  ;;  %v12842_v25 = vld [vmem:[%s15924_s1 + $0x40] sm:$0xff]  }
 0x1c8   : > { %v2055_v32 = vld [vmem:[#allocation2 + $0x80] sm:$0xff]  ;;  %v1848_v34 = vpop.f32.mrb[114].mxu0  ;;  %v2522_v39 = vpop.f32.mrb[110].mxu1 }
 0x1c9   : > { %v2622_v38 = vadd.f32 %v2519_v26, %v2055_v32  ;;  %1980 = vst.msk [vmem:[#allocation2 + $0x90] sm:$0xff] %vm261_vm3, %v1942_v28  ;;  %v1943_v40 = vadd.f32 %v1848_v34, %v1516_v30  ;;  %v11634_v41 = vpop.f32.mrb[115].mxu0  ;;  %v11708_v45 = vpop.f32.mrb[111].mxu1  ;;  %v4100_v30 = vsel %vm4083_vm7, %v4091_v14, %v4099_v15  ;;  %v4107_v32 = vrot.slane %v4105_v17, 3  ;;  %v12848_v33 = vld [vmem:[%s13135_s25 + $0x20] sm:$0xff]   ;;  %v1524_v17 = vld [vmem:[#allocation2 + $0xd8] sm:$0xff] }
 0x1ca   : > { %v2056_v44 = vld [vmem:[#allocation2 + $0x88] sm:$0xff]  ;;  %v4114_v45 = vshll.u32 %v12848_v33, 16 }
 0x1cb   : > { %2660 = vst.msk [vmem:[#allocation2 + $0x80] sm:$0xff] %vm261_vm3, %v2622_v38  ;;  %v2623_v46 = vadd.f32 %v2522_v39, %v2056_v44  ;;  %1981 = vst.msk [vmem:[#allocation2 + $0x98] sm:$0xff] %vm261_vm3, %v1943_v40  ;;  %11820 = vmatmul.mubr.msk.bf16.gmra.mrb[220].mxu0 %vm479_vm1, %v3029_v35  ;;  %11894 = vmatmul.mubr.msk.bf16.gmra.mrb[216].mxu1 %vm479_vm1, %v3576_v42  ;;  %v12843_v38 = vld [vmem:[%s13135_s25 + $0x8] sm:$0xf8]   ;;  %v14013_v39 = vld [vmem:[%s13135_s25 + $0x10] sm:$0xff]   ;;  %v4108_v43 = vor.u32 %v4107_v32, %v4104_v31  ;;  %v4111_v44 = vshrl.u32 %v12848_v33, 16 }
 0x1cc   : > { %11823 = vmatprep.mubr.msk.bf16.mxu0 %vm13073_vm0, %v13072_v1  ;;  %11897 = vmatprep.mubr.msk.bf16.mxu1 %vm13073_vm0, %v13072_v1  ;;  %v4767_v47 = vrot.slane %v14013_v39, 3  ;;  %v4116_v59 = vrot.slane %v4114_v45, 3  ;;  %v14052_v31 = vld [vmem:[%s13135_s25 + $0x20] sm:$0xff]  }
 0x1cd   : > { %2661 = vst.msk [vmem:[#allocation2 + $0x88] sm:$0xff] %vm261_vm3, %v2623_v46  ;;  %v4766_v46 = vrot.slane %v12843_v38, 3  ;;  %v1525_v38 = vld [vmem:[#allocation2 + $0xe0] sm:$0xff] }
 0x1ce   : > { %v1853_v54 = vpop.f32.mrb[116].mxu0  ;;  %v2527_v55 = vpop.f32.mrb[112].mxu1 }
 0x1cf   : > { %v1944_v56 = vadd.f32 %v1853_v54, %v1517_v53  ;;  %v11637_v57 = vpop.f32.mrb[117].mxu0  ;;  %v11711_v62 = vpop.f32.mrb[113].mxu1  ;;  %v1522_v53 = vld [vmem:[#allocation2 + $0xc8] sm:$0xff]  ;;  %v4768_v2 = vsel %vm4765_vm8, %v4766_v46, %v4767_v47 }
 0x1d0   : > { %v2057_v61 = vld [vmem:[#allocation2 + $0x90] sm:$0xff]  ;;  %v1856_v63 = vpop.f32.mrb[118].mxu0  ;;  %v2530_v6 = vpop.f32.mrb[114].mxu1  ;;  %v4109_v57 = vsel %vm4083_vm7, %v4099_v15, %v4108_v43 }
 0x1d1   : > { %v2624_v5 = vadd.f32 %v2527_v55, %v2057_v61  ;;  %1982 = vst.msk [vmem:[#allocation2 + $0xa0] sm:$0xff] %vm261_vm3, %v1944_v56  ;;  %v1945_v7 = vadd.f32 %v1856_v63, %v1518_v58  ;;  %v11638_v8 = vpop.f32.mrb[119].mxu0  ;;  %v11712_v12 = vpop.f32.mrb[115].mxu1  ;;  %v4113_v58 = vrot.slane %v4111_v44, 2 }
 0x1d2   : > { %v2058_v11 = vld [vmem:[#allocation2 + $0x98] sm:$0xff]  ;;  %v1523_v12 = vld [vmem:[#allocation2 + $0xd0] sm:$0xff] }
 0x1d3   : > { %2662 = vst.msk [vmem:[#allocation2 + $0x90] sm:$0xff] %vm261_vm3, %v2624_v5  ;;  %v2625_v13 = vadd.f32 %v2530_v6, %v2058_v11  ;;  %1983 = vst.msk [vmem:[#allocation2 + $0xa8] sm:$0xff] %vm261_vm3, %v1945_v7  ;;  %11824 = vmatmul.mubr.msk.bf16.gmra.mrb[224].mxu0 %vm479_vm1, %v3038_v0  ;;  %11898 = vmatmul.mubr.msk.bf16.gmra.mrb[220].mxu1 %vm479_vm1, %v3578_v9  ;;  %v4117_v8 = vor.u32 %v4116_v59, %v4113_v58  ;;  %v4120_v9 = vshrl.u32 %v12850_v60, 16 }
 0x1d4   : > { %11907 = vmatprep.mubr.msk.bf16.mxu0 %vm13073_vm0, %v13072_v1  ;;  %11901 = vmatprep.mubr.msk.bf16.mxu1 %vm13073_vm0, %v13072_v1  ;;  %v4769_v11 = vrot.slane %v14034_v4, 3 }
 0x1d5   : > { %2663 = vst.msk [vmem:[#allocation2 + $0x98] sm:$0xff] %vm261_vm3, %v2625_v13 }
 0x1d6   : > { %v1861_v20 = vpop.f32.mrb[120].mxu0  ;;  %v2535_v21 = vpop.f32.mrb[116].mxu1 }
 0x1d7   : > { %v1946_v22 = vadd.f32 %v1861_v20, %v1519_v19  ;;  %v11641_v23 = vpop.f32.mrb[121].mxu0  ;;  %v11715_v28 = vpop.f32.mrb[117].mxu1 }
 0x1d8   : > { %v2059_v26 = vld [vmem:[#allocation2 + $0xa0] sm:$0xff]  ;;  %v1864_v29 = vpop.f32.mrb[122].mxu0  ;;  %v2538_v35 = vpop.f32.mrb[118].mxu1  ;;  %v4125_v23 = vrot.slane %v4123_v10, 3 }
 0x1d9   : > { %v2626_v34 = vadd.f32 %v2535_v21, %v2059_v26  ;;  %1984 = vst.msk [vmem:[#allocation2 + $0xb0] sm:$0xff] %vm261_vm3, %v1946_v22  ;;  %v1947_v36 = vadd.f32 %v1864_v29, %v1520_v24  ;;  %v11642_v27 = vpop.f32.mrb[123].mxu0  ;;  %v11716_v41 = vpop.f32.mrb[119].mxu1  ;;  %v4118_v21 = vsel %vm4083_vm7, %v4108_v43, %v4117_v8  ;;  %v4122_v22 = vrot.slane %v4120_v9, 2  ;;  %v12852_v24 = vld [vmem:[%s13135_s25 + $0x30] sm:$0xff]   ;;  %v1526_v43 = vld [vmem:[#allocation2 + $0xe8] sm:$0xff] }
 0x1da   : > { %v2060_v40 = vld [vmem:[#allocation2 + $0xa8] sm:$0xff]  ;;  %v4132_v27 = vshll.u32 %v12852_v24, 16 }
 0x1db   : > { %2664 = vst.msk [vmem:[#allocation2 + $0xa0] sm:$0xff] %vm261_vm3, %v2626_v34  ;;  %v2627_v42 = vadd.f32 %v2538_v35, %v2060_v40  ;;  %1985 = vst.msk [vmem:[#allocation2 + $0xb8] sm:$0xff] %vm261_vm3, %v1947_v36  ;;  %11908 = vmatmul.mubr.msk.bf16.vlgmr.msra.gmra.mrb[228].mxu0 %vm479_vm1, %v4100_v30  ;;  %11902 = vmatmul.mubr.msk.bf16.gmra.mrb[224].mxu1 %vm479_vm1, %v3580_v37  ;;  %v4770_v30 = vsel %vm4765_vm8, %v4767_v47, %v4769_v11  ;;  %v4129_v36 = vshrl.u32 %v12852_v24, 16 }
 0x1dc   : > { %12062 = vmatpush3.bf16.msra.mxu0 %v12842_v25  ;;  %11985 = vmatprep.mubr.msk.bf16.mxu1 %vm13073_vm0, %v13072_v1  ;;  %v4126_v35 = vor.u32 %v4125_v23, %v4122_v22  ;;  %v4771_v37 = vrot.slane %v14052_v31, 3 }
 0x1dd   : > { %2665 = vst.msk [vmem:[#allocation2 + $0xa8] sm:$0xff] %vm261_vm3, %v2627_v42  ;;  %11911 = vmatprep.mubr.msk.bf16.mxu0 %vm13073_vm0, %v13072_v1  ;;  %12217 = vmatprep.subr.bf16.mxu0 %v13072_v1 }
 0x1de   : > { %v1869_v49 = vpop.f32.mrb[124].mxu0  ;;  %v2543_v50 = vpop.f32.mrb[120].mxu1  ;;  %v4127_v47 = vsel %vm4083_vm7, %v4117_v8, %v4126_v35 }
 0x1df   : > { %v1948_v51 = vadd.f32 %v1869_v49, %v1521_v48  ;;  %v11645_v52 = vpop.f32.mrb[125].mxu0  ;;  %v11719_v55 = vpop.f32.mrb[121].mxu1  ;;  %v4131_v48 = vrot.slane %v4129_v36, 2  ;;  %v4134_v49 = vrot.slane %v4132_v27, 3 }
 0x1e0   : > { %v2061_v54 = vld [vmem:[#allocation2 + $0xb0] sm:$0xff]  ;;  %v1872_v56 = vpop.f32.mrb[126].mxu0  ;;  %v2546_v62 = vpop.f32.mrb[122].mxu1  ;;  %v4772_v55 = vsel %vm4765_vm8, %v4769_v11, %v4771_v37 }
 0x1e1   : > { %v2628_v61 = vadd.f32 %v2543_v50, %v2061_v54  ;;  %1986 = vst.msk [vmem:[#allocation2 + $0xc0] sm:$0xff] %vm261_vm3, %v1948_v51  ;;  %v1949_v63 = vadd.f32 %v1872_v56, %v1522_v53  ;;  %v11646_v0 = vpop.f32.mrb[127].mxu0  ;;  %v11720_v6 = vpop.f32.mrb[123].mxu1  ;;  %v12854_v50 = vld [vmem:[%s13135_s25 + $0x38] sm:$0xff]   ;;  %v14069_v56 = vld [vmem:[%s13135_s25 + $0x28] sm:$0xff]   ;;  %v4135_v60 = vor.u32 %v4134_v49, %v4131_v48 }
 0x1e2   : > { %v2062_v5 = vld [vmem:[#allocation2 + $0xb8] sm:$0xff]  ;;  %v1527_v0 = vld [vmem:[#allocation2 + $0xf0] sm:$0xff] }
 0x1e3   : > { %2666 = vst.msk [vmem:[#allocation2 + $0xb0] sm:$0xff] %vm261_vm3, %v2628_v61  ;;  %v2629_v7 = vadd.f32 %v2546_v62, %v2062_v5  ;;  %1987 = vst.msk [vmem:[#allocation2 + $0xc8] sm:$0xff] %vm261_vm3, %v1949_v63  ;;  %11912 = vmatmul.mubr.msk.bf16.gmra.mrb[232].mxu0 %vm479_vm1, %v4109_v57  ;;  %11986 = vmatmul.mubr.msk.bf16.vlgmr.msra.gmra.mrb[228].mxu1 %vm479_vm1, %v4768_v2  ;;  %v4138_v61 = vshrl.u32 %v12854_v50, 16  ;;  %v4141_v62 = vshll.u32 %v12854_v50, 16  ;;  %v4773_v63 = vrot.slane %v14069_v56, 3  ;;  %v1528_v6 = vld [vmem:[#allocation2 + $0xf8] sm:$0xff] }
 0x1e4   : > { %11915 = vmatprep.mubr.msk.bf16.mxu0 %vm13073_vm0, %v13072_v1  ;;  %12140 = vmatpush3.bf16.msra.mxu1 %v12846_v3  ;;  %v4136_v10 = vsel %vm4083_vm7, %v4126_v35, %v4135_v60 }
 0x1e5   : > { %2667 = vst.msk [vmem:[#allocation2 + $0xb8] sm:$0xff] %vm261_vm3, %v2629_v7  ;;  %11989 = vmatprep.mubr.msk.bf16.mxu1 %vm13073_vm0, %v13072_v1  ;;  %12295 = vmatprep.subr.bf16.mxu1 %v13072_v1  ;;  %v4140_v11 = vrot.slane %v4138_v61, 2 }
 0x1e6   : > { %v1877_v13 = vpop.f32.mrb[128].mxu0  ;;  %v2551_v14 = vpop.f32.mrb[124].mxu1 }
 0x1e7   : > { %v1950_v15 = vadd.f32 %v1877_v13, %v1523_v12  ;;  %v11649_v16 = vpop.f32.mrb[129].mxu0  ;;  %v11723_v19 = vpop.f32.mrb[125].mxu1  ;;  %v4143_v12 = vrot.slane %v4141_v62, 3  ;;  %v12856_v13 = vld [vmem:[%s13135_s25 + $0x40] sm:$0xff]  }
 0x1e8   : > { %v2063_v18 = vld [vmem:[#allocation2 + $0xc0] sm:$0xff]  ;;  %v1880_v20 = vpop.f32.mrb[130].mxu0  ;;  %v2554_v26 = vpop.f32.mrb[126].mxu1  ;;  %v14086_v19 = vld [vmem:[%s13135_s25 + $0x30] sm:$0xff]   ;;  %v4147_v24 = vshrl.u32 %v12856_v13, 16 }
 0x1e9   : > { %v2630_v25 = vadd.f32 %v2551_v14, %v2063_v18  ;;  %1988 = vst.msk [vmem:[#allocation2 + $0xd0] sm:$0xff] %vm261_vm3, %v1950_v15  ;;  %v1951_v28 = vadd.f32 %v1880_v20, %v1524_v17  ;;  %v11650_v29 = vpop.f32.mrb[131].mxu0  ;;  %v11724_v33 = vpop.f32.mrb[127].mxu1  ;;  %v4774_v18 = vsel %vm4765_vm8, %v4771_v37, %v4773_v63  ;;  %v4144_v23 = vor.u32 %v4143_v12, %v4140_v11  ;;  %v12857_v37 = vld [vmem:[%s13135_s25 + $0x48] sm:$0xff]  }
 0x1ea   : > { %v2064_v32 = vld [vmem:[#allocation2 + $0xc8] sm:$0xff]  ;;  %v4156_v50 = vshrl.u32 %v12857_v37, 16 }
 0x1eb   : > { %2668 = vst.msk [vmem:[#allocation2 + $0xc0] sm:$0xff] %vm261_vm3, %v2630_v25  ;;  %v2631_v34 = vadd.f32 %v2554_v26, %v2064_v32  ;;  %1989 = vst.msk [vmem:[#allocation2 + $0xd8] sm:$0xff] %vm261_vm3, %v1951_v28  ;;  %11916 = vmatmul.mubr.msk.bf16.gmra.mrb[236].mxu0 %vm479_vm1, %v4118_v21  ;;  %11990 = vmatmul.mubr.msk.bf16.gmra.mrb[232].mxu1 %vm479_vm1, %v4770_v30  ;;  %v4150_v25 = vshll.u32 %v12856_v13, 16  ;;  %v4775_v26 = vrot.slane %v14086_v19, 3  ;;  %v1529_v28 = vld [vmem:[#allocation2 + $0x100] sm:$0xff]  ;;  %v1530_v33 = vld [vmem:[#allocation2 + $0x108] sm:$0xff] }
 0x1ec   : > { %11919 = vmatprep.mubr.msk.bf16.mxu0 %vm13073_vm0, %v13072_v1  ;;  %11993 = vmatprep.mubr.msk.bf16.mxu1 %vm13073_vm0, %v13072_v1  ;;  %v4145_v27 = vsel %vm4083_vm7, %v4135_v60, %v4144_v23 }
 0x1ed   : > { %2669 = vst.msk [vmem:[#allocation2 + $0xc8] sm:$0xff] %vm261_vm3, %v2631_v34 }
 0x1ee   : > { %v1885_v39 = vpop.f32.mrb[132].mxu0  ;;  %v2559_v40 = vpop.f32.mrb[128].mxu1 }
 0x1ef   : > { %v1952_v41 = vadd.f32 %v1885_v39, %v1525_v38  ;;  %v11653_v42 = vpop.f32.mrb[133].mxu0  ;;  %v11727_v45 = vpop.f32.mrb[129].mxu1  ;;  %v4149_v38 = vrot.slane %v4147_v24, 2  ;;  %v4152_v39 = vrot.slane %v4150_v25, 3 }
 0x1f0   : > { %v2065_v44 = vld [vmem:[#allocation2 + $0xd0] sm:$0xff]  ;;  %v1888_v46 = vpop.f32.mrb[134].mxu0  ;;  %v2562_v52 = vpop.f32.mrb[130].mxu1  ;;  %v14103_v45 = vld [vmem:[%s13135_s25 + $0x38] sm:$0xff]  }
 0x1f1   : > { %v2632_v51 = vadd.f32 %v2559_v40, %v2065_v44  ;;  %1990 = vst.msk [vmem:[#allocation2 + $0xe0] sm:$0xff] %vm261_vm3, %v1952_v41  ;;  %v1953_v53 = vadd.f32 %v1888_v46, %v1526_v43  ;;  %v11654_v54 = vpop.f32.mrb[135].mxu0  ;;  %v11728_v58 = vpop.f32.mrb[131].mxu1  ;;  %v4776_v44 = vsel %vm4765_vm8, %v4773_v63, %v4775_v26  ;;  %v4153_v49 = vor.u32 %v4152_v39, %v4149_v38 }
 0x1f2   : > { %v2066_v57 = vld [vmem:[#allocation2 + $0xd8] sm:$0xff]  ;;  %v4158_v63 = vrot.slane %v4156_v50, 2 }
 0x1f3   : > { %2670 = vst.msk [vmem:[#allocation2 + $0xd0] sm:$0xff] %vm261_vm3, %v2632_v51  ;;  %v2633_v59 = vadd.f32 %v2562_v52, %v2066_v57  ;;  %1991 = vst.msk [vmem:[#allocation2 + $0xe8] sm:$0xff] %vm261_vm3, %v1953_v53  ;;  %11920 = vmatmul.mubr.msk.bf16.gmra.mrb[240].mxu0 %vm479_vm1, %v4127_v47  ;;  %11994 = vmatmul.mubr.msk.bf16.gmra.mrb[236].mxu1 %vm479_vm1, %v4772_v55  ;;  %v4159_v51 = vshll.u32 %v12857_v37, 16  ;;  %v4777_v52 = vrot.slane %v14103_v45, 3  ;;  %v1531_v53 = vld [vmem:[#allocation2 + $0x110] sm:$0xff]  ;;  %v1532_v58 = vld [vmem:[#allocation2 + $0x118] sm:$0xff] }
 0x1f4   : > { %11923 = vmatprep.mubr.msk.bf16.mxu0 %vm13073_vm0, %v13072_v1  ;;  %11997 = vmatprep.mubr.msk.bf16.mxu1 %vm13073_vm0, %v13072_v1  ;;  %v4154_v62 = vsel %vm4083_vm7, %v4144_v23, %v4153_v49 }
 0x1f5   : > { %2671 = vst.msk [vmem:[#allocation2 + $0xd8] sm:$0xff] %vm261_vm3, %v2633_v59 }
 0x1f6   : > { %v1893_v2 = vpop.f32.mrb[136].mxu0  ;;  %v2567_v3 = vpop.f32.mrb[132].mxu1 }
 0x1f7   : > { %v1954_v4 = vadd.f32 %v1893_v2, %v1527_v0  ;;  %v11657_v5 = vpop.f32.mrb[137].mxu0  ;;  %v11731_v8 = vpop.f32.mrb[133].mxu1  ;;  %v4161_v0 = vrot.slane %v4159_v51, 3  ;;  %v12860_v2 = vld [vmem:[%s13135_s25 + $0x50] sm:$0xff]  }
 0x1f8   : > { %v2067_v7 = vld [vmem:[#allocation2 + $0xe0] sm:$0xff]  ;;  %v1896_v9 = vpop.f32.mrb[138].mxu0  ;;  %v2570_v15 = vpop.f32.mrb[134].mxu1  ;;  %v4165_v13 = vshrl.u32 %v12860_v2, 16 }
 0x1f9   : > { %v2634_v14 = vadd.f32 %v2567_v3, %v2067_v7  ;;  %1992 = vst.msk [vmem:[#allocation2 + $0xf0] sm:$0xff] %vm261_vm3, %v1954_v4  ;;  %v1955_v16 = vadd.f32 %v1896_v9, %v1528_v6  ;;  %v11658_v17 = vpop.f32.mrb[139].mxu0  ;;  %v11732_v21 = vpop.f32.mrb[135].mxu1  ;;  %v4778_v7 = vsel %vm4765_vm8, %v4775_v26, %v4777_v52  ;;  %v14120_v8 = vld [vmem:[%s13135_s25 + $0x40] sm:$0xff]   ;;  %v4162_v12 = vor.u32 %v4161_v0, %v4158_v63 }
 0x1fa   : > { %v2068_v20 = vld [vmem:[#allocation2 + $0xe8] sm:$0xff]  ;;  %v4167_v26 = vrot.slane %v4165_v13, 2 }
 0x1fb   : > { %2672 = vst.msk [vmem:[#allocation2 + $0xe0] sm:$0xff] %vm261_vm3, %v2634_v14  ;;  %v2635_v22 = vadd.f32 %v2570_v15, %v2068_v20  ;;  %1993 = vst.msk [vmem:[#allocation2 + $0xf8] sm:$0xff] %vm261_vm3, %v1955_v16  ;;  %11924 = vmatmul.mubr.msk.bf16.gmra.mrb[244].mxu0 %vm479_vm1, %v4136_v10  ;;  %11998 = vmatmul.mubr.msk.bf16.gmra.mrb[240].mxu1 %vm479_vm1, %v4774_v18  ;;  %v4168_v14 = vshll.u32 %v12860_v2, 16  ;;  %v4779_v15 = vrot.slane %v14120_v8, 3  ;;  %v1533_v16 = vld [vmem:[#allocation2 + $0x120] sm:$0xff]  ;;  %v1534_v21 = vld [vmem:[#allocation2 + $0x128] sm:$0xff] }
 0x1fc   : > { %11927 = vmatprep.mubr.msk.bf16.mxu0 %vm13073_vm0, %v13072_v1  ;;  %12001 = vmatprep.mubr.msk.bf16.mxu1 %vm13073_vm0, %v13072_v1 }
 0x1fd   : > { %2673 = vst.msk [vmem:[#allocation2 + $0xe8] sm:$0xff] %vm261_vm3, %v2635_v22  ;;  %v4163_v22 = vsel %vm4083_vm7, %v4153_v49, %v4162_v12 }
 0x1fe   : > { %v1901_v29 = vpop.f32.mrb[140].mxu0  ;;  %v2575_v30 = vpop.f32.mrb[136].mxu1 }
 0x1ff   : > { %v1956_v31 = vadd.f32 %v1901_v29, %v1529_v28  ;;  %v11661_v32 = vpop.f32.mrb[141].mxu0  ;;  %v11735_v35 = vpop.f32.mrb[137].mxu1  ;;  %v4170_v28 = vrot.slane %v4168_v14, 3  ;;  %v12862_v29 = vld [vmem:[%s13135_s25 + $0x58] sm:$0xff]  }
 0x200   : > { %v2069_v34 = vld [vmem:[#allocation2 + $0xf0] sm:$0xff]  ;;  %v1904_v36 = vpop.f32.mrb[142].mxu0  ;;  %v2578_v41 = vpop.f32.mrb[138].mxu1  ;;  %v4780_v35 = vsel %vm4765_vm8, %v4777_v52, %v4779_v15  ;;  %v4174_v39 = vshrl.u32 %v12862_v29, 16 }
 0x201   : > { %v2636_v40 = vadd.f32 %v2575_v30, %v2069_v34  ;;  %1994 = vst.msk [vmem:[#allocation2 + $0x100] sm:$0xff] %vm261_vm3, %v1956_v31  ;;  %v1957_v42 = vadd.f32 %v1904_v36, %v1530_v33  ;;  %v11662_v43 = vpop.f32.mrb[143].mxu0  ;;  %v11736_v47 = vpop.f32.mrb[139].mxu1  ;;  %v14136_v34 = vld [vmem:[%s13135_s25 + $0x48] sm:$0xff]   ;;  %v4171_v38 = vor.u32 %v4170_v28, %v4167_v26 }
 0x202   : > { %v2070_v46 = vld [vmem:[#allocation2 + $0xf8] sm:$0xff]  ;;  %v2722_v47 = vld [vmem:[#allocation2 + $0x8] sm:$0xff]  ;;  %v4176_v52 = vrot.slane %v4174_v39, 2 }
 0x203   : > { %2674 = vst.msk [vmem:[#allocation2 + $0xf0] sm:$0xff] %vm261_vm3, %v2636_v40  ;;  %v2637_v48 = vadd.f32 %v2578_v41, %v2070_v46  ;;  %1995 = vst.msk [vmem:[#allocation2 + $0x108] sm:$0xff] %vm261_vm3, %v1957_v42  ;;  %11928 = vmatmul.mubr.msk.bf16.gmra.mrb[248].mxu0 %vm479_vm1, %v4145_v27  ;;  %12002 = vmatmul.mubr.msk.bf16.gmra.mrb[244].mxu1 %vm479_vm1, %v4776_v44  ;;  %v4177_v40 = vshll.u32 %v12862_v29, 16  ;;  %v4781_v41 = vrot.slane %v14136_v34, 3  ;;  %v2721_v42 = vld [vmem:[#allocation2] sm:$0xff] }
 0x204   : > { %11931 = vmatprep.mubr.msk.bf16.mxu0 %vm13073_vm0, %v13072_v1  ;;  %12005 = vmatprep.mubr.msk.bf16.mxu1 %vm13073_vm0, %v13072_v1  ;;  %v4172_v51 = vsel %vm4083_vm7, %v4162_v12, %v4171_v38 }
 0x205   : > { %2675 = vst.msk [vmem:[#allocation2 + $0xf8] sm:$0xff] %vm261_vm3, %v2637_v48 }
 0x206   : > { %v1909_v54 = vpop.f32.mrb[144].mxu0  ;;  %v2583_v55 = vpop.f32.mrb[140].mxu1 }
 0x207   : > { %v1958_v56 = vadd.f32 %v1909_v54, %v1531_v53  ;;  %v11665_v57 = vpop.f32.mrb[145].mxu0  ;;  %v11739_v60 = vpop.f32.mrb[141].mxu1  ;;  %v4179_v53 = vrot.slane %v4177_v40, 3  ;;  %v12864_v54 = vld [vmem:[%s13135_s25 + $0x60] sm:$0xff]  }
 0x208   : > { %v2071_v59 = vld [vmem:[#allocation2 + $0x100] sm:$0xff]  ;;  %v1912_v61 = vpop.f32.mrb[146].mxu0  ;;  %v2586_v4 = vpop.f32.mrb[142].mxu1  ;;  %v14154_v60 = vld [vmem:[%s13135_s25 + $0x50] sm:$0xff]   ;;  %v4183_v2 = vshrl.u32 %v12864_v54, 16 }
 0x209   : > { %v2638_v3 = vadd.f32 %v2583_v55, %v2071_v59  ;;  %1996 = vst.msk [vmem:[#allocation2 + $0x110] sm:$0xff] %vm261_vm3, %v1958_v56  ;;  %v1959_v5 = vadd.f32 %v1912_v61, %v1532_v58  ;;  %v11666_v6 = vpop.f32.mrb[147].mxu0  ;;  %v11740_v10 = vpop.f32.mrb[143].mxu1  ;;  %v4782_v55 = vsel %vm4765_vm8, %v4779_v15, %v4781_v41  ;;  %v4180_v0 = vor.u32 %v4179_v53, %v4176_v52 }
 0x20a   : > { %v2072_v9 = vld [vmem:[#allocation2 + $0x108] sm:$0xff]  ;;  %v2724_v10 = vld [vmem:[#allocation2 + $0x18] sm:$0xff]  ;;  %v4185_v15 = vrot.slane %v4183_v2, 2 }
 0x20b   : > { %2676 = vst.msk [vmem:[#allocation2 + $0x100] sm:$0xff] %vm261_vm3, %v2638_v3  ;;  %v2639_v11 = vadd.f32 %v2586_v4, %v2072_v9  ;;  %1997 = vst.msk [vmem:[#allocation2 + $0x118] sm:$0xff] %vm261_vm3, %v1959_v5  ;;  %11932 = vmatmul.mubr.msk.bf16.gmra.mrb[252].mxu0 %vm479_vm1, %v4154_v62  ;;  %12006 = vmatmul.mubr.msk.bf16.gmra.mrb[248].mxu1 %vm479_vm1, %v4778_v7  ;;  %v4186_v3 = vshll.u32 %v12864_v54, 16  ;;  %v4783_v4 = vrot.slane %v14154_v60, 3  ;;  %v2723_v5 = vld [vmem:[#allocation2 + $0x10] sm:$0xff] }
 0x20c   : > { %11935 = vmatprep.mubr.msk.bf16.mxu0 %vm13073_vm0, %v13072_v1  ;;  %12009 = vmatprep.mubr.msk.bf16.mxu1 %vm13073_vm0, %v13072_v1  ;;  %v4181_v14 = vsel %vm4083_vm7, %v4171_v38, %v4180_v0 }
 0x20d   : > { %2677 = vst.msk [vmem:[#allocation2 + $0x108] sm:$0xff] %vm261_vm3, %v2639_v11 }
 0x20e   : > { %v1917_v17 = vpop.f32.mrb[148].mxu0  ;;  %v2591_v18 = vpop.f32.mrb[144].mxu1 }
 0x20f   : > { %v1960_v19 = vadd.f32 %v1917_v17, %v1533_v16  ;;  %v11669_v20 = vpop.f32.mrb[149].mxu0  ;;  %v11743_v24 = vpop.f32.mrb[145].mxu1  ;;  %v4188_v16 = vrot.slane %v4186_v3, 3  ;;  %v12866_v17 = vld [vmem:[%s13135_s25 + $0x68] sm:$0xff]  }
 0x210   : > { %v2073_v23 = vld [vmem:[#allocation2 + $0x110] sm:$0xff]  ;;  %v1920_v25 = vpop.f32.mrb[150].mxu0  ;;  %v2594_v31 = vpop.f32.mrb[146].mxu1  ;;  %v4192_v29 = vshrl.u32 %v12866_v17, 16 }
 0x211   : > { %v2640_v30 = vadd.f32 %v2591_v18, %v2073_v23  ;;  %1998 = vst.msk [vmem:[#allocation2 + $0x120] sm:$0xff] %vm261_vm3, %v1960_v19  ;;  %v1961_v32 = vadd.f32 %v1920_v25, %v1534_v21  ;;  %v11670_v33 = vpop.f32.mrb[151].mxu0  ;;  %v11744_v27 = vpop.f32.mrb[147].mxu1  ;;  %v14171_v23 = vld [vmem:[%s13135_s25 + $0x58] sm:$0xff]   ;;  %v4189_v28 = vor.u32 %v4188_v16, %v4185_v15 }
 0x212   : > { %v2074_v36 = vld [vmem:[#allocation2 + $0x118] sm:$0xff]  ;;  %v2726_v27 = vld [vmem:[#allocation2 + $0x28] sm:$0xff] }
 0x213   : > { %2678 = vst.msk [vmem:[#allocation2 + $0x110] sm:$0xff] %vm261_vm3, %v2640_v30  ;;  %v2641_v37 = vadd.f32 %v2594_v31, %v2074_v36  ;;  %1999 = vst.msk [vmem:[#allocation2 + $0x128] sm:$0xff] %vm261_vm3, %v1961_v32  ;;  %11936 = vmatmul.mubr.msk.bf16.gmra.mrb[0].mxu0 %vm479_vm1, %v4163_v22  ;;  %12010 = vmatmul.mubr.msk.bf16.gmra.mrb[252].mxu1 %vm479_vm1, %v4780_v35  ;;  %v4784_v22 = vsel %vm4765_vm8, %v4781_v41, %v4783_v4  ;;  %v4195_v30 = vshll.u32 %v12866_v17, 16  ;;  %v2725_v32 = vld [vmem:[#allocation2 + $0x20] sm:$0xff] }
 0x214   : > { %11939 = vmatprep.mubr.msk.bf16.mxu0 %vm13073_vm0, %v13072_v1  ;;  %12013 = vmatprep.mubr.msk.bf16.mxu1 %vm13073_vm0, %v13072_v1  ;;  %v4785_v31 = vrot.slane %v14171_v23, 3  ;;  %v4190_v40 = vsel %vm4083_vm7, %v4180_v0, %v4189_v28  ;;  %v4194_v41 = vrot.slane %v4192_v29, 2 }
 0x215   : > { %2679 = vst.msk [vmem:[#allocation2 + $0x118] sm:$0xff] %vm261_vm3, %v2641_v37 }
 0x216   : > { %v3136_v43 = vpop.f32.mrb[152].mxu0  ;;  %v2599_v44 = vpop.f32.mrb[148].mxu1 }
 0x217   : > { %v3287_v45 = vadd.f32 %v3136_v43, %v2721_v42  ;;  %v11753_v46 = vpop.f32.mrb[153].mxu0  ;;  %v11747_v49 = vpop.f32.mrb[149].mxu1  ;;  %v4197_v42 = vrot.slane %v4195_v30, 3  ;;  %v12868_v43 = vld [vmem:[%s13135_s25 + $0x70] sm:$0xff]  }
 0x218   : > { %v2075_v48 = vld [vmem:[#allocation2 + $0x120] sm:$0xff]  ;;  %v3139_v50 = vpop.f32.mrb[154].mxu0  ;;  %v2602_v57 = vpop.f32.mrb[150].mxu1  ;;  %v4201_v54 = vshrl.u32 %v12868_v43, 16 }
 0x219   : > { %v2642_v56 = vadd.f32 %v2599_v44, %v2075_v48  ;;  %3325 = vst.msk [vmem:[#allocation2] sm:$0xff] %vm261_vm3, %v3287_v45  ;;  %v3288_v58 = vadd.f32 %v3139_v50, %v2722_v47  ;;  %v11754_v59 = vpop.f32.mrb[155].mxu0  ;;  %v11748_v62 = vpop.f32.mrb[151].mxu1  ;;  %v4786_v48 = vsel %vm4765_vm8, %v4783_v4, %v4785_v31  ;;  %v14188_v49 = vld [vmem:[%s13135_s25 + $0x60] sm:$0xff]   ;;  %v4198_v53 = vor.u32 %v4197_v42, %v4194_v41 }
 0x21a   : > { %v2076_v61 = vld [vmem:[#allocation2 + $0x128] sm:$0xff]  ;;  %v2728_v62 = vld [vmem:[#allocation2 + $0x38] sm:$0xff]  ;;  %v4203_v4 = vrot.slane %v4201_v54, 2 }
 0x21b   : > { %2680 = vst.msk [vmem:[#allocation2 + $0x120] sm:$0xff] %vm261_vm3, %v2642_v56  ;;  %v2643_v63 = vadd.f32 %v2602_v57, %v2076_v61  ;;  %3326 = vst.msk [vmem:[#allocation2 + $0x8] sm:$0xff] %vm261_vm3, %v3288_v58  ;;  %11940 = vmatmul.mubr.msk.bf16.gmra.mrb[4].mxu0 %vm479_vm1, %v4172_v51  ;;  %12014 = vmatmul.mubr.msk.bf16.gmra.mrb[0].mxu1 %vm479_vm1, %v4782_v55  ;;  %v4204_v55 = vshll.u32 %v12868_v43, 16  ;;  %v4787_v56 = vrot.slane %v14188_v49, 3  ;;  %v2727_v57 = vld [vmem:[#allocation2 + $0x30] sm:$0xff] }
 0x21c   : > { %11943 = vmatprep.mubr.msk.bf16.mxu0 %vm13073_vm0, %v13072_v1  ;;  %12017 = vmatprep.mubr.msk.bf16.mxu1 %vm13073_vm0, %v13072_v1  ;;  %v4199_v3 = vsel %vm4083_vm7, %v4189_v28, %v4198_v53 }
 0x21d   : > { %2681 = vst.msk [vmem:[#allocation2 + $0x128] sm:$0xff] %vm261_vm3, %v2643_v63 }
 0x21e   : > { %v3144_v6 = vpop.f32.mrb[156].mxu0  ;;  %v3678_v7 = vpop.f32.mrb[152].mxu1 }
 0x21f   : > { %v3289_v8 = vadd.f32 %v3144_v6, %v2723_v5  ;;  %v11757_v9 = vpop.f32.mrb[157].mxu0  ;;  %v11831_v12 = vpop.f32.mrb[153].mxu1  ;;  %v4206_v5 = vrot.slane %v4204_v55, 3  ;;  %v12870_v6 = vld [vmem:[%s13135_s25 + $0x78] sm:$0xff]  }
 0x220   : > { %v3402_v11 = vld [vmem:[#allocation2] sm:$0xff]  ;;  %v3147_v13 = vpop.f32.mrb[158].mxu0  ;;  %v3681_v19 = vpop.f32.mrb[154].mxu1  ;;  %v14205_v12 = vld [vmem:[%s13135_s25 + $0x68] sm:$0xff]   ;;  %v4210_v17 = vshrl.u32 %v12870_v6, 16 }
 0x221   : > { %v3829_v18 = vadd.f32 %v3678_v7, %v3402_v11  ;;  %3327 = vst.msk [vmem:[#allocation2 + $0x10] sm:$0xff] %vm261_vm3, %v3289_v8  ;;  %v3290_v20 = vadd.f32 %v3147_v13, %v2724_v10  ;;  %v11758_v21 = vpop.f32.mrb[159].mxu0  ;;  %v11832_v25 = vpop.f32.mrb[155].mxu1  ;;  %v4788_v11 = vsel %vm4765_vm8, %v4785_v31, %v4787_v56  ;;  %v4207_v16 = vor.u32 %v4206_v5, %v4203_v4 }
 0x222   : > { %v3403_v24 = vld [vmem:[#allocation2 + $0x8] sm:$0xff]  ;;  %v4212_v31 = vrot.slane %v4210_v17, 2 }
 0x223   : > { %3867 = vst.msk [vmem:[#allocation2] sm:$0xff] %vm261_vm3, %v3829_v18  ;;  %v3830_v26 = vadd.f32 %v3681_v19, %v3403_v24  ;;  %3328 = vst.msk [vmem:[#allocation2 + $0x18] sm:$0xff] %vm261_vm3, %v3290_v20  ;;  %11944 = vmatmul.mubr.msk.bf16.gmra.mrb[8].mxu0 %vm479_vm1, %v4181_v14  ;;  %12018 = vmatmul.mubr.msk.bf16.gmra.mrb[4].mxu1 %vm479_vm1, %v4784_v22  ;;  %v4213_v18 = vshll.u32 %v12870_v6, 16  ;;  %v4789_v19 = vrot.slane %v14205_v12, 3  ;;  %v2729_v20 = vld [vmem:[#allocation2 + $0x40] sm:$0xff]  ;;  %v2730_v25 = vld [vmem:[#allocation2 + $0x48] sm:$0xff] }
 0x224   : > { %11947 = vmatprep.mubr.msk.bf16.mxu0 %vm13073_vm0, %v13072_v1  ;;  %12021 = vmatprep.mubr.msk.bf16.mxu1 %vm13073_vm0, %v13072_v1  ;;  %v4208_v30 = vsel %vm4083_vm7, %v4198_v53, %v4207_v16 }
 0x225   : > { %3868 = vst.msk [vmem:[#allocation2 + $0x8] sm:$0xff] %vm261_vm3, %v3830_v26 }
 0x226   : > { %v3152_v33 = vpop.f32.mrb[160].mxu0  ;;  %v3686_v34 = vpop.f32.mrb[156].mxu1 }
 0x227   : > { %v3291_v35 = vadd.f32 %v3152_v33, %v2725_v32  ;;  %v11761_v36 = vpop.f32.mrb[161].mxu0  ;;  %v11835_v38 = vpop.f32.mrb[157].mxu1  ;;  %v4215_v32 = vrot.slane %v4213_v18, 3  ;;  %v12872_v33 = vld [vmem:[%s13135_s25 + $0x80] sm:$0xff]  }
 0x228   : > { %v3404_v37 = vld [vmem:[#allocation2 + $0x10] sm:$0xff]  ;;  %v3155_v39 = vpop.f32.mrb[162].mxu0  ;;  %v3689_v45 = vpop.f32.mrb[158].mxu1  ;;  %v4219_v43 = vshrl.u32 %v12872_v33, 16 }
 0x229   : > { %v3831_v44 = vadd.f32 %v3686_v34, %v3404_v37  ;;  %3329 = vst.msk [vmem:[#allocation2 + $0x20] sm:$0xff] %vm261_vm3, %v3291_v35  ;;  %v3292_v46 = vadd.f32 %v3155_v39, %v2726_v27  ;;  %v11762_v47 = vpop.f32.mrb[163].mxu0  ;;  %v11836_v51 = vpop.f32.mrb[159].mxu1  ;;  %v4790_v37 = vsel %vm4765_vm8, %v4787_v56, %v4789_v19  ;;  %v14222_v38 = vld [vmem:[%s13135_s25 + $0x70] sm:$0xff]   ;;  %v4216_v42 = vor.u32 %v4215_v32, %v4212_v31 }
 0x22a   : > { %v3405_v50 = vld [vmem:[#allocation2 + $0x18] sm:$0xff]  ;;  %v4221_v56 = vrot.slane %v4219_v43, 2 }
 0x22b   : > { %3869 = vst.msk [vmem:[#allocation2 + $0x10] sm:$0xff] %vm261_vm3, %v3831_v44  ;;  %v3832_v52 = vadd.f32 %v3689_v45, %v3405_v50  ;;  %3330 = vst.msk [vmem:[#allocation2 + $0x28] sm:$0xff] %vm261_vm3, %v3292_v46  ;;  %11948 = vmatmul.mubr.msk.bf16.gmra.mrb[12].mxu0 %vm479_vm1, %v4190_v40  ;;  %12022 = vmatmul.mubr.msk.bf16.gmra.mrb[8].mxu1 %vm479_vm1, %v4786_v48  ;;  %v4222_v44 = vshll.u32 %v12872_v33, 16  ;;  %v4791_v45 = vrot.slane %v14222_v38, 3  ;;  %v2731_v46 = vld [vmem:[#allocation2 + $0x50] sm:$0xff]  ;;  %v2732_v51 = vld [vmem:[#allocation2 + $0x58] sm:$0xff] }
 0x22c   : > { %11951 = vmatprep.mubr.msk.bf16.mxu0 %vm13073_vm0, %v13072_v1  ;;  %12025 = vmatprep.mubr.msk.bf16.mxu1 %vm13073_vm0, %v13072_v1  ;;  %v4217_v55 = vsel %vm4083_vm7, %v4207_v16, %v4216_v42  ;;  %v2736_v43 = vld [vmem:[#allocation2 + $0x78] sm:$0xff] }
 0x22d   : > { %3870 = vst.msk [vmem:[#allocation2 + $0x18] sm:$0xff] %vm261_vm3, %v3832_v52 }
 0x22e   : > { %v3160_v58 = vpop.f32.mrb[164].mxu0  ;;  %v3694_v59 = vpop.f32.mrb[160].mxu1 }
 0x22f   : > { %v3293_v60 = vadd.f32 %v3160_v58, %v2727_v57  ;;  %v11765_v61 = vpop.f32.mrb[165].mxu0  ;;  %v11839_v0 = vpop.f32.mrb[161].mxu1  ;;  %v4224_v57 = vrot.slane %v4222_v44, 3  ;;  %v12874_v58 = vld [vmem:[%s13135_s25 + $0x88] sm:$0xff]  }
 0x230   : > { %v3406_v63 = vld [vmem:[#allocation2 + $0x20] sm:$0xff]  ;;  %v3163_v2 = vpop.f32.mrb[166].mxu0  ;;  %v3697_v8 = vpop.f32.mrb[162].mxu1  ;;  %v14239_v0 = vld [vmem:[%s13135_s25 + $0x78] sm:$0xff]   ;;  %v4228_v6 = vshrl.u32 %v12874_v58, 16 }
 0x231   : > { %v3833_v7 = vadd.f32 %v3694_v59, %v3406_v63  ;;  %3331 = vst.msk [vmem:[#allocation2 + $0x30] sm:$0xff] %vm261_vm3, %v3293_v60  ;;  %v3294_v9 = vadd.f32 %v3163_v2, %v2728_v62  ;;  %v11766_v10 = vpop.f32.mrb[167].mxu0  ;;  %v11840_v14 = vpop.f32.mrb[163].mxu1  ;;  %v4792_v63 = vsel %vm4765_vm8, %v4789_v19, %v4791_v45  ;;  %v4225_v5 = vor.u32 %v4224_v57, %v4221_v56 }
 0x232   : > { %v3407_v13 = vld [vmem:[#allocation2 + $0x28] sm:$0xff]  ;;  %v4230_v19 = vrot.slane %v4228_v6, 2 }
 0x233   : > { %3871 = vst.msk [vmem:[#allocation2 + $0x20] sm:$0xff] %vm261_vm3, %v3833_v7  ;;  %v3834_v15 = vadd.f32 %v3697_v8, %v3407_v13  ;;  %3332 = vst.msk [vmem:[#allocation2 + $0x38] sm:$0xff] %vm261_vm3, %v3294_v9  ;;  %11952 = vmatmul.mubr.msk.bf16.gmra.mrb[16].mxu0 %vm479_vm1, %v4199_v3  ;;  %12026 = vmatmul.mubr.msk.bf16.gmra.mrb[12].mxu1 %vm479_vm1, %v4788_v11  ;;  %v4231_v7 = vshll.u32 %v12874_v58, 16  ;;  %v4793_v8 = vrot.slane %v14239_v0, 3  ;;  %v2733_v9 = vld [vmem:[#allocation2 + $0x60] sm:$0xff]  ;;  %v2734_v14 = vld [vmem:[#allocation2 + $0x68] sm:$0xff] }
 0x234   : > { %11955 = vmatprep.mubr.msk.bf16.mxu0 %vm13073_vm0, %v13072_v1  ;;  %12029 = vmatprep.mubr.msk.bf16.mxu1 %vm13073_vm0, %v13072_v1  ;;  %v4226_v18 = vsel %vm4083_vm7, %v4216_v42, %v4225_v5 }
 0x235   : > { %3872 = vst.msk [vmem:[#allocation2 + $0x28] sm:$0xff] %vm261_vm3, %v3834_v15 }
 0x236   : > { %v3168_v21 = vpop.f32.mrb[168].mxu0  ;;  %v3702_v22 = vpop.f32.mrb[164].mxu1 }
 0x237   : > { %v3295_v23 = vadd.f32 %v3168_v21, %v2729_v20  ;;  %v11769_v24 = vpop.f32.mrb[169].mxu0  ;;  %v11843_v28 = vpop.f32.mrb[165].mxu1  ;;  %v4233_v20 = vrot.slane %v4231_v7, 3  ;;  %v12876_v21 = vld [vmem:[%s13135_s25 + $0x90] sm:$0xff]  }
 0x238   : > { %v3408_v26 = vld [vmem:[#allocation2 + $0x30] sm:$0xff]  ;;  %v3171_v29 = vpop.f32.mrb[170].mxu0  ;;  %v3705_v35 = vpop.f32.mrb[166].mxu1  ;;  %v14256_v28 = vld [vmem:[%s13135_s25 + $0x80] sm:$0xff]   ;;  %v4237_v33 = vshrl.u32 %v12876_v21, 16 }
 0x239   : > { %v3835_v34 = vadd.f32 %v3702_v22, %v3408_v26  ;;  %3333 = vst.msk [vmem:[#allocation2 + $0x40] sm:$0xff] %vm261_vm3, %v3295_v23  ;;  %v3296_v36 = vadd.f32 %v3171_v29, %v2730_v25  ;;  %v11770_v27 = vpop.f32.mrb[171].mxu0  ;;  %v11844_v40 = vpop.f32.mrb[167].mxu1  ;;  %v4794_v26 = vsel %vm4765_vm8, %v4791_v45, %v4793_v8  ;;  %v4234_v32 = vor.u32 %v4233_v20, %v4230_v19 }
 0x23a   : > { %v3409_v39 = vld [vmem:[#allocation2 + $0x38] sm:$0xff] }
 0x23b   : > { %3873 = vst.msk [vmem:[#allocation2 + $0x30] sm:$0xff] %vm261_vm3, %v3835_v34  ;;  %v3836_v41 = vadd.f32 %v3705_v35, %v3409_v39  ;;  %3334 = vst.msk [vmem:[#allocation2 + $0x48] sm:$0xff] %vm261_vm3, %v3296_v36  ;;  %11956 = vmatmul.mubr.msk.bf16.gmra.mrb[20].mxu0 %vm479_vm1, %v4208_v30  ;;  %12030 = vmatmul.mubr.msk.bf16.gmra.mrb[16].mxu1 %vm479_vm1, %v4790_v37  ;;  %v4240_v34 = vshll.u32 %v12876_v21, 16  ;;  %v4795_v35 = vrot.slane %v14256_v28, 3  ;;  %v2735_v36 = vld [vmem:[#allocation2 + $0x70] sm:$0xff]  ;;  %v12878_v40 = vld [vmem:[%s13135_s25 + $0x98] sm:$0xff]  }
 0x23c   : > { %11959 = vmatprep.mubr.msk.bf16.mxu0 %vm13073_vm0, %v13072_v1  ;;  %12033 = vmatprep.mubr.msk.bf16.mxu1 %vm13073_vm0, %v13072_v1  ;;  %v4235_v45 = vsel %vm4083_vm7, %v4225_v5, %v4234_v32  ;;  %v4246_v57 = vshrl.u32 %v12878_v40, 16  ;;  %v4249_v58 = vshll.u32 %v12878_v40, 16 }
 0x23d   : > { %3874 = vst.msk [vmem:[#allocation2 + $0x38] sm:$0xff] %vm261_vm3, %v3836_v41 }
 0x23e   : > { %v3176_v47 = vpop.f32.mrb[172].mxu0  ;;  %v3710_v48 = vpop.f32.mrb[168].mxu1  ;;  %v4251_v5 = vrot.slane %v4249_v58, 3 }
 0x23f   : > { %v3297_v49 = vadd.f32 %v3176_v47, %v2731_v46  ;;  %v11773_v50 = vpop.f32.mrb[173].mxu0  ;;  %v11847_v53 = vpop.f32.mrb[169].mxu1  ;;  %v4239_v46 = vrot.slane %v4237_v33, 2  ;;  %v4242_v47 = vrot.slane %v4240_v34, 3 }
 0x240   : > { %v3410_v52 = vld [vmem:[#allocation2 + $0x40] sm:$0xff]  ;;  %v3179_v54 = vpop.f32.mrb[174].mxu0  ;;  %v3713_v60 = vpop.f32.mrb[170].mxu1  ;;  %v14273_v53 = vld [vmem:[%s13135_s25 + $0x88] sm:$0xff]  }
 0x241   : > { %v3837_v59 = vadd.f32 %v3710_v48, %v3410_v52  ;;  %3335 = vst.msk [vmem:[#allocation2 + $0x50] sm:$0xff] %vm261_vm3, %v3297_v49  ;;  %v3298_v61 = vadd.f32 %v3179_v54, %v2732_v51  ;;  %v11774_v62 = vpop.f32.mrb[175].mxu0  ;;  %v11848_v3 = vpop.f32.mrb[171].mxu1  ;;  %v4796_v52 = vsel %vm4765_vm8, %v4793_v8, %v4795_v35 }
 0x242   : > { %v3411_v2 = vld [vmem:[#allocation2 + $0x48] sm:$0xff] }
 0x243   : > { %3875 = vst.msk [vmem:[#allocation2 + $0x40] sm:$0xff] %vm261_vm3, %v3837_v59  ;;  %v3838_v4 = vadd.f32 %v3713_v60, %v3411_v2  ;;  %3336 = vst.msk [vmem:[#allocation2 + $0x58] sm:$0xff] %vm261_vm3, %v3298_v61  ;;  %11960 = vmatmul.mubr.msk.bf16.gmra.mrb[24].mxu0 %vm479_vm1, %v4217_v55  ;;  %12034 = vmatmul.mubr.msk.bf16.gmra.mrb[20].mxu1 %vm479_vm1, %v4792_v63  ;;  %v4243_v59 = vor.u32 %v4242_v47, %v4239_v46  ;;  %v4797_v60 = vrot.slane %v14273_v53, 3  ;;  %v2737_v61 = vld [vmem:[#allocation2 + $0x80] sm:$0xff]  ;;  %v2738_v3 = vld [vmem:[#allocation2 + $0x88] sm:$0xff] }
 0x244   : > { %11963 = vmatprep.mubr.msk.bf16.mxu0 %vm13073_vm0, %v13072_v1  ;;  %12037 = vmatprep.mubr.msk.bf16.mxu1 %vm13073_vm0, %v13072_v1  ;;  %v2741_v47 = vld [vmem:[#allocation2 + $0xa0] sm:$0xff]  ;;  %v12882_v53 = vld [vmem:[%s13135_s25 + $0x10] sm:$0xf8]  }
 0x245   : > { %3876 = vst.msk [vmem:[#allocation2 + $0x48] sm:$0xff] %vm261_vm3, %v3838_v4  ;;  %v4248_v4 = vrot.slane %v4246_v57, 2 }
 0x246   : > { %v3184_v10 = vpop.f32.mrb[176].mxu0  ;;  %v3718_v11 = vpop.f32.mrb[172].mxu1 }
 0x247   : > { %v3299_v12 = vadd.f32 %v3184_v10, %v2733_v9  ;;  %v11777_v13 = vpop.f32.mrb[177].mxu0  ;;  %v11851_v16 = vpop.f32.mrb[173].mxu1  ;;  %v4244_v9 = vsel %vm4083_vm7, %v4234_v32, %v4243_v59  ;;  %v12880_v10 = vld [vmem:[%s13135_s25 + $0xa0] ss:$0 sps:$4 sm:$0x77]   ;;  %v4252_v20 = vor.u32 %v4251_v5, %v4248_v4  ;;  %v2740_v32 = vld [vmem:[#allocation2 + $0x98] sm:$0xff] }
 0x248   : > { %v3412_v15 = vld [vmem:[#allocation2 + $0x50] sm:$0xff]  ;;  %v3187_v17 = vpop.f32.mrb[178].mxu0  ;;  %v3721_v23 = vpop.f32.mrb[174].mxu1  ;;  %v4255_v21 = vshrl.u32 %v12880_v10, 16 }
 0x249   : > { %v3839_v22 = vadd.f32 %v3718_v11, %v3412_v15  ;;  %3337 = vst.msk [vmem:[#allocation2 + $0x60] sm:$0xff] %vm261_vm3, %v3299_v12  ;;  %v3300_v24 = vadd.f32 %v3187_v17, %v2734_v14  ;;  %v11778_v25 = vpop.f32.mrb[179].mxu0  ;;  %v11852_v30 = vpop.f32.mrb[175].mxu1  ;;  %v4798_v15 = vsel %vm4765_vm8, %v4795_v35, %v4797_v60  ;;  %v14290_v16 = vld [vmem:[%s13135_s25 + $0x90] sm:$0xff]   ;;  %v4253_v34 = vsel %vm4083_vm7, %v4243_v59, %v4252_v20  ;;  %v14322_v59 = vld [vmem:[%s13135_s25 + $0x18] sm:$0xff]  }
 0x24a   : > { %v3413_v29 = vld [vmem:[#allocation2 + $0x58] sm:$0xff]  ;;  %v4257_v35 = vrot.slane %v4255_v21, 2 }
 0x24b   : > { %3877 = vst.msk [vmem:[#allocation2 + $0x50] sm:$0xff] %vm261_vm3, %v3839_v22  ;;  %v3840_v31 = vadd.f32 %v3721_v23, %v3413_v29  ;;  %3338 = vst.msk [vmem:[#allocation2 + $0x68] sm:$0xff] %vm261_vm3, %v3300_v24  ;;  %11964 = vmatmul.mubr.msk.bf16.gmra.mrb[28].mxu0 %vm479_vm1, %v4226_v18  ;;  %12038 = vmatmul.mubr.msk.bf16.gmra.mrb[24].mxu1 %vm479_vm1, %v4794_v26  ;;  %v4258_v22 = vshll.u32 %v12880_v10, 16  ;;  %v4799_v23 = vrot.slane %v14290_v16, 3  ;;  %v2739_v24 = vld [vmem:[#allocation2 + $0x90] sm:$0xff]  ;;  %v5308_v10 = vrot.slane %v14322_v59, 3 }
 0x24c   : > { %11967 = vmatprep.mubr.msk.bf16.mxu0 %vm13073_vm0, %v13072_v1  ;;  %12041 = vmatprep.mubr.msk.bf16.mxu1 %vm13073_vm0, %v13072_v1 }
 0x24d   : > { %3878 = vst.msk [vmem:[#allocation2 + $0x58] sm:$0xff] %vm261_vm3, %v3840_v31  ;;  %v4800_v40 = vsel %vm4765_vm8, %v4797_v60, %v4799_v23  ;;  %v12886_v60 = vld [vmem:[%s13135_s25 + $0x18] sm:$0xff]  }
 0x24e   : > { %v3192_v27 = vpop.f32.mrb[180].mxu0  ;;  %v3726_v37 = vpop.f32.mrb[176].mxu1 }
 0x24f   : > { %v3301_v38 = vadd.f32 %v3192_v27, %v2735_v36  ;;  %v11781_v39 = vpop.f32.mrb[181].mxu0  ;;  %v11855_v42 = vpop.f32.mrb[177].mxu1  ;;  %v4260_v36 = vrot.slane %v4258_v22, 3 }
 0x250   : > { %v3414_v41 = vld [vmem:[#allocation2 + $0x60] sm:$0xff]  ;;  %v3195_v44 = vpop.f32.mrb[182].mxu0  ;;  %v3729_v49 = vpop.f32.mrb[178].mxu1 }
 0x251   : > { %v3841_v48 = vadd.f32 %v3726_v37, %v3414_v41  ;;  %3339 = vst.msk [vmem:[#allocation2 + $0x70] sm:$0xff] %vm261_vm3, %v3301_v38  ;;  %v3302_v50 = vadd.f32 %v3195_v44, %v2736_v43  ;;  %v11782_v51 = vpop.f32.mrb[183].mxu0  ;;  %v11856_v55 = vpop.f32.mrb[179].mxu1  ;;  %v14306_v41 = vld [vmem:[%s13135_s25 + $0x98] sm:$0xff]  }
 0x252   : > { %v3415_v54 = vld [vmem:[#allocation2 + $0x68] sm:$0xff]  ;;  %v4801_v46 = vrot.slane %v14306_v41, 3 }
 0x253   : > { %3879 = vst.msk [vmem:[#allocation2 + $0x60] sm:$0xff] %vm261_vm3, %v3841_v48  ;;  %v3842_v56 = vadd.f32 %v3729_v49, %v3415_v54  ;;  %3340 = vst.msk [vmem:[#allocation2 + $0x78] sm:$0xff] %vm261_vm3, %v3302_v50  ;;  %11968 = vmatmul.mubr.msk.bf16.gmra.mrb[32].mxu0 %vm479_vm1, %v4235_v45  ;;  %12042 = vmatmul.mubr.msk.bf16.gmra.mrb[28].mxu1 %vm479_vm1, %v4796_v52  ;;  %v4261_v45 = vor.u32 %v4260_v36, %v4257_v35  ;;  %v2742_v49 = vld [vmem:[#allocation2 + $0xa8] sm:$0xff]  ;;  %v12885_v54 = vld [vmem:[%s13135_s25 + $0x10] sm:$0xf8]  }
 0x254   : > { %11971 = vmatprep.mubr.msk.bf16.mxu0 %vm13073_vm0, %v13072_v1  ;;  %12045 = vmatprep.mubr.msk.bf16.mxu1 %vm13073_vm0, %v13072_v1  ;;  %v12889_v36 = vld [vmem:[%s13135_s25 + $0x20] sm:$0xff]  }
 0x255   : > { %3880 = vst.msk [vmem:[#allocation2 + $0x68] sm:$0xff] %vm261_vm3, %v3842_v56  ;;  %v4262_v58 = vsel %vm4083_vm7, %v4252_v20, %v4261_v45  ;;  %v12884_v20 = vld [vmem:[%s15924_s1 + $0x50] sm:$0xff]  }
 0x256   : > { %v3200_v62 = vpop.f32.mrb[184].mxu0  ;;  %v3734_v63 = vpop.f32.mrb[180].mxu1 }
 0x257   : > { %v3303_v0 = vadd.f32 %v3200_v62, %v2737_v61  ;;  %v11785_v2 = vpop.f32.mrb[185].mxu0  ;;  %v11859_v7 = vpop.f32.mrb[181].mxu1 }
 0x258   : > { %v3416_v6 = vld [vmem:[#allocation2 + $0x70] sm:$0xff]  ;;  %v3203_v8 = vpop.f32.mrb[186].mxu0  ;;  %v3737_v12 = vpop.f32.mrb[182].mxu1  ;;  %v4802_v2 = vsel %vm4765_vm8, %v4799_v23, %v4801_v46  ;;  %v5850_v7 = vshrl.u32 %v12885_v54, 16 }
 0x259   : > { %v3843_v11 = vadd.f32 %v3734_v63, %v3416_v6  ;;  %3341 = vst.msk [vmem:[#allocation2 + $0x80] sm:$0xff] %vm261_vm3, %v3303_v0  ;;  %v3304_v13 = vadd.f32 %v3203_v8, %v2738_v3  ;;  %v11786_v14 = vpop.f32.mrb[187].mxu0  ;;  %v11860_v18 = vpop.f32.mrb[183].mxu1  ;;  %v12881_v3 = vld [vmem:[%s13135_s25 + $0xa0] ss:$0 sps:$4 sm:$0x77]  }
 0x25a   : > { %v3417_v17 = vld [vmem:[#allocation2 + $0x78] sm:$0xff]  ;;  %v5853_v8 = vshll.u32 %v12885_v54, 16  ;;  %v2743_v14 = vld [vmem:[#allocation2 + $0xb0] sm:$0xff]  ;;  %v5852_v21 = vrot.slane %v5850_v7, 3 }
 0x25b   : > { %3881 = vst.msk [vmem:[#allocation2 + $0x70] sm:$0xff] %vm261_vm3, %v3843_v11  ;;  %v3844_v19 = vadd.f32 %v3737_v12, %v3417_v17  ;;  %3342 = vst.msk [vmem:[#allocation2 + $0x88] sm:$0xff] %vm261_vm3, %v3304_v13  ;;  %11972 = vmatmul.mubr.msk.bf16.gmra.mrb[36].mxu0 %vm479_vm1, %v4244_v9  ;;  %12046 = vmatmul.mubr.msk.bf16.gmra.mrb[32].mxu1 %vm479_vm1, %v4798_v15  ;;  %v5307_v9 = vrot.slane %v12882_v53, 3  ;;  %v5858_v11 = vshrl.u32 %v12886_v60, 16  ;;  %v5861_v12 = vshll.u32 %v12886_v60, 16 }
 0x25c   : > { %11975 = vmatprep.mubr.msk.bf16.mxu0 %vm13073_vm0, %v13072_v1  ;;  %12049 = vmatprep.mubr.msk.bf16.mxu1 %vm13073_vm0, %v13072_v1  ;;  %v4803_v13 = vrot.slane %v12881_v3, 3  ;;  %v5855_v22 = vrot.slane %v5853_v8, 4  ;;  %v2747_v8 = vld [vmem:[#allocation2 + $0xd0] sm:$0xff] }
 0x25d   : > { %3882 = vst.msk [vmem:[#allocation2 + $0x78] sm:$0xff] %vm261_vm3, %v3844_v19  ;;  %v2744_v19 = vld [vmem:[#allocation2 + $0xb8] sm:$0xff] }
 0x25e   : > { %v3208_v25 = vpop.f32.mrb[188].mxu0  ;;  %v3742_v26 = vpop.f32.mrb[184].mxu1  ;;  %v4804_v35 = vsel %vm4765_vm8, %v4801_v46, %v4803_v13  ;;  %v2748_v13 = vld [vmem:[#allocation2 + $0xd8] sm:$0xff] }
 0x25f   : > { %v3305_v28 = vadd.f32 %v3208_v25, %v2739_v24  ;;  %v11789_v29 = vpop.f32.mrb[189].mxu0  ;;  %v11863_v31 = vpop.f32.mrb[185].mxu1 }
 0x260   : > { %v3418_v30 = vld [vmem:[#allocation2 + $0x80] sm:$0xff]  ;;  %v3211_v33 = vpop.f32.mrb[190].mxu0  ;;  %v3745_v37 = vpop.f32.mrb[186].mxu1  ;;  %v5863_v29 = vrot.slane %v5861_v12, 4 }
 0x261   : > { %v3845_v27 = vadd.f32 %v3742_v26, %v3418_v30  ;;  %3343 = vst.msk [vmem:[#allocation2 + $0x90] sm:$0xff] %vm261_vm3, %v3305_v28  ;;  %v3306_v38 = vadd.f32 %v3211_v33, %v2740_v32  ;;  %v11790_v39 = vpop.f32.mrb[191].mxu0  ;;  %v11864_v43 = vpop.f32.mrb[187].mxu1  ;;  %v5309_v26 = vsel %vm4765_vm8, %v5307_v9, %v5308_v10  ;;  %v5860_v28 = vrot.slane %v5858_v11, 3  ;;  %v14343_v30 = vld [vmem:[%s13135_s25 + $0x20] sm:$0xff]  }
 0x262   : > { %v3419_v42 = vld [vmem:[#allocation2 + $0x88] sm:$0xff]  ;;  %v5856_v39 = vor.u32 %v5855_v22, %v5852_v21  ;;  %v5310_v41 = vrot.slane %v14343_v30, 3  ;;  %v5870_v43 = vshll.u32 %v12889_v36, 16 }
 0x263   : > { %3883 = vst.msk [vmem:[#allocation2 + $0x80] sm:$0xff] %vm261_vm3, %v3845_v27  ;;  %v3846_v44 = vadd.f32 %v3745_v37, %v3419_v42  ;;  %3344 = vst.msk [vmem:[#allocation2 + $0x98] sm:$0xff] %vm261_vm3, %v3306_v38  ;;  %11976 = vmatmul.mubr.msk.bf16.gmra.mrb[40].mxu0 %vm479_vm1, %v4253_v34  ;;  %12050 = vmatmul.mubr.msk.bf16.gmra.mrb[36].mxu1 %vm479_vm1, %v4800_v40  ;;  %v14352_v40 = vor.u32 %v5863_v29, %v5860_v28  ;;  %v5867_v42 = vshrl.u32 %v12889_v36, 16 }
 0x264   : > { %11979 = vmatprep.mubr.msk.bf16.mxu0 %vm13073_vm0, %v13072_v1  ;;  %12053 = vmatprep.mubr.msk.bf16.mxu1 %vm13073_vm0, %v13072_v1  ;;  %v5311_v54 = vsel %vm4765_vm8, %v5308_v10, %v5310_v41 }
 0x265   : > { %3884 = vst.msk [vmem:[#allocation2 + $0x88] sm:$0xff] %vm261_vm3, %v3846_v44  ;;  %v2745_v44 = vld [vmem:[#allocation2 + $0xc0] sm:$0xff]  ;;  %v5865_v53 = vsel %vm5848_vm9, %v5856_v39, %v14352_v40  ;;  %v2750_v39 = vld [vmem:[#allocation2 + $0xe8] sm:$0xff] }
 0x266   : > { %v3216_v48 = vpop.f32.mrb[192].mxu0  ;;  %v3750_v50 = vpop.f32.mrb[188].mxu1 }
 0x267   : > { %v3307_v51 = vadd.f32 %v3216_v48, %v2741_v47  ;;  %v11793_v52 = vpop.f32.mrb[193].mxu0  ;;  %v11867_v56 = vpop.f32.mrb[189].mxu1 }
 0x268   : > { %v3420_v55 = vld [vmem:[#allocation2 + $0x90] sm:$0xff]  ;;  %v3219_v57 = vpop.f32.mrb[194].mxu0  ;;  %v3753_v62 = vpop.f32.mrb[190].mxu1  ;;  %v12891_v56 = vld [vmem:[%s13135_s25 + $0x28] sm:$0xff]  }
 0x269   : > { %v3847_v61 = vadd.f32 %v3750_v50, %v3420_v55  ;;  %3345 = vst.msk [vmem:[#allocation2 + $0xa0] sm:$0xff] %vm261_vm3, %v3307_v51  ;;  %v3308_v63 = vadd.f32 %v3219_v57, %v2742_v49  ;;  %v11794_v0 = vpop.f32.mrb[195].mxu0  ;;  %v11868_v5 = vpop.f32.mrb[191].mxu1  ;;  %v2746_v49 = vld [vmem:[#allocation2 + $0xc8] sm:$0xff] }
 0x26a   : > { %v3421_v4 = vld [vmem:[#allocation2 + $0x98] sm:$0xff]  ;;  %v14365_v55 = vld [vmem:[%s13135_s25 + $0x28] sm:$0xff]   ;;  %v5876_v5 = vshrl.u32 %v12891_v56, 16 }
 0x26b   : > { %3885 = vst.msk [vmem:[#allocation2 + $0x90] sm:$0xff] %vm261_vm3, %v3847_v61  ;;  %v3848_v6 = vadd.f32 %v3753_v62, %v3421_v4  ;;  %3346 = vst.msk [vmem:[#allocation2 + $0xa8] sm:$0xff] %vm261_vm3, %v3308_v63  ;;  %11980 = vmatmul.mubr.msk.bf16.gmra.mrb[44].mxu0 %vm479_vm1, %v4262_v58  ;;  %12054 = vmatmul.mubr.msk.bf16.gmra.mrb[40].mxu1 %vm479_vm1, %v4802_v2  ;;  %v12888_v61 = vld [vmem:[%s15924_s1 + $0x58] sm:$0xff]   ;;  %v5869_v62 = vrot.slane %v5867_v42, 3  ;;  %v5872_v63 = vrot.slane %v5870_v43, 4  ;;  %v5312_v4 = vrot.slane %v14365_v55, 3 }
 0x26c   : > { %12063 = vmatprep.mubr.msk.bf16.mxu0 %vm13073_vm0, %v13072_v1  ;;  %12057 = vmatprep.mubr.msk.bf16.mxu1 %vm13073_vm0, %v13072_v1 }
 0x26d   : > { %3886 = vst.msk [vmem:[#allocation2 + $0x98] sm:$0xff] %vm261_vm3, %v3848_v6  ;;  %v5879_v6 = vshll.u32 %v12891_v56, 16  ;;  %v5873_v7 = vor.u32 %v5872_v63, %v5869_v62 }
 0x26e   : > { %v3224_v15 = vpop.f32.mrb[196].mxu0  ;;  %v3758_v16 = vpop.f32.mrb[192].mxu1 }
 0x26f   : > { %v3309_v17 = vadd.f32 %v3224_v15, %v2743_v14  ;;  %v11797_v18 = vpop.f32.mrb[197].mxu0  ;;  %v11871_v24 = vpop.f32.mrb[193].mxu1 }
 0x270   : > { %v3422_v23 = vld [vmem:[#allocation2 + $0xa0] sm:$0xff]  ;;  %v3227_v25 = vpop.f32.mrb[198].mxu0  ;;  %v3761_v32 = vpop.f32.mrb[194].mxu1  ;;  %v5878_v18 = vrot.slane %v5876_v5, 3 }
 0x271   : > { %v3849_v31 = vadd.f32 %v3758_v16, %v3422_v23  ;;  %3347 = vst.msk [vmem:[#allocation2 + $0xb0] sm:$0xff] %vm261_vm3, %v3309_v17  ;;  %v3310_v33 = vadd.f32 %v3227_v25, %v2744_v19  ;;  %v11798_v34 = vpop.f32.mrb[199].mxu0  ;;  %v11872_v37 = vpop.f32.mrb[195].mxu1  ;;  %v5313_v17 = vsel %vm4765_vm8, %v5310_v41, %v5312_v4  ;;  %v5881_v19 = vrot.slane %v5879_v6, 4 }
 0x272   : > { %v3423_v27 = vld [vmem:[#allocation2 + $0xa8] sm:$0xff]  ;;  %v5874_v25 = vsel %vm5848_vm9, %v14352_v40, %v5873_v7 }
 0x273   : > { %3887 = vst.msk [vmem:[#allocation2 + $0xa0] sm:$0xff] %vm261_vm3, %v3849_v31  ;;  %v3850_v38 = vadd.f32 %v3761_v32, %v3423_v27  ;;  %3348 = vst.msk [vmem:[#allocation2 + $0xb8] sm:$0xff] %vm261_vm3, %v3310_v33  ;;  %12064 = vmatmul.mubr.msk.bf16.vlgmr.msra.gmra.mrb[48].mxu0 %vm479_vm1, %v5309_v26  ;;  %12058 = vmatmul.mubr.msk.bf16.gmra.mrb[44].mxu1 %vm479_vm1, %v4804_v35  ;;  %v12893_v26 = vld [vmem:[%s13135_s25 + $0x30] sm:$0xff]   ;;  %v5882_v31 = vor.u32 %v5881_v19, %v5878_v18  ;;  %v2749_v35 = vld [vmem:[#allocation2 + $0xe0] sm:$0xff] }
 0x274   : > { %12218 = vmatpush3.bf16.msra.mxu0 %v12884_v20  ;;  %12141 = vmatprep.mubr.msk.bf16.mxu1 %vm13073_vm0, %v13072_v1  ;;  %v14385_v20 = vld [vmem:[%s13135_s25 + $0x30] sm:$0xff]   ;;  %v5885_v33 = vshrl.u32 %v12893_v26, 16  ;;  %v5888_v34 = vshll.u32 %v12893_v26, 16 }
 0x275   : > { %3888 = vst.msk [vmem:[#allocation2 + $0xa8] sm:$0xff] %vm261_vm3, %v3850_v38  ;;  %12067 = vmatprep.mubr.msk.bf16.mxu0 %vm13073_vm0, %v13072_v1  ;;  %12373 = vmatprep.subr.bf16.mxu0 %v13072_v1  ;;  %v5314_v32 = vrot.slane %v14385_v20, 3  ;;  %v5883_v43 = vsel %vm5848_vm9, %v5873_v7, %v5882_v31 }
 0x276   : > { %v3232_v45 = vpop.f32.mrb[200].mxu0  ;;  %v3766_v46 = vpop.f32.mrb[196].mxu1 }
 0x277   : > { %v3311_v47 = vadd.f32 %v3232_v45, %v2745_v44  ;;  %v11801_v48 = vpop.f32.mrb[201].mxu0  ;;  %v11875_v51 = vpop.f32.mrb[197].mxu1  ;;  %v5315_v44 = vsel %vm4765_vm8, %v5312_v4, %v5314_v32  ;;  %v14404_v45 = vld [vmem:[%s13135_s25 + $0x38] sm:$0xff]  }
 0x278   : > { %v3424_v50 = vld [vmem:[#allocation2 + $0xb0] sm:$0xff]  ;;  %v3235_v52 = vpop.f32.mrb[202].mxu0  ;;  %v3769_v58 = vpop.f32.mrb[198].mxu1  ;;  %v5887_v51 = vrot.slane %v5885_v33, 3  ;;  %v5316_v56 = vrot.slane %v14404_v45, 3 }
 0x279   : > { %v3851_v57 = vadd.f32 %v3766_v46, %v3424_v50  ;;  %3349 = vst.msk [vmem:[#allocation2 + $0xc0] sm:$0xff] %vm261_vm3, %v3311_v47  ;;  %v3312_v59 = vadd.f32 %v3235_v52, %v2746_v49  ;;  %v11802_v60 = vpop.f32.mrb[203].mxu0  ;;  %v11876_v2 = vpop.f32.mrb[199].mxu1  ;;  %v12895_v46 = vld [vmem:[%s13135_s25 + $0x38] sm:$0xff]   ;;  %v5890_v52 = vrot.slane %v5888_v34, 4 }
 0x27a   : > { %v3425_v0 = vld [vmem:[#allocation2 + $0xb8] sm:$0xff]  ;;  %v2751_v60 = vld [vmem:[#allocation2 + $0xf0] sm:$0xff]  ;;  %v5317_v6 = vsel %vm4765_vm8, %v5314_v32, %v5316_v56 }
 0x27b   : > { %3889 = vst.msk [vmem:[#allocation2 + $0xb0] sm:$0xff] %vm261_vm3, %v3851_v57  ;;  %v3852_v3 = vadd.f32 %v3769_v58, %v3425_v0  ;;  %3350 = vst.msk [vmem:[#allocation2 + $0xc8] sm:$0xff] %vm261_vm3, %v3312_v59  ;;  %12068 = vmatmul.mubr.msk.bf16.gmra.mrb[52].mxu0 %vm479_vm1, %v5311_v54  ;;  %12142 = vmatmul.mubr.msk.bf16.vlgmr.msra.gmra.mrb[48].mxu1 %vm479_vm1, %v5865_v53  ;;  %v5894_v57 = vshrl.u32 %v12895_v46, 16  ;;  %v5897_v58 = vshll.u32 %v12895_v46, 16  ;;  %v2752_v2 = vld [vmem:[#allocation2 + $0xf8] sm:$0xff] }
 0x27c   : > { %12071 = vmatprep.mubr.msk.bf16.mxu0 %vm13073_vm0, %v13072_v1  ;;  %12296 = vmatpush3.bf16.msra.mxu1 %v12888_v61  ;;  %v5891_v59 = vor.u32 %v5890_v52, %v5887_v51 }
 0x27d   : > { %3890 = vst.msk [vmem:[#allocation2 + $0xb8] sm:$0xff] %vm261_vm3, %v3852_v3  ;;  %12145 = vmatprep.mubr.msk.bf16.mxu1 %vm13073_vm0, %v13072_v1  ;;  %12451 = vmatprep.subr.bf16.mxu1 %v13072_v1  ;;  %v5896_v7 = vrot.slane %v5894_v57, 3 }
 0x27e   : > { %v3240_v9 = vpop.f32.mrb[204].mxu0  ;;  %v3774_v10 = vpop.f32.mrb[200].mxu1 }
 0x27f   : > { %v3313_v11 = vadd.f32 %v3240_v9, %v2747_v8  ;;  %v11805_v12 = vpop.f32.mrb[205].mxu0  ;;  %v11879_v15 = vpop.f32.mrb[201].mxu1  ;;  %v5899_v8 = vrot.slane %v5897_v58, 4  ;;  %v14420_v9 = vld [vmem:[%s13135_s25 + $0x40] sm:$0xff]  }
 0x280   : > { %v3426_v14 = vld [vmem:[#allocation2 + $0xc0] sm:$0xff]  ;;  %v3243_v16 = vpop.f32.mrb[206].mxu0  ;;  %v3777_v22 = vpop.f32.mrb[202].mxu1  ;;  %v5318_v20 = vrot.slane %v14420_v9, 3 }
 0x281   : > { %v3853_v21 = vadd.f32 %v3774_v10, %v3426_v14  ;;  %3351 = vst.msk [vmem:[#allocation2 + $0xd0] sm:$0xff] %vm261_vm3, %v3313_v11  ;;  %v3314_v23 = vadd.f32 %v3243_v16, %v2748_v13  ;;  %v11806_v24 = vpop.f32.mrb[207].mxu0  ;;  %v11880_v29 = vpop.f32.mrb[203].mxu1  ;;  %v5892_v14 = vsel %vm5848_vm9, %v5882_v31, %v5891_v59  ;;  %v12897_v15 = vld [vmem:[%s13135_s25 + $0x40] sm:$0xff]   ;;  %v5900_v19 = vor.u32 %v5899_v8, %v5896_v7 }
 0x282   : > { %v3427_v28 = vld [vmem:[#allocation2 + $0xc8] sm:$0xff]  ;;  %v5319_v34 = vsel %vm4765_vm8, %v5316_v56, %v5318_v20 }
 0x283   : > { %3891 = vst.msk [vmem:[#allocation2 + $0xc0] sm:$0xff] %vm261_vm3, %v3853_v21  ;;  %v3854_v30 = vadd.f32 %v3777_v22, %v3427_v28  ;;  %3352 = vst.msk [vmem:[#allocation2 + $0xd8] sm:$0xff] %vm261_vm3, %v3314_v23  ;;  %12072 = vmatmul.mubr.msk.bf16.gmra.mrb[56].mxu0 %vm479_vm1, %v5313_v17  ;;  %12146 = vmatmul.mubr.msk.bf16.gmra.mrb[52].mxu1 %vm479_vm1, %v5874_v25  ;;  %v5903_v21 = vshrl.u32 %v12897_v15, 16  ;;  %v5906_v22 = vshll.u32 %v12897_v15, 16  ;;  %v2753_v23 = vld [vmem:[#allocation2 + $0x100] sm:$0xff]  ;;  %v2754_v29 = vld [vmem:[#allocation2 + $0x108] sm:$0xff] }
 0x284   : > { %12075 = vmatprep.mubr.msk.bf16.mxu0 %vm13073_vm0, %v13072_v1  ;;  %12149 = vmatprep.mubr.msk.bf16.mxu1 %vm13073_vm0, %v13072_v1  ;;  %v5901_v33 = vsel %vm5848_vm9, %v5891_v59, %v5900_v19 }
 0x285   : > { %3892 = vst.msk [vmem:[#allocation2 + $0xc8] sm:$0xff] %vm261_vm3, %v3854_v30 }
 0x286   : > { %v3248_v36 = vpop.f32.mrb[208].mxu0  ;;  %v3782_v27 = vpop.f32.mrb[204].mxu1 }
 0x287   : > { %v3315_v37 = vadd.f32 %v3248_v36, %v2749_v35  ;;  %v11809_v38 = vpop.f32.mrb[209].mxu0  ;;  %v11883_v41 = vpop.f32.mrb[205].mxu1  ;;  %v14438_v35 = vld [vmem:[%s13135_s25 + $0x48] sm:$0xff]  }
 0x288   : > { %v3428_v40 = vld [vmem:[#allocation2 + $0xd0] sm:$0xff]  ;;  %v3251_v42 = vpop.f32.mrb[210].mxu0  ;;  %v3785_v48 = vpop.f32.mrb[206].mxu1  ;;  %v12899_v36 = vld [vmem:[%s13135_s25 + $0x48] sm:$0xff]   ;;  %v5908_v41 = vrot.slane %v5906_v22, 4  ;;  %v5320_v45 = vrot.slane %v14438_v35, 3 }
 0x289   : > { %v3855_v47 = vadd.f32 %v3782_v27, %v3428_v40  ;;  %3353 = vst.msk [vmem:[#allocation2 + $0xe0] sm:$0xff] %vm261_vm3, %v3315_v37  ;;  %v3316_v49 = vadd.f32 %v3251_v42, %v2750_v39  ;;  %v11810_v50 = vpop.f32.mrb[211].mxu0  ;;  %v11884_v54 = vpop.f32.mrb[207].mxu1  ;;  %v5905_v40 = vrot.slane %v5903_v21, 3  ;;  %v5912_v46 = vshrl.u32 %v12899_v36, 16 }
 0x28a   : > { %v3429_v53 = vld [vmem:[#allocation2 + $0xd8] sm:$0xff]  ;;  %v5321_v58 = vsel %vm4765_vm8, %v5318_v20, %v5320_v45 }
 0x28b   : > { %3893 = vst.msk [vmem:[#allocation2 + $0xd0] sm:$0xff] %vm261_vm3, %v3855_v47  ;;  %v3856_v55 = vadd.f32 %v3785_v48, %v3429_v53  ;;  %3354 = vst.msk [vmem:[#allocation2 + $0xe8] sm:$0xff] %vm261_vm3, %v3316_v49  ;;  %12076 = vmatmul.mubr.msk.bf16.gmra.mrb[60].mxu0 %vm479_vm1, %v5315_v44  ;;  %12150 = vmatmul.mubr.msk.bf16.gmra.mrb[56].mxu1 %vm479_vm1, %v5883_v43  ;;  %v5915_v47 = vshll.u32 %v12899_v36, 16  ;;  %v5909_v48 = vor.u32 %v5908_v41, %v5905_v40  ;;  %v2755_v49 = vld [vmem:[#allocation2 + $0x110] sm:$0xff]  ;;  %v2756_v54 = vld [vmem:[#allocation2 + $0x118] sm:$0xff] }
 0x28c   : > { %12079 = vmatprep.mubr.msk.bf16.mxu0 %vm13073_vm0, %v13072_v1  ;;  %12153 = vmatprep.mubr.msk.bf16.mxu1 %vm13073_vm0, %v13072_v1  ;;  %v5914_v59 = vrot.slane %v5912_v46, 3 }
 0x28d   : > { %3894 = vst.msk [vmem:[#allocation2 + $0xd8] sm:$0xff] %vm261_vm3, %v3856_v55 }
 0x28e   : > { %v3256_v61 = vpop.f32.mrb[212].mxu0  ;;  %v3790_v62 = vpop.f32.mrb[208].mxu1 }
 0x28f   : > { %v3317_v63 = vadd.f32 %v3256_v61, %v2751_v60  ;;  %v11813_v0 = vpop.f32.mrb[213].mxu0  ;;  %v11887_v4 = vpop.f32.mrb[209].mxu1  ;;  %v5917_v60 = vrot.slane %v5915_v47, 4  ;;  %v14454_v61 = vld [vmem:[%s13135_s25 + $0x50] sm:$0xff]  }
 0x290   : > { %v3430_v3 = vld [vmem:[#allocation2 + $0xe0] sm:$0xff]  ;;  %v3259_v5 = vpop.f32.mrb[214].mxu0  ;;  %v3793_v11 = vpop.f32.mrb[210].mxu1  ;;  %v12901_v4 = vld [vmem:[%s13135_s25 + $0x50] sm:$0xff]   ;;  %v5322_v9 = vrot.slane %v14454_v61, 3 }
 0x291   : > { %v3857_v10 = vadd.f32 %v3790_v62, %v3430_v3  ;;  %3355 = vst.msk [vmem:[#allocation2 + $0xf0] sm:$0xff] %vm261_vm3, %v3317_v63  ;;  %v3318_v12 = vadd.f32 %v3259_v5, %v2752_v2  ;;  %v11814_v13 = vpop.f32.mrb[215].mxu0  ;;  %v11888_v17 = vpop.f32.mrb[211].mxu1  ;;  %v5910_v3 = vsel %vm5848_vm9, %v5900_v19, %v5909_v48  ;;  %v5918_v8 = vor.u32 %v5917_v60, %v5914_v59 }
 0x292   : > { %v3431_v16 = vld [vmem:[#allocation2 + $0xe8] sm:$0xff]  ;;  %v5323_v22 = vsel %vm4765_vm8, %v5320_v45, %v5322_v9 }
 0x293   : > { %3895 = vst.msk [vmem:[#allocation2 + $0xe0] sm:$0xff] %vm261_vm3, %v3857_v10  ;;  %v3858_v18 = vadd.f32 %v3793_v11, %v3431_v16  ;;  %3356 = vst.msk [vmem:[#allocation2 + $0xf8] sm:$0xff] %vm261_vm3, %v3318_v12  ;;  %12080 = vmatmul.mubr.msk.bf16.gmra.mrb[64].mxu0 %vm479_vm1, %v5317_v6  ;;  %12154 = vmatmul.mubr.msk.bf16.gmra.mrb[60].mxu1 %vm479_vm1, %v5892_v14  ;;  %v5921_v10 = vshrl.u32 %v12901_v4, 16  ;;  %v5924_v11 = vshll.u32 %v12901_v4, 16  ;;  %v2757_v12 = vld [vmem:[#allocation2 + $0x120] sm:$0xff]  ;;  %v2758_v17 = vld [vmem:[#allocation2 + $0x128] sm:$0xff] }
 0x294   : > { %12083 = vmatprep.mubr.msk.bf16.mxu0 %vm13073_vm0, %v13072_v1  ;;  %12157 = vmatprep.mubr.msk.bf16.mxu1 %vm13073_vm0, %v13072_v1  ;;  %v5919_v21 = vsel %vm5848_vm9, %v5909_v48, %v5918_v8 }
 0x295   : > { %3896 = vst.msk [vmem:[#allocation2 + $0xe8] sm:$0xff] %vm261_vm3, %v3858_v18 }
 0x296   : > { %v3264_v24 = vpop.f32.mrb[216].mxu0  ;;  %v3798_v25 = vpop.f32.mrb[212].mxu1 }
 0x297   : > { %v3319_v26 = vadd.f32 %v3264_v24, %v2753_v23  ;;  %v11817_v28 = vpop.f32.mrb[217].mxu0  ;;  %v11891_v31 = vpop.f32.mrb[213].mxu1  ;;  %v14472_v23 = vld [vmem:[%s13135_s25 + $0x58] sm:$0xff]  }
 0x298   : > { %v3432_v30 = vld [vmem:[#allocation2 + $0xf0] sm:$0xff]  ;;  %v3267_v32 = vpop.f32.mrb[218].mxu0  ;;  %v3801_v37 = vpop.f32.mrb[214].mxu1  ;;  %v12903_v24 = vld [vmem:[%s13135_s25 + $0x58] sm:$0xff]   ;;  %v5926_v31 = vrot.slane %v5924_v11, 4  ;;  %v5324_v35 = vrot.slane %v14472_v23, 3 }
 0x299   : > { %v3859_v27 = vadd.f32 %v3798_v25, %v3432_v30  ;;  %3357 = vst.msk [vmem:[#allocation2 + $0x100] sm:$0xff] %vm261_vm3, %v3319_v26  ;;  %v3320_v38 = vadd.f32 %v3267_v32, %v2754_v29  ;;  %v11818_v39 = vpop.f32.mrb[219].mxu0  ;;  %v11892_v43 = vpop.f32.mrb[215].mxu1  ;;  %v5923_v30 = vrot.slane %v5921_v10, 3  ;;  %v5930_v36 = vshrl.u32 %v12903_v24, 16 }
 0x29a   : > { %v3433_v42 = vld [vmem:[#allocation2 + $0xf8] sm:$0xff]  ;;  %v3945_v43 = vld [vmem:[#allocation2 + $0x8] sm:$0xff]  ;;  %v5325_v47 = vsel %vm4765_vm8, %v5322_v9, %v5324_v35 }
 0x29b   : > { %3897 = vst.msk [vmem:[#allocation2 + $0xf0] sm:$0xff] %vm261_vm3, %v3859_v27  ;;  %v3860_v44 = vadd.f32 %v3801_v37, %v3433_v42  ;;  %3358 = vst.msk [vmem:[#allocation2 + $0x108] sm:$0xff] %vm261_vm3, %v3320_v38  ;;  %12084 = vmatmul.mubr.msk.bf16.gmra.mrb[68].mxu0 %vm479_vm1, %v5319_v34  ;;  %12158 = vmatmul.mubr.msk.bf16.gmra.mrb[64].mxu1 %vm479_vm1, %v5901_v33  ;;  %v5933_v27 = vshll.u32 %v12903_v24, 16  ;;  %v5927_v37 = vor.u32 %v5926_v31, %v5923_v30  ;;  %v3944_v38 = vld [vmem:[#allocation2] sm:$0xff] }
 0x29c   : > { %12087 = vmatprep.mubr.msk.bf16.mxu0 %vm13073_vm0, %v13072_v1  ;;  %12161 = vmatprep.mubr.msk.bf16.mxu1 %vm13073_vm0, %v13072_v1  ;;  %v5932_v48 = vrot.slane %v5930_v36, 3 }
 0x29d   : > { %3898 = vst.msk [vmem:[#allocation2 + $0xf8] sm:$0xff] %vm261_vm3, %v3860_v44 }
 0x29e   : > { %v3272_v50 = vpop.f32.mrb[220].mxu0  ;;  %v3806_v51 = vpop.f32.mrb[216].mxu1 }
 0x29f   : > { %v3321_v52 = vadd.f32 %v3272_v50, %v2755_v49  ;;  %v11821_v53 = vpop.f32.mrb[221].mxu0  ;;  %v11895_v56 = vpop.f32.mrb[217].mxu1  ;;  %v5935_v49 = vrot.slane %v5933_v27, 4  ;;  %v14488_v50 = vld [vmem:[%s13135_s25 + $0x60] sm:$0xff]  }
 0x2a0   : > { %v3434_v55 = vld [vmem:[#allocation2 + $0x100] sm:$0xff]  ;;  %v3275_v57 = vpop.f32.mrb[222].mxu0  ;;  %v3809_v63 = vpop.f32.mrb[218].mxu1  ;;  %v5326_v61 = vrot.slane %v14488_v50, 3 }
 0x2a1   : > { %v3861_v62 = vadd.f32 %v3806_v51, %v3434_v55  ;;  %3359 = vst.msk [vmem:[#allocation2 + $0x110] sm:$0xff] %vm261_vm3, %v3321_v52  ;;  %v3322_v0 = vadd.f32 %v3275_v57, %v2756_v54  ;;  %v11822_v2 = vpop.f32.mrb[223].mxu0  ;;  %v11896_v6 = vpop.f32.mrb[219].mxu1  ;;  %v5928_v55 = vsel %vm5848_vm9, %v5918_v8, %v5927_v37  ;;  %v12905_v56 = vld [vmem:[%s13135_s25 + $0x60] sm:$0xff]   ;;  %v5936_v60 = vor.u32 %v5935_v49, %v5932_v48 }
 0x2a2   : > { %v3435_v5 = vld [vmem:[#allocation2 + $0x108] sm:$0xff]  ;;  %v3947_v6 = vld [vmem:[#allocation2 + $0x18] sm:$0xff]  ;;  %v5327_v11 = vsel %vm4765_vm8, %v5324_v35, %v5326_v61 }
 0x2a3   : > { %3899 = vst.msk [vmem:[#allocation2 + $0x100] sm:$0xff] %vm261_vm3, %v3861_v62  ;;  %v3862_v7 = vadd.f32 %v3809_v63, %v3435_v5  ;;  %3360 = vst.msk [vmem:[#allocation2 + $0x118] sm:$0xff] %vm261_vm3, %v3322_v0  ;;  %12088 = vmatmul.mubr.msk.bf16.gmra.mrb[72].mxu0 %vm479_vm1, %v5321_v58  ;;  %12162 = vmatmul.mubr.msk.bf16.gmra.mrb[68].mxu1 %vm479_vm1, %v5910_v3  ;;  %v5939_v62 = vshrl.u32 %v12905_v56, 16  ;;  %v5942_v63 = vshll.u32 %v12905_v56, 16  ;;  %v3946_v0 = vld [vmem:[#allocation2 + $0x10] sm:$0xff] }
 0x2a4   : > { %12091 = vmatprep.mubr.msk.bf16.mxu0 %vm13073_vm0, %v13072_v1  ;;  %12165 = vmatprep.mubr.msk.bf16.mxu1 %vm13073_vm0, %v13072_v1  ;;  %v5937_v10 = vsel %vm5848_vm9, %v5927_v37, %v5936_v60 }
 0x2a5   : > { %3900 = vst.msk [vmem:[#allocation2 + $0x108] sm:$0xff] %vm261_vm3, %v3862_v7 }
 0x2a6   : > { %v3280_v13 = vpop.f32.mrb[224].mxu0  ;;  %v3814_v14 = vpop.f32.mrb[220].mxu1 }
 0x2a7   : > { %v3323_v15 = vadd.f32 %v3280_v13, %v2757_v12  ;;  %v11825_v16 = vpop.f32.mrb[225].mxu0  ;;  %v11899_v19 = vpop.f32.mrb[221].mxu1  ;;  %v14506_v12 = vld [vmem:[%s13135_s25 + $0x68] sm:$0xff]  }
 0x2a8   : > { %v3436_v18 = vld [vmem:[#allocation2 + $0x110] sm:$0xff]  ;;  %v3283_v20 = vpop.f32.mrb[226].mxu0  ;;  %v3817_v26 = vpop.f32.mrb[222].mxu1  ;;  %v12907_v13 = vld [vmem:[%s13135_s25 + $0x68] sm:$0xff]   ;;  %v5944_v19 = vrot.slane %v5942_v63, 4  ;;  %v5328_v23 = vrot.slane %v14506_v12, 3 }
 0x2a9   : > { %v3863_v25 = vadd.f32 %v3814_v14, %v3436_v18  ;;  %3361 = vst.msk [vmem:[#allocation2 + $0x120] sm:$0xff] %vm261_vm3, %v3323_v15  ;;  %v3324_v28 = vadd.f32 %v3283_v20, %v2758_v17  ;;  %v11826_v29 = vpop.f32.mrb[227].mxu0  ;;  %v11900_v33 = vpop.f32.mrb[223].mxu1  ;;  %v5941_v18 = vrot.slane %v5939_v62, 3  ;;  %v5948_v24 = vshrl.u32 %v12907_v13, 16 }
 0x2aa   : > { %v3437_v32 = vld [vmem:[#allocation2 + $0x118] sm:$0xff]  ;;  %v3949_v33 = vld [vmem:[#allocation2 + $0x28] sm:$0xff]  ;;  %v5329_v27 = vsel %vm4765_vm8, %v5326_v61, %v5328_v23 }
 0x2ab   : > { %3901 = vst.msk [vmem:[#allocation2 + $0x110] sm:$0xff] %vm261_vm3, %v3863_v25  ;;  %v3864_v34 = vadd.f32 %v3817_v26, %v3437_v32  ;;  %3362 = vst.msk [vmem:[#allocation2 + $0x128] sm:$0xff] %vm261_vm3, %v3324_v28  ;;  %12092 = vmatmul.mubr.msk.bf16.gmra.mrb[76].mxu0 %vm479_vm1, %v5323_v22  ;;  %12166 = vmatmul.mubr.msk.bf16.gmra.mrb[72].mxu1 %vm479_vm1, %v5919_v21  ;;  %v5951_v25 = vshll.u32 %v12907_v13, 16  ;;  %v5945_v26 = vor.u32 %v5944_v19, %v5941_v18  ;;  %v3948_v28 = vld [vmem:[#allocation2 + $0x20] sm:$0xff] }
 0x2ac   : > { %12095 = vmatprep.mubr.msk.bf16.mxu0 %vm13073_vm0, %v13072_v1  ;;  %12169 = vmatprep.mubr.msk.bf16.mxu1 %vm13073_vm0, %v13072_v1  ;;  %v5950_v37 = vrot.slane %v5948_v24, 3 }
 0x2ad   : > { %3902 = vst.msk [vmem:[#allocation2 + $0x118] sm:$0xff] %vm261_vm3, %v3864_v34 }
 0x2ae   : > { %v4360_v39 = vpop.f32.mrb[228].mxu0  ;;  %v3822_v40 = vpop.f32.mrb[224].mxu1 }
 0x2af   : > { %v4511_v41 = vadd.f32 %v4360_v39, %v3944_v38  ;;  %v11909_v42 = vpop.f32.mrb[229].mxu0  ;;  %v11903_v45 = vpop.f32.mrb[225].mxu1  ;;  %v5953_v38 = vrot.slane %v5951_v25, 4  ;;  %v14522_v39 = vld [vmem:[%s13135_s25 + $0x70] sm:$0xff]  }
 0x2b0   : > { %v3438_v44 = vld [vmem:[#allocation2 + $0x120] sm:$0xff]  ;;  %v4363_v46 = vpop.f32.mrb[230].mxu0  ;;  %v3825_v52 = vpop.f32.mrb[226].mxu1  ;;  %v12909_v45 = vld [vmem:[%s13135_s25 + $0x70] sm:$0xff]   ;;  %v5330_v50 = vrot.slane %v14522_v39, 3 }
 0x2b1   : > { %v3865_v51 = vadd.f32 %v3822_v40, %v3438_v44  ;;  %4549 = vst.msk [vmem:[#allocation2] sm:$0xff] %vm261_vm3, %v4511_v41  ;;  %v4512_v53 = vadd.f32 %v4363_v46, %v3945_v43  ;;  %v11910_v54 = vpop.f32.mrb[231].mxu0  ;;  %v11904_v58 = vpop.f32.mrb[227].mxu1  ;;  %v5946_v44 = vsel %vm5848_vm9, %v5936_v60, %v5945_v26  ;;  %v5954_v49 = vor.u32 %v5953_v38, %v5950_v37 }
 0x2b2   : > { %v3439_v57 = vld [vmem:[#allocation2 + $0x128] sm:$0xff]  ;;  %v3951_v58 = vld [vmem:[#allocation2 + $0x38] sm:$0xff]  ;;  %v5331_v63 = vsel %vm4765_vm8, %v5328_v23, %v5330_v50 }
 0x2b3   : > { %3903 = vst.msk [vmem:[#allocation2 + $0x120] sm:$0xff] %vm261_vm3, %v3865_v51  ;;  %v3866_v59 = vadd.f32 %v3825_v52, %v3439_v57  ;;  %4550 = vst.msk [vmem:[#allocation2 + $0x8] sm:$0xff] %vm261_vm3, %v4512_v53  ;;  %12096 = vmatmul.mubr.msk.bf16.gmra.mrb[80].mxu0 %vm479_vm1, %v5325_v47  ;;  %12170 = vmatmul.mubr.msk.bf16.gmra.mrb[76].mxu1 %vm479_vm1, %v5928_v55  ;;  %v5957_v51 = vshrl.u32 %v12909_v45, 16  ;;  %v5960_v52 = vshll.u32 %v12909_v45, 16  ;;  %v3950_v53 = vld [vmem:[#allocation2 + $0x30] sm:$0xff] }
 0x2b4   : > { %12099 = vmatprep.mubr.msk.bf16.mxu0 %vm13073_vm0, %v13072_v1  ;;  %12173 = vmatprep.mubr.msk.bf16.mxu1 %vm13073_vm0, %v13072_v1  ;;  %v5955_v62 = vsel %vm5848_vm9, %v5945_v26, %v5954_v49 }
 0x2b5   : > { %3904 = vst.msk [vmem:[#allocation2 + $0x128] sm:$0xff] %vm261_vm3, %v3866_v59 }
 0x2b6   : > { %v4368_v2 = vpop.f32.mrb[232].mxu0  ;;  %v4902_v3 = vpop.f32.mrb[228].mxu1 }
 0x2b7   : > { %v4513_v4 = vadd.f32 %v4368_v2, %v3946_v0  ;;  %v11913_v5 = vpop.f32.mrb[233].mxu0  ;;  %v11987_v8 = vpop.f32.mrb[229].mxu1  ;;  %v14540_v0 = vld [vmem:[%s13135_s25 + $0x78] sm:$0xff]  }
 0x2b8   : > { %v4626_v7 = vld [vmem:[#allocation2] sm:$0xff]  ;;  %v4371_v9 = vpop.f32.mrb[234].mxu0  ;;  %v4905_v15 = vpop.f32.mrb[230].mxu1  ;;  %v12911_v2 = vld [vmem:[%s13135_s25 + $0x78] sm:$0xff]   ;;  %v5962_v8 = vrot.slane %v5960_v52, 4  ;;  %v5332_v12 = vrot.slane %v14540_v0, 3 }
 0x2b9   : > { %v5053_v14 = vadd.f32 %v4902_v3, %v4626_v7  ;;  %4551 = vst.msk [vmem:[#allocation2 + $0x10] sm:$0xff] %vm261_vm3, %v4513_v4  ;;  %v4514_v16 = vadd.f32 %v4371_v9, %v3947_v6  ;;  %v11914_v17 = vpop.f32.mrb[235].mxu0  ;;  %v11988_v21 = vpop.f32.mrb[231].mxu1  ;;  %v5959_v7 = vrot.slane %v5957_v51, 3  ;;  %v5966_v13 = vshrl.u32 %v12911_v2, 16 }
 0x2ba   : > { %v4627_v20 = vld [vmem:[#allocation2 + $0x8] sm:$0xff]  ;;  %v5333_v25 = vsel %vm4765_vm8, %v5330_v50, %v5332_v12 }
 0x2bb   : > { %5091 = vst.msk [vmem:[#allocation2] sm:$0xff] %vm261_vm3, %v5053_v14  ;;  %v5054_v22 = vadd.f32 %v4905_v15, %v4627_v20  ;;  %4552 = vst.msk [vmem:[#allocation2 + $0x18] sm:$0xff] %vm261_vm3, %v4514_v16  ;;  %12100 = vmatmul.mubr.msk.bf16.gmra.mrb[84].mxu0 %vm479_vm1, %v5327_v11  ;;  %12174 = vmatmul.mubr.msk.bf16.gmra.mrb[80].mxu1 %vm479_vm1, %v5937_v10  ;;  %v5969_v14 = vshll.u32 %v12911_v2, 16  ;;  %v5963_v15 = vor.u32 %v5962_v8, %v5959_v7  ;;  %v3952_v16 = vld [vmem:[#allocation2 + $0x40] sm:$0xff]  ;;  %v3953_v21 = vld [vmem:[#allocation2 + $0x48] sm:$0xff] }
 0x2bc   : > { %12103 = vmatprep.mubr.msk.bf16.mxu0 %vm13073_vm0, %v13072_v1  ;;  %12177 = vmatprep.mubr.msk.bf16.mxu1 %vm13073_vm0, %v13072_v1  ;;  %v5968_v26 = vrot.slane %v5966_v13, 3 }
 0x2bd   : > { %5092 = vst.msk [vmem:[#allocation2 + $0x8] sm:$0xff] %vm261_vm3, %v5054_v22 }
 0x2be   : > { %v4376_v29 = vpop.f32.mrb[236].mxu0  ;;  %v4910_v30 = vpop.f32.mrb[232].mxu1 }
 0x2bf   : > { %v4515_v31 = vadd.f32 %v4376_v29, %v3948_v28  ;;  %v11917_v32 = vpop.f32.mrb[237].mxu0  ;;  %v11991_v35 = vpop.f32.mrb[233].mxu1  ;;  %v5971_v28 = vrot.slane %v5969_v14, 4  ;;  %v14556_v29 = vld [vmem:[%s13135_s25 + $0x80] sm:$0xff]  }
 0x2c0   : > { %v4628_v34 = vld [vmem:[#allocation2 + $0x10] sm:$0xff]  ;;  %v4379_v36 = vpop.f32.mrb[238].mxu0  ;;  %v4913_v41 = vpop.f32.mrb[234].mxu1  ;;  %v12913_v35 = vld [vmem:[%s13135_s25 + $0x80] sm:$0xff]   ;;  %v5334_v39 = vrot.slane %v14556_v29, 3 }
 0x2c1   : > { %v5055_v40 = vadd.f32 %v4910_v30, %v4628_v34  ;;  %4553 = vst.msk [vmem:[#allocation2 + $0x20] sm:$0xff] %vm261_vm3, %v4515_v31  ;;  %v4516_v42 = vadd.f32 %v4379_v36, %v3949_v33  ;;  %v11918_v43 = vpop.f32.mrb[239].mxu0  ;;  %v11992_v47 = vpop.f32.mrb[235].mxu1  ;;  %v5964_v34 = vsel %vm5848_vm9, %v5954_v49, %v5963_v15  ;;  %v5972_v38 = vor.u32 %v5971_v28, %v5968_v26 }
 0x2c2   : > { %v4629_v46 = vld [vmem:[#allocation2 + $0x18] sm:$0xff]  ;;  %v5335_v52 = vsel %vm4765_vm8, %v5332_v12, %v5334_v39 }
 0x2c3   : > { %5093 = vst.msk [vmem:[#allocation2 + $0x10] sm:$0xff] %vm261_vm3, %v5055_v40  ;;  %v5056_v48 = vadd.f32 %v4913_v41, %v4629_v46  ;;  %4554 = vst.msk [vmem:[#allocation2 + $0x28] sm:$0xff] %vm261_vm3, %v4516_v42  ;;  %12104 = vmatmul.mubr.msk.bf16.gmra.mrb[88].mxu0 %vm479_vm1, %v5329_v27  ;;  %12178 = vmatmul.mubr.msk.bf16.gmra.mrb[84].mxu1 %vm479_vm1, %v5946_v44  ;;  %v5975_v40 = vshrl.u32 %v12913_v35, 16  ;;  %v5978_v41 = vshll.u32 %v12913_v35, 16  ;;  %v3954_v42 = vld [vmem:[#allocation2 + $0x50] sm:$0xff]  ;;  %v3955_v47 = vld [vmem:[#allocation2 + $0x58] sm:$0xff] }
 0x2c4   : > { %12107 = vmatprep.mubr.msk.bf16.mxu0 %vm13073_vm0, %v13072_v1  ;;  %12181 = vmatprep.mubr.msk.bf16.mxu1 %vm13073_vm0, %v13072_v1  ;;  %v5973_v51 = vsel %vm5848_vm9, %v5963_v15, %v5972_v38 }
 0x2c5   : > { %5094 = vst.msk [vmem:[#allocation2 + $0x18] sm:$0xff] %vm261_vm3, %v5056_v48 }
 0x2c6   : > { %v4384_v54 = vpop.f32.mrb[240].mxu0  ;;  %v4918_v55 = vpop.f32.mrb[236].mxu1 }
 0x2c7   : > { %v4517_v56 = vadd.f32 %v4384_v54, %v3950_v53  ;;  %v11921_v57 = vpop.f32.mrb[241].mxu0  ;;  %v11995_v60 = vpop.f32.mrb[237].mxu1  ;;  %v14574_v53 = vld [vmem:[%s13135_s25 + $0x88] sm:$0xff]  }
 0x2c8   : > { %v4630_v59 = vld [vmem:[#allocation2 + $0x20] sm:$0xff]  ;;  %v4387_v61 = vpop.f32.mrb[242].mxu0  ;;  %v4921_v4 = vpop.f32.mrb[238].mxu1  ;;  %v12915_v54 = vld [vmem:[%s13135_s25 + $0x88] sm:$0xff]   ;;  %v5980_v60 = vrot.slane %v5978_v41, 4  ;;  %v5336_v0 = vrot.slane %v14574_v53, 3 }
 0x2c9   : > { %v5057_v3 = vadd.f32 %v4918_v55, %v4630_v59  ;;  %4555 = vst.msk [vmem:[#allocation2 + $0x30] sm:$0xff] %vm261_vm3, %v4517_v56  ;;  %v4518_v5 = vadd.f32 %v4387_v61, %v3951_v58  ;;  %v11922_v6 = vpop.f32.mrb[243].mxu0  ;;  %v11996_v10 = vpop.f32.mrb[239].mxu1  ;;  %v5977_v59 = vrot.slane %v5975_v40, 3  ;;  %v5984_v2 = vshrl.u32 %v12915_v54, 16 }
 0x2ca   : > { %v4631_v9 = vld [vmem:[#allocation2 + $0x28] sm:$0xff]  ;;  %v5337_v14 = vsel %vm4765_vm8, %v5334_v39, %v5336_v0 }
 0x2cb   : > { %5095 = vst.msk [vmem:[#allocation2 + $0x20] sm:$0xff] %vm261_vm3, %v5057_v3  ;;  %v5058_v11 = vadd.f32 %v4921_v4, %v4631_v9  ;;  %4556 = vst.msk [vmem:[#allocation2 + $0x38] sm:$0xff] %vm261_vm3, %v4518_v5  ;;  %12108 = vmatmul.mubr.msk.bf16.gmra.mrb[92].mxu0 %vm479_vm1, %v5331_v63  ;;  %12182 = vmatmul.mubr.msk.bf16.gmra.mrb[88].mxu1 %vm479_vm1, %v5955_v62  ;;  %v5987_v3 = vshll.u32 %v12915_v54, 16  ;;  %v5981_v4 = vor.u32 %v5980_v60, %v5977_v59  ;;  %v3956_v5 = vld [vmem:[#allocation2 + $0x60] sm:$0xff]  ;;  %v3957_v10 = vld [vmem:[#allocation2 + $0x68] sm:$0xff] }
 0x2cc   : > { %12111 = vmatprep.mubr.msk.bf16.mxu0 %vm13073_vm0, %v13072_v1  ;;  %12185 = vmatprep.mubr.msk.bf16.mxu1 %vm13073_vm0, %v13072_v1  ;;  %v5986_v15 = vrot.slane %v5984_v2, 3 }
 0x2cd   : > { %5096 = vst.msk [vmem:[#allocation2 + $0x28] sm:$0xff] %vm261_vm3, %v5058_v11 }
 0x2ce   : > { %v4392_v17 = vpop.f32.mrb[244].mxu0  ;;  %v4926_v18 = vpop.f32.mrb[240].mxu1 }
 0x2cf   : > { %v4519_v19 = vadd.f32 %v4392_v17, %v3952_v16  ;;  %v11925_v20 = vpop.f32.mrb[245].mxu0  ;;  %v11999_v23 = vpop.f32.mrb[241].mxu1  ;;  %v5989_v16 = vrot.slane %v5987_v3, 4  ;;  %v14590_v17 = vld [vmem:[%s13135_s25 + $0x90] sm:$0xff]  }
 0x2d0   : > { %v4632_v22 = vld [vmem:[#allocation2 + $0x30] sm:$0xff]  ;;  %v4395_v24 = vpop.f32.mrb[246].mxu0  ;;  %v4929_v31 = vpop.f32.mrb[242].mxu1  ;;  %v5338_v29 = vrot.slane %v14590_v17, 3 }
 0x2d1   : > { %v5059_v30 = vadd.f32 %v4926_v18, %v4632_v22  ;;  %4557 = vst.msk [vmem:[#allocation2 + $0x40] sm:$0xff] %vm261_vm3, %v4519_v19  ;;  %v4520_v32 = vadd.f32 %v4395_v24, %v3953_v21  ;;  %v11926_v33 = vpop.f32.mrb[247].mxu0  ;;  %v12000_v27 = vpop.f32.mrb[243].mxu1  ;;  %v5982_v22 = vsel %vm5848_vm9, %v5972_v38, %v5981_v4  ;;  %v12917_v23 = vld [vmem:[%s13135_s25 + $0x90] sm:$0xff]   ;;  %v5990_v28 = vor.u32 %v5989_v16, %v5986_v15 }
 0x2d2   : > { %v4633_v36 = vld [vmem:[#allocation2 + $0x38] sm:$0xff]  ;;  %v5339_v41 = vsel %vm4765_vm8, %v5336_v0, %v5338_v29 }
 0x2d3   : > { %5097 = vst.msk [vmem:[#allocation2 + $0x30] sm:$0xff] %vm261_vm3, %v5059_v30  ;;  %v5060_v37 = vadd.f32 %v4929_v31, %v4633_v36  ;;  %4558 = vst.msk [vmem:[#allocation2 + $0x48] sm:$0xff] %vm261_vm3, %v4520_v32  ;;  %12112 = vmatmul.mubr.msk.bf16.gmra.mrb[96].mxu0 %vm479_vm1, %v5333_v25  ;;  %12186 = vmatmul.mubr.msk.bf16.gmra.mrb[92].mxu1 %vm479_vm1, %v5964_v34  ;;  %v5993_v30 = vshrl.u32 %v12917_v23, 16  ;;  %v5996_v31 = vshll.u32 %v12917_v23, 16  ;;  %v3958_v32 = vld [vmem:[#allocation2 + $0x70] sm:$0xff]  ;;  %v3959_v27 = vld [vmem:[#allocation2 + $0x78] sm:$0xff] }
 0x2d4   : > { %12115 = vmatprep.mubr.msk.bf16.mxu0 %vm13073_vm0, %v13072_v1  ;;  %12189 = vmatprep.mubr.msk.bf16.mxu1 %vm13073_vm0, %v13072_v1  ;;  %v5991_v40 = vsel %vm5848_vm9, %v5981_v4, %v5990_v28 }
 0x2d5   : > { %5098 = vst.msk [vmem:[#allocation2 + $0x38] sm:$0xff] %vm261_vm3, %v5060_v37 }
 0x2d6   : > { %v4400_v43 = vpop.f32.mrb[248].mxu0  ;;  %v4934_v44 = vpop.f32.mrb[244].mxu1 }
 0x2d7   : > { %v4521_v45 = vadd.f32 %v4400_v43, %v3954_v42  ;;  %v11929_v46 = vpop.f32.mrb[249].mxu0  ;;  %v12003_v49 = vpop.f32.mrb[245].mxu1  ;;  %v14608_v42 = vld [vmem:[%s13135_s25 + $0x98] sm:$0xff]  }
 0x2d8   : > { %v4634_v48 = vld [vmem:[#allocation2 + $0x40] sm:$0xff]  ;;  %v4403_v50 = vpop.f32.mrb[250].mxu0  ;;  %v4937_v56 = vpop.f32.mrb[246].mxu1  ;;  %v12919_v43 = vld [vmem:[%s13135_s25 + $0x98] sm:$0xff]   ;;  %v5998_v49 = vrot.slane %v5996_v31, 4  ;;  %v5340_v53 = vrot.slane %v14608_v42, 3 }
 0x2d9   : > { %v5061_v55 = vadd.f32 %v4934_v44, %v4634_v48  ;;  %4559 = vst.msk [vmem:[#allocation2 + $0x50] sm:$0xff] %vm261_vm3, %v4521_v45  ;;  %v4522_v57 = vadd.f32 %v4403_v50, %v3955_v47  ;;  %v11930_v58 = vpop.f32.mrb[251].mxu0  ;;  %v12004_v62 = vpop.f32.mrb[247].mxu1  ;;  %v5995_v48 = vrot.slane %v5993_v30, 3  ;;  %v6002_v54 = vshrl.u32 %v12919_v43, 16 }
 0x2da   : > { %v4635_v61 = vld [vmem:[#allocation2 + $0x48] sm:$0xff]  ;;  %v5341_v3 = vsel %vm4765_vm8, %v5338_v29, %v5340_v53  ;;  %v3963_v29 = vld [vmem:[#allocation2 + $0x98] sm:$0xff] }
 0x2db   : > { %5099 = vst.msk [vmem:[#allocation2 + $0x40] sm:$0xff] %vm261_vm3, %v5061_v55  ;;  %v5062_v63 = vadd.f32 %v4937_v56, %v4635_v61  ;;  %4560 = vst.msk [vmem:[#allocation2 + $0x58] sm:$0xff] %vm261_vm3, %v4522_v57  ;;  %12116 = vmatmul.mubr.msk.bf16.gmra.mrb[100].mxu0 %vm479_vm1, %v5335_v52  ;;  %12190 = vmatmul.mubr.msk.bf16.gmra.mrb[96].mxu1 %vm479_vm1, %v5973_v51  ;;  %v6005_v55 = vshll.u32 %v12919_v43, 16  ;;  %v5999_v56 = vor.u32 %v5998_v49, %v5995_v48  ;;  %v3960_v57 = vld [vmem:[#allocation2 + $0x80] sm:$0xff]  ;;  %v3961_v62 = vld [vmem:[#allocation2 + $0x88] sm:$0xff] }
 0x2dc   : > { %12119 = vmatprep.mubr.msk.bf16.mxu0 %vm13073_vm0, %v13072_v1  ;;  %12193 = vmatprep.mubr.msk.bf16.mxu1 %vm13073_vm0, %v13072_v1  ;;  %v6004_v4 = vrot.slane %v6002_v54, 3 }
 0x2dd   : > { %5100 = vst.msk [vmem:[#allocation2 + $0x48] sm:$0xff] %vm261_vm3, %v5062_v63 }
 0x2de   : > { %v4408_v6 = vpop.f32.mrb[252].mxu0  ;;  %v4942_v7 = vpop.f32.mrb[248].mxu1 }
 0x2df   : > { %v4523_v8 = vadd.f32 %v4408_v6, %v3956_v5  ;;  %v11933_v9 = vpop.f32.mrb[253].mxu0  ;;  %v12007_v12 = vpop.f32.mrb[249].mxu1  ;;  %v6007_v5 = vrot.slane %v6005_v55, 4  ;;  %v14624_v6 = vld [vmem:[%s13135_s25 + $0xa0] sm:$0xff]  }
 0x2e0   : > { %v4636_v11 = vld [vmem:[#allocation2 + $0x50] sm:$0xff]  ;;  %v4411_v13 = vpop.f32.mrb[254].mxu0  ;;  %v4945_v19 = vpop.f32.mrb[250].mxu1  ;;  %v12921_v12 = vld [vmem:[%s13135_s25 + $0xa0] sm:$0xff]   ;;  %v5342_v17 = vrot.slane %v14624_v6, 3 }
 0x2e1   : > { %v5063_v18 = vadd.f32 %v4942_v7, %v4636_v11  ;;  %4561 = vst.msk [vmem:[#allocation2 + $0x60] sm:$0xff] %vm261_vm3, %v4523_v8  ;;  %v4524_v20 = vadd.f32 %v4411_v13, %v3957_v10  ;;  %v11934_v21 = vpop.f32.mrb[255].mxu0  ;;  %v12008_v25 = vpop.f32.mrb[251].mxu1  ;;  %v6000_v11 = vsel %vm5848_vm9, %v5990_v28, %v5999_v56  ;;  %v6008_v16 = vor.u32 %v6007_v5, %v6004_v4  ;;  %v14667_v5 = vld [vmem:[%s13135_s25 + $0x1c] sm:$0xff]  }
 0x2e2   : > { %v4637_v24 = vld [vmem:[#allocation2 + $0x58] sm:$0xff]  ;;  %v12922_v25 = vld [vmem:[%s13135_s25 + $0xa8] ss:$0 sps:$4 sm:$0x77]  }
 0x2e3   : > { %5101 = vst.msk [vmem:[#allocation2 + $0x50] sm:$0xff] %vm261_vm3, %v5063_v18  ;;  %v5064_v26 = vadd.f32 %v4945_v19, %v4637_v24  ;;  %4562 = vst.msk [vmem:[#allocation2 + $0x68] sm:$0xff] %vm261_vm3, %v4524_v20  ;;  %12120 = vmatmul.mubr.msk.bf16.gmra.mrb[104].mxu0 %vm479_vm1, %v5337_v14  ;;  %12194 = vmatmul.mubr.msk.bf16.gmra.mrb[100].mxu1 %vm479_vm1, %v5982_v22  ;;  %v6011_v18 = vshrl.u32 %v12921_v12, 16  ;;  %v6014_v19 = vshll.u32 %v12921_v12, 16  ;;  %v3962_v20 = vld [vmem:[#allocation2 + $0x90] sm:$0xff]  ;;  %v5344_v42 = vrot.slane %v12922_v25, 3 }
 0x2e4   : > { %12123 = vmatprep.mubr.msk.bf16.mxu0 %vm13073_vm0, %v13072_v1  ;;  %12197 = vmatprep.mubr.msk.bf16.mxu1 %vm13073_vm0, %v13072_v1  ;;  %v6009_v31 = vsel %vm5848_vm9, %v5999_v56, %v6008_v16  ;;  %v12924_v12 = vld [vmem:[%s13135_s25 + $0x14] sm:$0xff]   ;;  %v7036_v25 = vshll.u32 %v14667_v5, 16 }
 0x2e5   : > { %5102 = vst.msk [vmem:[#allocation2 + $0x58] sm:$0xff] %vm261_vm3, %v5064_v26  ;;  %v5345_v55 = vsel %vm4765_vm8, %v5342_v17, %v5344_v42  ;;  %v7040_v42 = vshrl.u32 %v14667_v5, 16 }
 0x2e6   : > { %v4416_v33 = vpop.f32.mrb[0].mxu0  ;;  %v4950_v34 = vpop.f32.mrb[252].mxu1 }
 0x2e7   : > { %v4525_v35 = vadd.f32 %v4416_v33, %v3958_v32  ;;  %v11937_v36 = vpop.f32.mrb[1].mxu0  ;;  %v12011_v38 = vpop.f32.mrb[253].mxu1  ;;  %v5343_v32 = vsel %vm4765_vm8, %v5340_v53, %v5342_v17  ;;  %v12923_v33 = vld [vmem:[%s13135_s25 + $0xa8] ss:$0 sps:$4 sm:$0xff]  }
 0x2e8   : > { %v4638_v37 = vld [vmem:[#allocation2 + $0x60] sm:$0xff]  ;;  %v4419_v39 = vpop.f32.mrb[2].mxu0  ;;  %v4953_v45 = vpop.f32.mrb[254].mxu1  ;;  %v6016_v38 = vrot.slane %v6014_v19, 4  ;;  %v6020_v43 = vshrl.u32 %v12923_v33, 16  ;;  %v3965_v53 = vld [vmem:[#allocation2 + $0xa8] sm:$0xff] }
 0x2e9   : > { %v5065_v44 = vadd.f32 %v4950_v34, %v4638_v37  ;;  %4563 = vst.msk [vmem:[#allocation2 + $0x70] sm:$0xff] %vm261_vm3, %v4525_v35  ;;  %v4526_v46 = vadd.f32 %v4419_v39, %v3959_v27  ;;  %v11938_v47 = vpop.f32.mrb[3].mxu0  ;;  %v12012_v51 = vpop.f32.mrb[255].mxu1  ;;  %v6013_v37 = vrot.slane %v6011_v18, 3  ;;  %v12925_v18 = vld [vmem:[%s15924_s1 + $0x60] sm:$0xff]  }
 0x2ea   : > { %v4639_v50 = vld [vmem:[#allocation2 + $0x68] sm:$0xff]  ;;  %v6022_v56 = vrot.slane %v6020_v43, 3 }
 0x2eb   : > { %5103 = vst.msk [vmem:[#allocation2 + $0x60] sm:$0xff] %vm261_vm3, %v5065_v44  ;;  %v5066_v52 = vadd.f32 %v4953_v45, %v4639_v50  ;;  %4564 = vst.msk [vmem:[#allocation2 + $0x78] sm:$0xff] %vm261_vm3, %v4526_v46  ;;  %12124 = vmatmul.mubr.msk.bf16.gmra.mrb[108].mxu0 %vm479_vm1, %v5339_v41  ;;  %12198 = vmatmul.mubr.msk.bf16.gmra.mrb[104].mxu1 %vm479_vm1, %v5991_v40  ;;  %v6023_v44 = vshll.u32 %v12923_v33, 16  ;;  %v6017_v45 = vor.u32 %v6016_v38, %v6013_v37  ;;  %v3964_v46 = vld [vmem:[#allocation2 + $0xa0] sm:$0xff] }
 0x2ec   : > { %12127 = vmatprep.mubr.msk.bf16.mxu0 %vm13073_vm0, %v13072_v1  ;;  %12201 = vmatprep.mubr.msk.bf16.mxu1 %vm13073_vm0, %v13072_v1  ;;  %v3968_v33 = vld [vmem:[#allocation2 + $0xc0] sm:$0xff] }
 0x2ed   : > { %5104 = vst.msk [vmem:[#allocation2 + $0x68] sm:$0xff] %vm261_vm3, %v5066_v52  ;;  %v12928_v37 = vld [vmem:[%s13135_s25 + $0x1c] sm:$0xff]  }
 0x2ee   : > { %v4424_v58 = vpop.f32.mrb[4].mxu0  ;;  %v4958_v59 = vpop.f32.mrb[0].mxu1 }
 0x2ef   : > { %v4527_v60 = vadd.f32 %v4424_v58, %v3960_v57  ;;  %v11941_v61 = vpop.f32.mrb[5].mxu0  ;;  %v12015_v0 = vpop.f32.mrb[1].mxu1  ;;  %v6025_v57 = vrot.slane %v6023_v44, 4 }
 0x2f0   : > { %v4640_v63 = vld [vmem:[#allocation2 + $0x70] sm:$0xff]  ;;  %v4427_v2 = vpop.f32.mrb[6].mxu0  ;;  %v4961_v8 = vpop.f32.mrb[2].mxu1 }
 0x2f1   : > { %v5067_v7 = vadd.f32 %v4958_v59, %v4640_v63  ;;  %4565 = vst.msk [vmem:[#allocation2 + $0x80] sm:$0xff] %vm261_vm3, %v4527_v60  ;;  %v4528_v9 = vadd.f32 %v4427_v2, %v3961_v62  ;;  %v11942_v10 = vpop.f32.mrb[7].mxu0  ;;  %v12016_v14 = vpop.f32.mrb[3].mxu1  ;;  %v6018_v62 = vsel %vm5848_vm9, %v6008_v16, %v6017_v45  ;;  %v12926_v63 = vld [vmem:[%s13135_s25 + $0x14] sm:$0xff]   ;;  %v6026_v4 = vor.u32 %v6025_v57, %v6022_v56 }
 0x2f2   : > { %v4641_v13 = vld [vmem:[#allocation2 + $0x78] sm:$0xff]  ;;  %v7031_v6 = vshll.u32 %v12926_v63, 16  ;;  %v7029_v19 = vshrl.u32 %v12926_v63, 16  ;;  %v3970_v56 = vld [vmem:[#allocation2 + $0xd0] sm:$0xff] }
 0x2f3   : > { %5105 = vst.msk [vmem:[#allocation2 + $0x70] sm:$0xff] %vm261_vm3, %v5067_v7  ;;  %v5068_v15 = vadd.f32 %v4961_v8, %v4641_v13  ;;  %4566 = vst.msk [vmem:[#allocation2 + $0x88] sm:$0xff] %vm261_vm3, %v4528_v9  ;;  %12128 = vmatmul.mubr.msk.bf16.gmra.mrb[112].mxu0 %vm479_vm1, %v5341_v3  ;;  %12202 = vmatmul.mubr.msk.bf16.gmra.mrb[108].mxu1 %vm479_vm1, %v6000_v11  ;;  %v3966_v7 = vld [vmem:[#allocation2 + $0xb0] sm:$0xff]  ;;  %v6027_v17 = vsel %vm5848_vm9, %v6017_v45, %v6026_v4 }
 0x2f4   : > { %12131 = vmatprep.mubr.msk.bf16.mxu0 %vm13073_vm0, %v13072_v1  ;;  %12205 = vmatprep.mubr.msk.bf16.mxu1 %vm13073_vm0, %v13072_v1 }
 0x2f5   : > { %5106 = vst.msk [vmem:[#allocation2 + $0x78] sm:$0xff] %vm261_vm3, %v5068_v15  ;;  %v3967_v15 = vld [vmem:[#allocation2 + $0xb8] sm:$0xff] }
 0x2f6   : > { %v4432_v21 = vpop.f32.mrb[8].mxu0  ;;  %v4966_v22 = vpop.f32.mrb[4].mxu1 }
 0x2f7   : > { %v4529_v23 = vadd.f32 %v4432_v21, %v3962_v20  ;;  %v11945_v24 = vpop.f32.mrb[9].mxu0  ;;  %v12019_v28 = vpop.f32.mrb[5].mxu1 }
 0x2f8   : > { %v4642_v26 = vld [vmem:[#allocation2 + $0x80] sm:$0xff]  ;;  %v4435_v30 = vpop.f32.mrb[10].mxu0  ;;  %v4969_v35 = vpop.f32.mrb[6].mxu1  ;;  %v7033_v24 = vrot.slane %v7031_v6, 1 }
 0x2f9   : > { %v5069_v34 = vadd.f32 %v4966_v22, %v4642_v26  ;;  %4567 = vst.msk [vmem:[#allocation2 + $0x90] sm:$0xff] %vm261_vm3, %v4529_v23  ;;  %v4530_v36 = vadd.f32 %v4435_v30, %v3963_v29  ;;  %v11946_v27 = vpop.f32.mrb[11].mxu0  ;;  %v12020_v40 = vpop.f32.mrb[7].mxu1  ;;  %v14681_v30 = vld [vmem:[%s13135_s25 + $0x24] sm:$0xff]  }
 0x2fa   : > { %v4643_v39 = vld [vmem:[#allocation2 + $0x88] sm:$0xff]  ;;  %v7044_v43 = vshll.u32 %v14681_v30, 16 }
 0x2fb   : > { %5107 = vst.msk [vmem:[#allocation2 + $0x80] sm:$0xff] %vm261_vm3, %v5069_v34  ;;  %v5070_v41 = vadd.f32 %v4969_v35, %v4643_v39  ;;  %4568 = vst.msk [vmem:[#allocation2 + $0x98] sm:$0xff] %vm261_vm3, %v4530_v36  ;;  %12132 = vmatmul.mubr.msk.bf16.gmra.mrb[116].mxu0 %vm479_vm1, %v5343_v32  ;;  %12206 = vmatmul.mubr.msk.bf16.gmra.mrb[112].mxu1 %vm479_vm1, %v6009_v31  ;;  %v7034_v31 = vor.u32 %v7033_v24, %v7029_v19  ;;  %v7038_v32 = vrot.slane %v7036_v25, 1  ;;  %v3969_v40 = vld [vmem:[#allocation2 + $0xc8] sm:$0xff] }
 0x2fc   : > { %12135 = vmatprep.mubr.msk.bf16.mxu0 %vm13073_vm0, %v13072_v1  ;;  %12209 = vmatprep.mubr.msk.bf16.mxu1 %vm13073_vm0, %v13072_v1  ;;  %v3973_v24 = vld [vmem:[#allocation2 + $0xe8] sm:$0xff] }
 0x2fd   : > { %5108 = vst.msk [vmem:[#allocation2 + $0x88] sm:$0xff] %vm261_vm3, %v5070_v41 }
 0x2fe   : > { %v4440_v47 = vpop.f32.mrb[12].mxu0  ;;  %v4974_v48 = vpop.f32.mrb[8].mxu1 }
 0x2ff   : > { %v4531_v49 = vadd.f32 %v4440_v47, %v3964_v46  ;;  %v11949_v50 = vpop.f32.mrb[13].mxu0  ;;  %v12023_v52 = vpop.f32.mrb[9].mxu1 }
 0x300   : > { %v4644_v51 = vld [vmem:[#allocation2 + $0x90] sm:$0xff]  ;;  %v4443_v54 = vpop.f32.mrb[14].mxu0  ;;  %v4977_v59 = vpop.f32.mrb[10].mxu1 }
 0x301   : > { %v5071_v58 = vadd.f32 %v4974_v48, %v4644_v51  ;;  %4569 = vst.msk [vmem:[#allocation2 + $0xa0] sm:$0xff] %vm261_vm3, %v4531_v49  ;;  %v4532_v60 = vadd.f32 %v4443_v54, %v3965_v53  ;;  %v11950_v61 = vpop.f32.mrb[15].mxu0  ;;  %v12024_v2 = vpop.f32.mrb[11].mxu1  ;;  %v7039_v48 = vsel %vm977_vm2, %v7034_v31, %v7038_v32  ;;  %v12929_v49 = vld [vmem:[%s15924_s1 + $0x68] sm:$0xff]   ;;  %v7042_v53 = vor.u32 %v7040_v42, %v7038_v32 }
 0x302   : > { %v4645_v0 = vld [vmem:[#allocation2 + $0x98] sm:$0xff]  ;;  %v7046_v54 = vrot.slane %v7044_v43, 1  ;;  %v12931_v61 = vld [vmem:[%s13135_s25 + $0x24] sm:$0xff]  }
 0x303   : > { %5109 = vst.msk [vmem:[#allocation2 + $0x90] sm:$0xff] %vm261_vm3, %v5071_v58  ;;  %v5072_v3 = vadd.f32 %v4977_v59, %v4645_v0  ;;  %4570 = vst.msk [vmem:[#allocation2 + $0xa8] sm:$0xff] %vm261_vm3, %v4532_v60  ;;  %12136 = vmatmul.mubr.msk.bf16.gmra.mrb[120].mxu0 %vm479_vm1, %v5345_v55  ;;  %12210 = vmatmul.mubr.msk.bf16.gmra.mrb[116].mxu1 %vm479_vm1, %v6018_v62  ;;  %v12932_v55 = vld [vmem:[%s13135_s25 + $0x2c] sm:$0xff]   ;;  %v3971_v0 = vld [vmem:[#allocation2 + $0xd8] sm:$0xff] }
 0x304   : > { %12219 = vmatprep.mubr.msk.bf16.mxu0 %vm13073_vm0, %v13072_v1  ;;  %12213 = vmatprep.mubr.msk.bf16.mxu1 %vm13073_vm0, %v13072_v1 }
 0x305   : > { %5110 = vst.msk [vmem:[#allocation2 + $0x98] sm:$0xff] %vm261_vm3, %v5072_v3  ;;  %v7047_v3 = vsel %vm977_vm2, %v7042_v53, %v7046_v54 }
 0x306   : > { %v4448_v8 = vpop.f32.mrb[16].mxu0  ;;  %v4982_v9 = vpop.f32.mrb[12].mxu1 }
 0x307   : > { %v4533_v10 = vadd.f32 %v4448_v8, %v3966_v7  ;;  %v11953_v11 = vpop.f32.mrb[17].mxu0  ;;  %v12027_v14 = vpop.f32.mrb[13].mxu1  ;;  %v7048_v8 = vshrl.u32 %v14681_v30, 16 }
 0x308   : > { %v4646_v13 = vld [vmem:[#allocation2 + $0xa0] sm:$0xff]  ;;  %v4451_v16 = vpop.f32.mrb[18].mxu0  ;;  %v4985_v21 = vpop.f32.mrb[14].mxu1 }
 0x309   : > { %v5073_v20 = vadd.f32 %v4982_v9, %v4646_v13  ;;  %4571 = vst.msk [vmem:[#allocation2 + $0xb0] sm:$0xff] %vm261_vm3, %v4533_v10  ;;  %v4534_v22 = vadd.f32 %v4451_v16, %v3967_v15  ;;  %v11954_v23 = vpop.f32.mrb[19].mxu0  ;;  %v12028_v28 = vpop.f32.mrb[15].mxu1  ;;  %v7052_v9 = vshll.u32 %v12932_v55, 16  ;;  %v14719_v13 = vld [vmem:[%s13135_s25 + $0x34] sm:$0xff]   ;;  %v7050_v14 = vor.u32 %v7048_v8, %v7046_v54  ;;  %v3972_v16 = vld [vmem:[#allocation2 + $0xe0] sm:$0xff] }
 0x30a   : > { %v4647_v26 = vld [vmem:[#allocation2 + $0xa8] sm:$0xff]  ;;  %v7060_v28 = vshll.u32 %v14719_v13, 16  ;;  %v7064_v54 = vshrl.u32 %v14719_v13, 16 }
 0x30b   : > { %5111 = vst.msk [vmem:[#allocation2 + $0xa0] sm:$0xff] %vm261_vm3, %v5073_v20  ;;  %v5074_v29 = vadd.f32 %v4985_v21, %v4647_v26  ;;  %4572 = vst.msk [vmem:[#allocation2 + $0xb8] sm:$0xff] %vm261_vm3, %v4534_v22  ;;  %12220 = vmatmul.mubr.msk.bf16.vlgmr.msra.gmra.mrb[124].mxu0 %vm479_vm1, %v12924_v12  ;;  %12214 = vmatmul.mubr.msk.bf16.gmra.mrb[120].mxu1 %vm479_vm1, %v6027_v17  ;;  %v7054_v15 = vrot.slane %v7052_v9, 1  ;;  %v12933_v21 = vld [vmem:[%s13135_s25 + $0x2c] sm:$0xff]   ;;  %v7056_v26 = vshrl.u32 %v12932_v55, 16 }
 0x30c   : > { %12374 = vmatpush3.bf16.msra.mxu0 %v12925_v18  ;;  %12297 = vmatprep.mubr.msk.bf16.mxu1 %vm13073_vm0, %v13072_v1 }
 0x30d   : > { %5112 = vst.msk [vmem:[#allocation2 + $0xa8] sm:$0xff] %vm261_vm3, %v5074_v29  ;;  %12223 = vmatprep.mubr.msk.bf16.mxu0 %vm13073_vm0, %v13072_v1  ;;  %12529 = vmatprep.subr.bf16.mxu0 %v13072_v1 }
 0x30e   : > { %v4456_v34 = vpop.f32.mrb[20].mxu0  ;;  %v4990_v35 = vpop.f32.mrb[16].mxu1 }
 0x30f   : > { %v4535_v36 = vadd.f32 %v4456_v34, %v3968_v33  ;;  %v11957_v27 = vpop.f32.mrb[21].mxu0  ;;  %v12031_v39 = vpop.f32.mrb[17].mxu1  ;;  %v7055_v33 = vsel %vm977_vm2, %v7050_v14, %v7054_v15 }
 0x310   : > { %v4648_v38 = vld [vmem:[#allocation2 + $0xb0] sm:$0xff]  ;;  %v4459_v41 = vpop.f32.mrb[22].mxu0  ;;  %v4993_v45 = vpop.f32.mrb[18].mxu1  ;;  %v7058_v27 = vor.u32 %v7056_v26, %v7054_v15 }
 0x311   : > { %v5075_v44 = vadd.f32 %v4990_v35, %v4648_v38  ;;  %4573 = vst.msk [vmem:[#allocation2 + $0xc0] sm:$0xff] %vm261_vm3, %v4535_v36  ;;  %v4536_v46 = vadd.f32 %v4459_v41, %v3969_v40  ;;  %v11958_v47 = vpop.f32.mrb[23].mxu0  ;;  %v12032_v51 = vpop.f32.mrb[19].mxu1  ;;  %v12936_v38 = vld [vmem:[%s13135_s25 + $0x3c] sm:$0xff]   ;;  %v3974_v39 = vld [vmem:[#allocation2 + $0xf0] sm:$0xff] }
 0x312   : > { %v4649_v50 = vld [vmem:[#allocation2 + $0xb8] sm:$0xff]  ;;  %v7068_v55 = vshll.u32 %v12936_v38, 16  ;;  %v7072_v9 = vshrl.u32 %v12936_v38, 16 }
 0x313   : > { %5113 = vst.msk [vmem:[#allocation2 + $0xb0] sm:$0xff] %vm261_vm3, %v5075_v44  ;;  %v5076_v52 = vadd.f32 %v4993_v45, %v4649_v50  ;;  %4574 = vst.msk [vmem:[#allocation2 + $0xc8] sm:$0xff] %vm261_vm3, %v4536_v46  ;;  %12224 = vmatmul.mubr.msk.bf16.gmra.mrb[128].mxu0 %vm479_vm1, %v12928_v37  ;;  %12298 = vmatmul.mubr.msk.bf16.vlgmr.msra.gmra.mrb[124].mxu1 %vm479_vm1, %v7039_v48  ;;  %v7062_v37 = vrot.slane %v7060_v28, 1  ;;  %v12935_v44 = vld [vmem:[%s13135_s25 + $0x34] sm:$0xff]   ;;  %v12939_v28 = vld [vmem:[%s13135_s25 + $0x44] sm:$0xff]  }
 0x314   : > { %12227 = vmatprep.mubr.msk.bf16.mxu0 %vm13073_vm0, %v13072_v1  ;;  %12452 = vmatpush3.bf16.msra.mxu1 %v12929_v49  ;;  %v3975_v47 = vld [vmem:[#allocation2 + $0xf8] sm:$0xff] }
 0x315   : > { %5114 = vst.msk [vmem:[#allocation2 + $0xb8] sm:$0xff] %vm261_vm3, %v5076_v52  ;;  %12301 = vmatprep.mubr.msk.bf16.mxu1 %vm13073_vm0, %v13072_v1  ;;  %12607 = vmatprep.subr.bf16.mxu1 %v13072_v1  ;;  %v7063_v49 = vsel %vm977_vm2, %v7058_v27, %v7062_v37 }
 0x316   : > { %v4464_v57 = vpop.f32.mrb[24].mxu0  ;;  %v4998_v58 = vpop.f32.mrb[20].mxu1 }
 0x317   : > { %v4537_v59 = vadd.f32 %v4464_v57, %v3970_v56  ;;  %v11961_v60 = vpop.f32.mrb[25].mxu0  ;;  %v12035_v63 = vpop.f32.mrb[21].mxu1 }
 0x318   : > { %v4650_v62 = vld [vmem:[#allocation2 + $0xc0] sm:$0xff]  ;;  %v4467_v2 = vpop.f32.mrb[26].mxu0  ;;  %v5001_v5 = vpop.f32.mrb[22].mxu1  ;;  %v7066_v60 = vor.u32 %v7064_v54, %v7062_v37 }
 0x319   : > { %v5077_v4 = vadd.f32 %v4998_v58, %v4650_v62  ;;  %4575 = vst.msk [vmem:[#allocation2 + $0xd0] sm:$0xff] %vm261_vm3, %v4537_v59  ;;  %v4538_v6 = vadd.f32 %v4467_v2, %v3971_v0  ;;  %v11962_v7 = vpop.f32.mrb[27].mxu0  ;;  %v12036_v11 = vpop.f32.mrb[23].mxu1  ;;  %v14749_v59 = vld [vmem:[%s13135_s25 + $0x44] sm:$0xff]  }
 0x31a   : > { %v4651_v10 = vld [vmem:[#allocation2 + $0xc8] sm:$0xff]  ;;  %v3976_v62 = vld [vmem:[#allocation2 + $0x100] sm:$0xff]  ;;  %v7080_v37 = vshrl.u32 %v14749_v59, 16 }
 0x31b   : > { %5115 = vst.msk [vmem:[#allocation2 + $0xc0] sm:$0xff] %vm261_vm3, %v5077_v4  ;;  %v5078_v12 = vadd.f32 %v5001_v5, %v4651_v10  ;;  %4576 = vst.msk [vmem:[#allocation2 + $0xd8] sm:$0xff] %vm261_vm3, %v4538_v6  ;;  %12228 = vmatmul.mubr.msk.bf16.gmra.mrb[132].mxu0 %vm479_vm1, %v12931_v61  ;;  %12302 = vmatmul.mubr.msk.bf16.gmra.mrb[128].mxu1 %vm479_vm1, %v7047_v3  ;;  %v7070_v61 = vrot.slane %v7068_v55, 1  ;;  %v12937_v4 = vld [vmem:[%s13135_s25 + $0x3c] sm:$0xff]   ;;  %v3977_v7 = vld [vmem:[#allocation2 + $0x108] sm:$0xff]  ;;  %v7076_v10 = vshll.u32 %v14749_v59, 16 }
 0x31c   : > { %12231 = vmatprep.mubr.msk.bf16.mxu0 %vm13073_vm0, %v13072_v1  ;;  %12305 = vmatprep.mubr.msk.bf16.mxu1 %vm13073_vm0, %v13072_v1 }
 0x31d   : > { %5116 = vst.msk [vmem:[#allocation2 + $0xc8] sm:$0xff] %vm261_vm3, %v5078_v12  ;;  %v7071_v15 = vsel %vm977_vm2, %v7066_v60, %v7070_v61 }
 0x31e   : > { %v4472_v17 = vpop.f32.mrb[28].mxu0  ;;  %v5006_v18 = vpop.f32.mrb[24].mxu1 }
 0x31f   : > { %v4539_v19 = vadd.f32 %v4472_v17, %v3972_v16  ;;  %v11965_v20 = vpop.f32.mrb[29].mxu0  ;;  %v12039_v23 = vpop.f32.mrb[25].mxu1 }
 0x320   : > { %v4652_v22 = vld [vmem:[#allocation2 + $0xd0] sm:$0xff]  ;;  %v4475_v25 = vpop.f32.mrb[30].mxu0  ;;  %v5009_v30 = vpop.f32.mrb[26].mxu1  ;;  %v7078_v20 = vrot.slane %v7076_v10, 1 }
 0x321   : > { %v5079_v29 = vadd.f32 %v5006_v18, %v4652_v22  ;;  %4577 = vst.msk [vmem:[#allocation2 + $0xe0] sm:$0xff] %vm261_vm3, %v4539_v19  ;;  %v4540_v31 = vadd.f32 %v4475_v25, %v3973_v24  ;;  %v11966_v32 = vpop.f32.mrb[31].mxu0  ;;  %v12040_v35 = vpop.f32.mrb[27].mxu1  ;;  %v7074_v19 = vor.u32 %v7072_v9, %v7070_v61  ;;  %v3978_v22 = vld [vmem:[#allocation2 + $0x110] sm:$0xff] }
 0x322   : > { %v4653_v34 = vld [vmem:[#allocation2 + $0xd8] sm:$0xff] }
 0x323   : > { %5117 = vst.msk [vmem:[#allocation2 + $0xd0] sm:$0xff] %vm261_vm3, %v5079_v29  ;;  %v5080_v36 = vadd.f32 %v5009_v30, %v4653_v34  ;;  %4578 = vst.msk [vmem:[#allocation2 + $0xe8] sm:$0xff] %vm261_vm3, %v4540_v31  ;;  %12232 = vmatmul.mubr.msk.bf16.gmra.mrb[136].mxu0 %vm479_vm1, %v12933_v21  ;;  %12306 = vmatmul.mubr.msk.bf16.gmra.mrb[132].mxu1 %vm479_vm1, %v7055_v33  ;;  %v12940_v21 = vld [vmem:[%s13135_s25 + $0x4c] sm:$0xff]   ;;  %v3979_v31 = vld [vmem:[#allocation2 + $0x118] sm:$0xff]  ;;  %v7079_v33 = vsel %vm977_vm2, %v7074_v19, %v7078_v20 }
 0x324   : > { %12235 = vmatprep.mubr.msk.bf16.mxu0 %vm13073_vm0, %v13072_v1  ;;  %12309 = vmatprep.mubr.msk.bf16.mxu1 %vm13073_vm0, %v13072_v1  ;;  %v7084_v38 = vshll.u32 %v12940_v21, 16  ;;  %v7088_v55 = vshrl.u32 %v12940_v21, 16  ;;  %v12943_v10 = vld [vmem:[%s13135_s25 + $0x54] sm:$0xff]  }
 0x325   : > { %5118 = vst.msk [vmem:[#allocation2 + $0xd8] sm:$0xff] %vm261_vm3, %v5080_v36 }
 0x326   : > { %v4480_v40 = vpop.f32.mrb[32].mxu0  ;;  %v5014_v41 = vpop.f32.mrb[28].mxu1 }
 0x327   : > { %v4541_v42 = vadd.f32 %v4480_v40, %v3974_v39  ;;  %v11969_v43 = vpop.f32.mrb[33].mxu0  ;;  %v12043_v46 = vpop.f32.mrb[29].mxu1 }
 0x328   : > { %v4654_v45 = vld [vmem:[#allocation2 + $0xe0] sm:$0xff]  ;;  %v4483_v48 = vpop.f32.mrb[34].mxu0  ;;  %v5017_v51 = vpop.f32.mrb[30].mxu1  ;;  %v7082_v43 = vor.u32 %v7080_v37, %v7078_v20 }
 0x329   : > { %v5081_v50 = vadd.f32 %v5014_v41, %v4654_v45  ;;  %4579 = vst.msk [vmem:[#allocation2 + $0xf0] sm:$0xff] %vm261_vm3, %v4541_v42  ;;  %v4542_v52 = vadd.f32 %v4483_v48, %v3975_v47  ;;  %v11970_v53 = vpop.f32.mrb[35].mxu0  ;;  %v12044_v57 = vpop.f32.mrb[31].mxu1  ;;  %v14779_v42 = vld [vmem:[%s13135_s25 + $0x54] sm:$0xff]   ;;  %v3980_v45 = vld [vmem:[#allocation2 + $0x120] sm:$0xff] }
 0x32a   : > { %v4655_v56 = vld [vmem:[#allocation2 + $0xe8] sm:$0xff]  ;;  %v7096_v20 = vshrl.u32 %v14779_v42, 16 }
 0x32b   : > { %5119 = vst.msk [vmem:[#allocation2 + $0xe0] sm:$0xff] %vm261_vm3, %v5081_v50  ;;  %v5082_v58 = vadd.f32 %v5017_v51, %v4655_v56  ;;  %4580 = vst.msk [vmem:[#allocation2 + $0xf8] sm:$0xff] %vm261_vm3, %v4542_v52  ;;  %12236 = vmatmul.mubr.msk.bf16.gmra.mrb[140].mxu0 %vm479_vm1, %v12935_v44  ;;  %12310 = vmatmul.mubr.msk.bf16.gmra.mrb[136].mxu1 %vm479_vm1, %v7063_v49  ;;  %v7086_v44 = vrot.slane %v7084_v38, 1  ;;  %v12941_v50 = vld [vmem:[%s13135_s25 + $0x4c] sm:$0xff]   ;;  %v7092_v56 = vshll.u32 %v14779_v42, 16 }
 0x32c   : > { %12239 = vmatprep.mubr.msk.bf16.mxu0 %vm13073_vm0, %v13072_v1  ;;  %12313 = vmatprep.mubr.msk.bf16.mxu1 %vm13073_vm0, %v13072_v1  ;;  %v3981_v53 = vld [vmem:[#allocation2 + $0x128] sm:$0xff] }
 0x32d   : > { %5120 = vst.msk [vmem:[#allocation2 + $0xe8] sm:$0xff] %vm261_vm3, %v5082_v58  ;;  %v7087_v61 = vsel %vm977_vm2, %v7082_v43, %v7086_v44 }
 0x32e   : > { %v4488_v63 = vpop.f32.mrb[36].mxu0  ;;  %v5022_v0 = vpop.f32.mrb[32].mxu1 }
 0x32f   : > { %v4543_v2 = vadd.f32 %v4488_v63, %v3976_v62  ;;  %v11973_v3 = vpop.f32.mrb[37].mxu0  ;;  %v12047_v6 = vpop.f32.mrb[33].mxu1 }
 0x330   : > { %v4656_v5 = vld [vmem:[#allocation2 + $0xf0] sm:$0xff]  ;;  %v4491_v8 = vpop.f32.mrb[38].mxu0  ;;  %v5025_v12 = vpop.f32.mrb[34].mxu1  ;;  %v7094_v3 = vrot.slane %v7092_v56, 1  ;;  %v12947_v56 = vld [vmem:[%s13135_s25 + $0x64] sm:$0xff]  }
 0x331   : > { %v5083_v11 = vadd.f32 %v5022_v0, %v4656_v5  ;;  %4581 = vst.msk [vmem:[#allocation2 + $0x100] sm:$0xff] %vm261_vm3, %v4543_v2  ;;  %v4544_v13 = vadd.f32 %v4491_v8, %v3977_v7  ;;  %v11974_v14 = vpop.f32.mrb[39].mxu0  ;;  %v12048_v17 = vpop.f32.mrb[35].mxu1  ;;  %v7090_v2 = vor.u32 %v7088_v55, %v7086_v44  ;;  %v5168_v5 = vld [vmem:[#allocation2] sm:$0xff] }
 0x332   : > { %v4657_v16 = vld [vmem:[#allocation2 + $0xf8] sm:$0xff] }
 0x333   : > { %5121 = vst.msk [vmem:[#allocation2 + $0xf0] sm:$0xff] %vm261_vm3, %v5083_v11  ;;  %v5084_v18 = vadd.f32 %v5025_v12, %v4657_v16  ;;  %4582 = vst.msk [vmem:[#allocation2 + $0x108] sm:$0xff] %vm261_vm3, %v4544_v13  ;;  %12240 = vmatmul.mubr.msk.bf16.gmra.mrb[144].mxu0 %vm479_vm1, %v12937_v4  ;;  %12314 = vmatmul.mubr.msk.bf16.gmra.mrb[140].mxu1 %vm479_vm1, %v7071_v15  ;;  %v12944_v4 = vld [vmem:[%s13135_s25 + $0x5c] sm:$0xff]   ;;  %v5169_v13 = vld [vmem:[#allocation2 + $0x8] sm:$0xff]  ;;  %v7095_v15 = vsel %vm977_vm2, %v7090_v2, %v7094_v3 }
 0x334   : > { %12243 = vmatprep.mubr.msk.bf16.mxu0 %vm13073_vm0, %v13072_v1  ;;  %12317 = vmatprep.mubr.msk.bf16.mxu1 %vm13073_vm0, %v13072_v1  ;;  %v7100_v21 = vshll.u32 %v12944_v4, 16  ;;  %v7104_v38 = vshrl.u32 %v12944_v4, 16 }
 0x335   : > { %5122 = vst.msk [vmem:[#allocation2 + $0xf8] sm:$0xff] %vm261_vm3, %v5084_v18 }
 0x336   : > { %v4496_v23 = vpop.f32.mrb[40].mxu0  ;;  %v5030_v24 = vpop.f32.mrb[36].mxu1 }
 0x337   : > { %v4545_v25 = vadd.f32 %v4496_v23, %v3978_v22  ;;  %v11977_v26 = vpop.f32.mrb[41].mxu0  ;;  %v12051_v30 = vpop.f32.mrb[37].mxu1 }
 0x338   : > { %v4658_v29 = vld [vmem:[#allocation2 + $0x100] sm:$0xff]  ;;  %v4499_v32 = vpop.f32.mrb[42].mxu0  ;;  %v5033_v35 = vpop.f32.mrb[38].mxu1  ;;  %v7098_v26 = vor.u32 %v7096_v20, %v7094_v3 }
 0x339   : > { %v5085_v34 = vadd.f32 %v5030_v24, %v4658_v29  ;;  %4583 = vst.msk [vmem:[#allocation2 + $0x110] sm:$0xff] %vm261_vm3, %v4545_v25  ;;  %v4546_v36 = vadd.f32 %v4499_v32, %v3979_v31  ;;  %v11978_v27 = vpop.f32.mrb[43].mxu0  ;;  %v12052_v40 = vpop.f32.mrb[39].mxu1  ;;  %v14809_v25 = vld [vmem:[%s13135_s25 + $0x64] sm:$0xff]   ;;  %v5170_v29 = vld [vmem:[#allocation2 + $0x10] sm:$0xff] }
 0x33a   : > { %v4659_v39 = vld [vmem:[#allocation2 + $0x108] sm:$0xff]  ;;  %v5171_v27 = vld [vmem:[#allocation2 + $0x18] sm:$0xff]  ;;  %v7112_v3 = vshrl.u32 %v14809_v25, 16 }
 0x33b   : > { %5123 = vst.msk [vmem:[#allocation2 + $0x100] sm:$0xff] %vm261_vm3, %v5085_v34  ;;  %v5086_v41 = vadd.f32 %v5033_v35, %v4659_v39  ;;  %4584 = vst.msk [vmem:[#allocation2 + $0x118] sm:$0xff] %vm261_vm3, %v4546_v36  ;;  %12244 = vmatmul.mubr.msk.bf16.gmra.mrb[148].mxu0 %vm479_vm1, %v12939_v28  ;;  %12318 = vmatmul.mubr.msk.bf16.gmra.mrb[144].mxu1 %vm479_vm1, %v7079_v33  ;;  %v7102_v28 = vrot.slane %v7100_v21, 1  ;;  %v12945_v34 = vld [vmem:[%s13135_s25 + $0x5c] sm:$0xff]   ;;  %v7108_v39 = vshll.u32 %v14809_v25, 16 }
 0x33c   : > { %12247 = vmatprep.mubr.msk.bf16.mxu0 %vm13073_vm0, %v13072_v1  ;;  %12321 = vmatprep.mubr.msk.bf16.mxu1 %vm13073_vm0, %v13072_v1 }
 0x33d   : > { %5124 = vst.msk [vmem:[#allocation2 + $0x108] sm:$0xff] %vm261_vm3, %v5086_v41  ;;  %v7103_v44 = vsel %vm977_vm2, %v7098_v26, %v7102_v28 }
 0x33e   : > { %v4504_v46 = vpop.f32.mrb[44].mxu0  ;;  %v5038_v47 = vpop.f32.mrb[40].mxu1 }
 0x33f   : > { %v4547_v48 = vadd.f32 %v4504_v46, %v3980_v45  ;;  %v11981_v49 = vpop.f32.mrb[45].mxu0  ;;  %v12055_v52 = vpop.f32.mrb[41].mxu1 }
 0x340   : > { %v4660_v51 = vld [vmem:[#allocation2 + $0x110] sm:$0xff]  ;;  %v4507_v54 = vpop.f32.mrb[46].mxu0  ;;  %v5041_v58 = vpop.f32.mrb[42].mxu1  ;;  %v7110_v49 = vrot.slane %v7108_v39, 1 }
 0x341   : > { %v5087_v57 = vadd.f32 %v5038_v47, %v4660_v51  ;;  %4585 = vst.msk [vmem:[#allocation2 + $0x120] sm:$0xff] %vm261_vm3, %v4547_v48  ;;  %v4548_v59 = vadd.f32 %v4507_v54, %v3981_v53  ;;  %v11982_v60 = vpop.f32.mrb[47].mxu0  ;;  %v12056_v63 = vpop.f32.mrb[43].mxu1  ;;  %v7106_v48 = vor.u32 %v7104_v38, %v7102_v28  ;;  %v5172_v51 = vld [vmem:[#allocation2 + $0x20] sm:$0xff]  ;;  %v12951_v39 = vld [vmem:[%s13135_s25 + $0x74] sm:$0xff]  }
 0x342   : > { %v4661_v62 = vld [vmem:[#allocation2 + $0x118] sm:$0xff] }
 0x343   : > { %5125 = vst.msk [vmem:[#allocation2 + $0x110] sm:$0xff] %vm261_vm3, %v5087_v57  ;;  %v5088_v0 = vadd.f32 %v5041_v58, %v4661_v62  ;;  %4586 = vst.msk [vmem:[#allocation2 + $0x128] sm:$0xff] %vm261_vm3, %v4548_v59  ;;  %12248 = vmatmul.mubr.msk.bf16.gmra.mrb[152].mxu0 %vm479_vm1, %v12941_v50  ;;  %12322 = vmatmul.mubr.msk.bf16.gmra.mrb[148].mxu1 %vm479_vm1, %v7087_v61  ;;  %v12948_v50 = vld [vmem:[%s13135_s25 + $0x6c] sm:$0xff]   ;;  %v7111_v61 = vsel %vm977_vm2, %v7106_v48, %v7110_v49 }
 0x344   : > { %12251 = vmatprep.mubr.msk.bf16.mxu0 %vm13073_vm0, %v13072_v1  ;;  %12325 = vmatprep.mubr.msk.bf16.mxu1 %vm13073_vm0, %v13072_v1  ;;  %v5173_v59 = vld [vmem:[#allocation2 + $0x28] sm:$0xff]  ;;  %v7116_v4 = vshll.u32 %v12948_v50, 16  ;;  %v7120_v21 = vshrl.u32 %v12948_v50, 16 }
 0x345   : > { %5126 = vst.msk [vmem:[#allocation2 + $0x118] sm:$0xff] %vm261_vm3, %v5088_v0 }
 0x346   : > { %v5443_v6 = vpop.f32.mrb[48].mxu0  ;;  %v5046_v7 = vpop.f32.mrb[44].mxu1 }
 0x347   : > { %v5594_v8 = vadd.f32 %v5443_v6, %v5168_v5  ;;  %v12065_v9 = vpop.f32.mrb[49].mxu0  ;;  %v12059_v12 = vpop.f32.mrb[45].mxu1 }
 0x348   : > { %v4662_v11 = vld [vmem:[#allocation2 + $0x120] sm:$0xff]  ;;  %v5446_v14 = vpop.f32.mrb[50].mxu0  ;;  %v5049_v17 = vpop.f32.mrb[46].mxu1  ;;  %v7114_v9 = vor.u32 %v7112_v3, %v7110_v49 }
 0x349   : > { %v5089_v16 = vadd.f32 %v5046_v7, %v4662_v11  ;;  %5632 = vst.msk [vmem:[#allocation2] sm:$0xff] %vm261_vm3, %v5594_v8  ;;  %v5595_v18 = vadd.f32 %v5446_v14, %v5169_v13  ;;  %v12066_v19 = vpop.f32.mrb[51].mxu0  ;;  %v12060_v23 = vpop.f32.mrb[47].mxu1  ;;  %v14839_v8 = vld [vmem:[%s13135_s25 + $0x74] sm:$0xff]  }
 0x34a   : > { %v4663_v22 = vld [vmem:[#allocation2 + $0x128] sm:$0xff]  ;;  %v5174_v11 = vld [vmem:[#allocation2 + $0x30] sm:$0xff]  ;;  %v5175_v19 = vld [vmem:[#allocation2 + $0x38] sm:$0xff]  ;;  %v7128_v49 = vshrl.u32 %v14839_v8, 16 }
 0x34b   : > { %5127 = vst.msk [vmem:[#allocation2 + $0x120] sm:$0xff] %vm261_vm3, %v5089_v16  ;;  %v5090_v24 = vadd.f32 %v5049_v17, %v4663_v22  ;;  %5633 = vst.msk [vmem:[#allocation2 + $0x8] sm:$0xff] %vm261_vm3, %v5595_v18  ;;  %12252 = vmatmul.mubr.msk.bf16.gmra.mrb[156].mxu0 %vm479_vm1, %v12943_v10  ;;  %12326 = vmatmul.mubr.msk.bf16.gmra.mrb[152].mxu1 %vm479_vm1, %v7095_v15  ;;  %v7118_v10 = vrot.slane %v7116_v4, 1  ;;  %v12949_v16 = vld [vmem:[%s13135_s25 + $0x6c] sm:$0xff]   ;;  %v7124_v22 = vshll.u32 %v14839_v8, 16 }
 0x34c   : > { %12255 = vmatprep.mubr.msk.bf16.mxu0 %vm13073_vm0, %v13072_v1  ;;  %12329 = vmatprep.mubr.msk.bf16.mxu1 %vm13073_vm0, %v13072_v1 }
 0x34d   : > { %5128 = vst.msk [vmem:[#allocation2 + $0x128] sm:$0xff] %vm261_vm3, %v5090_v24  ;;  %v7119_v28 = vsel %vm977_vm2, %v7114_v9, %v7118_v10 }
 0x34e   : > { %v5451_v30 = vpop.f32.mrb[52].mxu0  ;;  %v6125_v31 = vpop.f32.mrb[48].mxu1 }
 0x34f   : > { %v5596_v32 = vadd.f32 %v5451_v30, %v5170_v29  ;;  %v12069_v33 = vpop.f32.mrb[53].mxu0  ;;  %v12143_v36 = vpop.f32.mrb[49].mxu1 }
 0x350   : > { %v5709_v35 = vld [vmem:[#allocation2] sm:$0xff]  ;;  %v5454_v37 = vpop.f32.mrb[54].mxu0  ;;  %v6128_v41 = vpop.f32.mrb[50].mxu1  ;;  %v7126_v33 = vrot.slane %v7124_v22, 1 }
 0x351   : > { %v6276_v40 = vadd.f32 %v6125_v31, %v5709_v35  ;;  %5634 = vst.msk [vmem:[#allocation2 + $0x10] sm:$0xff] %vm261_vm3, %v5596_v32  ;;  %v5597_v42 = vadd.f32 %v5454_v37, %v5171_v27  ;;  %v12070_v43 = vpop.f32.mrb[55].mxu0  ;;  %v12144_v46 = vpop.f32.mrb[51].mxu1  ;;  %v7122_v32 = vor.u32 %v7120_v21, %v7118_v10  ;;  %v5176_v35 = vld [vmem:[#allocation2 + $0x40] sm:$0xff] }
 0x352   : > { %v5710_v45 = vld [vmem:[#allocation2 + $0x8] sm:$0xff] }
 0x353   : > { %6314 = vst.msk [vmem:[#allocation2] sm:$0xff] %vm261_vm3, %v6276_v40  ;;  %v6277_v47 = vadd.f32 %v6128_v41, %v5710_v45  ;;  %5635 = vst.msk [vmem:[#allocation2 + $0x18] sm:$0xff] %vm261_vm3, %v5597_v42  ;;  %12256 = vmatmul.mubr.msk.bf16.gmra.mrb[160].mxu0 %vm479_vm1, %v12945_v34  ;;  %12330 = vmatmul.mubr.msk.bf16.gmra.mrb[156].mxu1 %vm479_vm1, %v7103_v44  ;;  %v12952_v34 = vld [vmem:[%s13135_s25 + $0x7c] sm:$0xff]   ;;  %v5177_v42 = vld [vmem:[#allocation2 + $0x48] sm:$0xff]  ;;  %v7127_v44 = vsel %vm977_vm2, %v7122_v32, %v7126_v33 }
 0x354   : > { %12259 = vmatprep.mubr.msk.bf16.mxu0 %vm13073_vm0, %v13072_v1  ;;  %12333 = vmatprep.mubr.msk.bf16.mxu1 %vm13073_vm0, %v13072_v1  ;;  %v7132_v50 = vshll.u32 %v12952_v34, 16  ;;  %v7136_v4 = vshrl.u32 %v12952_v34, 16  ;;  %v12955_v22 = vld [vmem:[%s13135_s25 + $0x84] sm:$0xff]  }
 0x355   : > { %6315 = vst.msk [vmem:[#allocation2 + $0x8] sm:$0xff] %vm261_vm3, %v6277_v47 }
 0x356   : > { %v5459_v52 = vpop.f32.mrb[56].mxu0  ;;  %v6133_v53 = vpop.f32.mrb[52].mxu1 }
 0x357   : > { %v5598_v54 = vadd.f32 %v5459_v52, %v5172_v51  ;;  %v12073_v55 = vpop.f32.mrb[57].mxu0  ;;  %v12147_v58 = vpop.f32.mrb[53].mxu1 }
 0x358   : > { %v5711_v57 = vld [vmem:[#allocation2 + $0x10] sm:$0xff]  ;;  %v5462_v60 = vpop.f32.mrb[58].mxu0  ;;  %v6136_v63 = vpop.f32.mrb[54].mxu1  ;;  %v7130_v55 = vor.u32 %v7128_v49, %v7126_v33 }
 0x359   : > { %v6278_v62 = vadd.f32 %v6133_v53, %v5711_v57  ;;  %5636 = vst.msk [vmem:[#allocation2 + $0x20] sm:$0xff] %vm261_vm3, %v5598_v54  ;;  %v5599_v0 = vadd.f32 %v5462_v60, %v5173_v59  ;;  %v12074_v2 = vpop.f32.mrb[59].mxu0  ;;  %v12148_v6 = vpop.f32.mrb[55].mxu1  ;;  %v14869_v54 = vld [vmem:[%s13135_s25 + $0x84] sm:$0xff]   ;;  %v5178_v57 = vld [vmem:[#allocation2 + $0x50] sm:$0xff] }
 0x35a   : > { %v5712_v5 = vld [vmem:[#allocation2 + $0x18] sm:$0xff]  ;;  %v7144_v33 = vshrl.u32 %v14869_v54, 16 }
 0x35b   : > { %6316 = vst.msk [vmem:[#allocation2 + $0x10] sm:$0xff] %vm261_vm3, %v6278_v62  ;;  %v6279_v7 = vadd.f32 %v6136_v63, %v5712_v5  ;;  %5637 = vst.msk [vmem:[#allocation2 + $0x28] sm:$0xff] %vm261_vm3, %v5599_v0  ;;  %12260 = vmatmul.mubr.msk.bf16.gmra.mrb[164].mxu0 %vm479_vm1, %v12947_v56  ;;  %12334 = vmatmul.mubr.msk.bf16.gmra.mrb[160].mxu1 %vm479_vm1, %v7111_v61  ;;  %v7134_v56 = vrot.slane %v7132_v50, 1  ;;  %v12953_v62 = vld [vmem:[%s13135_s25 + $0x7c] sm:$0xff]   ;;  %v7140_v5 = vshll.u32 %v14869_v54, 16 }
 0x35c   : > { %12263 = vmatprep.mubr.msk.bf16.mxu0 %vm13073_vm0, %v13072_v1  ;;  %12337 = vmatprep.mubr.msk.bf16.mxu1 %vm13073_vm0, %v13072_v1  ;;  %v5179_v2 = vld [vmem:[#allocation2 + $0x58] sm:$0xff] }
 0x35d   : > { %6317 = vst.msk [vmem:[#allocation2 + $0x18] sm:$0xff] %vm261_vm3, %v6279_v7  ;;  %v7135_v10 = vsel %vm977_vm2, %v7130_v55, %v7134_v56 }
 0x35e   : > { %v5467_v12 = vpop.f32.mrb[60].mxu0  ;;  %v6141_v13 = vpop.f32.mrb[56].mxu1 }
 0x35f   : > { %v5600_v14 = vadd.f32 %v5467_v12, %v5174_v11  ;;  %v12077_v15 = vpop.f32.mrb[61].mxu0  ;;  %v12151_v18 = vpop.f32.mrb[57].mxu1 }
 0x360   : > { %v5713_v17 = vld [vmem:[#allocation2 + $0x20] sm:$0xff]  ;;  %v5470_v20 = vpop.f32.mrb[62].mxu0  ;;  %v6144_v24 = vpop.f32.mrb[58].mxu1  ;;  %v7142_v15 = vrot.slane %v7140_v5, 1  ;;  %v12959_v5 = vld [vmem:[%s13135_s25 + $0x94] sm:$0xff]  }
 0x361   : > { %v6280_v23 = vadd.f32 %v6141_v13, %v5713_v17  ;;  %5638 = vst.msk [vmem:[#allocation2 + $0x30] sm:$0xff] %vm261_vm3, %v5600_v14  ;;  %v5601_v25 = vadd.f32 %v5470_v20, %v5175_v19  ;;  %v12078_v26 = vpop.f32.mrb[63].mxu0  ;;  %v12152_v30 = vpop.f32.mrb[59].mxu1  ;;  %v7138_v14 = vor.u32 %v7136_v4, %v7134_v56  ;;  %v5180_v17 = vld [vmem:[#allocation2 + $0x60] sm:$0xff] }
 0x362   : > { %v5714_v29 = vld [vmem:[#allocation2 + $0x28] sm:$0xff] }
 0x363   : > { %6318 = vst.msk [vmem:[#allocation2 + $0x20] sm:$0xff] %vm261_vm3, %v6280_v23  ;;  %v6281_v31 = vadd.f32 %v6144_v24, %v5714_v29  ;;  %5639 = vst.msk [vmem:[#allocation2 + $0x38] sm:$0xff] %vm261_vm3, %v5601_v25  ;;  %12264 = vmatmul.mubr.msk.bf16.gmra.mrb[168].mxu0 %vm479_vm1, %v12949_v16  ;;  %12338 = vmatmul.mubr.msk.bf16.gmra.mrb[164].mxu1 %vm479_vm1, %v7119_v28  ;;  %v12956_v16 = vld [vmem:[%s13135_s25 + $0x8c] sm:$0xff]   ;;  %v7143_v28 = vsel %vm977_vm2, %v7138_v14, %v7142_v15 }
 0x364   : > { %12267 = vmatprep.mubr.msk.bf16.mxu0 %vm13073_vm0, %v13072_v1  ;;  %12341 = vmatprep.mubr.msk.bf16.mxu1 %vm13073_vm0, %v13072_v1  ;;  %v5181_v25 = vld [vmem:[#allocation2 + $0x68] sm:$0xff]  ;;  %v7148_v34 = vshll.u32 %v12956_v16, 16  ;;  %v7152_v50 = vshrl.u32 %v12956_v16, 16 }
 0x365   : > { %6319 = vst.msk [vmem:[#allocation2 + $0x28] sm:$0xff] %vm261_vm3, %v6281_v31 }
 0x366   : > { %v5475_v36 = vpop.f32.mrb[64].mxu0  ;;  %v6149_v27 = vpop.f32.mrb[60].mxu1 }
 0x367   : > { %v5602_v37 = vadd.f32 %v5475_v36, %v5176_v35  ;;  %v12081_v38 = vpop.f32.mrb[65].mxu0  ;;  %v12155_v41 = vpop.f32.mrb[61].mxu1 }
 0x368   : > { %v5715_v40 = vld [vmem:[#allocation2 + $0x30] sm:$0xff]  ;;  %v5478_v43 = vpop.f32.mrb[66].mxu0  ;;  %v6152_v46 = vpop.f32.mrb[62].mxu1  ;;  %v7146_v38 = vor.u32 %v7144_v33, %v7142_v15 }
 0x369   : > { %v6282_v45 = vadd.f32 %v6149_v27, %v5715_v40  ;;  %5640 = vst.msk [vmem:[#allocation2 + $0x40] sm:$0xff] %vm261_vm3, %v5602_v37  ;;  %v5603_v47 = vadd.f32 %v5478_v43, %v5177_v42  ;;  %v12082_v48 = vpop.f32.mrb[67].mxu0  ;;  %v12156_v52 = vpop.f32.mrb[63].mxu1  ;;  %v14899_v37 = vld [vmem:[%s13135_s25 + $0x94] sm:$0xff]  }
 0x36a   : > { %v5716_v51 = vld [vmem:[#allocation2 + $0x38] sm:$0xff]  ;;  %v5182_v40 = vld [vmem:[#allocation2 + $0x70] sm:$0xff]  ;;  %v7160_v15 = vshrl.u32 %v14899_v37, 16 }
 0x36b   : > { %6320 = vst.msk [vmem:[#allocation2 + $0x30] sm:$0xff] %vm261_vm3, %v6282_v45  ;;  %v6283_v53 = vadd.f32 %v6152_v46, %v5716_v51  ;;  %5641 = vst.msk [vmem:[#allocation2 + $0x48] sm:$0xff] %vm261_vm3, %v5603_v47  ;;  %12268 = vmatmul.mubr.msk.bf16.gmra.mrb[172].mxu0 %vm479_vm1, %v12951_v39  ;;  %12342 = vmatmul.mubr.msk.bf16.gmra.mrb[168].mxu1 %vm479_vm1, %v7127_v44  ;;  %v7150_v39 = vrot.slane %v7148_v34, 1  ;;  %v12957_v45 = vld [vmem:[%s13135_s25 + $0x8c] sm:$0xff]   ;;  %v5183_v48 = vld [vmem:[#allocation2 + $0x78] sm:$0xff]  ;;  %v7156_v51 = vshll.u32 %v14899_v37, 16 }
 0x36c   : > { %12271 = vmatprep.mubr.msk.bf16.mxu0 %vm13073_vm0, %v13072_v1  ;;  %12345 = vmatprep.mubr.msk.bf16.mxu1 %vm13073_vm0, %v13072_v1 }
 0x36d   : > { %6321 = vst.msk [vmem:[#allocation2 + $0x38] sm:$0xff] %vm261_vm3, %v6283_v53  ;;  %v7151_v56 = vsel %vm977_vm2, %v7146_v38, %v7150_v39 }
 0x36e   : > { %v5483_v58 = vpop.f32.mrb[68].mxu0  ;;  %v6157_v59 = vpop.f32.mrb[64].mxu1 }
 0x36f   : > { %v5604_v60 = vadd.f32 %v5483_v58, %v5178_v57  ;;  %v12085_v61 = vpop.f32.mrb[69].mxu0  ;;  %v12159_v0 = vpop.f32.mrb[65].mxu1 }
 0x370   : > { %v5717_v63 = vld [vmem:[#allocation2 + $0x40] sm:$0xff]  ;;  %v5486_v3 = vpop.f32.mrb[70].mxu0  ;;  %v6160_v7 = vpop.f32.mrb[66].mxu1  ;;  %v7158_v61 = vrot.slane %v7156_v51, 1 }
 0x371   : > { %v6284_v6 = vadd.f32 %v6157_v59, %v5717_v63  ;;  %5642 = vst.msk [vmem:[#allocation2 + $0x50] sm:$0xff] %vm261_vm3, %v5604_v60  ;;  %v5605_v8 = vadd.f32 %v5486_v3, %v5179_v2  ;;  %v12086_v9 = vpop.f32.mrb[71].mxu0  ;;  %v12160_v12 = vpop.f32.mrb[67].mxu1  ;;  %v7154_v60 = vor.u32 %v7152_v50, %v7150_v39  ;;  %v5184_v63 = vld [vmem:[#allocation2 + $0x80] sm:$0xff] }
 0x372   : > { %v5718_v11 = vld [vmem:[#allocation2 + $0x48] sm:$0xff] }
 0x373   : > { %6322 = vst.msk [vmem:[#allocation2 + $0x40] sm:$0xff] %vm261_vm3, %v6284_v6  ;;  %v6285_v13 = vadd.f32 %v6160_v7, %v5718_v11  ;;  %5643 = vst.msk [vmem:[#allocation2 + $0x58] sm:$0xff] %vm261_vm3, %v5605_v8  ;;  %12272 = vmatmul.mubr.msk.bf16.gmra.mrb[176].mxu0 %vm479_vm1, %v12953_v62  ;;  %12346 = vmatmul.mubr.msk.bf16.gmra.mrb[172].mxu1 %vm479_vm1, %v7135_v10  ;;  %v12960_v62 = vld [vmem:[%s13135_s25 + $0x9c] sm:$0xff]   ;;  %v5185_v8 = vld [vmem:[#allocation2 + $0x88] sm:$0xff]  ;;  %v7159_v10 = vsel %vm977_vm2, %v7154_v60, %v7158_v61 }
 0x374   : > { %12275 = vmatprep.mubr.msk.bf16.mxu0 %vm13073_vm0, %v13072_v1  ;;  %12349 = vmatprep.mubr.msk.bf16.mxu1 %vm13073_vm0, %v13072_v1  ;;  %v7164_v16 = vshll.u32 %v12960_v62, 16  ;;  %v7168_v34 = vshrl.u32 %v12960_v62, 16 }
 0x375   : > { %6323 = vst.msk [vmem:[#allocation2 + $0x48] sm:$0xff] %vm261_vm3, %v6285_v13 }
 0x376   : > { %v5491_v18 = vpop.f32.mrb[72].mxu0  ;;  %v6165_v19 = vpop.f32.mrb[68].mxu1 }
 0x377   : > { %v5606_v20 = vadd.f32 %v5491_v18, %v5180_v17  ;;  %v12089_v21 = vpop.f32.mrb[73].mxu0  ;;  %v12163_v24 = vpop.f32.mrb[69].mxu1 }
 0x378   : > { %v5719_v23 = vld [vmem:[#allocation2 + $0x50] sm:$0xff]  ;;  %v5494_v26 = vpop.f32.mrb[74].mxu0  ;;  %v6168_v30 = vpop.f32.mrb[70].mxu1  ;;  %v7162_v21 = vor.u32 %v7160_v15, %v7158_v61 }
 0x379   : > { %v6286_v29 = vadd.f32 %v6165_v19, %v5719_v23  ;;  %5644 = vst.msk [vmem:[#allocation2 + $0x60] sm:$0xff] %vm261_vm3, %v5606_v20  ;;  %v5607_v31 = vadd.f32 %v5494_v26, %v5181_v25  ;;  %v12090_v32 = vpop.f32.mrb[75].mxu0  ;;  %v12164_v36 = vpop.f32.mrb[71].mxu1  ;;  %v14929_v20 = vld [vmem:[%s13135_s25 + $0xa4] sm:$0xff]   ;;  %v5186_v23 = vld [vmem:[#allocation2 + $0x90] sm:$0xff] }
 0x37a   : > { %v5720_v35 = vld [vmem:[#allocation2 + $0x58] sm:$0xff] }
 0x37b   : > { %6324 = vst.msk [vmem:[#allocation2 + $0x50] sm:$0xff] %vm261_vm3, %v6286_v29  ;;  %v6287_v27 = vadd.f32 %v6168_v30, %v5720_v35  ;;  %5645 = vst.msk [vmem:[#allocation2 + $0x68] sm:$0xff] %vm261_vm3, %v5607_v31  ;;  %12276 = vmatmul.mubr.msk.bf16.gmra.mrb[180].mxu0 %vm479_vm1, %v12955_v22  ;;  %12350 = vmatmul.mubr.msk.bf16.gmra.mrb[176].mxu1 %vm479_vm1, %v7143_v28  ;;  %v7166_v22 = vrot.slane %v7164_v16, 1  ;;  %v5187_v29 = vld [vmem:[#allocation2 + $0x98] sm:$0xff]  ;;  %v7172_v35 = vshll.u32 %v14929_v20, 16 }
 0x37c   : > { %12279 = vmatprep.mubr.msk.bf16.mxu0 %vm13073_vm0, %v13072_v1  ;;  %12353 = vmatprep.mubr.msk.bf16.mxu1 %vm13073_vm0, %v13072_v1  ;;  %v12961_v30 = vld [vmem:[%s13135_s25 + $0x9c] sm:$0xff]  }
 0x37d   : > { %6325 = vst.msk [vmem:[#allocation2 + $0x58] sm:$0xff] %vm261_vm3, %v6287_v27  ;;  %v12965_v36 = vld [vmem:[%s13135_s25 + $0x1c] sm:$0xff]  }
 0x37e   : > { %v5499_v41 = vpop.f32.mrb[76].mxu0  ;;  %v6173_v42 = vpop.f32.mrb[72].mxu1  ;;  %v7687_v60 = vshrl.u32 %v12965_v36, 16 }
 0x37f   : > { %v5608_v43 = vadd.f32 %v5499_v41, %v5182_v40  ;;  %v12093_v44 = vpop.f32.mrb[77].mxu0  ;;  %v12167_v47 = vpop.f32.mrb[73].mxu1  ;;  %v7167_v40 = vsel %vm977_vm2, %v7162_v21, %v7166_v22 }
 0x380   : > { %v5721_v46 = vld [vmem:[#allocation2 + $0x60] sm:$0xff]  ;;  %v5502_v49 = vpop.f32.mrb[78].mxu0  ;;  %v6176_v53 = vpop.f32.mrb[74].mxu1  ;;  %v7170_v44 = vor.u32 %v7168_v34, %v7166_v22  ;;  %v7689_v47 = vshll.u32 %v12965_v36, 16 }
 0x381   : > { %v6288_v52 = vadd.f32 %v6173_v42, %v5721_v46  ;;  %5646 = vst.msk [vmem:[#allocation2 + $0x70] sm:$0xff] %vm261_vm3, %v5608_v43  ;;  %v5609_v54 = vadd.f32 %v5502_v49, %v5183_v48  ;;  %v12094_v55 = vpop.f32.mrb[79].mxu0  ;;  %v12168_v58 = vpop.f32.mrb[75].mxu1  ;;  %v14946_v46 = vld [vmem:[%s13135_s25 + $0x24] sm:$0xff]  }
 0x382   : > { %v5722_v57 = vld [vmem:[#allocation2 + $0x68] sm:$0xff]  ;;  %v5188_v49 = vld [vmem:[#allocation2 + $0xa0] sm:$0xff]  ;;  %v7691_v61 = vrot.slane %v7689_v47, 1  ;;  %v7694_v62 = vshll.u32 %v14946_v46, 16 }
 0x383   : > { %6326 = vst.msk [vmem:[#allocation2 + $0x60] sm:$0xff] %vm261_vm3, %v6288_v52  ;;  %v6289_v59 = vadd.f32 %v6176_v53, %v5722_v57  ;;  %5647 = vst.msk [vmem:[#allocation2 + $0x78] sm:$0xff] %vm261_vm3, %v5609_v54  ;;  %12280 = vmatmul.mubr.msk.bf16.gmra.mrb[184].mxu0 %vm479_vm1, %v12957_v45  ;;  %12354 = vmatmul.mubr.msk.bf16.gmra.mrb[180].mxu1 %vm479_vm1, %v7151_v56  ;;  %v7174_v45 = vrot.slane %v7172_v35, 1  ;;  %v12964_v48 = vld [vmem:[%s13135_s25 + $0xac] ss:$0 sps:$4 sm:$0x11]  }
 0x384   : > { %12283 = vmatprep.mubr.msk.bf16.mxu0 %vm13073_vm0, %v13072_v1  ;;  %12357 = vmatprep.mubr.msk.bf16.mxu1 %vm13073_vm0, %v13072_v1  ;;  %v5189_v54 = vld [vmem:[#allocation2 + $0xa8] sm:$0xff] }
 0x385   : > { %6327 = vst.msk [vmem:[#allocation2 + $0x68] sm:$0xff] %vm261_vm3, %v6289_v59  ;;  %v12963_v55 = vld [vmem:[%s13135_s25 + $0xa4] sm:$0xff]   ;;  %v7175_v59 = vsel %vm977_vm2, %v7170_v44, %v7174_v45 }
 0x386   : > { %v5507_v0 = vpop.f32.mrb[80].mxu0  ;;  %v6181_v2 = vpop.f32.mrb[76].mxu1  ;;  %v14979_v34 = vld [vmem:[%s13135_s25 + $0x24] sm:$0xff]  }
 0x387   : > { %v5610_v3 = vadd.f32 %v5507_v0, %v5184_v63  ;;  %v12097_v4 = vpop.f32.mrb[81].mxu0  ;;  %v12171_v7 = vpop.f32.mrb[77].mxu1 }
 0x388   : > { %v5723_v6 = vld [vmem:[#allocation2 + $0x70] sm:$0xff]  ;;  %v5510_v9 = vpop.f32.mrb[82].mxu0  ;;  %v6184_v12 = vpop.f32.mrb[78].mxu1  ;;  %v7176_v4 = vshrl.u32 %v14929_v20, 16 }
 0x389   : > { %v6290_v11 = vadd.f32 %v6181_v2, %v5723_v6  ;;  %5648 = vst.msk [vmem:[#allocation2 + $0x80] sm:$0xff] %vm261_vm3, %v5610_v3  ;;  %v5611_v13 = vadd.f32 %v5510_v9, %v5185_v8  ;;  %v12098_v14 = vpop.f32.mrb[83].mxu0  ;;  %v12172_v18 = vpop.f32.mrb[79].mxu1  ;;  %v7692_v9 = vor.u32 %v7691_v61, %v7687_v60  ;;  %v15003_v60 = vld [vmem:[%s13135_s25 + $0x2c] sm:$0xff]  }
 0x38a   : > { %v5724_v17 = vld [vmem:[#allocation2 + $0x78] sm:$0xff]  ;;  %v5190_v14 = vld [vmem:[#allocation2 + $0xb0] sm:$0xff] }
 0x38b   : > { %6328 = vst.msk [vmem:[#allocation2 + $0x70] sm:$0xff] %vm261_vm3, %v6290_v11  ;;  %v6291_v19 = vadd.f32 %v6184_v12, %v5724_v17  ;;  %5649 = vst.msk [vmem:[#allocation2 + $0x88] sm:$0xff] %vm261_vm3, %v5611_v13  ;;  %12284 = vmatmul.mubr.msk.bf16.gmra.mrb[188].mxu0 %vm479_vm1, %v12959_v5  ;;  %12358 = vmatmul.mubr.msk.bf16.gmra.mrb[184].mxu1 %vm479_vm1, %v7159_v10  ;;  %v7180_v5 = vshll.u32 %v12964_v48, 16  ;;  %v7696_v10 = vrot.slane %v7694_v62, 1  ;;  %v14964_v11 = vld [vmem:[%s13135_s25 + $0x2c] sm:$0xff]  }
 0x38c   : > { %12287 = vmatprep.mubr.msk.bf16.mxu0 %vm13073_vm0, %v13072_v1  ;;  %12361 = vmatprep.mubr.msk.bf16.mxu1 %vm13073_vm0, %v13072_v1  ;;  %v7178_v12 = vor.u32 %v7176_v4, %v7174_v45  ;;  %v8347_v4 = vrot.slane %v15003_v60, 1 }
 0x38d   : > { %6329 = vst.msk [vmem:[#allocation2 + $0x78] sm:$0xff] %vm261_vm3, %v6291_v19  ;;  %v7182_v13 = vrot.slane %v7180_v5, 1  ;;  %v5191_v19 = vld [vmem:[#allocation2 + $0xb8] sm:$0xff]  ;;  %v5194_v5 = vld [vmem:[#allocation2 + $0xd0] sm:$0xff] }
 0x38e   : > { %v5515_v24 = vpop.f32.mrb[84].mxu0  ;;  %v6189_v25 = vpop.f32.mrb[80].mxu1 }
 0x38f   : > { %v5612_v26 = vadd.f32 %v5515_v24, %v5186_v23  ;;  %v12101_v28 = vpop.f32.mrb[85].mxu0  ;;  %v12175_v32 = vpop.f32.mrb[81].mxu1  ;;  %v7697_v23 = vsel %vm977_vm2, %v7692_v9, %v7696_v10  ;;  %v12967_v24 = vld [vmem:[%s15924_s1 + $0x70] sm:$0xff]  }
 0x390   : > { %v5725_v31 = vld [vmem:[#allocation2 + $0x80] sm:$0xff]  ;;  %v5518_v33 = vpop.f32.mrb[86].mxu0  ;;  %v6192_v37 = vpop.f32.mrb[82].mxu1  ;;  %v7183_v32 = vsel %vm977_vm2, %v7178_v12, %v7182_v13  ;;  %v5195_v12 = vld [vmem:[#allocation2 + $0xd8] sm:$0xff] }
 0x391   : > { %v6292_v27 = vadd.f32 %v6189_v25, %v5725_v31  ;;  %5650 = vst.msk [vmem:[#allocation2 + $0x90] sm:$0xff] %vm261_vm3, %v5612_v26  ;;  %v5613_v38 = vadd.f32 %v5518_v33, %v5187_v29  ;;  %v12102_v39 = vpop.f32.mrb[87].mxu0  ;;  %v12176_v42 = vpop.f32.mrb[83].mxu1  ;;  %v7698_v25 = vshrl.u32 %v14946_v46, 16  ;;  %v7702_v26 = vshll.u32 %v14964_v11, 16 }
 0x392   : > { %v5726_v41 = vld [vmem:[#allocation2 + $0x88] sm:$0xff]  ;;  %v12968_v33 = vld [vmem:[%s13135_s25 + $0x1c] sm:$0xfe]   ;;  %v14986_v39 = vld [vmem:[%s13135_s25 + $0x34] sm:$0xff]  }
 0x393   : > { %6330 = vst.msk [vmem:[#allocation2 + $0x80] sm:$0xff] %vm261_vm3, %v6292_v27  ;;  %v6293_v43 = vadd.f32 %v6192_v37, %v5726_v41  ;;  %5651 = vst.msk [vmem:[#allocation2 + $0x98] sm:$0xff] %vm261_vm3, %v5613_v38  ;;  %12288 = vmatmul.mubr.msk.bf16.gmra.mrb[192].mxu0 %vm479_vm1, %v12961_v30  ;;  %12362 = vmatmul.mubr.msk.bf16.gmra.mrb[188].mxu1 %vm479_vm1, %v7167_v40  ;;  %v7700_v37 = vor.u32 %v7698_v25, %v7696_v10  ;;  %v7704_v38 = vrot.slane %v7702_v26, 1  ;;  %v5192_v42 = vld [vmem:[#allocation2 + $0xc0] sm:$0xff] }
 0x394   : > { %12291 = vmatprep.mubr.msk.bf16.mxu0 %vm13073_vm0, %v13072_v1  ;;  %12365 = vmatprep.mubr.msk.bf16.mxu1 %vm13073_vm0, %v13072_v1  ;;  %v8344_v40 = vrot.slane %v12968_v33, 1  ;;  %v8345_v41 = vrot.slane %v14979_v34, 1 }
 0x395   : > { %6331 = vst.msk [vmem:[#allocation2 + $0x88] sm:$0xff] %vm261_vm3, %v6293_v43 }
 0x396   : > { %v5523_v50 = vpop.f32.mrb[88].mxu0  ;;  %v6197_v51 = vpop.f32.mrb[84].mxu1 }
 0x397   : > { %v5614_v52 = vadd.f32 %v5523_v50, %v5188_v49  ;;  %v12105_v53 = vpop.f32.mrb[89].mxu0  ;;  %v12179_v57 = vpop.f32.mrb[85].mxu1  ;;  %v5193_v49 = vld [vmem:[#allocation2 + $0xc8] sm:$0xff] }
 0x398   : > { %v5727_v56 = vld [vmem:[#allocation2 + $0x90] sm:$0xff]  ;;  %v5526_v58 = vpop.f32.mrb[90].mxu0  ;;  %v6200_v0 = vpop.f32.mrb[86].mxu1  ;;  %v7710_v53 = vshll.u32 %v14986_v39, 16 }
 0x399   : > { %v6294_v63 = vadd.f32 %v6197_v51, %v5727_v56  ;;  %5652 = vst.msk [vmem:[#allocation2 + $0xa0] sm:$0xff] %vm261_vm3, %v5614_v52  ;;  %v5615_v2 = vadd.f32 %v5526_v58, %v5189_v54  ;;  %v12106_v3 = vpop.f32.mrb[91].mxu0  ;;  %v12180_v7 = vpop.f32.mrb[87].mxu1  ;;  %v7705_v51 = vsel %vm977_vm2, %v7700_v37, %v7704_v38  ;;  %v7706_v52 = vshrl.u32 %v14964_v11, 16  ;;  %v5197_v37 = vld [vmem:[#allocation2 + $0xe8] sm:$0xff] }
 0x39a   : > { %v5728_v6 = vld [vmem:[#allocation2 + $0x98] sm:$0xff]  ;;  %v8346_v58 = vsel %vm1636_vm4, %v8344_v40, %v8345_v41 }
 0x39b   : > { %6332 = vst.msk [vmem:[#allocation2 + $0x90] sm:$0xff] %vm261_vm3, %v6294_v63  ;;  %v6295_v8 = vadd.f32 %v6200_v0, %v5728_v6  ;;  %5653 = vst.msk [vmem:[#allocation2 + $0xa8] sm:$0xff] %vm261_vm3, %v5615_v2  ;;  %12292 = vmatmul.mubr.msk.bf16.gmra.mrb[196].mxu0 %vm479_vm1, %v12963_v55  ;;  %12366 = vmatmul.mubr.msk.bf16.gmra.mrb[192].mxu1 %vm479_vm1, %v7175_v59  ;;  %v12971_v59 = vld [vmem:[%s15924_s1 + $0x78] sm:$0xff]   ;;  %v7708_v0 = vor.u32 %v7706_v52, %v7704_v38  ;;  %v7712_v2 = vrot.slane %v7710_v53, 1  ;;  %v15054_v53 = vld [vmem:[%s13135_s25 + $0x4c] sm:$0xff]  }
 0x39c   : > { %12375 = vmatprep.mubr.msk.bf16.mxu0 %vm13073_vm0, %v13072_v1  ;;  %12369 = vmatprep.mubr.msk.bf16.mxu1 %vm13073_vm0, %v13072_v1  ;;  %v15012_v3 = vld [vmem:[%s13135_s25 + $0x3c] sm:$0xff]  }
 0x39d   : > { %6333 = vst.msk [vmem:[#allocation2 + $0x98] sm:$0xff] %vm261_vm3, %v6295_v8  ;;  %v7722_v40 = vshrl.u32 %v15012_v3, 16 }
 0x39e   : > { %v5531_v15 = vpop.f32.mrb[92].mxu0  ;;  %v6205_v16 = vpop.f32.mrb[88].mxu1 }
 0x39f   : > { %v5616_v17 = vadd.f32 %v5531_v15, %v5190_v14  ;;  %v12109_v18 = vpop.f32.mrb[93].mxu0  ;;  %v12183_v21 = vpop.f32.mrb[89].mxu1  ;;  %v7713_v14 = vsel %vm977_vm2, %v7708_v0, %v7712_v2  ;;  %v7714_v15 = vshrl.u32 %v14986_v39, 16 }
 0x3a0   : > { %v5729_v20 = vld [vmem:[#allocation2 + $0xa0] sm:$0xff]  ;;  %v5534_v22 = vpop.f32.mrb[94].mxu0  ;;  %v6208_v29 = vpop.f32.mrb[90].mxu1  ;;  %v8348_v21 = vsel %vm1636_vm4, %v8345_v41, %v8347_v4 }
 0x3a1   : > { %v6296_v28 = vadd.f32 %v6205_v16, %v5729_v20  ;;  %5654 = vst.msk [vmem:[#allocation2 + $0xb0] sm:$0xff] %vm261_vm3, %v5616_v17  ;;  %v5617_v30 = vadd.f32 %v5534_v22, %v5191_v19  ;;  %v12110_v31 = vpop.f32.mrb[95].mxu0  ;;  %v12184_v36 = vpop.f32.mrb[91].mxu1  ;;  %v7718_v16 = vshll.u32 %v15012_v3, 16  ;;  %v15024_v22 = vld [vmem:[%s13135_s25 + $0x34] sm:$0xff]   ;;  %v7716_v26 = vor.u32 %v7714_v15, %v7712_v2 }
 0x3a2   : > { %v5730_v35 = vld [vmem:[#allocation2 + $0xa8] sm:$0xff]  ;;  %v5196_v31 = vld [vmem:[#allocation2 + $0xe0] sm:$0xff]  ;;  %v7734_v3 = vshll.u32 %v15054_v53, 16  ;;  %v15075_v15 = vld [vmem:[%s13135_s25 + $0x54] sm:$0xff]  }
 0x3a3   : > { %6334 = vst.msk [vmem:[#allocation2 + $0xa0] sm:$0xff] %vm261_vm3, %v6296_v28  ;;  %v6297_v27 = vadd.f32 %v6208_v29, %v5730_v35  ;;  %5655 = vst.msk [vmem:[#allocation2 + $0xb8] sm:$0xff] %vm261_vm3, %v5617_v30  ;;  %12376 = vmatmul.mubr.msk.bf16.vlgmr.msra.gmra.mrb[200].mxu0 %vm479_vm1, %v7697_v23  ;;  %12370 = vmatmul.mubr.msk.bf16.gmra.mrb[196].mxu1 %vm479_vm1, %v7183_v32  ;;  %v7720_v28 = vrot.slane %v7718_v16, 1  ;;  %v15033_v29 = vld [vmem:[%s13135_s25 + $0x44] sm:$0xff]   ;;  %v8349_v30 = vrot.slane %v15024_v22, 1 }
 0x3a4   : > { %12530 = vmatpush3.bf16.msra.mxu0 %v12967_v24  ;;  %12453 = vmatprep.mubr.msk.bf16.mxu1 %vm13073_vm0, %v13072_v1  ;;  %v7726_v41 = vshll.u32 %v15033_v29, 16  ;;  %v7730_v2 = vshrl.u32 %v15033_v29, 16  ;;  %v7742_v29 = vshll.u32 %v15075_v15, 16 }
 0x3a5   : > { %6335 = vst.msk [vmem:[#allocation2 + $0xa8] sm:$0xff] %vm261_vm3, %v6297_v27  ;;  %12379 = vmatprep.mubr.msk.bf16.mxu0 %vm13073_vm0, %v13072_v1  ;;  %v7721_v39 = vsel %vm977_vm2, %v7716_v26, %v7720_v28 }
 0x3a6   : > { %v5539_v43 = vpop.f32.mrb[96].mxu0  ;;  %v6213_v44 = vpop.f32.mrb[92].mxu1  ;;  %v7728_v52 = vrot.slane %v7726_v41, 1 }
 0x3a7   : > { %v5618_v45 = vadd.f32 %v5539_v43, %v5192_v42  ;;  %v12113_v46 = vpop.f32.mrb[97].mxu0  ;;  %v12187_v48 = vpop.f32.mrb[93].mxu1 }
 0x3a8   : > { %v5731_v47 = vld [vmem:[#allocation2 + $0xb0] sm:$0xff]  ;;  %v5542_v50 = vpop.f32.mrb[98].mxu0  ;;  %v6216_v55 = vpop.f32.mrb[94].mxu1  ;;  %v8350_v46 = vsel %vm1636_vm4, %v8347_v4, %v8349_v30 }
 0x3a9   : > { %v6298_v54 = vadd.f32 %v6213_v44, %v5731_v47  ;;  %5656 = vst.msk [vmem:[#allocation2 + $0xc0] sm:$0xff] %vm261_vm3, %v5618_v45  ;;  %v5619_v56 = vadd.f32 %v5542_v50, %v5193_v49  ;;  %v12114_v57 = vpop.f32.mrb[99].mxu0  ;;  %v12188_v62 = vpop.f32.mrb[95].mxu1  ;;  %v15045_v47 = vld [vmem:[%s13135_s25 + $0x3c] sm:$0xff]  }
 0x3aa   : > { %v5732_v61 = vld [vmem:[#allocation2 + $0xb8] sm:$0xff] }
 0x3ab   : > { %6336 = vst.msk [vmem:[#allocation2 + $0xb0] sm:$0xff] %vm261_vm3, %v6298_v54  ;;  %v6299_v63 = vadd.f32 %v6216_v55, %v5732_v61  ;;  %5657 = vst.msk [vmem:[#allocation2 + $0xc8] sm:$0xff] %vm261_vm3, %v5619_v56  ;;  %12380 = vmatmul.mubr.msk.bf16.gmra.mrb[204].mxu0 %vm479_vm1, %v7705_v51  ;;  %12454 = vmatmul.mubr.msk.bf16.vlgmr.msra.gmra.mrb[200].mxu1 %vm479_vm1, %v8346_v58  ;;  %v7724_v51 = vor.u32 %v7722_v40, %v7720_v28  ;;  %v8351_v54 = vrot.slane %v15045_v47, 1  ;;  %v5198_v55 = vld [vmem:[#allocation2 + $0xf0] sm:$0xff]  ;;  %v5199_v62 = vld [vmem:[#allocation2 + $0xf8] sm:$0xff] }
 0x3ac   : > { %12383 = vmatprep.mubr.msk.bf16.mxu0 %vm13073_vm0, %v13072_v1  ;;  %12608 = vmatpush3.bf16.msra.mxu1 %v12971_v59  ;;  %v7738_v28 = vshrl.u32 %v15054_v53, 16  ;;  %v15096_v40 = vld [vmem:[%s13135_s25 + $0x5c] sm:$0xff]  }
 0x3ad   : > { %6337 = vst.msk [vmem:[#allocation2 + $0xb8] sm:$0xff] %vm261_vm3, %v6299_v63  ;;  %12457 = vmatprep.mubr.msk.bf16.mxu1 %vm13073_vm0, %v13072_v1  ;;  %v7729_v0 = vsel %vm977_vm2, %v7724_v51, %v7728_v52  ;;  %v7750_v53 = vshll.u32 %v15096_v40, 16 }
 0x3ae   : > { %v5547_v6 = vpop.f32.mrb[100].mxu0  ;;  %v6221_v7 = vpop.f32.mrb[96].mxu1 }
 0x3af   : > { %v5620_v8 = vadd.f32 %v5547_v6, %v5194_v5  ;;  %v12117_v9 = vpop.f32.mrb[101].mxu0  ;;  %v12191_v11 = vpop.f32.mrb[97].mxu1 }
 0x3b0   : > { %v5733_v10 = vld [vmem:[#allocation2 + $0xc0] sm:$0xff]  ;;  %v5550_v13 = vpop.f32.mrb[102].mxu0  ;;  %v6224_v18 = vpop.f32.mrb[98].mxu1 }
 0x3b1   : > { %v6300_v17 = vadd.f32 %v6221_v7, %v5733_v10  ;;  %5658 = vst.msk [vmem:[#allocation2 + $0xd0] sm:$0xff] %vm261_vm3, %v5620_v8  ;;  %v5621_v19 = vadd.f32 %v5550_v13, %v5195_v12  ;;  %v12118_v20 = vpop.f32.mrb[103].mxu0  ;;  %v12192_v24 = vpop.f32.mrb[99].mxu1  ;;  %v8352_v8 = vsel %vm1636_vm4, %v8349_v30, %v8351_v54  ;;  %v15066_v9 = vld [vmem:[%s13135_s25 + $0x44] sm:$0xff]   ;;  %v7732_v13 = vor.u32 %v7730_v2, %v7728_v52 }
 0x3b2   : > { %v5734_v23 = vld [vmem:[#allocation2 + $0xc8] sm:$0xff]  ;;  %v8353_v16 = vrot.slane %v15066_v9, 1  ;;  %v7746_v52 = vshrl.u32 %v15075_v15, 16 }
 0x3b3   : > { %6338 = vst.msk [vmem:[#allocation2 + $0xc0] sm:$0xff] %vm261_vm3, %v6300_v17  ;;  %v6301_v25 = vadd.f32 %v6224_v18, %v5734_v23  ;;  %5659 = vst.msk [vmem:[#allocation2 + $0xd8] sm:$0xff] %vm261_vm3, %v5621_v19  ;;  %12384 = vmatmul.mubr.msk.bf16.gmra.mrb[208].mxu0 %vm479_vm1, %v7713_v14  ;;  %12458 = vmatmul.mubr.msk.bf16.gmra.mrb[204].mxu1 %vm479_vm1, %v8348_v21  ;;  %v7736_v14 = vrot.slane %v7734_v3, 1  ;;  %v5200_v17 = vld [vmem:[#allocation2 + $0x100] sm:$0xff]  ;;  %v5201_v24 = vld [vmem:[#allocation2 + $0x108] sm:$0xff] }
 0x3b4   : > { %12387 = vmatprep.mubr.msk.bf16.mxu0 %vm13073_vm0, %v13072_v1  ;;  %12461 = vmatprep.mubr.msk.bf16.mxu1 %vm13073_vm0, %v13072_v1  ;;  %v15117_v2 = vld [vmem:[%s13135_s25 + $0x64] sm:$0xff]  }
 0x3b5   : > { %6339 = vst.msk [vmem:[#allocation2 + $0xc8] sm:$0xff] %vm261_vm3, %v6301_v25  ;;  %v7737_v26 = vsel %vm977_vm2, %v7732_v13, %v7736_v14  ;;  %v7758_v15 = vshll.u32 %v15117_v2, 16 }
 0x3b6   : > { %v5555_v32 = vpop.f32.mrb[104].mxu0  ;;  %v6229_v33 = vpop.f32.mrb[100].mxu1 }
 0x3b7   : > { %v5622_v34 = vadd.f32 %v5555_v32, %v5196_v31  ;;  %v12121_v35 = vpop.f32.mrb[105].mxu0  ;;  %v12195_v27 = vpop.f32.mrb[101].mxu1 }
 0x3b8   : > { %v5735_v36 = vld [vmem:[#allocation2 + $0xd0] sm:$0xff]  ;;  %v5558_v38 = vpop.f32.mrb[106].mxu0  ;;  %v6232_v43 = vpop.f32.mrb[102].mxu1 }
 0x3b9   : > { %v6302_v42 = vadd.f32 %v6229_v33, %v5735_v36  ;;  %5660 = vst.msk [vmem:[#allocation2 + $0xe0] sm:$0xff] %vm261_vm3, %v5622_v34  ;;  %v5623_v44 = vadd.f32 %v5558_v38, %v5197_v37  ;;  %v12122_v45 = vpop.f32.mrb[107].mxu0  ;;  %v12196_v49 = vpop.f32.mrb[103].mxu1  ;;  %v8354_v34 = vsel %vm1636_vm4, %v8351_v54, %v8353_v16  ;;  %v15087_v35 = vld [vmem:[%s13135_s25 + $0x4c] sm:$0xff]   ;;  %v7740_v38 = vor.u32 %v7738_v28, %v7736_v14 }
 0x3ba   : > { %v5736_v48 = vld [vmem:[#allocation2 + $0xd8] sm:$0xff]  ;;  %v8355_v41 = vrot.slane %v15087_v35, 1  ;;  %v7754_v14 = vshrl.u32 %v15096_v40, 16  ;;  %v15138_v28 = vld [vmem:[%s13135_s25 + $0x6c] sm:$0xff]  }
 0x3bb   : > { %6340 = vst.msk [vmem:[#allocation2 + $0xd0] sm:$0xff] %vm261_vm3, %v6302_v42  ;;  %v6303_v50 = vadd.f32 %v6232_v43, %v5736_v48  ;;  %5661 = vst.msk [vmem:[#allocation2 + $0xe8] sm:$0xff] %vm261_vm3, %v5623_v44  ;;  %12388 = vmatmul.mubr.msk.bf16.gmra.mrb[212].mxu0 %vm479_vm1, %v7721_v39  ;;  %12462 = vmatmul.mubr.msk.bf16.gmra.mrb[208].mxu1 %vm479_vm1, %v8350_v46  ;;  %v7744_v39 = vrot.slane %v7742_v29, 1  ;;  %v5202_v42 = vld [vmem:[#allocation2 + $0x110] sm:$0xff]  ;;  %v5203_v49 = vld [vmem:[#allocation2 + $0x118] sm:$0xff]  ;;  %v7766_v40 = vshll.u32 %v15138_v28, 16 }
 0x3bc   : > { %12391 = vmatprep.mubr.msk.bf16.mxu0 %vm13073_vm0, %v13072_v1  ;;  %12465 = vmatprep.mubr.msk.bf16.mxu1 %vm13073_vm0, %v13072_v1 }
 0x3bd   : > { %6341 = vst.msk [vmem:[#allocation2 + $0xd8] sm:$0xff] %vm261_vm3, %v6303_v50  ;;  %v7745_v51 = vsel %vm977_vm2, %v7740_v38, %v7744_v39 }
 0x3be   : > { %v5563_v56 = vpop.f32.mrb[108].mxu0  ;;  %v6237_v57 = vpop.f32.mrb[104].mxu1 }
 0x3bf   : > { %v5624_v58 = vadd.f32 %v5563_v56, %v5198_v55  ;;  %v12125_v59 = vpop.f32.mrb[109].mxu0  ;;  %v12199_v61 = vpop.f32.mrb[105].mxu1 }
 0x3c0   : > { %v5737_v60 = vld [vmem:[#allocation2 + $0xe0] sm:$0xff]  ;;  %v5566_v63 = vpop.f32.mrb[110].mxu0  ;;  %v6240_v5 = vpop.f32.mrb[106].mxu1  ;;  %v15108_v59 = vld [vmem:[%s13135_s25 + $0x54] sm:$0xff]  }
 0x3c1   : > { %v6304_v4 = vadd.f32 %v6237_v57, %v5737_v60  ;;  %5662 = vst.msk [vmem:[#allocation2 + $0xf0] sm:$0xff] %vm261_vm3, %v5624_v58  ;;  %v5625_v6 = vadd.f32 %v5566_v63, %v5199_v62  ;;  %v12126_v7 = vpop.f32.mrb[111].mxu0  ;;  %v12200_v11 = vpop.f32.mrb[107].mxu1  ;;  %v8356_v58 = vsel %vm1636_vm4, %v8353_v16, %v8355_v41  ;;  %v7748_v63 = vor.u32 %v7746_v52, %v7744_v39  ;;  %v15159_v52 = vld [vmem:[%s13135_s25 + $0x74] sm:$0xff]  }
 0x3c2   : > { %v5738_v10 = vld [vmem:[#allocation2 + $0xe8] sm:$0xff]  ;;  %v8357_v3 = vrot.slane %v15108_v59, 1  ;;  %v7762_v39 = vshrl.u32 %v15117_v2, 16  ;;  %v7774_v2 = vshll.u32 %v15159_v52, 16 }
 0x3c3   : > { %6342 = vst.msk [vmem:[#allocation2 + $0xe0] sm:$0xff] %vm261_vm3, %v6304_v4  ;;  %v6305_v12 = vadd.f32 %v6240_v5, %v5738_v10  ;;  %5663 = vst.msk [vmem:[#allocation2 + $0xf8] sm:$0xff] %vm261_vm3, %v5625_v6  ;;  %12392 = vmatmul.mubr.msk.bf16.gmra.mrb[216].mxu0 %vm479_vm1, %v7729_v0  ;;  %12466 = vmatmul.mubr.msk.bf16.gmra.mrb[212].mxu1 %vm479_vm1, %v8352_v8  ;;  %v7752_v0 = vrot.slane %v7750_v53, 1  ;;  %v5204_v4 = vld [vmem:[#allocation2 + $0x120] sm:$0xff]  ;;  %v5205_v11 = vld [vmem:[#allocation2 + $0x128] sm:$0xff] }
 0x3c4   : > { %12395 = vmatprep.mubr.msk.bf16.mxu0 %vm13073_vm0, %v13072_v1  ;;  %12469 = vmatprep.mubr.msk.bf16.mxu1 %vm13073_vm0, %v13072_v1 }
 0x3c5   : > { %6343 = vst.msk [vmem:[#allocation2 + $0xe8] sm:$0xff] %vm261_vm3, %v6305_v12  ;;  %v7753_v13 = vsel %vm977_vm2, %v7748_v63, %v7752_v0 }
 0x3c6   : > { %v5571_v18 = vpop.f32.mrb[112].mxu0  ;;  %v6245_v19 = vpop.f32.mrb[108].mxu1 }
 0x3c7   : > { %v5626_v20 = vadd.f32 %v5571_v18, %v5200_v17  ;;  %v12129_v21 = vpop.f32.mrb[113].mxu0  ;;  %v12203_v23 = vpop.f32.mrb[109].mxu1 }
 0x3c8   : > { %v5739_v22 = vld [vmem:[#allocation2 + $0xf0] sm:$0xff]  ;;  %v5574_v25 = vpop.f32.mrb[114].mxu0  ;;  %v6248_v31 = vpop.f32.mrb[110].mxu1  ;;  %v15129_v21 = vld [vmem:[%s13135_s25 + $0x5c] sm:$0xff]  }
 0x3c9   : > { %v6306_v30 = vadd.f32 %v6245_v19, %v5739_v22  ;;  %5664 = vst.msk [vmem:[#allocation2 + $0x100] sm:$0xff] %vm261_vm3, %v5626_v20  ;;  %v5627_v32 = vadd.f32 %v5574_v25, %v5201_v24  ;;  %v12130_v33 = vpop.f32.mrb[115].mxu0  ;;  %v12204_v27 = vpop.f32.mrb[111].mxu1  ;;  %v8358_v20 = vsel %vm1636_vm4, %v8355_v41, %v8357_v3  ;;  %v7756_v25 = vor.u32 %v7754_v14, %v7752_v0  ;;  %v15180_v14 = vld [vmem:[%s13135_s25 + $0x7c] sm:$0xff]  }
 0x3ca   : > { %v5740_v36 = vld [vmem:[#allocation2 + $0xf8] sm:$0xff]  ;;  %v8359_v29 = vrot.slane %v15129_v21, 1  ;;  %v6391_v27 = vld [vmem:[#allocation2 + $0x8] sm:$0xff]  ;;  %v7770_v0 = vshrl.u32 %v15138_v28, 16  ;;  %v7782_v28 = vshll.u32 %v15180_v14, 16 }
 0x3cb   : > { %6344 = vst.msk [vmem:[#allocation2 + $0xf0] sm:$0xff] %vm261_vm3, %v6306_v30  ;;  %v6307_v37 = vadd.f32 %v6248_v31, %v5740_v36  ;;  %5665 = vst.msk [vmem:[#allocation2 + $0x108] sm:$0xff] %vm261_vm3, %v5627_v32  ;;  %12396 = vmatmul.mubr.msk.bf16.gmra.mrb[220].mxu0 %vm479_vm1, %v7737_v26  ;;  %12470 = vmatmul.mubr.msk.bf16.gmra.mrb[216].mxu1 %vm479_vm1, %v8354_v34  ;;  %v7760_v26 = vrot.slane %v7758_v15, 1  ;;  %v6390_v30 = vld [vmem:[#allocation2] sm:$0xff] }
 0x3cc   : > { %12399 = vmatprep.mubr.msk.bf16.mxu0 %vm13073_vm0, %v13072_v1  ;;  %12473 = vmatprep.mubr.msk.bf16.mxu1 %vm13073_vm0, %v13072_v1 }
 0x3cd   : > { %6345 = vst.msk [vmem:[#allocation2 + $0xf8] sm:$0xff] %vm261_vm3, %v6307_v37  ;;  %v7761_v38 = vsel %vm977_vm2, %v7756_v25, %v7760_v26 }
 0x3ce   : > { %v5579_v43 = vpop.f32.mrb[116].mxu0  ;;  %v6253_v44 = vpop.f32.mrb[112].mxu1 }
 0x3cf   : > { %v5628_v45 = vadd.f32 %v5579_v43, %v5202_v42  ;;  %v12133_v46 = vpop.f32.mrb[117].mxu0  ;;  %v12207_v48 = vpop.f32.mrb[113].mxu1 }
 0x3d0   : > { %v5741_v47 = vld [vmem:[#allocation2 + $0x100] sm:$0xff]  ;;  %v5582_v50 = vpop.f32.mrb[118].mxu0  ;;  %v6256_v55 = vpop.f32.mrb[114].mxu1 }
 0x3d1   : > { %v6308_v54 = vadd.f32 %v6253_v44, %v5741_v47  ;;  %5666 = vst.msk [vmem:[#allocation2 + $0x110] sm:$0xff] %vm261_vm3, %v5628_v45  ;;  %v5629_v56 = vadd.f32 %v5582_v50, %v5203_v49  ;;  %v12134_v57 = vpop.f32.mrb[119].mxu0  ;;  %v12208_v61 = vpop.f32.mrb[115].mxu1  ;;  %v8360_v45 = vsel %vm1636_vm4, %v8357_v3, %v8359_v29  ;;  %v15150_v46 = vld [vmem:[%s13135_s25 + $0x64] sm:$0xff]   ;;  %v7764_v50 = vor.u32 %v7762_v39, %v7760_v26 }
 0x3d2   : > { %v5742_v60 = vld [vmem:[#allocation2 + $0x108] sm:$0xff]  ;;  %v8361_v53 = vrot.slane %v15150_v46, 1  ;;  %v6393_v61 = vld [vmem:[#allocation2 + $0x18] sm:$0xff]  ;;  %v7778_v26 = vshrl.u32 %v15159_v52, 16 }
 0x3d3   : > { %6346 = vst.msk [vmem:[#allocation2 + $0x100] sm:$0xff] %vm261_vm3, %v6308_v54  ;;  %v6309_v62 = vadd.f32 %v6256_v55, %v5742_v60  ;;  %5667 = vst.msk [vmem:[#allocation2 + $0x118] sm:$0xff] %vm261_vm3, %v5629_v56  ;;  %12400 = vmatmul.mubr.msk.bf16.gmra.mrb[224].mxu0 %vm479_vm1, %v7745_v51  ;;  %12474 = vmatmul.mubr.msk.bf16.gmra.mrb[220].mxu1 %vm479_vm1, %v8356_v58  ;;  %v7768_v51 = vrot.slane %v7766_v40, 1  ;;  %v6392_v54 = vld [vmem:[#allocation2 + $0x10] sm:$0xff]  ;;  %v15201_v39 = vld [vmem:[%s13135_s25 + $0x84] sm:$0xff]  }
 0x3d4   : > { %12403 = vmatprep.mubr.msk.bf16.mxu0 %vm13073_vm0, %v13072_v1  ;;  %12477 = vmatprep.mubr.msk.bf16.mxu1 %vm13073_vm0, %v13072_v1  ;;  %v7790_v52 = vshll.u32 %v15201_v39, 16 }
 0x3d5   : > { %6347 = vst.msk [vmem:[#allocation2 + $0x108] sm:$0xff] %vm261_vm3, %v6309_v62  ;;  %v7769_v63 = vsel %vm977_vm2, %v7764_v50, %v7768_v51 }
 0x3d6   : > { %v5587_v5 = vpop.f32.mrb[120].mxu0  ;;  %v6261_v6 = vpop.f32.mrb[116].mxu1 }
 0x3d7   : > { %v5630_v7 = vadd.f32 %v5587_v5, %v5204_v4  ;;  %v12137_v8 = vpop.f32.mrb[121].mxu0  ;;  %v12211_v10 = vpop.f32.mrb[117].mxu1 }
 0x3d8   : > { %v5743_v9 = vld [vmem:[#allocation2 + $0x110] sm:$0xff]  ;;  %v5590_v12 = vpop.f32.mrb[122].mxu0  ;;  %v6264_v17 = vpop.f32.mrb[118].mxu1 }
 0x3d9   : > { %v6310_v16 = vadd.f32 %v6261_v6, %v5743_v9  ;;  %5668 = vst.msk [vmem:[#allocation2 + $0x120] sm:$0xff] %vm261_vm3, %v5630_v7  ;;  %v5631_v18 = vadd.f32 %v5590_v12, %v5205_v11  ;;  %v12138_v19 = vpop.f32.mrb[123].mxu0  ;;  %v12212_v23 = vpop.f32.mrb[119].mxu1  ;;  %v8362_v7 = vsel %vm1636_vm4, %v8359_v29, %v8361_v53  ;;  %v15171_v8 = vld [vmem:[%s13135_s25 + $0x6c] sm:$0xff]   ;;  %v7772_v12 = vor.u32 %v7770_v0, %v7768_v51 }
 0x3da   : > { %v5744_v22 = vld [vmem:[#allocation2 + $0x118] sm:$0xff]  ;;  %v8363_v15 = vrot.slane %v15171_v8, 1  ;;  %v6395_v23 = vld [vmem:[#allocation2 + $0x28] sm:$0xff]  ;;  %v7786_v51 = vshrl.u32 %v15180_v14, 16 }
 0x3db   : > { %6348 = vst.msk [vmem:[#allocation2 + $0x110] sm:$0xff] %vm261_vm3, %v6310_v16  ;;  %v6311_v24 = vadd.f32 %v6264_v17, %v5744_v22  ;;  %5669 = vst.msk [vmem:[#allocation2 + $0x128] sm:$0xff] %vm261_vm3, %v5631_v18  ;;  %12404 = vmatmul.mubr.msk.bf16.gmra.mrb[228].mxu0 %vm479_vm1, %v7753_v13  ;;  %12478 = vmatmul.mubr.msk.bf16.gmra.mrb[224].mxu1 %vm479_vm1, %v8358_v20  ;;  %v7776_v13 = vrot.slane %v7774_v2, 1  ;;  %v6394_v16 = vld [vmem:[#allocation2 + $0x20] sm:$0xff]  ;;  %v15222_v0 = vld [vmem:[%s13135_s25 + $0x8c] sm:$0xff]  }
 0x3dc   : > { %12407 = vmatprep.mubr.msk.bf16.mxu0 %vm13073_vm0, %v13072_v1  ;;  %12481 = vmatprep.mubr.msk.bf16.mxu1 %vm13073_vm0, %v13072_v1  ;;  %v7798_v14 = vshll.u32 %v15222_v0, 16 }
 0x3dd   : > { %6349 = vst.msk [vmem:[#allocation2 + $0x118] sm:$0xff] %vm261_vm3, %v6311_v24  ;;  %v7777_v25 = vsel %vm977_vm2, %v7772_v12, %v7776_v13 }
 0x3de   : > { %v6623_v31 = vpop.f32.mrb[124].mxu0  ;;  %v6269_v32 = vpop.f32.mrb[120].mxu1 }
 0x3df   : > { %v6774_v33 = vadd.f32 %v6623_v31, %v6390_v30  ;;  %v12221_v34 = vpop.f32.mrb[125].mxu0  ;;  %v12215_v36 = vpop.f32.mrb[121].mxu1 }
 0x3e0   : > { %v5745_v35 = vld [vmem:[#allocation2 + $0x120] sm:$0xff]  ;;  %v6626_v37 = vpop.f32.mrb[126].mxu0  ;;  %v6272_v42 = vpop.f32.mrb[122].mxu1  ;;  %v15192_v34 = vld [vmem:[%s13135_s25 + $0x74] sm:$0xff]  }
 0x3e1   : > { %v6312_v41 = vadd.f32 %v6269_v32, %v5745_v35  ;;  %6812 = vst.msk [vmem:[#allocation2] sm:$0xff] %vm261_vm3, %v6774_v33  ;;  %v6775_v43 = vadd.f32 %v6626_v37, %v6391_v27  ;;  %v12222_v44 = vpop.f32.mrb[127].mxu0  ;;  %v12216_v48 = vpop.f32.mrb[123].mxu1  ;;  %v8364_v33 = vsel %vm1636_vm4, %v8361_v53, %v8363_v15  ;;  %v7780_v37 = vor.u32 %v7778_v26, %v7776_v13  ;;  %v15243_v26 = vld [vmem:[%s13135_s25 + $0x94] sm:$0xff]  }
 0x3e2   : > { %v5746_v47 = vld [vmem:[#allocation2 + $0x128] sm:$0xff]  ;;  %v8365_v40 = vrot.slane %v15192_v34, 1  ;;  %v6397_v48 = vld [vmem:[#allocation2 + $0x38] sm:$0xff]  ;;  %v7794_v13 = vshrl.u32 %v15201_v39, 16  ;;  %v7806_v39 = vshll.u32 %v15243_v26, 16 }
 0x3e3   : > { %6350 = vst.msk [vmem:[#allocation2 + $0x120] sm:$0xff] %vm261_vm3, %v6312_v41  ;;  %v6313_v49 = vadd.f32 %v6272_v42, %v5746_v47  ;;  %6813 = vst.msk [vmem:[#allocation2 + $0x8] sm:$0xff] %vm261_vm3, %v6775_v43  ;;  %12408 = vmatmul.mubr.msk.bf16.gmra.mrb[232].mxu0 %vm479_vm1, %v7761_v38  ;;  %12482 = vmatmul.mubr.msk.bf16.gmra.mrb[228].mxu1 %vm479_vm1, %v8360_v45  ;;  %v7784_v38 = vrot.slane %v7782_v28, 1  ;;  %v6396_v41 = vld [vmem:[#allocation2 + $0x30] sm:$0xff] }
 0x3e4   : > { %12411 = vmatprep.mubr.msk.bf16.mxu0 %vm13073_vm0, %v13072_v1  ;;  %12485 = vmatprep.mubr.msk.bf16.mxu1 %vm13073_vm0, %v13072_v1 }
 0x3e5   : > { %6351 = vst.msk [vmem:[#allocation2 + $0x128] sm:$0xff] %vm261_vm3, %v6313_v49  ;;  %v7785_v50 = vsel %vm977_vm2, %v7780_v37, %v7784_v38 }
 0x3e6   : > { %v6631_v55 = vpop.f32.mrb[128].mxu0  ;;  %v7281_v56 = vpop.f32.mrb[124].mxu1 }
 0x3e7   : > { %v6776_v57 = vadd.f32 %v6631_v55, %v6392_v54  ;;  %v12225_v58 = vpop.f32.mrb[129].mxu0  ;;  %v12299_v60 = vpop.f32.mrb[125].mxu1 }
 0x3e8   : > { %v6889_v59 = vld [vmem:[#allocation2] sm:$0xff]  ;;  %v6634_v62 = vpop.f32.mrb[130].mxu0  ;;  %v7284_v4 = vpop.f32.mrb[126].mxu1 }
 0x3e9   : > { %v7432_v3 = vadd.f32 %v7281_v56, %v6889_v59  ;;  %6814 = vst.msk [vmem:[#allocation2 + $0x10] sm:$0xff] %vm261_vm3, %v6776_v57  ;;  %v6777_v5 = vadd.f32 %v6634_v62, %v6393_v61  ;;  %v12226_v6 = vpop.f32.mrb[131].mxu0  ;;  %v12300_v10 = vpop.f32.mrb[127].mxu1  ;;  %v8366_v57 = vsel %vm1636_vm4, %v8363_v15, %v8365_v40  ;;  %v15213_v58 = vld [vmem:[%s13135_s25 + $0x7c] sm:$0xff]   ;;  %v7788_v62 = vor.u32 %v7786_v51, %v7784_v38 }
 0x3ea   : > { %v6890_v9 = vld [vmem:[#allocation2 + $0x8] sm:$0xff]  ;;  %v8367_v2 = vrot.slane %v15213_v58, 1  ;;  %v7802_v38 = vshrl.u32 %v15222_v0, 16  ;;  %v15264_v51 = vld [vmem:[%s13135_s25 + $0x9c] sm:$0xff]  }
 0x3eb   : > { %7470 = vst.msk [vmem:[#allocation2] sm:$0xff] %vm261_vm3, %v7432_v3  ;;  %v7433_v11 = vadd.f32 %v7284_v4, %v6890_v9  ;;  %6815 = vst.msk [vmem:[#allocation2 + $0x18] sm:$0xff] %vm261_vm3, %v6777_v5  ;;  %12412 = vmatmul.mubr.msk.bf16.gmra.mrb[236].mxu0 %vm479_vm1, %v7769_v63  ;;  %12486 = vmatmul.mubr.msk.bf16.gmra.mrb[232].mxu1 %vm479_vm1, %v8362_v7  ;;  %v7792_v63 = vrot.slane %v7790_v52, 1  ;;  %v6398_v3 = vld [vmem:[#allocation2 + $0x40] sm:$0xff]  ;;  %v6399_v10 = vld [vmem:[#allocation2 + $0x48] sm:$0xff]  ;;  %v7814_v0 = vshll.u32 %v15264_v51, 16 }
 0x3ec   : > { %12415 = vmatprep.mubr.msk.bf16.mxu0 %vm13073_vm0, %v13072_v1  ;;  %12489 = vmatprep.mubr.msk.bf16.mxu1 %vm13073_vm0, %v13072_v1 }
 0x3ed   : > { %7471 = vst.msk [vmem:[#allocation2 + $0x8] sm:$0xff] %vm261_vm3, %v7433_v11  ;;  %v7793_v12 = vsel %vm977_vm2, %v7788_v62, %v7792_v63 }
 0x3ee   : > { %v6639_v17 = vpop.f32.mrb[132].mxu0  ;;  %v7289_v18 = vpop.f32.mrb[128].mxu1 }
 0x3ef   : > { %v6778_v19 = vadd.f32 %v6639_v17, %v6394_v16  ;;  %v12229_v20 = vpop.f32.mrb[133].mxu0  ;;  %v12303_v22 = vpop.f32.mrb[129].mxu1 }
 0x3f0   : > { %v6891_v21 = vld [vmem:[#allocation2 + $0x10] sm:$0xff]  ;;  %v6642_v24 = vpop.f32.mrb[134].mxu0  ;;  %v7292_v30 = vpop.f32.mrb[130].mxu1  ;;  %v15234_v20 = vld [vmem:[%s13135_s25 + $0x84] sm:$0xff]  }
 0x3f1   : > { %v7434_v29 = vadd.f32 %v7289_v18, %v6891_v21  ;;  %6816 = vst.msk [vmem:[#allocation2 + $0x20] sm:$0xff] %vm261_vm3, %v6778_v19  ;;  %v6779_v31 = vadd.f32 %v6642_v24, %v6395_v23  ;;  %v12230_v32 = vpop.f32.mrb[135].mxu0  ;;  %v12304_v36 = vpop.f32.mrb[131].mxu1  ;;  %v8368_v19 = vsel %vm1636_vm4, %v8365_v40, %v8367_v2  ;;  %v7796_v24 = vor.u32 %v7794_v13, %v7792_v63  ;;  %v15285_v13 = vld [vmem:[%s13135_s25 + $0xa4] sm:$0xff]  }
 0x3f2   : > { %v6892_v35 = vld [vmem:[#allocation2 + $0x18] sm:$0xff]  ;;  %v8369_v28 = vrot.slane %v15234_v20, 1  ;;  %v7810_v63 = vshrl.u32 %v15243_v26, 16  ;;  %v7822_v26 = vshll.u32 %v15285_v13, 16 }
 0x3f3   : > { %7472 = vst.msk [vmem:[#allocation2 + $0x10] sm:$0xff] %vm261_vm3, %v7434_v29  ;;  %v7435_v27 = vadd.f32 %v7292_v30, %v6892_v35  ;;  %6817 = vst.msk [vmem:[#allocation2 + $0x28] sm:$0xff] %vm261_vm3, %v6779_v31  ;;  %12416 = vmatmul.mubr.msk.bf16.gmra.mrb[240].mxu0 %vm479_vm1, %v7777_v25  ;;  %12490 = vmatmul.mubr.msk.bf16.gmra.mrb[236].mxu1 %vm479_vm1, %v8364_v33  ;;  %v7800_v25 = vrot.slane %v7798_v14, 1  ;;  %v6400_v29 = vld [vmem:[#allocation2 + $0x50] sm:$0xff]  ;;  %v6401_v36 = vld [vmem:[#allocation2 + $0x58] sm:$0xff] }
 0x3f4   : > { %12419 = vmatprep.mubr.msk.bf16.mxu0 %vm13073_vm0, %v13072_v1  ;;  %12493 = vmatprep.mubr.msk.bf16.mxu1 %vm13073_vm0, %v13072_v1 }
 0x3f5   : > { %7473 = vst.msk [vmem:[#allocation2 + $0x18] sm:$0xff] %vm261_vm3, %v7435_v27  ;;  %v7801_v37 = vsel %vm977_vm2, %v7796_v24, %v7800_v25 }
 0x3f6   : > { %v6647_v42 = vpop.f32.mrb[136].mxu0  ;;  %v7297_v43 = vpop.f32.mrb[132].mxu1 }
 0x3f7   : > { %v6780_v44 = vadd.f32 %v6647_v42, %v6396_v41  ;;  %v12233_v45 = vpop.f32.mrb[137].mxu0  ;;  %v12307_v47 = vpop.f32.mrb[133].mxu1 }
 0x3f8   : > { %v6893_v46 = vld [vmem:[#allocation2 + $0x20] sm:$0xff]  ;;  %v6650_v49 = vpop.f32.mrb[138].mxu0  ;;  %v7300_v54 = vpop.f32.mrb[134].mxu1  ;;  %v15255_v45 = vld [vmem:[%s13135_s25 + $0x8c] sm:$0xff]  }
 0x3f9   : > { %v7436_v53 = vadd.f32 %v7297_v43, %v6893_v46  ;;  %6818 = vst.msk [vmem:[#allocation2 + $0x30] sm:$0xff] %vm261_vm3, %v6780_v44  ;;  %v6781_v55 = vadd.f32 %v6650_v49, %v6397_v48  ;;  %v12234_v56 = vpop.f32.mrb[139].mxu0  ;;  %v12308_v60 = vpop.f32.mrb[135].mxu1  ;;  %v8370_v44 = vsel %vm1636_vm4, %v8367_v2, %v8369_v28  ;;  %v7804_v49 = vor.u32 %v7802_v38, %v7800_v25  ;;  %v15306_v38 = vld [vmem:[%s13135_s25 + $0xac] sm:$0xff]  }
 0x3fa   : > { %v6894_v59 = vld [vmem:[#allocation2 + $0x28] sm:$0xff]  ;;  %v8371_v52 = vrot.slane %v15255_v45, 1  ;;  %v7818_v25 = vshrl.u32 %v15264_v51, 16  ;;  %v7830_v51 = vshll.u32 %v15306_v38, 16 }
 0x3fb   : > { %7474 = vst.msk [vmem:[#allocation2 + $0x20] sm:$0xff] %vm261_vm3, %v7436_v53  ;;  %v7437_v61 = vadd.f32 %v7300_v54, %v6894_v59  ;;  %6819 = vst.msk [vmem:[#allocation2 + $0x38] sm:$0xff] %vm261_vm3, %v6781_v55  ;;  %12420 = vmatmul.mubr.msk.bf16.gmra.mrb[244].mxu0 %vm479_vm1, %v7785_v50  ;;  %12494 = vmatmul.mubr.msk.bf16.gmra.mrb[240].mxu1 %vm479_vm1, %v8366_v57  ;;  %v7808_v50 = vrot.slane %v7806_v39, 1  ;;  %v6402_v53 = vld [vmem:[#allocation2 + $0x60] sm:$0xff]  ;;  %v6403_v60 = vld [vmem:[#allocation2 + $0x68] sm:$0xff] }
 0x3fc   : > { %12423 = vmatprep.mubr.msk.bf16.mxu0 %vm13073_vm0, %v13072_v1  ;;  %12497 = vmatprep.mubr.msk.bf16.mxu1 %vm13073_vm0, %v13072_v1 }
 0x3fd   : > { %7475 = vst.msk [vmem:[#allocation2 + $0x28] sm:$0xff] %vm261_vm3, %v7437_v61  ;;  %v7809_v62 = vsel %vm977_vm2, %v7804_v49, %v7808_v50 }
 0x3fe   : > { %v6655_v4 = vpop.f32.mrb[140].mxu0  ;;  %v7305_v5 = vpop.f32.mrb[136].mxu1 }
 0x3ff   : > { %v6782_v6 = vadd.f32 %v6655_v4, %v6398_v3  ;;  %v12237_v7 = vpop.f32.mrb[141].mxu0  ;;  %v12311_v9 = vpop.f32.mrb[137].mxu1 }
 0x400   : > { %v6895_v8 = vld [vmem:[#allocation2 + $0x30] sm:$0xff]  ;;  %v6658_v11 = vpop.f32.mrb[142].mxu0  ;;  %v7308_v16 = vpop.f32.mrb[138].mxu1 }
 0x401   : > { %v7438_v15 = vadd.f32 %v7305_v5, %v6895_v8  ;;  %6820 = vst.msk [vmem:[#allocation2 + $0x40] sm:$0xff] %vm261_vm3, %v6782_v6  ;;  %v6783_v17 = vadd.f32 %v6658_v11, %v6399_v10  ;;  %v12238_v18 = vpop.f32.mrb[143].mxu0  ;;  %v12312_v22 = vpop.f32.mrb[139].mxu1  ;;  %v8372_v6 = vsel %vm1636_vm4, %v8369_v28, %v8371_v52  ;;  %v15276_v7 = vld [vmem:[%s13135_s25 + $0x94] sm:$0xff]   ;;  %v7812_v11 = vor.u32 %v7810_v63, %v7808_v50 }
 0x402   : > { %v6896_v21 = vld [vmem:[#allocation2 + $0x38] sm:$0xff]  ;;  %v8373_v14 = vrot.slane %v15276_v7, 1  ;;  %v7826_v50 = vshrl.u32 %v15285_v13, 16  ;;  %v13005_v63 = vld [vmem:[%s13135_s25 + $0xb4] ss:$0 sps:$4 sm:$0x11]  }
 0x403   : > { %7476 = vst.msk [vmem:[#allocation2 + $0x30] sm:$0xff] %vm261_vm3, %v7438_v15  ;;  %v7439_v23 = vadd.f32 %v7308_v16, %v6896_v21  ;;  %6821 = vst.msk [vmem:[#allocation2 + $0x48] sm:$0xff] %vm261_vm3, %v6783_v17  ;;  %12424 = vmatmul.mubr.msk.bf16.gmra.mrb[248].mxu0 %vm479_vm1, %v7793_v12  ;;  %12498 = vmatmul.mubr.msk.bf16.gmra.mrb[244].mxu1 %vm479_vm1, %v8368_v19  ;;  %v7816_v12 = vrot.slane %v7814_v0, 1  ;;  %v6404_v15 = vld [vmem:[#allocation2 + $0x70] sm:$0xff]  ;;  %v6405_v22 = vld [vmem:[#allocation2 + $0x78] sm:$0xff]  ;;  %v7834_v13 = vshrl.u32 %v15306_v38, 16 }
 0x404   : > { %12427 = vmatprep.mubr.msk.bf16.mxu0 %vm13073_vm0, %v13072_v1  ;;  %12501 = vmatprep.mubr.msk.bf16.mxu1 %vm13073_vm0, %v13072_v1  ;;  %v6409_v7 = vld [vmem:[#allocation2 + $0x98] sm:$0xff] }
 0x405   : > { %7477 = vst.msk [vmem:[#allocation2 + $0x38] sm:$0xff] %vm261_vm3, %v7439_v23  ;;  %v7817_v24 = vsel %vm977_vm2, %v7812_v11, %v7816_v12 }
 0x406   : > { %v6663_v30 = vpop.f32.mrb[144].mxu0  ;;  %v7313_v31 = vpop.f32.mrb[140].mxu1 }
 0x407   : > { %v6784_v32 = vadd.f32 %v6663_v30, %v6400_v29  ;;  %v12241_v33 = vpop.f32.mrb[145].mxu0  ;;  %v12315_v35 = vpop.f32.mrb[141].mxu1 }
 0x408   : > { %v6897_v34 = vld [vmem:[#allocation2 + $0x40] sm:$0xff]  ;;  %v6666_v27 = vpop.f32.mrb[146].mxu0  ;;  %v7316_v41 = vpop.f32.mrb[142].mxu1 }
 0x409   : > { %v7440_v40 = vadd.f32 %v7313_v31, %v6897_v34  ;;  %6822 = vst.msk [vmem:[#allocation2 + $0x50] sm:$0xff] %vm261_vm3, %v6784_v32  ;;  %v6785_v42 = vadd.f32 %v6666_v27, %v6401_v36  ;;  %v12242_v43 = vpop.f32.mrb[147].mxu0  ;;  %v12316_v47 = vpop.f32.mrb[143].mxu1  ;;  %v8374_v32 = vsel %vm1636_vm4, %v8371_v52, %v8373_v14  ;;  %v15297_v33 = vld [vmem:[%s13135_s25 + $0x9c] sm:$0xff]   ;;  %v7820_v27 = vor.u32 %v7818_v25, %v7816_v12 }
 0x40a   : > { %v6898_v46 = vld [vmem:[#allocation2 + $0x48] sm:$0xff]  ;;  %v8375_v39 = vrot.slane %v15297_v33, 1  ;;  %v6410_v33 = vld [vmem:[#allocation2 + $0xa0] sm:$0xff] }
 0x40b   : > { %7478 = vst.msk [vmem:[#allocation2 + $0x40] sm:$0xff] %vm261_vm3, %v7440_v40  ;;  %v7441_v48 = vadd.f32 %v7316_v41, %v6898_v46  ;;  %6823 = vst.msk [vmem:[#allocation2 + $0x58] sm:$0xff] %vm261_vm3, %v6785_v42  ;;  %12428 = vmatmul.mubr.msk.bf16.gmra.mrb[252].mxu0 %vm479_vm1, %v7801_v37  ;;  %12502 = vmatmul.mubr.msk.bf16.gmra.mrb[248].mxu1 %vm479_vm1, %v8370_v44  ;;  %v7824_v37 = vrot.slane %v7822_v26, 1  ;;  %v6406_v40 = vld [vmem:[#allocation2 + $0x80] sm:$0xff]  ;;  %v6407_v47 = vld [vmem:[#allocation2 + $0x88] sm:$0xff] }
 0x40c   : > { %12431 = vmatprep.mubr.msk.bf16.mxu0 %vm13073_vm0, %v13072_v1  ;;  %12505 = vmatprep.mubr.msk.bf16.mxu1 %vm13073_vm0, %v13072_v1 }
 0x40d   : > { %7479 = vst.msk [vmem:[#allocation2 + $0x48] sm:$0xff] %vm261_vm3, %v7441_v48  ;;  %v7825_v49 = vsel %vm977_vm2, %v7820_v27, %v7824_v37 }
 0x40e   : > { %v6671_v54 = vpop.f32.mrb[148].mxu0  ;;  %v7321_v55 = vpop.f32.mrb[144].mxu1 }
 0x40f   : > { %v6786_v56 = vadd.f32 %v6671_v54, %v6402_v53  ;;  %v12245_v57 = vpop.f32.mrb[149].mxu0  ;;  %v12319_v59 = vpop.f32.mrb[145].mxu1 }
 0x410   : > { %v6899_v58 = vld [vmem:[#allocation2 + $0x50] sm:$0xff]  ;;  %v6674_v61 = vpop.f32.mrb[150].mxu0  ;;  %v7324_v3 = vpop.f32.mrb[146].mxu1  ;;  %v15318_v57 = vld [vmem:[%s13135_s25 + $0xa4] sm:$0xff]  }
 0x411   : > { %v7442_v2 = vadd.f32 %v7321_v55, %v6899_v58  ;;  %6824 = vst.msk [vmem:[#allocation2 + $0x60] sm:$0xff] %vm261_vm3, %v6786_v56  ;;  %v6787_v4 = vadd.f32 %v6674_v61, %v6403_v60  ;;  %v12246_v5 = vpop.f32.mrb[151].mxu0  ;;  %v12320_v9 = vpop.f32.mrb[147].mxu1  ;;  %v8376_v56 = vsel %vm1636_vm4, %v8373_v14, %v8375_v39  ;;  %v7828_v61 = vor.u32 %v7826_v50, %v7824_v37  ;;  %v6411_v37 = vld [vmem:[#allocation2 + $0xa8] sm:$0xff] }
 0x412   : > { %v6900_v8 = vld [vmem:[#allocation2 + $0x58] sm:$0xff]  ;;  %v8377_v0 = vrot.slane %v15318_v57, 1  ;;  %v7838_v14 = vshll.u32 %v13005_v63, 16 }
 0x413   : > { %7480 = vst.msk [vmem:[#allocation2 + $0x50] sm:$0xff] %vm261_vm3, %v7442_v2  ;;  %v7443_v10 = vadd.f32 %v7324_v3, %v6900_v8  ;;  %6825 = vst.msk [vmem:[#allocation2 + $0x68] sm:$0xff] %vm261_vm3, %v6787_v4  ;;  %12432 = vmatmul.mubr.msk.bf16.gmra.mrb[0].mxu0 %vm479_vm1, %v7809_v62  ;;  %12506 = vmatmul.mubr.msk.bf16.gmra.mrb[252].mxu1 %vm479_vm1, %v8372_v6  ;;  %v7832_v62 = vrot.slane %v7830_v51, 1  ;;  %v6408_v2 = vld [vmem:[#allocation2 + $0x90] sm:$0xff]  ;;  %v13007_v8 = vld [vmem:[%s13135_s25 + $0x1c] sm:$0xfe]  }
 0x414   : > { %12435 = vmatprep.mubr.msk.bf16.mxu0 %vm13073_vm0, %v13072_v1  ;;  %12509 = vmatprep.mubr.msk.bf16.mxu1 %vm13073_vm0, %v13072_v1  ;;  %v8886_v25 = vshrl.u32 %v13007_v8, 16  ;;  %v8889_v26 = vshll.u32 %v13007_v8, 16 }
 0x415   : > { %7481 = vst.msk [vmem:[#allocation2 + $0x58] sm:$0xff] %vm261_vm3, %v7443_v10  ;;  %v7833_v12 = vsel %vm977_vm2, %v7828_v61, %v7832_v62  ;;  %v6412_v61 = vld [vmem:[#allocation2 + $0xb0] sm:$0xff] }
 0x416   : > { %v6679_v16 = vpop.f32.mrb[152].mxu0  ;;  %v7329_v17 = vpop.f32.mrb[148].mxu1  ;;  %v8888_v38 = vrot.slane %v8886_v25, 1 }
 0x417   : > { %v6788_v18 = vadd.f32 %v6679_v16, %v6404_v15  ;;  %v12249_v19 = vpop.f32.mrb[153].mxu0  ;;  %v12323_v21 = vpop.f32.mrb[149].mxu1  ;;  %v13008_v15 = vld [vmem:[%s13135_s25 + $0x24] sm:$0xff]  }
 0x418   : > { %v6901_v20 = vld [vmem:[#allocation2 + $0x60] sm:$0xff]  ;;  %v6682_v23 = vpop.f32.mrb[154].mxu0  ;;  %v7332_v29 = vpop.f32.mrb[150].mxu1  ;;  %v15338_v21 = vld [vmem:[%s13135_s25 + $0xac] sm:$0xff]  }
 0x419   : > { %v7444_v28 = vadd.f32 %v7329_v17, %v6901_v20  ;;  %6826 = vst.msk [vmem:[#allocation2 + $0x70] sm:$0xff] %vm261_vm3, %v6788_v18  ;;  %v6789_v30 = vadd.f32 %v6682_v23, %v6405_v22  ;;  %v12250_v31 = vpop.f32.mrb[155].mxu0  ;;  %v12324_v35 = vpop.f32.mrb[151].mxu1  ;;  %v8378_v20 = vsel %vm1636_vm4, %v8375_v39, %v8377_v0  ;;  %v8891_v39 = vrot.slane %v8889_v26, 2  ;;  %v6414_v26 = vld [vmem:[#allocation2 + $0xc0] sm:$0xff] }
 0x41a   : > { %v6902_v34 = vld [vmem:[#allocation2 + $0x68] sm:$0xff]  ;;  %v8897_v31 = vshll.u32 %v13008_v15, 16 }
 0x41b   : > { %7482 = vst.msk [vmem:[#allocation2 + $0x60] sm:$0xff] %vm261_vm3, %v7444_v28  ;;  %v7445_v36 = vadd.f32 %v7332_v29, %v6902_v34  ;;  %6827 = vst.msk [vmem:[#allocation2 + $0x78] sm:$0xff] %vm261_vm3, %v6789_v30  ;;  %12436 = vmatmul.mubr.msk.bf16.gmra.mrb[4].mxu0 %vm479_vm1, %v7817_v24  ;;  %12510 = vmatmul.mubr.msk.bf16.gmra.mrb[0].mxu1 %vm479_vm1, %v8374_v32  ;;  %v7836_v28 = vor.u32 %v7834_v13, %v7832_v62  ;;  %v7840_v29 = vrot.slane %v7838_v14, 1 }
 0x41c   : > { %12439 = vmatprep.mubr.msk.bf16.mxu0 %vm13073_vm0, %v13072_v1  ;;  %12513 = vmatprep.mubr.msk.bf16.mxu1 %vm13073_vm0, %v13072_v1  ;;  %v8894_v30 = vshrl.u32 %v13008_v15, 16  ;;  %v8379_v32 = vrot.slane %v15338_v21, 1 }
 0x41d   : > { %7483 = vst.msk [vmem:[#allocation2 + $0x68] sm:$0xff] %vm261_vm3, %v7445_v36 }
 0x41e   : > { %v6687_v41 = vpop.f32.mrb[156].mxu0  ;;  %v7337_v42 = vpop.f32.mrb[152].mxu1  ;;  %v8380_v51 = vsel %vm1636_vm4, %v8377_v0, %v8379_v32 }
 0x41f   : > { %v6790_v43 = vadd.f32 %v6687_v41, %v6406_v40  ;;  %v12253_v44 = vpop.f32.mrb[157].mxu0  ;;  %v12327_v46 = vpop.f32.mrb[153].mxu1 }
 0x420   : > { %v6903_v45 = vld [vmem:[#allocation2 + $0x70] sm:$0xff]  ;;  %v6690_v48 = vpop.f32.mrb[158].mxu0  ;;  %v7340_v53 = vpop.f32.mrb[154].mxu1  ;;  %v8896_v44 = vrot.slane %v8894_v30, 1 }
 0x421   : > { %v7446_v52 = vadd.f32 %v7337_v42, %v6903_v45  ;;  %6828 = vst.msk [vmem:[#allocation2 + $0x80] sm:$0xff] %vm261_vm3, %v6790_v43  ;;  %v6791_v54 = vadd.f32 %v6690_v48, %v6407_v47  ;;  %v12254_v55 = vpop.f32.mrb[159].mxu0  ;;  %v12328_v59 = vpop.f32.mrb[155].mxu1  ;;  %v7841_v43 = vsel %vm977_vm2, %v7836_v28, %v7840_v29  ;;  %v8899_v45 = vrot.slane %v8897_v31, 2  ;;  %v13011_v46 = vld [vmem:[%s13135_s25 + $0x2c] sm:$0xff]  }
 0x422   : > { %v6904_v58 = vld [vmem:[#allocation2 + $0x78] sm:$0xff]  ;;  %v8906_v59 = vshll.u32 %v13011_v46, 16 }
 0x423   : > { %7484 = vst.msk [vmem:[#allocation2 + $0x70] sm:$0xff] %vm261_vm3, %v7446_v52  ;;  %v7447_v60 = vadd.f32 %v7340_v53, %v6904_v58  ;;  %6829 = vst.msk [vmem:[#allocation2 + $0x88] sm:$0xff] %vm261_vm3, %v6791_v54  ;;  %12440 = vmatmul.mubr.msk.bf16.gmra.mrb[8].mxu0 %vm479_vm1, %v7825_v49  ;;  %12514 = vmatmul.mubr.msk.bf16.gmra.mrb[4].mxu1 %vm479_vm1, %v8376_v56  ;;  %v13006_v52 = vld [vmem:[%s13135_s25 + $0xb4] ss:$0 sps:$4 sm:$0x11]   ;;  %v8892_v56 = vor.u32 %v8891_v39, %v8888_v38  ;;  %v8903_v58 = vshrl.u32 %v13011_v46, 16 }
 0x424   : > { %12443 = vmatprep.mubr.msk.bf16.mxu0 %vm13073_vm0, %v13072_v1  ;;  %12517 = vmatprep.mubr.msk.bf16.mxu1 %vm13073_vm0, %v13072_v1  ;;  %v8900_v57 = vor.u32 %v8899_v45, %v8896_v44  ;;  %v13015_v38 = vld [vmem:[%s13135_s25 + $0x3c] sm:$0xff]   ;;  %v15387_v44 = vld [vmem:[%s13135_s25 + $0x2c] sm:$0xff]  }
 0x425   : > { %7485 = vst.msk [vmem:[#allocation2 + $0x78] sm:$0xff] %vm261_vm3, %v7447_v60  ;;  %v8381_v60 = vrot.slane %v13006_v52, 1  ;;  %v8905_v8 = vrot.slane %v8903_v58, 1  ;;  %v6416_v52 = vld [vmem:[#allocation2 + $0xd0] sm:$0xff] }
 0x426   : > { %v6695_v3 = vpop.f32.mrb[160].mxu0  ;;  %v7345_v4 = vpop.f32.mrb[156].mxu1 }
 0x427   : > { %v6792_v5 = vadd.f32 %v6695_v3, %v6408_v2  ;;  %v12257_v6 = vpop.f32.mrb[161].mxu0  ;;  %v12331_v10 = vpop.f32.mrb[157].mxu1  ;;  %v6413_v3 = vld [vmem:[#allocation2 + $0xb8] sm:$0xff]  ;;  %v8382_v15 = vsel %vm1636_vm4, %v8379_v32, %v8381_v60  ;;  %v6415_v32 = vld [vmem:[#allocation2 + $0xc8] sm:$0xff] }
 0x428   : > { %v6905_v9 = vld [vmem:[#allocation2 + $0x80] sm:$0xff]  ;;  %v6698_v11 = vpop.f32.mrb[162].mxu0  ;;  %v7348_v17 = vpop.f32.mrb[158].mxu1  ;;  %v13013_v10 = vld [vmem:[%s13135_s25 + $0x34] sm:$0xff]  }
 0x429   : > { %v7448_v16 = vadd.f32 %v7345_v4, %v6905_v9  ;;  %6830 = vst.msk [vmem:[#allocation2 + $0x90] sm:$0xff] %vm261_vm3, %v6792_v5  ;;  %v6793_v18 = vadd.f32 %v6698_v11, %v6409_v7  ;;  %v12258_v19 = vpop.f32.mrb[163].mxu0  ;;  %v12332_v23 = vpop.f32.mrb[159].mxu1  ;;  %v8901_v7 = vsel %vm2178_vm5, %v8892_v56, %v8900_v57  ;;  %v8908_v9 = vrot.slane %v8906_v59, 2 }
 0x42a   : > { %v6906_v22 = vld [vmem:[#allocation2 + $0x88] sm:$0xff]  ;;  %v8915_v23 = vshll.u32 %v13013_v10, 16 }
 0x42b   : > { %7486 = vst.msk [vmem:[#allocation2 + $0x80] sm:$0xff] %vm261_vm3, %v7448_v16  ;;  %v7449_v24 = vadd.f32 %v7348_v17, %v6906_v22  ;;  %6831 = vst.msk [vmem:[#allocation2 + $0x98] sm:$0xff] %vm261_vm3, %v6793_v18  ;;  %12444 = vmatmul.mubr.msk.bf16.gmra.mrb[12].mxu0 %vm479_vm1, %v7833_v12  ;;  %12518 = vmatmul.mubr.msk.bf16.gmra.mrb[8].mxu1 %vm479_vm1, %v8378_v20  ;;  %v13009_v16 = vld [vmem:[%s13135_s25 + $0x1c] sm:$0xfc]   ;;  %v15370_v17 = vld [vmem:[%s13135_s25 + $0x24] sm:$0xff]   ;;  %v8909_v21 = vor.u32 %v8908_v9, %v8905_v8  ;;  %v8912_v22 = vshrl.u32 %v13013_v10, 16 }
 0x42c   : > { %12447 = vmatprep.mubr.msk.bf16.mxu0 %vm13073_vm0, %v13072_v1  ;;  %12521 = vmatprep.mubr.msk.bf16.mxu1 %vm13073_vm0, %v13072_v1  ;;  %v9567_v25 = vrot.slane %v15370_v17, 2 }
 0x42d   : > { %7487 = vst.msk [vmem:[#allocation2 + $0x88] sm:$0xff] %vm261_vm3, %v7449_v24  ;;  %v9566_v24 = vrot.slane %v13009_v16, 2 }
 0x42e   : > { %v6703_v34 = vpop.f32.mrb[164].mxu0  ;;  %v7353_v35 = vpop.f32.mrb[160].mxu1 }
 0x42f   : > { %v6794_v36 = vadd.f32 %v6703_v34, %v6410_v33  ;;  %v12261_v27 = vpop.f32.mrb[165].mxu0  ;;  %v12335_v41 = vpop.f32.mrb[161].mxu1 }
 0x430   : > { %v6907_v40 = vld [vmem:[#allocation2 + $0x90] sm:$0xff]  ;;  %v6706_v42 = vpop.f32.mrb[166].mxu0  ;;  %v7356_v48 = vpop.f32.mrb[162].mxu1  ;;  %v8914_v27 = vrot.slane %v8912_v22, 1 }
 0x431   : > { %v7450_v47 = vadd.f32 %v7353_v35, %v6907_v40  ;;  %6832 = vst.msk [vmem:[#allocation2 + $0xa0] sm:$0xff] %vm261_vm3, %v6794_v36  ;;  %v6795_v49 = vadd.f32 %v6706_v42, %v6411_v37  ;;  %v12262_v50 = vpop.f32.mrb[167].mxu0  ;;  %v12336_v54 = vpop.f32.mrb[163].mxu1  ;;  %v8910_v36 = vsel %vm2178_vm5, %v8900_v57, %v8909_v21  ;;  %v8917_v37 = vrot.slane %v8915_v23, 2  ;;  %v6417_v57 = vld [vmem:[#allocation2 + $0xd8] sm:$0xff] }
 0x432   : > { %v6908_v53 = vld [vmem:[#allocation2 + $0x98] sm:$0xff]  ;;  %v8924_v50 = vshll.u32 %v13015_v38, 16 }
 0x433   : > { %7488 = vst.msk [vmem:[#allocation2 + $0x90] sm:$0xff] %vm261_vm3, %v7450_v47  ;;  %v7451_v55 = vadd.f32 %v7356_v48, %v6908_v53  ;;  %6833 = vst.msk [vmem:[#allocation2 + $0xa8] sm:$0xff] %vm261_vm3, %v6795_v49  ;;  %12448 = vmatmul.mubr.msk.bf16.gmra.mrb[16].mxu0 %vm479_vm1, %v7841_v43  ;;  %12522 = vmatmul.mubr.msk.bf16.gmra.mrb[12].mxu1 %vm479_vm1, %v8380_v51  ;;  %v9568_v43 = vsel %vm3541_vm6, %v9566_v24, %v9567_v25  ;;  %v8921_v49 = vshrl.u32 %v13015_v38, 16 }
 0x434   : > { %12531 = vmatprep.mubr.msk.bf16.mxu0 %vm13073_vm0, %v13072_v1  ;;  %12525 = vmatprep.mubr.msk.bf16.mxu1 %vm13073_vm0, %v13072_v1  ;;  %v8918_v48 = vor.u32 %v8917_v37, %v8914_v27  ;;  %v9569_v51 = vrot.slane %v15387_v44, 2 }
 0x435   : > { %7489 = vst.msk [vmem:[#allocation2 + $0x98] sm:$0xff] %vm261_vm3, %v7451_v55 }
 0x436   : > { %v6711_v62 = vpop.f32.mrb[168].mxu0  ;;  %v7361_v63 = vpop.f32.mrb[164].mxu1 }
 0x437   : > { %v6796_v0 = vadd.f32 %v6711_v62, %v6412_v61  ;;  %v12265_v2 = vpop.f32.mrb[169].mxu0  ;;  %v12339_v5 = vpop.f32.mrb[165].mxu1  ;;  %v8919_v61 = vsel %vm2178_vm5, %v8909_v21, %v8918_v48  ;;  %v8923_v62 = vrot.slane %v8921_v49, 1 }
 0x438   : > { %v6909_v4 = vld [vmem:[#allocation2 + $0xa0] sm:$0xff]  ;;  %v6714_v6 = vpop.f32.mrb[170].mxu0  ;;  %v7364_v12 = vpop.f32.mrb[166].mxu1 }
 0x439   : > { %v7452_v11 = vadd.f32 %v7361_v63, %v6909_v4  ;;  %6834 = vst.msk [vmem:[#allocation2 + $0xb0] sm:$0xff] %vm261_vm3, %v6796_v0  ;;  %v6797_v13 = vadd.f32 %v6714_v6, %v6413_v3  ;;  %v12266_v14 = vpop.f32.mrb[171].mxu0  ;;  %v12340_v19 = vpop.f32.mrb[167].mxu1  ;;  %v8926_v63 = vrot.slane %v8924_v50, 2  ;;  %v13017_v0 = vld [vmem:[%s13135_s25 + $0x44] sm:$0xff]   ;;  %v9570_v6 = vsel %vm3541_vm6, %v9567_v25, %v9569_v51 }
 0x43a   : > { %v6910_v18 = vld [vmem:[#allocation2 + $0xa8] sm:$0xff] }
 0x43b   : > { %7490 = vst.msk [vmem:[#allocation2 + $0xa0] sm:$0xff] %vm261_vm3, %v7452_v11  ;;  %v7453_v20 = vadd.f32 %v7364_v12, %v6910_v18  ;;  %6835 = vst.msk [vmem:[#allocation2 + $0xb8] sm:$0xff] %vm261_vm3, %v6797_v13  ;;  %12532 = vmatmul.mubr.msk.bf16.vlgmr.msra.gmra.mrb[20].mxu0 %vm479_vm1, %v8901_v7  ;;  %12526 = vmatmul.mubr.msk.bf16.gmra.mrb[16].mxu1 %vm479_vm1, %v8382_v15  ;;  %v15404_v7 = vld [vmem:[%s13135_s25 + $0x34] sm:$0xff]   ;;  %v8927_v11 = vor.u32 %v8926_v63, %v8923_v62  ;;  %v8930_v12 = vshrl.u32 %v13017_v0, 16  ;;  %v6418_v15 = vld [vmem:[#allocation2 + $0xe0] sm:$0xff] }
 0x43c   : > { %12535 = vmatprep.mubr.msk.bf16.mxu0 %vm13073_vm0, %v13072_v1  ;;  %12609 = vmatprep.mubr.msk.bf16.mxu1 %vm13073_vm0, %v13072_v1  ;;  %v8933_v13 = vshll.u32 %v13017_v0, 16  ;;  %v9571_v14 = vrot.slane %v15404_v7, 2 }
 0x43d   : > { %7491 = vst.msk [vmem:[#allocation2 + $0xa8] sm:$0xff] %vm261_vm3, %v7453_v20  ;;  %v6419_v20 = vld [vmem:[#allocation2 + $0xe8] sm:$0xff]  ;;  %v8928_v24 = vsel %vm2178_vm5, %v8918_v48, %v8927_v11  ;;  %v8932_v25 = vrot.slane %v8930_v12, 1 }
 0x43e   : > { %v6719_v28 = vpop.f32.mrb[172].mxu0  ;;  %v7369_v29 = vpop.f32.mrb[168].mxu1 }
 0x43f   : > { %v6798_v30 = vadd.f32 %v6719_v28, %v6414_v26  ;;  %v12269_v31 = vpop.f32.mrb[173].mxu0  ;;  %v12343_v34 = vpop.f32.mrb[169].mxu1  ;;  %v8935_v26 = vrot.slane %v8933_v13, 2  ;;  %v13019_v28 = vld [vmem:[%s13135_s25 + $0x4c] sm:$0xff]  }
 0x440   : > { %v6911_v33 = vld [vmem:[#allocation2 + $0xb0] sm:$0xff]  ;;  %v6722_v35 = vpop.f32.mrb[174].mxu0  ;;  %v7372_v40 = vpop.f32.mrb[170].mxu1  ;;  %v15421_v34 = vld [vmem:[%s13135_s25 + $0x3c] sm:$0xff]   ;;  %v8939_v38 = vshrl.u32 %v13019_v28, 16 }
 0x441   : > { %v7454_v39 = vadd.f32 %v7369_v29, %v6911_v33  ;;  %6836 = vst.msk [vmem:[#allocation2 + $0xc0] sm:$0xff] %vm261_vm3, %v6798_v30  ;;  %v6799_v41 = vadd.f32 %v6722_v35, %v6415_v32  ;;  %v12270_v42 = vpop.f32.mrb[175].mxu0  ;;  %v12344_v46 = vpop.f32.mrb[171].mxu1  ;;  %v9572_v33 = vsel %vm3541_vm6, %v9569_v51, %v9571_v14  ;;  %v8936_v37 = vor.u32 %v8935_v26, %v8932_v25 }
 0x442   : > { %v6912_v45 = vld [vmem:[#allocation2 + $0xb8] sm:$0xff]  ;;  %v8941_v51 = vrot.slane %v8939_v38, 1 }
 0x443   : > { %7492 = vst.msk [vmem:[#allocation2 + $0xb0] sm:$0xff] %vm261_vm3, %v7454_v39  ;;  %v7455_v47 = vadd.f32 %v7372_v40, %v6912_v45  ;;  %6837 = vst.msk [vmem:[#allocation2 + $0xc8] sm:$0xff] %vm261_vm3, %v6799_v41  ;;  %12536 = vmatmul.mubr.msk.bf16.gmra.mrb[24].mxu0 %vm479_vm1, %v8910_v36  ;;  %12610 = vmatmul.mubr.msk.bf16.vlgmr.msra.gmra.mrb[20].mxu1 %vm479_vm1, %v9568_v43  ;;  %v8942_v39 = vshll.u32 %v13019_v28, 16  ;;  %v9573_v40 = vrot.slane %v15421_v34, 2  ;;  %v6420_v41 = vld [vmem:[#allocation2 + $0xf0] sm:$0xff]  ;;  %v6421_v46 = vld [vmem:[#allocation2 + $0xf8] sm:$0xff] }
 0x444   : > { %12539 = vmatprep.mubr.msk.bf16.mxu0 %vm13073_vm0, %v13072_v1  ;;  %12613 = vmatprep.mubr.msk.bf16.mxu1 %vm13073_vm0, %v13072_v1  ;;  %v8937_v50 = vsel %vm2178_vm5, %v8927_v11, %v8936_v37 }
 0x445   : > { %7493 = vst.msk [vmem:[#allocation2 + $0xb8] sm:$0xff] %vm261_vm3, %v7455_v47 }
 0x446   : > { %v6727_v53 = vpop.f32.mrb[176].mxu0  ;;  %v7377_v54 = vpop.f32.mrb[172].mxu1 }
 0x447   : > { %v6800_v55 = vadd.f32 %v6727_v53, %v6416_v52  ;;  %v12273_v56 = vpop.f32.mrb[177].mxu0  ;;  %v12347_v59 = vpop.f32.mrb[173].mxu1  ;;  %v8944_v52 = vrot.slane %v8942_v39, 2  ;;  %v13021_v53 = vld [vmem:[%s13135_s25 + $0x54] sm:$0xff]  }
 0x448   : > { %v6913_v58 = vld [vmem:[#allocation2 + $0xc0] sm:$0xff]  ;;  %v6730_v60 = vpop.f32.mrb[178].mxu0  ;;  %v7380_v3 = vpop.f32.mrb[174].mxu1  ;;  %v8948_v0 = vshrl.u32 %v13021_v53, 16 }
 0x449   : > { %v7456_v2 = vadd.f32 %v7377_v54, %v6913_v58  ;;  %6838 = vst.msk [vmem:[#allocation2 + $0xd0] sm:$0xff] %vm261_vm3, %v6800_v55  ;;  %v6801_v4 = vadd.f32 %v6730_v60, %v6417_v57  ;;  %v12274_v5 = vpop.f32.mrb[179].mxu0  ;;  %v12348_v9 = vpop.f32.mrb[175].mxu1  ;;  %v9574_v58 = vsel %vm3541_vm6, %v9571_v14, %v9573_v40  ;;  %v15438_v59 = vld [vmem:[%s13135_s25 + $0x44] sm:$0xff]   ;;  %v8945_v63 = vor.u32 %v8944_v52, %v8941_v51 }
 0x44a   : > { %v6914_v8 = vld [vmem:[#allocation2 + $0xc8] sm:$0xff]  ;;  %v8950_v14 = vrot.slane %v8948_v0, 1 }
 0x44b   : > { %7494 = vst.msk [vmem:[#allocation2 + $0xc0] sm:$0xff] %vm261_vm3, %v7456_v2  ;;  %v7457_v10 = vadd.f32 %v7380_v3, %v6914_v8  ;;  %6839 = vst.msk [vmem:[#allocation2 + $0xd8] sm:$0xff] %vm261_vm3, %v6801_v4  ;;  %12540 = vmatmul.mubr.msk.bf16.gmra.mrb[28].mxu0 %vm479_vm1, %v8919_v61  ;;  %12614 = vmatmul.mubr.msk.bf16.gmra.mrb[24].mxu1 %vm479_vm1, %v9570_v6  ;;  %v8951_v2 = vshll.u32 %v13021_v53, 16  ;;  %v9575_v3 = vrot.slane %v15438_v59, 2  ;;  %v6422_v4 = vld [vmem:[#allocation2 + $0x100] sm:$0xff]  ;;  %v6423_v9 = vld [vmem:[#allocation2 + $0x108] sm:$0xff] }
 0x44c   : > { %12543 = vmatprep.mubr.msk.bf16.mxu0 %vm13073_vm0, %v13072_v1  ;;  %12617 = vmatprep.mubr.msk.bf16.mxu1 %vm13073_vm0, %v13072_v1  ;;  %v8946_v13 = vsel %vm2178_vm5, %v8936_v37, %v8945_v63 }
 0x44d   : > { %7495 = vst.msk [vmem:[#allocation2 + $0xc8] sm:$0xff] %vm261_vm3, %v7457_v10 }
 0x44e   : > { %v6735_v16 = vpop.f32.mrb[180].mxu0  ;;  %v7385_v17 = vpop.f32.mrb[176].mxu1 }
 0x44f   : > { %v6802_v18 = vadd.f32 %v6735_v16, %v6418_v15  ;;  %v12277_v19 = vpop.f32.mrb[181].mxu0  ;;  %v12351_v22 = vpop.f32.mrb[177].mxu1  ;;  %v8953_v15 = vrot.slane %v8951_v2, 2  ;;  %v13023_v16 = vld [vmem:[%s13135_s25 + $0x5c] sm:$0xff]  }
 0x450   : > { %v6915_v21 = vld [vmem:[#allocation2 + $0xd0] sm:$0xff]  ;;  %v6738_v23 = vpop.f32.mrb[182].mxu0  ;;  %v7388_v30 = vpop.f32.mrb[178].mxu1  ;;  %v8957_v28 = vshrl.u32 %v13023_v16, 16 }
 0x451   : > { %v7458_v29 = vadd.f32 %v7385_v17, %v6915_v21  ;;  %6840 = vst.msk [vmem:[#allocation2 + $0xe0] sm:$0xff] %vm261_vm3, %v6802_v18  ;;  %v6803_v31 = vadd.f32 %v6738_v23, %v6419_v20  ;;  %v12278_v32 = vpop.f32.mrb[183].mxu0  ;;  %v12352_v36 = vpop.f32.mrb[179].mxu1  ;;  %v9576_v21 = vsel %vm3541_vm6, %v9573_v40, %v9575_v3  ;;  %v15455_v22 = vld [vmem:[%s13135_s25 + $0x4c] sm:$0xff]   ;;  %v8954_v26 = vor.u32 %v8953_v15, %v8950_v14 }
 0x452   : > { %v6916_v35 = vld [vmem:[#allocation2 + $0xd8] sm:$0xff]  ;;  %v8959_v40 = vrot.slane %v8957_v28, 1 }
 0x453   : > { %7496 = vst.msk [vmem:[#allocation2 + $0xd0] sm:$0xff] %vm261_vm3, %v7458_v29  ;;  %v7459_v27 = vadd.f32 %v7388_v30, %v6916_v35  ;;  %6841 = vst.msk [vmem:[#allocation2 + $0xe8] sm:$0xff] %vm261_vm3, %v6803_v31  ;;  %12544 = vmatmul.mubr.msk.bf16.gmra.mrb[32].mxu0 %vm479_vm1, %v8928_v24  ;;  %12618 = vmatmul.mubr.msk.bf16.gmra.mrb[28].mxu1 %vm479_vm1, %v9572_v33  ;;  %v8960_v29 = vshll.u32 %v13023_v16, 16  ;;  %v9577_v30 = vrot.slane %v15455_v22, 2  ;;  %v6424_v31 = vld [vmem:[#allocation2 + $0x110] sm:$0xff]  ;;  %v6425_v36 = vld [vmem:[#allocation2 + $0x118] sm:$0xff] }
 0x454   : > { %12547 = vmatprep.mubr.msk.bf16.mxu0 %vm13073_vm0, %v13072_v1  ;;  %12621 = vmatprep.mubr.msk.bf16.mxu1 %vm13073_vm0, %v13072_v1  ;;  %v8955_v39 = vsel %vm2178_vm5, %v8945_v63, %v8954_v26 }
 0x455   : > { %7497 = vst.msk [vmem:[#allocation2 + $0xd8] sm:$0xff] %vm261_vm3, %v7459_v27 }
 0x456   : > { %v6743_v42 = vpop.f32.mrb[184].mxu0  ;;  %v7393_v43 = vpop.f32.mrb[180].mxu1 }
 0x457   : > { %v6804_v44 = vadd.f32 %v6743_v42, %v6420_v41  ;;  %v12281_v45 = vpop.f32.mrb[185].mxu0  ;;  %v12355_v48 = vpop.f32.mrb[181].mxu1  ;;  %v8962_v41 = vrot.slane %v8960_v29, 2  ;;  %v13025_v42 = vld [vmem:[%s13135_s25 + $0x64] sm:$0xff]  }
 0x458   : > { %v6917_v47 = vld [vmem:[#allocation2 + $0xe0] sm:$0xff]  ;;  %v6746_v49 = vpop.f32.mrb[186].mxu0  ;;  %v7396_v55 = vpop.f32.mrb[182].mxu1  ;;  %v15472_v48 = vld [vmem:[%s13135_s25 + $0x54] sm:$0xff]   ;;  %v8966_v53 = vshrl.u32 %v13025_v42, 16 }
 0x459   : > { %v7460_v54 = vadd.f32 %v7393_v43, %v6917_v47  ;;  %6842 = vst.msk [vmem:[#allocation2 + $0xf0] sm:$0xff] %vm261_vm3, %v6804_v44  ;;  %v6805_v56 = vadd.f32 %v6746_v49, %v6421_v46  ;;  %v12282_v57 = vpop.f32.mrb[187].mxu0  ;;  %v12356_v61 = vpop.f32.mrb[183].mxu1  ;;  %v9578_v47 = vsel %vm3541_vm6, %v9575_v3, %v9577_v30  ;;  %v8963_v52 = vor.u32 %v8962_v41, %v8959_v40 }
 0x45a   : > { %v6918_v60 = vld [vmem:[#allocation2 + $0xe8] sm:$0xff]  ;;  %v8968_v3 = vrot.slane %v8966_v53, 1 }
 0x45b   : > { %7498 = vst.msk [vmem:[#allocation2 + $0xe0] sm:$0xff] %vm261_vm3, %v7460_v54  ;;  %v7461_v62 = vadd.f32 %v7396_v55, %v6918_v60  ;;  %6843 = vst.msk [vmem:[#allocation2 + $0xf8] sm:$0xff] %vm261_vm3, %v6805_v56  ;;  %12548 = vmatmul.mubr.msk.bf16.gmra.mrb[36].mxu0 %vm479_vm1, %v8937_v50  ;;  %12622 = vmatmul.mubr.msk.bf16.gmra.mrb[32].mxu1 %vm479_vm1, %v9574_v58  ;;  %v8969_v54 = vshll.u32 %v13025_v42, 16  ;;  %v9579_v55 = vrot.slane %v15472_v48, 2  ;;  %v6426_v56 = vld [vmem:[#allocation2 + $0x120] sm:$0xff]  ;;  %v6427_v61 = vld [vmem:[#allocation2 + $0x128] sm:$0xff] }
 0x45c   : > { %12551 = vmatprep.mubr.msk.bf16.mxu0 %vm13073_vm0, %v13072_v1  ;;  %12625 = vmatprep.mubr.msk.bf16.mxu1 %vm13073_vm0, %v13072_v1  ;;  %v8964_v2 = vsel %vm2178_vm5, %v8954_v26, %v8963_v52 }
 0x45d   : > { %7499 = vst.msk [vmem:[#allocation2 + $0xe8] sm:$0xff] %vm261_vm3, %v7461_v62 }
 0x45e   : > { %v6751_v5 = vpop.f32.mrb[188].mxu0  ;;  %v7401_v6 = vpop.f32.mrb[184].mxu1 }
 0x45f   : > { %v6806_v7 = vadd.f32 %v6751_v5, %v6422_v4  ;;  %v12285_v8 = vpop.f32.mrb[189].mxu0  ;;  %v12359_v11 = vpop.f32.mrb[185].mxu1  ;;  %v8971_v4 = vrot.slane %v8969_v54, 2  ;;  %v13027_v5 = vld [vmem:[%s13135_s25 + $0x6c] sm:$0xff]  }
 0x460   : > { %v6919_v10 = vld [vmem:[#allocation2 + $0xf0] sm:$0xff]  ;;  %v6754_v12 = vpop.f32.mrb[190].mxu0  ;;  %v7404_v18 = vpop.f32.mrb[186].mxu1  ;;  %v15489_v11 = vld [vmem:[%s13135_s25 + $0x5c] sm:$0xff]   ;;  %v8975_v16 = vshrl.u32 %v13027_v5, 16 }
 0x461   : > { %v7462_v17 = vadd.f32 %v7401_v6, %v6919_v10  ;;  %6844 = vst.msk [vmem:[#allocation2 + $0x100] sm:$0xff] %vm261_vm3, %v6806_v7  ;;  %v6807_v19 = vadd.f32 %v6754_v12, %v6423_v9  ;;  %v12286_v20 = vpop.f32.mrb[191].mxu0  ;;  %v12360_v24 = vpop.f32.mrb[187].mxu1  ;;  %v9580_v10 = vsel %vm3541_vm6, %v9577_v30, %v9579_v55  ;;  %v8972_v15 = vor.u32 %v8971_v4, %v8968_v3 }
 0x462   : > { %v6920_v23 = vld [vmem:[#allocation2 + $0xf8] sm:$0xff]  ;;  %v7548_v24 = vld [vmem:[#allocation2 + $0x8] sm:$0xff]  ;;  %v8977_v30 = vrot.slane %v8975_v16, 1 }
 0x463   : > { %7500 = vst.msk [vmem:[#allocation2 + $0xf0] sm:$0xff] %vm261_vm3, %v7462_v17  ;;  %v7463_v25 = vadd.f32 %v7404_v18, %v6920_v23  ;;  %6845 = vst.msk [vmem:[#allocation2 + $0x108] sm:$0xff] %vm261_vm3, %v6807_v19  ;;  %12552 = vmatmul.mubr.msk.bf16.gmra.mrb[40].mxu0 %vm479_vm1, %v8946_v13  ;;  %12626 = vmatmul.mubr.msk.bf16.gmra.mrb[36].mxu1 %vm479_vm1, %v9576_v21  ;;  %v8978_v17 = vshll.u32 %v13027_v5, 16  ;;  %v9581_v18 = vrot.slane %v15489_v11, 2  ;;  %v7547_v19 = vld [vmem:[#allocation2] sm:$0xff] }
 0x464   : > { %12555 = vmatprep.mubr.msk.bf16.mxu0 %vm13073_vm0, %v13072_v1  ;;  %12629 = vmatprep.mubr.msk.bf16.mxu1 %vm13073_vm0, %v13072_v1  ;;  %v8973_v29 = vsel %vm2178_vm5, %v8963_v52, %v8972_v15 }
 0x465   : > { %7501 = vst.msk [vmem:[#allocation2 + $0xf8] sm:$0xff] %vm261_vm3, %v7463_v25 }
 0x466   : > { %v6759_v32 = vpop.f32.mrb[192].mxu0  ;;  %v7409_v33 = vpop.f32.mrb[188].mxu1 }
 0x467   : > { %v6808_v34 = vadd.f32 %v6759_v32, %v6424_v31  ;;  %v12289_v35 = vpop.f32.mrb[193].mxu0  ;;  %v12363_v37 = vpop.f32.mrb[189].mxu1  ;;  %v8980_v31 = vrot.slane %v8978_v17, 2  ;;  %v13029_v32 = vld [vmem:[%s13135_s25 + $0x74] sm:$0xff]  }
 0x468   : > { %v6921_v27 = vld [vmem:[#allocation2 + $0x100] sm:$0xff]  ;;  %v6762_v38 = vpop.f32.mrb[194].mxu0  ;;  %v7412_v44 = vpop.f32.mrb[190].mxu1  ;;  %v8984_v42 = vshrl.u32 %v13029_v32, 16 }
 0x469   : > { %v7464_v43 = vadd.f32 %v7409_v33, %v6921_v27  ;;  %6846 = vst.msk [vmem:[#allocation2 + $0x110] sm:$0xff] %vm261_vm3, %v6808_v34  ;;  %v6809_v45 = vadd.f32 %v6762_v38, %v6425_v36  ;;  %v12290_v46 = vpop.f32.mrb[195].mxu0  ;;  %v12364_v50 = vpop.f32.mrb[191].mxu1  ;;  %v9582_v27 = vsel %vm3541_vm6, %v9579_v55, %v9581_v18  ;;  %v15506_v37 = vld [vmem:[%s13135_s25 + $0x64] sm:$0xff]   ;;  %v8981_v41 = vor.u32 %v8980_v31, %v8977_v30 }
 0x46a   : > { %v6922_v49 = vld [vmem:[#allocation2 + $0x108] sm:$0xff]  ;;  %v7550_v50 = vld [vmem:[#allocation2 + $0x18] sm:$0xff]  ;;  %v8986_v55 = vrot.slane %v8984_v42, 1 }
 0x46b   : > { %7502 = vst.msk [vmem:[#allocation2 + $0x100] sm:$0xff] %vm261_vm3, %v7464_v43  ;;  %v7465_v51 = vadd.f32 %v7412_v44, %v6922_v49  ;;  %6847 = vst.msk [vmem:[#allocation2 + $0x118] sm:$0xff] %vm261_vm3, %v6809_v45  ;;  %12556 = vmatmul.mubr.msk.bf16.gmra.mrb[44].mxu0 %vm479_vm1, %v8955_v39  ;;  %12630 = vmatmul.mubr.msk.bf16.gmra.mrb[40].mxu1 %vm479_vm1, %v9578_v47  ;;  %v8987_v43 = vshll.u32 %v13029_v32, 16  ;;  %v9583_v44 = vrot.slane %v15506_v37, 2  ;;  %v7549_v45 = vld [vmem:[#allocation2 + $0x10] sm:$0xff] }
 0x46c   : > { %12559 = vmatprep.mubr.msk.bf16.mxu0 %vm13073_vm0, %v13072_v1  ;;  %12633 = vmatprep.mubr.msk.bf16.mxu1 %vm13073_vm0, %v13072_v1  ;;  %v8982_v54 = vsel %vm2178_vm5, %v8972_v15, %v8981_v41 }
 0x46d   : > { %7503 = vst.msk [vmem:[#allocation2 + $0x108] sm:$0xff] %vm261_vm3, %v7465_v51 }
 0x46e   : > { %v6767_v57 = vpop.f32.mrb[196].mxu0  ;;  %v7417_v58 = vpop.f32.mrb[192].mxu1 }
 0x46f   : > { %v6810_v59 = vadd.f32 %v6767_v57, %v6426_v56  ;;  %v12293_v60 = vpop.f32.mrb[197].mxu0  ;;  %v12367_v63 = vpop.f32.mrb[193].mxu1  ;;  %v8989_v56 = vrot.slane %v8987_v43, 2  ;;  %v13031_v57 = vld [vmem:[%s13135_s25 + $0x7c] sm:$0xff]  }
 0x470   : > { %v6923_v62 = vld [vmem:[#allocation2 + $0x110] sm:$0xff]  ;;  %v6770_v0 = vpop.f32.mrb[198].mxu0  ;;  %v7420_v7 = vpop.f32.mrb[194].mxu1  ;;  %v8993_v5 = vshrl.u32 %v13031_v57, 16 }
 0x471   : > { %v7466_v6 = vadd.f32 %v7417_v58, %v6923_v62  ;;  %6848 = vst.msk [vmem:[#allocation2 + $0x120] sm:$0xff] %vm261_vm3, %v6810_v59  ;;  %v6811_v8 = vadd.f32 %v6770_v0, %v6427_v61  ;;  %v12294_v9 = vpop.f32.mrb[199].mxu0  ;;  %v12368_v13 = vpop.f32.mrb[195].mxu1  ;;  %v9584_v62 = vsel %vm3541_vm6, %v9581_v18, %v9583_v44  ;;  %v15523_v63 = vld [vmem:[%s13135_s25 + $0x6c] sm:$0xff]   ;;  %v8990_v4 = vor.u32 %v8989_v56, %v8986_v55 }
 0x472   : > { %v6924_v12 = vld [vmem:[#allocation2 + $0x118] sm:$0xff]  ;;  %v7552_v13 = vld [vmem:[#allocation2 + $0x28] sm:$0xff]  ;;  %v8995_v18 = vrot.slane %v8993_v5, 1 }
 0x473   : > { %7504 = vst.msk [vmem:[#allocation2 + $0x110] sm:$0xff] %vm261_vm3, %v7466_v6  ;;  %v7467_v14 = vadd.f32 %v7420_v7, %v6924_v12  ;;  %6849 = vst.msk [vmem:[#allocation2 + $0x128] sm:$0xff] %vm261_vm3, %v6811_v8  ;;  %12560 = vmatmul.mubr.msk.bf16.gmra.mrb[48].mxu0 %vm479_vm1, %v8964_v2  ;;  %12634 = vmatmul.mubr.msk.bf16.gmra.mrb[44].mxu1 %vm479_vm1, %v9580_v10  ;;  %v8996_v6 = vshll.u32 %v13031_v57, 16  ;;  %v9585_v7 = vrot.slane %v15523_v63, 2  ;;  %v7551_v8 = vld [vmem:[#allocation2 + $0x20] sm:$0xff] }
 0x474   : > { %12563 = vmatprep.mubr.msk.bf16.mxu0 %vm13073_vm0, %v13072_v1  ;;  %12637 = vmatprep.mubr.msk.bf16.mxu1 %vm13073_vm0, %v13072_v1  ;;  %v8991_v17 = vsel %vm2178_vm5, %v8981_v41, %v8990_v4 }
 0x475   : > { %7505 = vst.msk [vmem:[#allocation2 + $0x118] sm:$0xff] %vm261_vm3, %v7467_v14 }
 0x476   : > { %v7939_v20 = vpop.f32.mrb[200].mxu0  ;;  %v7425_v21 = vpop.f32.mrb[196].mxu1 }
 0x477   : > { %v8090_v22 = vadd.f32 %v7939_v20, %v7547_v19  ;;  %v12377_v23 = vpop.f32.mrb[201].mxu0  ;;  %v12371_v26 = vpop.f32.mrb[197].mxu1  ;;  %v8998_v19 = vrot.slane %v8996_v6, 2  ;;  %v13033_v20 = vld [vmem:[%s13135_s25 + $0x84] sm:$0xff]  }
 0x478   : > { %v6925_v25 = vld [vmem:[#allocation2 + $0x120] sm:$0xff]  ;;  %v7942_v28 = vpop.f32.mrb[202].mxu0  ;;  %v7428_v34 = vpop.f32.mrb[198].mxu1  ;;  %v15540_v26 = vld [vmem:[%s13135_s25 + $0x74] sm:$0xff]   ;;  %v9002_v32 = vshrl.u32 %v13033_v20, 16 }
 0x479   : > { %v7468_v33 = vadd.f32 %v7425_v21, %v6925_v25  ;;  %8128 = vst.msk [vmem:[#allocation2] sm:$0xff] %vm261_vm3, %v8090_v22  ;;  %v8091_v35 = vadd.f32 %v7942_v28, %v7548_v24  ;;  %v12378_v36 = vpop.f32.mrb[203].mxu0  ;;  %v12372_v39 = vpop.f32.mrb[199].mxu1  ;;  %v9586_v25 = vsel %vm3541_vm6, %v9583_v44, %v9585_v7  ;;  %v8999_v31 = vor.u32 %v8998_v19, %v8995_v18 }
 0x47a   : > { %v6926_v38 = vld [vmem:[#allocation2 + $0x128] sm:$0xff]  ;;  %v7554_v39 = vld [vmem:[#allocation2 + $0x38] sm:$0xff]  ;;  %v9004_v44 = vrot.slane %v9002_v32, 1 }
 0x47b   : > { %7506 = vst.msk [vmem:[#allocation2 + $0x120] sm:$0xff] %vm261_vm3, %v7468_v33  ;;  %v7469_v40 = vadd.f32 %v7428_v34, %v6926_v38  ;;  %8129 = vst.msk [vmem:[#allocation2 + $0x8] sm:$0xff] %vm261_vm3, %v8091_v35  ;;  %12564 = vmatmul.mubr.msk.bf16.gmra.mrb[52].mxu0 %vm479_vm1, %v8973_v29  ;;  %12638 = vmatmul.mubr.msk.bf16.gmra.mrb[48].mxu1 %vm479_vm1, %v9582_v27  ;;  %v9005_v33 = vshll.u32 %v13033_v20, 16  ;;  %v9587_v34 = vrot.slane %v15540_v26, 2  ;;  %v7553_v35 = vld [vmem:[#allocation2 + $0x30] sm:$0xff] }
 0x47c   : > { %12567 = vmatprep.mubr.msk.bf16.mxu0 %vm13073_vm0, %v13072_v1  ;;  %12641 = vmatprep.mubr.msk.bf16.mxu1 %vm13073_vm0, %v13072_v1  ;;  %v9000_v43 = vsel %vm2178_vm5, %v8990_v4, %v8999_v31 }
 0x47d   : > { %7507 = vst.msk [vmem:[#allocation2 + $0x128] sm:$0xff] %vm261_vm3, %v7469_v40 }
 0x47e   : > { %v7947_v46 = vpop.f32.mrb[204].mxu0  ;;  %v8480_v47 = vpop.f32.mrb[200].mxu1 }
 0x47f   : > { %v8092_v48 = vadd.f32 %v7947_v46, %v7549_v45  ;;  %v12381_v49 = vpop.f32.mrb[205].mxu0  ;;  %v12455_v52 = vpop.f32.mrb[201].mxu1  ;;  %v9007_v45 = vrot.slane %v9005_v33, 2  ;;  %v13035_v46 = vld [vmem:[%s13135_s25 + $0x8c] sm:$0xff]  }
 0x480   : > { %v8205_v51 = vld [vmem:[#allocation2] sm:$0xff]  ;;  %v7950_v53 = vpop.f32.mrb[206].mxu0  ;;  %v8483_v59 = vpop.f32.mrb[202].mxu1  ;;  %v9011_v57 = vshrl.u32 %v13035_v46, 16 }
 0x481   : > { %v8631_v58 = vadd.f32 %v8480_v47, %v8205_v51  ;;  %8130 = vst.msk [vmem:[#allocation2 + $0x10] sm:$0xff] %vm261_vm3, %v8092_v48  ;;  %v8093_v60 = vadd.f32 %v7950_v53, %v7550_v50  ;;  %v12382_v61 = vpop.f32.mrb[207].mxu0  ;;  %v12456_v2 = vpop.f32.mrb[203].mxu1  ;;  %v9588_v51 = vsel %vm3541_vm6, %v9585_v7, %v9587_v34  ;;  %v15557_v52 = vld [vmem:[%s13135_s25 + $0x7c] sm:$0xff]   ;;  %v9008_v56 = vor.u32 %v9007_v45, %v9004_v44 }
 0x482   : > { %v8206_v0 = vld [vmem:[#allocation2 + $0x8] sm:$0xff]  ;;  %v9013_v7 = vrot.slane %v9011_v57, 1 }
 0x483   : > { %8669 = vst.msk [vmem:[#allocation2] sm:$0xff] %vm261_vm3, %v8631_v58  ;;  %v8632_v3 = vadd.f32 %v8483_v59, %v8206_v0  ;;  %8131 = vst.msk [vmem:[#allocation2 + $0x18] sm:$0xff] %vm261_vm3, %v8093_v60  ;;  %12568 = vmatmul.mubr.msk.bf16.gmra.mrb[56].mxu0 %vm479_vm1, %v8982_v54  ;;  %12642 = vmatmul.mubr.msk.bf16.gmra.mrb[52].mxu1 %vm479_vm1, %v9584_v62  ;;  %v9014_v58 = vshll.u32 %v13035_v46, 16  ;;  %v9589_v59 = vrot.slane %v15557_v52, 2  ;;  %v7555_v60 = vld [vmem:[#allocation2 + $0x40] sm:$0xff]  ;;  %v7556_v2 = vld [vmem:[#allocation2 + $0x48] sm:$0xff] }
 0x484   : > { %12571 = vmatprep.mubr.msk.bf16.mxu0 %vm13073_vm0, %v13072_v1  ;;  %12645 = vmatprep.mubr.msk.bf16.mxu1 %vm13073_vm0, %v13072_v1  ;;  %v9009_v6 = vsel %vm2178_vm5, %v8999_v31, %v9008_v56 }
 0x485   : > { %8670 = vst.msk [vmem:[#allocation2 + $0x8] sm:$0xff] %vm261_vm3, %v8632_v3 }
 0x486   : > { %v7955_v9 = vpop.f32.mrb[208].mxu0  ;;  %v8488_v10 = vpop.f32.mrb[204].mxu1 }
 0x487   : > { %v8094_v11 = vadd.f32 %v7955_v9, %v7551_v8  ;;  %v12385_v12 = vpop.f32.mrb[209].mxu0  ;;  %v12459_v15 = vpop.f32.mrb[205].mxu1  ;;  %v9016_v8 = vrot.slane %v9014_v58, 2  ;;  %v13037_v9 = vld [vmem:[%s13135_s25 + $0x94] sm:$0xff]  }
 0x488   : > { %v8207_v14 = vld [vmem:[#allocation2 + $0x10] sm:$0xff]  ;;  %v7958_v16 = vpop.f32.mrb[210].mxu0  ;;  %v8491_v22 = vpop.f32.mrb[206].mxu1  ;;  %v15574_v15 = vld [vmem:[%s13135_s25 + $0x84] sm:$0xff]   ;;  %v9020_v20 = vshrl.u32 %v13037_v9, 16 }
 0x489   : > { %v8633_v21 = vadd.f32 %v8488_v10, %v8207_v14  ;;  %8132 = vst.msk [vmem:[#allocation2 + $0x20] sm:$0xff] %vm261_vm3, %v8094_v11  ;;  %v8095_v23 = vadd.f32 %v7958_v16, %v7552_v13  ;;  %v12386_v24 = vpop.f32.mrb[211].mxu0  ;;  %v12460_v29 = vpop.f32.mrb[207].mxu1  ;;  %v9590_v14 = vsel %vm3541_vm6, %v9587_v34, %v9589_v59  ;;  %v9017_v19 = vor.u32 %v9016_v8, %v9013_v7 }
 0x48a   : > { %v8208_v28 = vld [vmem:[#allocation2 + $0x18] sm:$0xff]  ;;  %v9022_v34 = vrot.slane %v9020_v20, 1 }
 0x48b   : > { %8671 = vst.msk [vmem:[#allocation2 + $0x10] sm:$0xff] %vm261_vm3, %v8633_v21  ;;  %v8634_v30 = vadd.f32 %v8491_v22, %v8208_v28  ;;  %8133 = vst.msk [vmem:[#allocation2 + $0x28] sm:$0xff] %vm261_vm3, %v8095_v23  ;;  %12572 = vmatmul.mubr.msk.bf16.gmra.mrb[60].mxu0 %vm479_vm1, %v8991_v17  ;;  %12646 = vmatmul.mubr.msk.bf16.gmra.mrb[56].mxu1 %vm479_vm1, %v9586_v25  ;;  %v9023_v21 = vshll.u32 %v13037_v9, 16  ;;  %v9591_v22 = vrot.slane %v15574_v15, 2  ;;  %v7557_v23 = vld [vmem:[#allocation2 + $0x50] sm:$0xff]  ;;  %v7558_v29 = vld [vmem:[#allocation2 + $0x58] sm:$0xff] }
 0x48c   : > { %12575 = vmatprep.mubr.msk.bf16.mxu0 %vm13073_vm0, %v13072_v1  ;;  %12649 = vmatprep.mubr.msk.bf16.mxu1 %vm13073_vm0, %v13072_v1  ;;  %v9018_v33 = vsel %vm2178_vm5, %v9008_v56, %v9017_v19  ;;  %v7562_v20 = vld [vmem:[#allocation2 + $0x78] sm:$0xff] }
 0x48d   : > { %8672 = vst.msk [vmem:[#allocation2 + $0x18] sm:$0xff] %vm261_vm3, %v8634_v30 }
 0x48e   : > { %v7963_v36 = vpop.f32.mrb[212].mxu0  ;;  %v8496_v27 = vpop.f32.mrb[208].mxu1 }
 0x48f   : > { %v8096_v37 = vadd.f32 %v7963_v36, %v7553_v35  ;;  %v12389_v38 = vpop.f32.mrb[213].mxu0  ;;  %v12463_v41 = vpop.f32.mrb[209].mxu1  ;;  %v9025_v35 = vrot.slane %v9023_v21, 2  ;;  %v13039_v36 = vld [vmem:[%s13135_s25 + $0x9c] sm:$0xff]  }
 0x490   : > { %v8209_v40 = vld [vmem:[#allocation2 + $0x20] sm:$0xff]  ;;  %v7966_v42 = vpop.f32.mrb[214].mxu0  ;;  %v8499_v48 = vpop.f32.mrb[210].mxu1  ;;  %v15591_v41 = vld [vmem:[%s13135_s25 + $0x8c] sm:$0xff]   ;;  %v9029_v46 = vshrl.u32 %v13039_v36, 16 }
 0x491   : > { %v8635_v47 = vadd.f32 %v8496_v27, %v8209_v40  ;;  %8134 = vst.msk [vmem:[#allocation2 + $0x30] sm:$0xff] %vm261_vm3, %v8096_v37  ;;  %v8097_v49 = vadd.f32 %v7966_v42, %v7554_v39  ;;  %v12390_v50 = vpop.f32.mrb[215].mxu0  ;;  %v12464_v54 = vpop.f32.mrb[211].mxu1  ;;  %v9592_v40 = vsel %vm3541_vm6, %v9589_v59, %v9591_v22  ;;  %v9026_v45 = vor.u32 %v9025_v35, %v9022_v34 }
 0x492   : > { %v8210_v53 = vld [vmem:[#allocation2 + $0x28] sm:$0xff]  ;;  %v9031_v59 = vrot.slane %v9029_v46, 1 }
 0x493   : > { %8673 = vst.msk [vmem:[#allocation2 + $0x20] sm:$0xff] %vm261_vm3, %v8635_v47  ;;  %v8636_v55 = vadd.f32 %v8499_v48, %v8210_v53  ;;  %8135 = vst.msk [vmem:[#allocation2 + $0x38] sm:$0xff] %vm261_vm3, %v8097_v49  ;;  %12576 = vmatmul.mubr.msk.bf16.gmra.mrb[64].mxu0 %vm479_vm1, %v9000_v43  ;;  %12650 = vmatmul.mubr.msk.bf16.gmra.mrb[60].mxu1 %vm479_vm1, %v9588_v51  ;;  %v9032_v47 = vshll.u32 %v13039_v36, 16  ;;  %v9593_v48 = vrot.slane %v15591_v41, 2  ;;  %v7559_v49 = vld [vmem:[#allocation2 + $0x60] sm:$0xff]  ;;  %v7560_v54 = vld [vmem:[#allocation2 + $0x68] sm:$0xff] }
 0x494   : > { %12579 = vmatprep.mubr.msk.bf16.mxu0 %vm13073_vm0, %v13072_v1  ;;  %12653 = vmatprep.mubr.msk.bf16.mxu1 %vm13073_vm0, %v13072_v1  ;;  %v9027_v58 = vsel %vm2178_vm5, %v9017_v19, %v9026_v45 }
 0x495   : > { %8674 = vst.msk [vmem:[#allocation2 + $0x28] sm:$0xff] %vm261_vm3, %v8636_v55 }
 0x496   : > { %v7971_v61 = vpop.f32.mrb[216].mxu0  ;;  %v8504_v62 = vpop.f32.mrb[212].mxu1 }
 0x497   : > { %v8098_v63 = vadd.f32 %v7971_v61, %v7555_v60  ;;  %v12393_v0 = vpop.f32.mrb[217].mxu0  ;;  %v12467_v4 = vpop.f32.mrb[213].mxu1  ;;  %v9034_v60 = vrot.slane %v9032_v47, 2  ;;  %v13041_v61 = vld [vmem:[%s13135_s25 + $0xa4] sm:$0xff]  }
 0x498   : > { %v8211_v3 = vld [vmem:[#allocation2 + $0x30] sm:$0xff]  ;;  %v7974_v5 = vpop.f32.mrb[218].mxu0  ;;  %v8507_v11 = vpop.f32.mrb[214].mxu1  ;;  %v9038_v9 = vshrl.u32 %v13041_v61, 16 }
 0x499   : > { %v8637_v10 = vadd.f32 %v8504_v62, %v8211_v3  ;;  %8136 = vst.msk [vmem:[#allocation2 + $0x40] sm:$0xff] %vm261_vm3, %v8098_v63  ;;  %v8099_v12 = vadd.f32 %v7974_v5, %v7556_v2  ;;  %v12394_v13 = vpop.f32.mrb[219].mxu0  ;;  %v12468_v17 = vpop.f32.mrb[215].mxu1  ;;  %v9594_v3 = vsel %vm3541_vm6, %v9591_v22, %v9593_v48  ;;  %v15608_v4 = vld [vmem:[%s13135_s25 + $0x94] sm:$0xff]   ;;  %v9035_v8 = vor.u32 %v9034_v60, %v9031_v59 }
 0x49a   : > { %v8212_v16 = vld [vmem:[#allocation2 + $0x38] sm:$0xff]  ;;  %v13043_v17 = vld [vmem:[%s13135_s25 + $0xac] sm:$0xff]  }
 0x49b   : > { %8675 = vst.msk [vmem:[#allocation2 + $0x30] sm:$0xff] %vm261_vm3, %v8637_v10  ;;  %v8638_v18 = vadd.f32 %v8507_v11, %v8212_v16  ;;  %8137 = vst.msk [vmem:[#allocation2 + $0x48] sm:$0xff] %vm261_vm3, %v8099_v12  ;;  %12580 = vmatmul.mubr.msk.bf16.gmra.mrb[68].mxu0 %vm479_vm1, %v9009_v6  ;;  %12654 = vmatmul.mubr.msk.bf16.gmra.mrb[64].mxu1 %vm479_vm1, %v9590_v14  ;;  %v9041_v10 = vshll.u32 %v13041_v61, 16  ;;  %v9595_v11 = vrot.slane %v15608_v4, 2  ;;  %v7561_v12 = vld [vmem:[#allocation2 + $0x70] sm:$0xff]  ;;  %v9047_v35 = vshrl.u32 %v13043_v17, 16 }
 0x49c   : > { %12583 = vmatprep.mubr.msk.bf16.mxu0 %vm13073_vm0, %v13072_v1  ;;  %12657 = vmatprep.mubr.msk.bf16.mxu1 %vm13073_vm0, %v13072_v1  ;;  %v9036_v22 = vsel %vm2178_vm5, %v9026_v45, %v9035_v8  ;;  %v9050_v36 = vshll.u32 %v13043_v17, 16 }
 0x49d   : > { %8676 = vst.msk [vmem:[#allocation2 + $0x38] sm:$0xff] %vm261_vm3, %v8638_v18 }
 0x49e   : > { %v7979_v24 = vpop.f32.mrb[220].mxu0  ;;  %v8512_v25 = vpop.f32.mrb[216].mxu1  ;;  %v9052_v45 = vrot.slane %v9050_v36, 2 }
 0x49f   : > { %v8100_v26 = vadd.f32 %v7979_v24, %v7557_v23  ;;  %v12397_v28 = vpop.f32.mrb[221].mxu0  ;;  %v12471_v31 = vpop.f32.mrb[217].mxu1  ;;  %v9040_v23 = vrot.slane %v9038_v9, 1  ;;  %v9043_v24 = vrot.slane %v9041_v10, 2 }
 0x4a0   : > { %v8213_v30 = vld [vmem:[#allocation2 + $0x40] sm:$0xff]  ;;  %v7982_v32 = vpop.f32.mrb[222].mxu0  ;;  %v8515_v37 = vpop.f32.mrb[218].mxu1 }
 0x4a1   : > { %v8639_v27 = vadd.f32 %v8512_v25, %v8213_v30  ;;  %8138 = vst.msk [vmem:[#allocation2 + $0x50] sm:$0xff] %vm261_vm3, %v8100_v26  ;;  %v8101_v38 = vadd.f32 %v7982_v32, %v7558_v29  ;;  %v12398_v39 = vpop.f32.mrb[223].mxu0  ;;  %v12472_v43 = vpop.f32.mrb[219].mxu1  ;;  %v9596_v30 = vsel %vm3541_vm6, %v9593_v48, %v9595_v11  ;;  %v15625_v31 = vld [vmem:[%s13135_s25 + $0x9c] sm:$0xff]  }
 0x4a2   : > { %v8214_v42 = vld [vmem:[#allocation2 + $0x48] sm:$0xff] }
 0x4a3   : > { %8677 = vst.msk [vmem:[#allocation2 + $0x40] sm:$0xff] %vm261_vm3, %v8639_v27  ;;  %v8640_v44 = vadd.f32 %v8515_v37, %v8214_v42  ;;  %8139 = vst.msk [vmem:[#allocation2 + $0x58] sm:$0xff] %vm261_vm3, %v8101_v38  ;;  %12584 = vmatmul.mubr.msk.bf16.gmra.mrb[72].mxu0 %vm479_vm1, %v9018_v33  ;;  %12658 = vmatmul.mubr.msk.bf16.gmra.mrb[68].mxu1 %vm479_vm1, %v9592_v40  ;;  %v9044_v27 = vor.u32 %v9043_v24, %v9040_v23  ;;  %v9597_v37 = vrot.slane %v15625_v31, 2  ;;  %v7563_v38 = vld [vmem:[#allocation2 + $0x80] sm:$0xff]  ;;  %v7564_v43 = vld [vmem:[#allocation2 + $0x88] sm:$0xff] }
 0x4a4   : > { %12587 = vmatprep.mubr.msk.bf16.mxu0 %vm13073_vm0, %v13072_v1  ;;  %12661 = vmatprep.mubr.msk.bf16.mxu1 %vm13073_vm0, %v13072_v1  ;;  %v7567_v24 = vld [vmem:[#allocation2 + $0xa0] sm:$0xff] }
 0x4a5   : > { %8678 = vst.msk [vmem:[#allocation2 + $0x48] sm:$0xff] %vm261_vm3, %v8640_v44  ;;  %v9049_v44 = vrot.slane %v9047_v35, 1 }
 0x4a6   : > { %v7987_v50 = vpop.f32.mrb[224].mxu0  ;;  %v8520_v51 = vpop.f32.mrb[220].mxu1 }
 0x4a7   : > { %v8102_v52 = vadd.f32 %v7987_v50, %v7559_v49  ;;  %v12401_v53 = vpop.f32.mrb[225].mxu0  ;;  %v12475_v56 = vpop.f32.mrb[221].mxu1  ;;  %v9045_v49 = vsel %vm2178_vm5, %v9035_v8, %v9044_v27  ;;  %v13045_v50 = vld [vmem:[%s13135_s25 + $0xb4] ss:$0 sps:$4 sm:$0x33]   ;;  %v9053_v60 = vor.u32 %v9052_v45, %v9049_v44  ;;  %v7566_v8 = vld [vmem:[#allocation2 + $0x98] sm:$0xff] }
 0x4a8   : > { %v8215_v55 = vld [vmem:[#allocation2 + $0x50] sm:$0xff]  ;;  %v7990_v57 = vpop.f32.mrb[226].mxu0  ;;  %v8523_v63 = vpop.f32.mrb[222].mxu1  ;;  %v15642_v56 = vld [vmem:[%s13135_s25 + $0xa4] sm:$0xff]   ;;  %v9056_v61 = vshrl.u32 %v13045_v50, 16 }
 0x4a9   : > { %v8641_v62 = vadd.f32 %v8520_v51, %v8215_v55  ;;  %8140 = vst.msk [vmem:[#allocation2 + $0x60] sm:$0xff] %vm261_vm3, %v8102_v52  ;;  %v8103_v0 = vadd.f32 %v7990_v57, %v7560_v54  ;;  %v12402_v2 = vpop.f32.mrb[227].mxu0  ;;  %v12476_v6 = vpop.f32.mrb[223].mxu1  ;;  %v9598_v55 = vsel %vm3541_vm6, %v9595_v11, %v9597_v37  ;;  %v9054_v10 = vsel %vm2178_vm5, %v9044_v27, %v9053_v60  ;;  %v7569_v44 = vld [vmem:[#allocation2 + $0xb0] sm:$0xff] }
 0x4aa   : > { %v8216_v5 = vld [vmem:[#allocation2 + $0x58] sm:$0xff]  ;;  %v9058_v11 = vrot.slane %v9056_v61, 1 }
 0x4ab   : > { %8679 = vst.msk [vmem:[#allocation2 + $0x50] sm:$0xff] %vm261_vm3, %v8641_v62  ;;  %v8642_v7 = vadd.f32 %v8523_v63, %v8216_v5  ;;  %8141 = vst.msk [vmem:[#allocation2 + $0x68] sm:$0xff] %vm261_vm3, %v8103_v0  ;;  %12588 = vmatmul.mubr.msk.bf16.gmra.mrb[76].mxu0 %vm479_vm1, %v9027_v58  ;;  %12662 = vmatmul.mubr.msk.bf16.gmra.mrb[72].mxu1 %vm479_vm1, %v9594_v3  ;;  %v9059_v62 = vshll.u32 %v13045_v50, 16  ;;  %v9599_v63 = vrot.slane %v15642_v56, 2  ;;  %v7565_v0 = vld [vmem:[#allocation2 + $0x90] sm:$0xff] }
 0x4ac   : > { %12591 = vmatprep.mubr.msk.bf16.mxu0 %vm13073_vm0, %v13072_v1  ;;  %12665 = vmatprep.mubr.msk.bf16.mxu1 %vm13073_vm0, %v13072_v1 }
 0x4ad   : > { %8680 = vst.msk [vmem:[#allocation2 + $0x58] sm:$0xff] %vm261_vm3, %v8642_v7  ;;  %v9600_v17 = vsel %vm3541_vm6, %v9597_v37, %v9599_v63 }
 0x4ae   : > { %v7995_v13 = vpop.f32.mrb[228].mxu0  ;;  %v8528_v14 = vpop.f32.mrb[224].mxu1 }
 0x4af   : > { %v8104_v15 = vadd.f32 %v7995_v13, %v7561_v12  ;;  %v12405_v16 = vpop.f32.mrb[229].mxu0  ;;  %v12479_v19 = vpop.f32.mrb[225].mxu1  ;;  %v9061_v12 = vrot.slane %v9059_v62, 2 }
 0x4b0   : > { %v8217_v18 = vld [vmem:[#allocation2 + $0x60] sm:$0xff]  ;;  %v7998_v21 = vpop.f32.mrb[230].mxu0  ;;  %v8531_v26 = vpop.f32.mrb[226].mxu1 }
 0x4b1   : > { %v8643_v25 = vadd.f32 %v8528_v14, %v8217_v18  ;;  %8142 = vst.msk [vmem:[#allocation2 + $0x70] sm:$0xff] %vm261_vm3, %v8104_v15  ;;  %v8105_v28 = vadd.f32 %v7998_v21, %v7562_v20  ;;  %v12406_v29 = vpop.f32.mrb[231].mxu0  ;;  %v12480_v33 = vpop.f32.mrb[227].mxu1  ;;  %v13044_v18 = vld [vmem:[%s13135_s25 + $0xac] sm:$0xff]  }
 0x4b2   : > { %v8218_v32 = vld [vmem:[#allocation2 + $0x68] sm:$0xff]  ;;  %v9601_v23 = vrot.slane %v13044_v18, 2 }
 0x4b3   : > { %8681 = vst.msk [vmem:[#allocation2 + $0x60] sm:$0xff] %vm261_vm3, %v8643_v25  ;;  %v8644_v34 = vadd.f32 %v8531_v26, %v8218_v32  ;;  %8143 = vst.msk [vmem:[#allocation2 + $0x78] sm:$0xff] %vm261_vm3, %v8105_v28  ;;  %12592 = vmatmul.mubr.msk.bf16.gmra.mrb[80].mxu0 %vm479_vm1, %v9036_v22  ;;  %12666 = vmatmul.mubr.msk.bf16.gmra.mrb[76].mxu1 %vm479_vm1, %v9596_v30  ;;  %v9062_v22 = vor.u32 %v9061_v12, %v9058_v11  ;;  %v7568_v32 = vld [vmem:[#allocation2 + $0xa8] sm:$0xff] }
 0x4b4   : > { %12595 = vmatprep.mubr.msk.bf16.mxu0 %vm13073_vm0, %v13072_v1  ;;  %12669 = vmatprep.mubr.msk.bf16.mxu1 %vm13073_vm0, %v13072_v1 }
 0x4b5   : > { %8682 = vst.msk [vmem:[#allocation2 + $0x68] sm:$0xff] %vm261_vm3, %v8644_v34  ;;  %v9063_v34 = vsel %vm2178_vm5, %v9053_v60, %v9062_v22  ;;  %v7571_v60 = vld [vmem:[#allocation2 + $0xc0] sm:$0xff] }
 0x4b6   : > { %v8003_v39 = vpop.f32.mrb[232].mxu0  ;;  %v8536_v40 = vpop.f32.mrb[228].mxu1 }
 0x4b7   : > { %v8106_v41 = vadd.f32 %v8003_v39, %v7563_v38  ;;  %v12409_v42 = vpop.f32.mrb[233].mxu0  ;;  %v12483_v47 = vpop.f32.mrb[229].mxu1  ;;  %v9602_v38 = vsel %vm3541_vm6, %v9599_v63, %v9601_v23  ;;  %v13046_v39 = vld [vmem:[%s13135_s25 + $0xb4] ss:$0 sps:$4 sm:$0x33]  }
 0x4b8   : > { %v8219_v46 = vld [vmem:[#allocation2 + $0x70] sm:$0xff]  ;;  %v8006_v48 = vpop.f32.mrb[234].mxu0  ;;  %v8539_v52 = vpop.f32.mrb[230].mxu1 }
 0x4b9   : > { %v8645_v51 = vadd.f32 %v8536_v40, %v8219_v46  ;;  %8144 = vst.msk [vmem:[#allocation2 + $0x80] sm:$0xff] %vm261_vm3, %v8106_v41  ;;  %v8107_v53 = vadd.f32 %v8006_v48, %v7564_v43  ;;  %v12410_v54 = vpop.f32.mrb[235].mxu0  ;;  %v12484_v58 = vpop.f32.mrb[231].mxu1  ;;  %v9603_v43 = vrot.slane %v13046_v39, 2 }
 0x4ba   : > { %v8220_v57 = vld [vmem:[#allocation2 + $0x78] sm:$0xff] }
 0x4bb   : > { %8683 = vst.msk [vmem:[#allocation2 + $0x70] sm:$0xff] %vm261_vm3, %v8645_v51  ;;  %v8646_v59 = vadd.f32 %v8539_v52, %v8220_v57  ;;  %8145 = vst.msk [vmem:[#allocation2 + $0x88] sm:$0xff] %vm261_vm3, %v8107_v53  ;;  %12596 = vmatmul.mubr.msk.bf16.gmra.mrb[84].mxu0 %vm479_vm1, %v9045_v49  ;;  %12670 = vmatmul.mubr.msk.bf16.gmra.mrb[80].mxu1 %vm479_vm1, %v9598_v55  ;;  %v7570_v51 = vld [vmem:[#allocation2 + $0xb8] sm:$0xff]  ;;  %v9604_v57 = vsel %vm3541_vm6, %v9601_v23, %v9603_v43 }
 0x4bc   : > { %12599 = vmatprep.mubr.msk.bf16.mxu0 %vm13073_vm0, %v13072_v1  ;;  %12673 = vmatprep.mubr.msk.bf16.mxu1 %vm13073_vm0, %v13072_v1 }
 0x4bd   : > { %8684 = vst.msk [vmem:[#allocation2 + $0x78] sm:$0xff] %vm261_vm3, %v8646_v59 }
 0x4be   : > { %v8011_v2 = vpop.f32.mrb[236].mxu0  ;;  %v8544_v3 = vpop.f32.mrb[232].mxu1 }
 0x4bf   : > { %v8108_v4 = vadd.f32 %v8011_v2, %v7565_v0  ;;  %v12413_v5 = vpop.f32.mrb[237].mxu0  ;;  %v12487_v7 = vpop.f32.mrb[233].mxu1 }
 0x4c0   : > { %v8221_v6 = vld [vmem:[#allocation2 + $0x80] sm:$0xff]  ;;  %v8014_v9 = vpop.f32.mrb[238].mxu0  ;;  %v8547_v14 = vpop.f32.mrb[234].mxu1 }
 0x4c1   : > { %v8647_v13 = vadd.f32 %v8544_v3, %v8221_v6  ;;  %8146 = vst.msk [vmem:[#allocation2 + $0x90] sm:$0xff] %vm261_vm3, %v8108_v4  ;;  %v8109_v15 = vadd.f32 %v8014_v9, %v7566_v8  ;;  %v12414_v16 = vpop.f32.mrb[239].mxu0  ;;  %v12488_v20 = vpop.f32.mrb[235].mxu1  ;;  %v7572_v4 = vld [vmem:[#allocation2 + $0xc8] sm:$0xff] }
 0x4c2   : > { %v8222_v19 = vld [vmem:[#allocation2 + $0x88] sm:$0xff]  ;;  %v7574_v20 = vld [vmem:[#allocation2 + $0xd8] sm:$0xff] }
 0x4c3   : > { %8685 = vst.msk [vmem:[#allocation2 + $0x80] sm:$0xff] %vm261_vm3, %v8647_v13  ;;  %v8648_v21 = vadd.f32 %v8547_v14, %v8222_v19  ;;  %8147 = vst.msk [vmem:[#allocation2 + $0x98] sm:$0xff] %vm261_vm3, %v8109_v15  ;;  %12600 = vmatmul.mubr.msk.bf16.gmra.mrb[88].mxu0 %vm479_vm1, %v9054_v10  ;;  %12674 = vmatmul.mubr.msk.bf16.gmra.mrb[84].mxu1 %vm479_vm1, %v9600_v17  ;;  %v7573_v13 = vld [vmem:[#allocation2 + $0xd0] sm:$0xff] }
 0x4c4   : > { %12603 = vmatprep.mubr.msk.bf16.mxu0 %vm13073_vm0, %v13072_v1  ;;  %12677 = vmatprep.mubr.msk.bf16.mxu1 %vm13073_vm0, %v13072_v1 }
 0x4c5   : > { %8686 = vst.msk [vmem:[#allocation2 + $0x88] sm:$0xff] %vm261_vm3, %v8648_v21 }
 0x4c6   : > { %v8019_v25 = vpop.f32.mrb[240].mxu0  ;;  %v8552_v26 = vpop.f32.mrb[236].mxu1 }
 0x4c7   : > { %v8110_v28 = vadd.f32 %v8019_v25, %v7567_v24  ;;  %v12417_v29 = vpop.f32.mrb[241].mxu0  ;;  %v12491_v31 = vpop.f32.mrb[237].mxu1 }
 0x4c8   : > { %v8223_v30 = vld [vmem:[#allocation2 + $0x90] sm:$0xff]  ;;  %v8022_v33 = vpop.f32.mrb[242].mxu0  ;;  %v8555_v36 = vpop.f32.mrb[238].mxu1 }
 0x4c9   : > { %v8649_v35 = vadd.f32 %v8552_v26, %v8223_v30  ;;  %8148 = vst.msk [vmem:[#allocation2 + $0xa0] sm:$0xff] %vm261_vm3, %v8110_v28  ;;  %v8111_v27 = vadd.f32 %v8022_v33, %v7568_v32  ;;  %v12418_v37 = vpop.f32.mrb[243].mxu0  ;;  %v12492_v41 = vpop.f32.mrb[239].mxu1  ;;  %v7575_v30 = vld [vmem:[#allocation2 + $0xe0] sm:$0xff] }
 0x4ca   : > { %v8224_v40 = vld [vmem:[#allocation2 + $0x98] sm:$0xff] }
 0x4cb   : > { %8687 = vst.msk [vmem:[#allocation2 + $0x90] sm:$0xff] %vm261_vm3, %v8649_v35  ;;  %v8650_v42 = vadd.f32 %v8555_v36, %v8224_v40  ;;  %8149 = vst.msk [vmem:[#allocation2 + $0xa8] sm:$0xff] %vm261_vm3, %v8111_v27  ;;  %12604 = vmatmul.mubr.msk.bf16.gmra.mrb[92].mxu0 %vm479_vm1, %v9063_v34  ;;  %12678 = vmatmul.mubr.msk.bf16.gmra.mrb[88].mxu1 %vm479_vm1, %v9602_v38  ;;  %v7576_v27 = vld [vmem:[#allocation2 + $0xe8] sm:$0xff] }
 0x4cc   : > { %12681 = vmatprep.mubr.msk.bf16.mxu1 %vm13073_vm0, %v13072_v1 }
 0x4cd   : > { %8688 = vst.msk [vmem:[#allocation2 + $0x98] sm:$0xff] %vm261_vm3, %v8650_v42 }
 0x4ce   : > { %v8027_v45 = vpop.f32.mrb[244].mxu0  ;;  %v8560_v46 = vpop.f32.mrb[240].mxu1 }
 0x4cf   : > { %v8112_v47 = vadd.f32 %v8027_v45, %v7569_v44  ;;  %v12421_v48 = vpop.f32.mrb[245].mxu0  ;;  %v12495_v50 = vpop.f32.mrb[241].mxu1  ;;  %v7577_v45 = vld [vmem:[#allocation2 + $0xf0] sm:$0xff] }
 0x4d0   : > { %v8225_v49 = vld [vmem:[#allocation2 + $0xa0] sm:$0xff]  ;;  %v8030_v52 = vpop.f32.mrb[246].mxu0  ;;  %v8563_v54 = vpop.f32.mrb[242].mxu1 }
 0x4d1   : > { %v8651_v53 = vadd.f32 %v8560_v46, %v8225_v49  ;;  %8150 = vst.msk [vmem:[#allocation2 + $0xb0] sm:$0xff] %vm261_vm3, %v8112_v47  ;;  %v8113_v55 = vadd.f32 %v8030_v52, %v7570_v51  ;;  %v12422_v56 = vpop.f32.mrb[247].mxu0  ;;  %v12496_v1 = vpop.f32.mrb[243].mxu1  ;;  %v7578_v52 = vld [vmem:[#allocation2 + $0xf8] sm:$0xff] }
 0x4d2   : > { %v8226_v58 = vld [vmem:[#allocation2 + $0xa8] sm:$0xff] }
 0x4d3   : > { %8689 = vst.msk [vmem:[#allocation2 + $0xa0] sm:$0xff] %vm261_vm3, %v8651_v53  ;;  %v8652_v59 = vadd.f32 %v8563_v54, %v8226_v58  ;;  %8151 = vst.msk [vmem:[#allocation2 + $0xb8] sm:$0xff] %vm261_vm3, %v8113_v55  ;;  %12682 = vmatmul.mubr.msk.bf16.gmra.mrb[92].mxu1 %vm479_vm1, %v9604_v57 }
 0x4d5   : > { %8690 = vst.msk [vmem:[#allocation2 + $0xa8] sm:$0xff] %vm261_vm3, %v8652_v59 }
 0x4d6   : > { %v8035_v61 = vpop.f32.mrb[248].mxu0  ;;  %v8568_v62 = vpop.f32.mrb[244].mxu1 }
 0x4d7   : > { %v8114_v63 = vadd.f32 %v8035_v61, %v7571_v60  ;;  %v12425_v0 = vpop.f32.mrb[249].mxu0  ;;  %v12499_v3 = vpop.f32.mrb[245].mxu1  ;;  %v7579_v60 = vld [vmem:[#allocation2 + $0x100] sm:$0xff] }
 0x4d8   : > { %v8227_v2 = vld [vmem:[#allocation2 + $0xb0] sm:$0xff]  ;;  %v8038_v5 = vpop.f32.mrb[250].mxu0  ;;  %v8571_v7 = vpop.f32.mrb[246].mxu1 }
 0x4d9   : > { %v8653_v6 = vadd.f32 %v8568_v62, %v8227_v2  ;;  %8152 = vst.msk [vmem:[#allocation2 + $0xc0] sm:$0xff] %vm261_vm3, %v8114_v63  ;;  %v8115_v8 = vadd.f32 %v8038_v5, %v7572_v4  ;;  %v12426_v9 = vpop.f32.mrb[251].mxu0  ;;  %v12500_v11 = vpop.f32.mrb[247].mxu1  ;;  %v7580_v4 = vld [vmem:[#allocation2 + $0x108] sm:$0xff] }
 0x4da   : > { %v8228_v10 = vld [vmem:[#allocation2 + $0xb8] sm:$0xff] }
 0x4db   : > { %8691 = vst.msk [vmem:[#allocation2 + $0xb0] sm:$0xff] %vm261_vm3, %v8653_v6  ;;  %v8654_v12 = vadd.f32 %v8571_v7, %v8228_v10  ;;  %8153 = vst.msk [vmem:[#allocation2 + $0xc8] sm:$0xff] %vm261_vm3, %v8115_v8 }
 0x4dd   : > { %8692 = vst.msk [vmem:[#allocation2 + $0xb8] sm:$0xff] %vm261_vm3, %v8654_v12 }
 0x4de   : > { %v8043_v14 = vpop.f32.mrb[252].mxu0  ;;  %v8576_v15 = vpop.f32.mrb[248].mxu1 }
 0x4df   : > { %v8116_v16 = vadd.f32 %v8043_v14, %v7573_v13  ;;  %v12429_v17 = vpop.f32.mrb[253].mxu0  ;;  %v12503_v19 = vpop.f32.mrb[249].mxu1  ;;  %v7581_v13 = vld [vmem:[#allocation2 + $0x110] sm:$0xff] }
 0x4e0   : > { %v8229_v18 = vld [vmem:[#allocation2 + $0xc0] sm:$0xff]  ;;  %v8046_v21 = vpop.f32.mrb[254].mxu0  ;;  %v8579_v23 = vpop.f32.mrb[250].mxu1 }
 0x4e1   : > { %v8655_v22 = vadd.f32 %v8576_v15, %v8229_v18  ;;  %8154 = vst.msk [vmem:[#allocation2 + $0xd0] sm:$0xff] %vm261_vm3, %v8116_v16  ;;  %v8117_v24 = vadd.f32 %v8046_v21, %v7574_v20  ;;  %v12430_v25 = vpop.f32.mrb[255].mxu0  ;;  %v12504_v28 = vpop.f32.mrb[251].mxu1  ;;  %v7582_v20 = vld [vmem:[#allocation2 + $0x118] sm:$0xff] }
 0x4e2   : > { %v8230_v26 = vld [vmem:[#allocation2 + $0xc8] sm:$0xff] }
 0x4e3   : > { %8693 = vst.msk [vmem:[#allocation2 + $0xc0] sm:$0xff] %vm261_vm3, %v8655_v22  ;;  %v8656_v29 = vadd.f32 %v8579_v23, %v8230_v26  ;;  %8155 = vst.msk [vmem:[#allocation2 + $0xd8] sm:$0xff] %vm261_vm3, %v8117_v24 }
 0x4e5   : > { %8694 = vst.msk [vmem:[#allocation2 + $0xc8] sm:$0xff] %vm261_vm3, %v8656_v29 }
 0x4e6   : > { %v8051_v31 = vpop.f32.mrb[0].mxu0  ;;  %v8584_v32 = vpop.f32.mrb[252].mxu1 }
 0x4e7   : > { %v8118_v33 = vadd.f32 %v8051_v31, %v7575_v30  ;;  %v12433_v34 = vpop.f32.mrb[1].mxu0  ;;  %v12507_v36 = vpop.f32.mrb[253].mxu1  ;;  %v7583_v30 = vld [vmem:[#allocation2 + $0x120] sm:$0xff] }
 0x4e8   : > { %v8231_v35 = vld [vmem:[#allocation2 + $0xd0] sm:$0xff]  ;;  %v8054_v37 = vpop.f32.mrb[2].mxu0  ;;  %v8587_v39 = vpop.f32.mrb[254].mxu1 }
 0x4e9   : > { %v8657_v38 = vadd.f32 %v8584_v32, %v8231_v35  ;;  %8156 = vst.msk [vmem:[#allocation2 + $0xe0] sm:$0xff] %vm261_vm3, %v8118_v33  ;;  %v8119_v40 = vadd.f32 %v8054_v37, %v7576_v27  ;;  %v12434_v41 = vpop.f32.mrb[3].mxu0  ;;  %v12508_v43 = vpop.f32.mrb[255].mxu1  ;;  %v7584_v27 = vld [vmem:[#allocation2 + $0x128] sm:$0xff] }
 0x4ea   : > { %v8232_v42 = vld [vmem:[#allocation2 + $0xd8] sm:$0xff] }
 0x4eb   : > { %8695 = vst.msk [vmem:[#allocation2 + $0xd0] sm:$0xff] %vm261_vm3, %v8657_v38  ;;  %v8658_v44 = vadd.f32 %v8587_v39, %v8232_v42  ;;  %8157 = vst.msk [vmem:[#allocation2 + $0xe8] sm:$0xff] %vm261_vm3, %v8119_v40 }
 0x4ed   : > { %8696 = vst.msk [vmem:[#allocation2 + $0xd8] sm:$0xff] %vm261_vm3, %v8658_v44 }
 0x4ee   : > { %v8059_v46 = vpop.f32.mrb[4].mxu0  ;;  %v8592_v47 = vpop.f32.mrb[0].mxu1 }
 0x4ef   : > { %v8120_v48 = vadd.f32 %v8059_v46, %v7577_v45  ;;  %v12437_v49 = vpop.f32.mrb[5].mxu0  ;;  %v12511_v51 = vpop.f32.mrb[1].mxu1  ;;  %v8746_v45 = vld [vmem:[#allocation2] sm:$0xff] }
 0x4f0   : > { %v8233_v50 = vld [vmem:[#allocation2 + $0xe0] sm:$0xff]  ;;  %v8062_v53 = vpop.f32.mrb[6].mxu0  ;;  %v8595_v55 = vpop.f32.mrb[2].mxu1 }
 0x4f1   : > { %v8659_v54 = vadd.f32 %v8592_v47, %v8233_v50  ;;  %8158 = vst.msk [vmem:[#allocation2 + $0xf0] sm:$0xff] %vm261_vm3, %v8120_v48  ;;  %v8121_v56 = vadd.f32 %v8062_v53, %v7578_v52  ;;  %v12438_v57 = vpop.f32.mrb[7].mxu0  ;;  %v12512_v1 = vpop.f32.mrb[3].mxu1  ;;  %v8747_v52 = vld [vmem:[#allocation2 + $0x8] sm:$0xff] }
 0x4f2   : > { %v8234_v58 = vld [vmem:[#allocation2 + $0xe8] sm:$0xff] }
 0x4f3   : > { %8697 = vst.msk [vmem:[#allocation2 + $0xe0] sm:$0xff] %vm261_vm3, %v8659_v54  ;;  %v8660_v59 = vadd.f32 %v8595_v55, %v8234_v58  ;;  %8159 = vst.msk [vmem:[#allocation2 + $0xf8] sm:$0xff] %vm261_vm3, %v8121_v56 }
 0x4f5   : > { %8698 = vst.msk [vmem:[#allocation2 + $0xe8] sm:$0xff] %vm261_vm3, %v8660_v59 }
 0x4f6   : > { %v8067_v61 = vpop.f32.mrb[8].mxu0  ;;  %v8600_v62 = vpop.f32.mrb[4].mxu1 }
 0x4f7   : > { %v8122_v63 = vadd.f32 %v8067_v61, %v7579_v60  ;;  %v12441_v0 = vpop.f32.mrb[9].mxu0  ;;  %v12515_v3 = vpop.f32.mrb[5].mxu1  ;;  %v8748_v60 = vld [vmem:[#allocation2 + $0x10] sm:$0xff] }
 0x4f8   : > { %v8235_v2 = vld [vmem:[#allocation2 + $0xf0] sm:$0xff]  ;;  %v8070_v5 = vpop.f32.mrb[10].mxu0  ;;  %v8603_v7 = vpop.f32.mrb[6].mxu1 }
 0x4f9   : > { %v8661_v6 = vadd.f32 %v8600_v62, %v8235_v2  ;;  %8160 = vst.msk [vmem:[#allocation2 + $0x100] sm:$0xff] %vm261_vm3, %v8122_v63  ;;  %v8123_v8 = vadd.f32 %v8070_v5, %v7580_v4  ;;  %v12442_v9 = vpop.f32.mrb[11].mxu0  ;;  %v12516_v11 = vpop.f32.mrb[7].mxu1  ;;  %v8749_v4 = vld [vmem:[#allocation2 + $0x18] sm:$0xff] }
 0x4fa   : > { %v8236_v10 = vld [vmem:[#allocation2 + $0xf8] sm:$0xff] }
 0x4fb   : > { %8699 = vst.msk [vmem:[#allocation2 + $0xf0] sm:$0xff] %vm261_vm3, %v8661_v6  ;;  %v8662_v12 = vadd.f32 %v8603_v7, %v8236_v10  ;;  %8161 = vst.msk [vmem:[#allocation2 + $0x108] sm:$0xff] %vm261_vm3, %v8123_v8 }
 0x4fd   : > { %8700 = vst.msk [vmem:[#allocation2 + $0xf8] sm:$0xff] %vm261_vm3, %v8662_v12 }
 0x4fe   : > { %v8075_v14 = vpop.f32.mrb[12].mxu0  ;;  %v8608_v15 = vpop.f32.mrb[8].mxu1 }
 0x4ff   : > { %v8124_v16 = vadd.f32 %v8075_v14, %v7581_v13  ;;  %v12445_v17 = vpop.f32.mrb[13].mxu0  ;;  %v12519_v19 = vpop.f32.mrb[9].mxu1  ;;  %v8750_v13 = vld [vmem:[#allocation2 + $0x20] sm:$0xff] }
 0x500   : > { %v8237_v18 = vld [vmem:[#allocation2 + $0x100] sm:$0xff]  ;;  %v8078_v21 = vpop.f32.mrb[14].mxu0  ;;  %v8611_v23 = vpop.f32.mrb[10].mxu1 }
 0x501   : > { %v8663_v22 = vadd.f32 %v8608_v15, %v8237_v18  ;;  %8162 = vst.msk [vmem:[#allocation2 + $0x110] sm:$0xff] %vm261_vm3, %v8124_v16  ;;  %v8125_v24 = vadd.f32 %v8078_v21, %v7582_v20  ;;  %v12446_v25 = vpop.f32.mrb[15].mxu0  ;;  %v12520_v28 = vpop.f32.mrb[11].mxu1  ;;  %v15723_v18 = vld [vmem:[%s15925_s2] ss:$0 sm:$0xff]  ;;  %v8751_v21 = vld [vmem:[#allocation2 + $0x28] sm:$0xff] }
 0x502   : > { %v8238_v26 = vld [vmem:[#allocation2 + $0x108] sm:$0xff] }
 0x503   : > { %8701 = vst.msk [vmem:[#allocation2 + $0x100] sm:$0xff] %vm261_vm3, %v8663_v22  ;;  %v8664_v29 = vadd.f32 %v8611_v23, %v8238_v26  ;;  %8163 = vst.msk [vmem:[#allocation2 + $0x118] sm:$0xff] %vm261_vm3, %v8125_v24 }
 0x505   : > { %8702 = vst.msk [vmem:[#allocation2 + $0x108] sm:$0xff] %vm261_vm3, %v8664_v29 }
 0x506   : > { %v8083_v31 = vpop.f32.mrb[16].mxu0  ;;  %v8616_v32 = vpop.f32.mrb[12].mxu1 }
 0x507   : > { %v8126_v33 = vadd.f32 %v8083_v31, %v7583_v30  ;;  %v12449_v34 = vpop.f32.mrb[17].mxu0  ;;  %v12523_v36 = vpop.f32.mrb[13].mxu1 }
 0x508   : > { %v8239_v35 = vld [vmem:[#allocation2 + $0x110] sm:$0xff]  ;;  %v8086_v37 = vpop.f32.mrb[18].mxu0  ;;  %v8619_v39 = vpop.f32.mrb[14].mxu1 }
 0x509   : > { %v8665_v38 = vadd.f32 %v8616_v32, %v8239_v35  ;;  %8164 = vst.msk [vmem:[#allocation2 + $0x120] sm:$0xff] %vm261_vm3, %v8126_v33  ;;  %v8127_v40 = vadd.f32 %v8086_v37, %v7584_v27  ;;  %v12450_v41 = vpop.f32.mrb[19].mxu0  ;;  %v12524_v43 = vpop.f32.mrb[15].mxu1  ;;  %v8752_v36 = vld [vmem:[#allocation2 + $0x30] sm:$0xff] }
 0x50a   : > { %v8240_v42 = vld [vmem:[#allocation2 + $0x118] sm:$0xff] }
 0x50b   : > { %8703 = vst.msk [vmem:[#allocation2 + $0x110] sm:$0xff] %vm261_vm3, %v8665_v38  ;;  %v8666_v44 = vadd.f32 %v8619_v39, %v8240_v42  ;;  %8165 = vst.msk [vmem:[#allocation2 + $0x128] sm:$0xff] %vm261_vm3, %v8127_v40 }
 0x50d   : > { %8704 = vst.msk [vmem:[#allocation2 + $0x118] sm:$0xff] %vm261_vm3, %v8666_v44  ;;  %v8753_v44 = vld [vmem:[#allocation2 + $0x38] sm:$0xff] }
 0x50e   : > { %v9161_v46 = vpop.f32.mrb[20].mxu0  ;;  %v8624_v47 = vpop.f32.mrb[16].mxu1 }
 0x50f   : > { %v9312_v48 = vadd.f32 %v9161_v46, %v8746_v45  ;;  %v12533_v49 = vpop.f32.mrb[21].mxu0  ;;  %v12527_v51 = vpop.f32.mrb[17].mxu1 }
 0x510   : > { %v8241_v50 = vld [vmem:[#allocation2 + $0x120] sm:$0xff]  ;;  %v9164_v53 = vpop.f32.mrb[22].mxu0  ;;  %v8627_v55 = vpop.f32.mrb[18].mxu1 }
 0x511   : > { %v8667_v54 = vadd.f32 %v8624_v47, %v8241_v50  ;;  %9350 = vst.msk [vmem:[#allocation2] sm:$0xff] %vm261_vm3, %v9312_v48  ;;  %v9313_v56 = vadd.f32 %v9164_v53, %v8747_v52  ;;  %v12534_v57 = vpop.f32.mrb[23].mxu0  ;;  %v12528_v1 = vpop.f32.mrb[19].mxu1 }
 0x512   : > { %v8242_v58 = vld [vmem:[#allocation2 + $0x128] sm:$0xff]  ;;  %v8754_v1 = vld [vmem:[#allocation2 + $0x40] sm:$0xff] }
 0x513   : > { %8705 = vst.msk [vmem:[#allocation2 + $0x120] sm:$0xff] %vm261_vm3, %v8667_v54  ;;  %v8668_v59 = vadd.f32 %v8627_v55, %v8242_v58  ;;  %9351 = vst.msk [vmem:[#allocation2 + $0x8] sm:$0xff] %vm261_vm3, %v9313_v56 }
 0x515   : > { %8706 = vst.msk [vmem:[#allocation2 + $0x128] sm:$0xff] %vm261_vm3, %v8668_v59 }
 0x516   : > { %v9169_v61 = vpop.f32.mrb[24].mxu0  ;;  %v9702_v62 = vpop.f32.mrb[20].mxu1 }
 0x517   : > { %v9314_v63 = vadd.f32 %v9169_v61, %v8748_v60  ;;  %v12537_v0 = vpop.f32.mrb[25].mxu0  ;;  %v12611_v3 = vpop.f32.mrb[21].mxu1 }
 0x518   : > { %v9427_v2 = vld [vmem:[#allocation2] sm:$0xff]  ;;  %v9172_v5 = vpop.f32.mrb[26].mxu0  ;;  %v9705_v7 = vpop.f32.mrb[22].mxu1 }
 0x519   : > { %v9853_v6 = vadd.f32 %v9702_v62, %v9427_v2  ;;  %9352 = vst.msk [vmem:[#allocation2 + $0x10] sm:$0xff] %vm261_vm3, %v9314_v63  ;;  %v9315_v8 = vadd.f32 %v9172_v5, %v8749_v4  ;;  %v12538_v9 = vpop.f32.mrb[27].mxu0  ;;  %v12612_v11 = vpop.f32.mrb[23].mxu1  ;;  %v8755_v4 = vld [vmem:[#allocation2 + $0x48] sm:$0xff] }
 0x51a   : > { %v9428_v10 = vld [vmem:[#allocation2 + $0x8] sm:$0xff] }
 0x51b   : > { %9891 = vst.msk [vmem:[#allocation2] sm:$0xff] %vm261_vm3, %v9853_v6  ;;  %v9854_v12 = vadd.f32 %v9705_v7, %v9428_v10  ;;  %9353 = vst.msk [vmem:[#allocation2 + $0x18] sm:$0xff] %vm261_vm3, %v9315_v8 }
 0x51d   : > { %9892 = vst.msk [vmem:[#allocation2 + $0x8] sm:$0xff] %vm261_vm3, %v9854_v12 }
 0x51e   : > { %v9177_v14 = vpop.f32.mrb[28].mxu0  ;;  %v9710_v15 = vpop.f32.mrb[24].mxu1 }
 0x51f   : > { %v9316_v16 = vadd.f32 %v9177_v14, %v8750_v13  ;;  %v12541_v17 = vpop.f32.mrb[29].mxu0  ;;  %v12615_v20 = vpop.f32.mrb[25].mxu1 }
 0x520   : > { %v9429_v19 = vld [vmem:[#allocation2 + $0x10] sm:$0xff]  ;;  %v9180_v22 = vpop.f32.mrb[30].mxu0  ;;  %v9713_v24 = vpop.f32.mrb[26].mxu1 }
 0x521   : > { %v9855_v23 = vadd.f32 %v9710_v15, %v9429_v19  ;;  %9354 = vst.msk [vmem:[#allocation2 + $0x20] sm:$0xff] %vm261_vm3, %v9316_v16  ;;  %v9317_v25 = vadd.f32 %v9180_v22, %v8751_v21  ;;  %v12542_v26 = vpop.f32.mrb[31].mxu0  ;;  %v12616_v30 = vpop.f32.mrb[27].mxu1  ;;  %v8756_v20 = vld [vmem:[#allocation2 + $0x50] sm:$0xff] }
 0x522   : > { %v9932_v28 = vld [vmem:[#allocation2] sm:$0xff]  ;;  %v9430_v29 = vld [vmem:[#allocation2 + $0x18] sm:$0xff] }
 0x523   : > { %v9977_v31 = vadd.f32 %v15723_v18, %v9932_v28  ;;  %9893 = vst.msk [vmem:[#allocation2 + $0x10] sm:$0xff] %vm261_vm3, %v9855_v23  ;;  %v9856_v32 = vadd.f32 %v9713_v24, %v9430_v29  ;;  %9355 = vst.msk [vmem:[#allocation2 + $0x28] sm:$0xff] %vm261_vm3, %v9317_v25  ;;  %v8757_v30 = vld [vmem:[#allocation2 + $0x58] sm:$0xff] }
 0x524   : > { %v9933_v33 = vld [vmem:[#allocation2 + $0x8] sm:$0xff] }
 0x525   : > { %v10015_v34 = vmax.f32 %v9977_v31, 0.0  ;;  %v9978_v35 = vadd.f32 %v15723_v18, %v9933_v33  ;;  %9894 = vst.msk [vmem:[#allocation2 + $0x18] sm:$0xff] %vm261_vm3, %v9856_v32 }
 0x526   : > { %v9185_v27 = vpop.f32.mrb[32].mxu0  ;;  %v9718_v39 = vpop.f32.mrb[28].mxu1 }
 0x527   : > { %v11079_v37 = vpack.c.bf16 %v10015_v34, %v10015_v34  ;;  %v10016_v38 = vmax.f32 %v9978_v35, 0.0  ;;  %v9318_v40 = vadd.f32 %v9185_v27, %v8752_v36  ;;  %v12545_v41 = vpop.f32.mrb[33].mxu0  ;;  %v12619_v43 = vpop.f32.mrb[29].mxu1 }
 0x528   : > { %v9431_v42 = vld [vmem:[#allocation2 + $0x20] sm:$0xff]  ;;  %v9188_v45 = vpop.f32.mrb[34].mxu0  ;;  %v9721_v48 = vpop.f32.mrb[30].mxu1 }
 0x529   : > { %10206 = vst.msk [vmem:[%s15735_s12] sm:$0xf] %vm10205_vm10, %v11079_v37  ;;  %v11080_v46 = vpack.c.bf16 %v10016_v38, %v10016_v38  ;;  %v9857_v47 = vadd.f32 %v9718_v39, %v9431_v42  ;;  %v9319_v49 = vadd.f32 %v9188_v45, %v8753_v44  ;;  %v12546_v50 = vpop.f32.mrb[35].mxu0  ;;  %v12620_v53 = vpop.f32.mrb[31].mxu1  ;;  %v8758_v44 = vld [vmem:[#allocation2 + $0x60] sm:$0xff] }
 0x52a   : > { %9356 = vst.msk [vmem:[#allocation2 + $0x30] sm:$0xff] %vm261_vm3, %v9318_v40  ;;  %v9934_v51 = vld [vmem:[#allocation2 + $0x10] sm:$0xff]  ;;  %v9432_v52 = vld [vmem:[#allocation2 + $0x28] sm:$0xff] }
 0x52b   : > { %10207 = vst.msk [vmem:[%s15735_s12 + $0x4] sm:$0xf] %vm10205_vm10, %v11080_v46  ;;  %v9979_v54 = vadd.f32 %v15723_v18, %v9934_v51  ;;  %v9858_v55 = vadd.f32 %v9721_v48, %v9432_v52  ;;  %v8759_v53 = vld [vmem:[#allocation2 + $0x68] sm:$0xff] }
 0x52c   : > { %9895 = vst.msk [vmem:[#allocation2 + $0x20] sm:$0xff] %vm261_vm3, %v9857_v47  ;;  %9357 = vst.msk [vmem:[#allocation2 + $0x38] sm:$0xff] %vm261_vm3, %v9319_v49  ;;  %v9935_v56 = vld [vmem:[#allocation2 + $0x18] sm:$0xff] }
 0x52d   : > { %v10017_v57 = vmax.f32 %v9979_v54, 0.0  ;;  %v9980_v58 = vadd.f32 %v15723_v18, %v9935_v56  ;;  %9896 = vst.msk [vmem:[#allocation2 + $0x28] sm:$0xff] %vm261_vm3, %v9858_v55 }
 0x52e   : > { %v9193_v59 = vpop.f32.mrb[36].mxu0  ;;  %v9726_v62 = vpop.f32.mrb[32].mxu1 }
 0x52f   : > { %v11081_v60 = vpack.c.bf16 %v10017_v57, %v10017_v57  ;;  %v10018_v61 = vmax.f32 %v9980_v58, 0.0  ;;  %v9320_v63 = vadd.f32 %v9193_v59, %v8754_v1  ;;  %v12549_v0 = vpop.f32.mrb[37].mxu0  ;;  %v12623_v3 = vpop.f32.mrb[33].mxu1 }
 0x530   : > { %v9196_v5 = vpop.f32.mrb[38].mxu0  ;;  %v9729_v8 = vpop.f32.mrb[34].mxu1 }
 0x531   : > { %v9433_v2 = vld [vmem:[#allocation2 + $0x30] sm:$0xff]  ;;  %10208 = vst.msk [vmem:[%s15735_s12 + $0x8] sm:$0xf] %vm10205_vm10, %v11081_v60  ;;  %v11082_v6 = vpack.c.bf16 %v10018_v61, %v10018_v61  ;;  %v9321_v9 = vadd.f32 %v9196_v5, %v8755_v4  ;;  %v12550_v10 = vpop.f32.mrb[39].mxu0  ;;  %v12624_v13 = vpop.f32.mrb[35].mxu1 }
 0x532   : > { %v9859_v7 = vadd.f32 %v9726_v62, %v9433_v2  ;;  %9358 = vst.msk [vmem:[#allocation2 + $0x40] sm:$0xff] %vm261_vm3, %v9320_v63  ;;  %v8760_v4 = vld [vmem:[#allocation2 + $0x70] sm:$0xff]  ;;  %v8761_v13 = vld [vmem:[#allocation2 + $0x78] sm:$0xff] }
 0x533   : > { %v9936_v11 = vld [vmem:[#allocation2 + $0x20] sm:$0xff]  ;;  %v9434_v12 = vld [vmem:[#allocation2 + $0x38] sm:$0xff]  ;;  %10209 = vst.msk [vmem:[%s15735_s12 + $0xc] sm:$0xf] %vm10205_vm10, %v11082_v6 }
 0x534   : > { %v9981_v14 = vadd.f32 %v15723_v18, %v9936_v11  ;;  %9897 = vst.msk [vmem:[#allocation2 + $0x30] sm:$0xff] %vm261_vm3, %v9859_v7  ;;  %v9860_v15 = vadd.f32 %v9729_v8, %v9434_v12  ;;  %9359 = vst.msk [vmem:[#allocation2 + $0x48] sm:$0xff] %vm261_vm3, %v9321_v9  ;;  %v9937_v16 = vld [vmem:[#allocation2 + $0x28] sm:$0xff] }
 0x535   : > { %v9982_v19 = vadd.f32 %v15723_v18, %v9937_v16 }
 0x536   : > { %v10019_v17 = vmax.f32 %v9981_v14, 0.0  ;;  %9898 = vst.msk [vmem:[#allocation2 + $0x38] sm:$0xff] %vm261_vm3, %v9860_v15  ;;  %v9201_v21 = vpop.f32.mrb[40].mxu0  ;;  %v9734_v24 = vpop.f32.mrb[36].mxu1 }
 0x537   : > { %v10020_v23 = vmax.f32 %v9982_v19, 0.0  ;;  %v9322_v25 = vadd.f32 %v9201_v21, %v8756_v20  ;;  %v12553_v26 = vpop.f32.mrb[41].mxu0  ;;  %v12627_v29 = vpop.f32.mrb[37].mxu1 }
 0x538   : > { %v11083_v22 = vpack.c.bf16 %v10019_v17, %v10019_v17  ;;  %v9204_v31 = vpop.f32.mrb[42].mxu0  ;;  %v9737_v34 = vpop.f32.mrb[38].mxu1 }
 0x539   : > { %v9435_v28 = vld [vmem:[#allocation2 + $0x40] sm:$0xff]  ;;  %v11084_v32 = vpack.c.bf16 %v10020_v23, %v10020_v23  ;;  %9360 = vst.msk [vmem:[#allocation2 + $0x50] sm:$0xff] %vm261_vm3, %v9322_v25  ;;  %v9323_v35 = vadd.f32 %v9204_v31, %v8757_v30  ;;  %v12554_v36 = vpop.f32.mrb[43].mxu0  ;;  %v12628_v38 = vpop.f32.mrb[39].mxu1 }
 0x53a   : > { %10210 = vst.msk [vmem:[%s15735_s12 + $0x10] sm:$0xf] %vm10205_vm10, %v11083_v22  ;;  %v9861_v33 = vadd.f32 %v9734_v24, %v9435_v28  ;;  %v8762_v30 = vld [vmem:[#allocation2 + $0x80] sm:$0xff]  ;;  %v8763_v38 = vld [vmem:[#allocation2 + $0x88] sm:$0xff] }
 0x53b   : > { %v9938_v27 = vld [vmem:[#allocation2 + $0x30] sm:$0xff]  ;;  %v9436_v37 = vld [vmem:[#allocation2 + $0x48] sm:$0xff]  ;;  %10211 = vst.msk [vmem:[%s15735_s12 + $0x14] sm:$0xf] %vm10205_vm10, %v11084_v32 }
 0x53c   : > { %v9983_v39 = vadd.f32 %v15723_v18, %v9938_v27  ;;  %9899 = vst.msk [vmem:[#allocation2 + $0x40] sm:$0xff] %vm261_vm3, %v9861_v33  ;;  %v9862_v40 = vadd.f32 %v9737_v34, %v9436_v37  ;;  %9361 = vst.msk [vmem:[#allocation2 + $0x58] sm:$0xff] %vm261_vm3, %v9323_v35 }
 0x53d   : > { %v9939_v41 = vld [vmem:[#allocation2 + $0x38] sm:$0xff] }
 0x53e   : > { %v10021_v42 = vmax.f32 %v9983_v39, 0.0  ;;  %v9984_v43 = vadd.f32 %v15723_v18, %v9939_v41  ;;  %9900 = vst.msk [vmem:[#allocation2 + $0x48] sm:$0xff] %vm261_vm3, %v9862_v40  ;;  %v9209_v45 = vpop.f32.mrb[44].mxu0  ;;  %v9742_v48 = vpop.f32.mrb[40].mxu1 }
 0x53f   : > { %v9324_v49 = vadd.f32 %v9209_v45, %v8758_v44  ;;  %v12557_v50 = vpop.f32.mrb[45].mxu0  ;;  %v12631_v52 = vpop.f32.mrb[41].mxu1 }
 0x540   : > { %v11085_v46 = vpack.c.bf16 %v10021_v42, %v10021_v42  ;;  %v10022_v47 = vmax.f32 %v9984_v43, 0.0  ;;  %v9437_v51 = vld [vmem:[#allocation2 + $0x50] sm:$0xff]  ;;  %v9212_v54 = vpop.f32.mrb[46].mxu0  ;;  %v9745_v57 = vpop.f32.mrb[42].mxu1 }
 0x541   : > { %v9863_v56 = vadd.f32 %v9742_v48, %v9437_v51  ;;  %9362 = vst.msk [vmem:[#allocation2 + $0x60] sm:$0xff] %vm261_vm3, %v9324_v49  ;;  %v9325_v58 = vadd.f32 %v9212_v54, %v8759_v53  ;;  %v12558_v1 = vpop.f32.mrb[47].mxu0  ;;  %v12632_v61 = vpop.f32.mrb[43].mxu1  ;;  %v8764_v53 = vld [vmem:[#allocation2 + $0x90] sm:$0xff] }
 0x542   : > { %10212 = vst.msk [vmem:[%s15735_s12 + $0x18] sm:$0xf] %vm10205_vm10, %v11085_v46  ;;  %v11086_v55 = vpack.c.bf16 %v10022_v47, %v10022_v47  ;;  %v8765_v61 = vld [vmem:[#allocation2 + $0x98] sm:$0xff] }
 0x543   : > { %v9940_v59 = vld [vmem:[#allocation2 + $0x40] sm:$0xff]  ;;  %v9438_v60 = vld [vmem:[#allocation2 + $0x58] sm:$0xff]  ;;  %9901 = vst.msk [vmem:[#allocation2 + $0x50] sm:$0xff] %vm261_vm3, %v9863_v56  ;;  %9363 = vst.msk [vmem:[#allocation2 + $0x68] sm:$0xff] %vm261_vm3, %v9325_v58 }
 0x544   : > { %10213 = vst.msk [vmem:[%s15735_s12 + $0x1c] sm:$0xf] %vm10205_vm10, %v11086_v55  ;;  %v9985_v62 = vadd.f32 %v15723_v18, %v9940_v59  ;;  %v9864_v63 = vadd.f32 %v9745_v57, %v9438_v60 }
 0x545   : > { %v9941_v0 = vld [vmem:[#allocation2 + $0x48] sm:$0xff] }
 0x546   : > { %v10023_v2 = vmax.f32 %v9985_v62, 0.0  ;;  %v9986_v3 = vadd.f32 %v15723_v18, %v9941_v0  ;;  %9902 = vst.msk [vmem:[#allocation2 + $0x58] sm:$0xff] %vm261_vm3, %v9864_v63  ;;  %v9217_v5 = vpop.f32.mrb[48].mxu0  ;;  %v9750_v8 = vpop.f32.mrb[44].mxu1 }
 0x547   : > { %v9326_v9 = vadd.f32 %v9217_v5, %v8760_v4  ;;  %v12561_v10 = vpop.f32.mrb[49].mxu0  ;;  %v12635_v12 = vpop.f32.mrb[45].mxu1 }
 0x548   : > { %v11087_v6 = vpack.c.bf16 %v10023_v2, %v10023_v2  ;;  %v10024_v7 = vmax.f32 %v9986_v3, 0.0  ;;  %v9439_v11 = vld [vmem:[#allocation2 + $0x60] sm:$0xff]  ;;  %v9220_v14 = vpop.f32.mrb[50].mxu0  ;;  %v9753_v17 = vpop.f32.mrb[46].mxu1 }
 0x549   : > { %v9865_v16 = vadd.f32 %v9750_v8, %v9439_v11  ;;  %9364 = vst.msk [vmem:[#allocation2 + $0x70] sm:$0xff] %vm261_vm3, %v9326_v9  ;;  %v9327_v19 = vadd.f32 %v9220_v14, %v8761_v13  ;;  %v12562_v20 = vpop.f32.mrb[51].mxu0  ;;  %v12636_v23 = vpop.f32.mrb[47].mxu1  ;;  %v8766_v13 = vld [vmem:[#allocation2 + $0xa0] sm:$0xff] }
 0x54a   : > { %10214 = vst.msk [vmem:[%s15735_s12 + $0x20] sm:$0xf] %vm10205_vm10, %v11087_v6  ;;  %v11088_v15 = vpack.c.bf16 %v10024_v7, %v10024_v7  ;;  %v9942_v21 = vld [vmem:[#allocation2 + $0x50] sm:$0xff]  ;;  %v9440_v22 = vld [vmem:[#allocation2 + $0x68] sm:$0xff] }
 0x54b   : > { %v9987_v24 = vadd.f32 %v15723_v18, %v9942_v21  ;;  %9903 = vst.msk [vmem:[#allocation2 + $0x60] sm:$0xff] %vm261_vm3, %v9865_v16  ;;  %v9866_v25 = vadd.f32 %v9753_v17, %v9440_v22  ;;  %9365 = vst.msk [vmem:[#allocation2 + $0x78] sm:$0xff] %vm261_vm3, %v9327_v19  ;;  %v8767_v23 = vld [vmem:[#allocation2 + $0xa8] sm:$0xff] }
 0x54c   : > { %10215 = vst.msk [vmem:[%s15735_s12 + $0x24] sm:$0xf] %vm10205_vm10, %v11088_v15 }
 0x54d   : > { %v9943_v26 = vld [vmem:[#allocation2 + $0x58] sm:$0xff]  ;;  %v10025_v28 = vmax.f32 %v9987_v24, 0.0  ;;  %9904 = vst.msk [vmem:[#allocation2 + $0x68] sm:$0xff] %vm261_vm3, %v9866_v25 }
 0x54e   : > { %v9988_v29 = vadd.f32 %v15723_v18, %v9943_v26  ;;  %v9225_v31 = vpop.f32.mrb[52].mxu0  ;;  %v9758_v34 = vpop.f32.mrb[48].mxu1 }
 0x54f   : > { %v11089_v32 = vpack.c.bf16 %v10025_v28, %v10025_v28  ;;  %v9328_v35 = vadd.f32 %v9225_v31, %v8762_v30  ;;  %v12565_v36 = vpop.f32.mrb[53].mxu0  ;;  %v12639_v37 = vpop.f32.mrb[49].mxu1 }
 0x550   : > { %v10026_v33 = vmax.f32 %v9988_v29, 0.0  ;;  %v9441_v27 = vld [vmem:[#allocation2 + $0x70] sm:$0xff]  ;;  %v9228_v39 = vpop.f32.mrb[54].mxu0  ;;  %v9761_v42 = vpop.f32.mrb[50].mxu1 }
 0x551   : > { %10216 = vst.msk [vmem:[%s15735_s12 + $0x28] sm:$0xf] %vm10205_vm10, %v11089_v32  ;;  %v9867_v41 = vadd.f32 %v9758_v34, %v9441_v27  ;;  %v9329_v43 = vadd.f32 %v9228_v39, %v8763_v38  ;;  %v12566_v44 = vpop.f32.mrb[55].mxu0  ;;  %v12640_v47 = vpop.f32.mrb[51].mxu1  ;;  %v8768_v38 = vld [vmem:[#allocation2 + $0xb0] sm:$0xff] }
 0x552   : > { %v11090_v40 = vpack.c.bf16 %v10026_v33, %v10026_v33  ;;  %9366 = vst.msk [vmem:[#allocation2 + $0x80] sm:$0xff] %vm261_vm3, %v9328_v35  ;;  %v9944_v45 = vld [vmem:[#allocation2 + $0x60] sm:$0xff]  ;;  %v9442_v46 = vld [vmem:[#allocation2 + $0x78] sm:$0xff] }
 0x553   : > { %v9989_v48 = vadd.f32 %v15723_v18, %v9944_v45  ;;  %9905 = vst.msk [vmem:[#allocation2 + $0x70] sm:$0xff] %vm261_vm3, %v9867_v41  ;;  %v9868_v49 = vadd.f32 %v9761_v42, %v9442_v46  ;;  %9367 = vst.msk [vmem:[#allocation2 + $0x88] sm:$0xff] %vm261_vm3, %v9329_v43  ;;  %v8769_v47 = vld [vmem:[#allocation2 + $0xb8] sm:$0xff] }
 0x554   : > { %10217 = vst.msk [vmem:[%s15735_s12 + $0x2c] sm:$0xf] %vm10205_vm10, %v11090_v40  ;;  %v9945_v50 = vld [vmem:[#allocation2 + $0x68] sm:$0xff] }
 0x555   : > { %v10027_v51 = vmax.f32 %v9989_v48, 0.0  ;;  %v9990_v52 = vadd.f32 %v15723_v18, %v9945_v50  ;;  %9906 = vst.msk [vmem:[#allocation2 + $0x78] sm:$0xff] %vm261_vm3, %v9868_v49 }
 0x556   : > { %v9233_v54 = vpop.f32.mrb[56].mxu0  ;;  %v9766_v57 = vpop.f32.mrb[52].mxu1 }
 0x557   : > { %v11091_v55 = vpack.c.bf16 %v10027_v51, %v10027_v51  ;;  %v10028_v56 = vmax.f32 %v9990_v52, 0.0  ;;  %v9330_v58 = vadd.f32 %v9233_v54, %v8764_v53  ;;  %v12569_v1 = vpop.f32.mrb[57].mxu0  ;;  %v12643_v60 = vpop.f32.mrb[53].mxu1 }
 0x558   : > { %v9236_v62 = vpop.f32.mrb[58].mxu0  ;;  %v9769_v2 = vpop.f32.mrb[54].mxu1 }
 0x559   : > { %v9443_v59 = vld [vmem:[#allocation2 + $0x80] sm:$0xff]  ;;  %10218 = vst.msk [vmem:[%s15735_s12 + $0x30] sm:$0xf] %vm10205_vm10, %v11091_v55  ;;  %v11092_v63 = vpack.c.bf16 %v10028_v56, %v10028_v56  ;;  %v9331_v3 = vadd.f32 %v9236_v62, %v8765_v61  ;;  %v12570_v4 = vpop.f32.mrb[59].mxu0  ;;  %v12644_v7 = vpop.f32.mrb[55].mxu1 }
 0x55a   : > { %v9869_v0 = vadd.f32 %v9766_v57, %v9443_v59  ;;  %9368 = vst.msk [vmem:[#allocation2 + $0x90] sm:$0xff] %vm261_vm3, %v9330_v58  ;;  %v9946_v5 = vld [vmem:[#allocation2 + $0x70] sm:$0xff]  ;;  %v9444_v6 = vld [vmem:[#allocation2 + $0x88] sm:$0xff]  ;;  %v8770_v61 = vld [vmem:[#allocation2 + $0xc0] sm:$0xff] }
 0x55b   : > { %10219 = vst.msk [vmem:[%s15735_s12 + $0x34] sm:$0xf] %vm10205_vm10, %v11092_v63  ;;  %v9991_v8 = vadd.f32 %v15723_v18, %v9946_v5  ;;  %v9870_v9 = vadd.f32 %v9769_v2, %v9444_v6  ;;  %v8771_v7 = vld [vmem:[#allocation2 + $0xc8] sm:$0xff] }
 0x55c   : > { %9907 = vst.msk [vmem:[#allocation2 + $0x80] sm:$0xff] %vm261_vm3, %v9869_v0  ;;  %9369 = vst.msk [vmem:[#allocation2 + $0x98] sm:$0xff] %vm261_vm3, %v9331_v3  ;;  %v9947_v10 = vld [vmem:[#allocation2 + $0x78] sm:$0xff] }
 0x55d   : > { %v10029_v11 = vmax.f32 %v9991_v8, 0.0  ;;  %v9992_v12 = vadd.f32 %v15723_v18, %v9947_v10  ;;  %9908 = vst.msk [vmem:[#allocation2 + $0x88] sm:$0xff] %vm261_vm3, %v9870_v9 }
 0x55e   : > { %v9241_v14 = vpop.f32.mrb[60].mxu0  ;;  %v9774_v17 = vpop.f32.mrb[56].mxu1 }
 0x55f   : > { %v11093_v15 = vpack.c.bf16 %v10029_v11, %v10029_v11  ;;  %v10030_v16 = vmax.f32 %v9992_v12, 0.0  ;;  %v9332_v19 = vadd.f32 %v9241_v14, %v8766_v13  ;;  %v12573_v20 = vpop.f32.mrb[61].mxu0  ;;  %v12647_v22 = vpop.f32.mrb[57].mxu1 }
 0x560   : > { %v9244_v24 = vpop.f32.mrb[62].mxu0  ;;  %v9777_v28 = vpop.f32.mrb[58].mxu1 }
 0x561   : > { %v9445_v21 = vld [vmem:[#allocation2 + $0x90] sm:$0xff]  ;;  %10220 = vst.msk [vmem:[%s15735_s12 + $0x38] sm:$0xf] %vm10205_vm10, %v11093_v15  ;;  %v11094_v25 = vpack.c.bf16 %v10030_v16, %v10030_v16  ;;  %v9333_v29 = vadd.f32 %v9244_v24, %v8767_v23  ;;  %v12574_v30 = vpop.f32.mrb[63].mxu0  ;;  %v12648_v33 = vpop.f32.mrb[59].mxu1 }
 0x562   : > { %v9871_v26 = vadd.f32 %v9774_v17, %v9445_v21  ;;  %9370 = vst.msk [vmem:[#allocation2 + $0xa0] sm:$0xff] %vm261_vm3, %v9332_v19  ;;  %v8772_v23 = vld [vmem:[#allocation2 + $0xd0] sm:$0xff]  ;;  %v8773_v33 = vld [vmem:[#allocation2 + $0xd8] sm:$0xff] }
 0x563   : > { %v9948_v31 = vld [vmem:[#allocation2 + $0x80] sm:$0xff]  ;;  %v9446_v32 = vld [vmem:[#allocation2 + $0x98] sm:$0xff]  ;;  %10221 = vst.msk [vmem:[%s15735_s12 + $0x3c] sm:$0xf] %vm10205_vm10, %v11094_v25 }
 0x564   : > { %v9993_v34 = vadd.f32 %v15723_v18, %v9948_v31  ;;  %9909 = vst.msk [vmem:[#allocation2 + $0x90] sm:$0xff] %vm261_vm3, %v9871_v26  ;;  %v9872_v35 = vadd.f32 %v9777_v28, %v9446_v32  ;;  %9371 = vst.msk [vmem:[#allocation2 + $0xa8] sm:$0xff] %vm261_vm3, %v9333_v29  ;;  %v9949_v36 = vld [vmem:[#allocation2 + $0x88] sm:$0xff] }
 0x565   : > { %v9994_v37 = vadd.f32 %v15723_v18, %v9949_v36 }
 0x566   : > { %v10031_v27 = vmax.f32 %v9993_v34, 0.0  ;;  %9910 = vst.msk [vmem:[#allocation2 + $0x98] sm:$0xff] %vm261_vm3, %v9872_v35  ;;  %v9249_v39 = vpop.f32.mrb[64].mxu0  ;;  %v9782_v42 = vpop.f32.mrb[60].mxu1 }
 0x567   : > { %v10032_v41 = vmax.f32 %v9994_v37, 0.0  ;;  %v9334_v43 = vadd.f32 %v9249_v39, %v8768_v38  ;;  %v12577_v44 = vpop.f32.mrb[65].mxu0  ;;  %v12651_v46 = vpop.f32.mrb[61].mxu1 }
 0x568   : > { %v11095_v40 = vpack.c.bf16 %v10031_v27, %v10031_v27  ;;  %v9252_v48 = vpop.f32.mrb[66].mxu0  ;;  %v9785_v51 = vpop.f32.mrb[62].mxu1 }
 0x569   : > { %v9447_v45 = vld [vmem:[#allocation2 + $0xa0] sm:$0xff]  ;;  %v11096_v49 = vpack.c.bf16 %v10032_v41, %v10032_v41  ;;  %9372 = vst.msk [vmem:[#allocation2 + $0xb0] sm:$0xff] %vm261_vm3, %v9334_v43  ;;  %v9335_v52 = vadd.f32 %v9252_v48, %v8769_v47  ;;  %v12578_v53 = vpop.f32.mrb[67].mxu0  ;;  %v12652_v56 = vpop.f32.mrb[63].mxu1 }
 0x56a   : > { %10222 = vst.msk [vmem:[%s15735_s12 + $0x40] sm:$0xf] %vm10205_vm10, %v11095_v40  ;;  %v9873_v50 = vadd.f32 %v9782_v42, %v9447_v45  ;;  %v8774_v47 = vld [vmem:[#allocation2 + $0xe0] sm:$0xff]  ;;  %v8775_v56 = vld [vmem:[#allocation2 + $0xe8] sm:$0xff] }
 0x56b   : > { %v9950_v54 = vld [vmem:[#allocation2 + $0x90] sm:$0xff]  ;;  %v9448_v55 = vld [vmem:[#allocation2 + $0xa8] sm:$0xff]  ;;  %10223 = vst.msk [vmem:[%s15735_s12 + $0x44] sm:$0xf] %vm10205_vm10, %v11096_v49 }
 0x56c   : > { %v9995_v57 = vadd.f32 %v15723_v18, %v9950_v54  ;;  %9911 = vst.msk [vmem:[#allocation2 + $0xa0] sm:$0xff] %vm261_vm3, %v9873_v50  ;;  %v9874_v58 = vadd.f32 %v9785_v51, %v9448_v55  ;;  %9373 = vst.msk [vmem:[#allocation2 + $0xb8] sm:$0xff] %vm261_vm3, %v9335_v52 }
 0x56d   : > { %v9951_v1 = vld [vmem:[#allocation2 + $0x98] sm:$0xff] }
 0x56e   : > { %v10033_v59 = vmax.f32 %v9995_v57, 0.0  ;;  %v9996_v60 = vadd.f32 %v15723_v18, %v9951_v1  ;;  %9912 = vst.msk [vmem:[#allocation2 + $0xa8] sm:$0xff] %vm261_vm3, %v9874_v58  ;;  %v9257_v62 = vpop.f32.mrb[68].mxu0  ;;  %v9790_v2 = vpop.f32.mrb[64].mxu1 }
 0x56f   : > { %v9336_v3 = vadd.f32 %v9257_v62, %v8770_v61  ;;  %v12581_v4 = vpop.f32.mrb[69].mxu0  ;;  %v12655_v6 = vpop.f32.mrb[65].mxu1 }
 0x570   : > { %v11097_v63 = vpack.c.bf16 %v10033_v59, %v10033_v59  ;;  %v10034_v0 = vmax.f32 %v9996_v60, 0.0  ;;  %v9449_v5 = vld [vmem:[#allocation2 + $0xb0] sm:$0xff]  ;;  %v9260_v8 = vpop.f32.mrb[70].mxu0  ;;  %v9793_v11 = vpop.f32.mrb[66].mxu1 }
 0x571   : > { %v9875_v10 = vadd.f32 %v9790_v2, %v9449_v5  ;;  %9374 = vst.msk [vmem:[#allocation2 + $0xc0] sm:$0xff] %vm261_vm3, %v9336_v3  ;;  %v9337_v12 = vadd.f32 %v9260_v8, %v8771_v7  ;;  %v12582_v13 = vpop.f32.mrb[71].mxu0  ;;  %v12656_v16 = vpop.f32.mrb[67].mxu1  ;;  %v8776_v7 = vld [vmem:[#allocation2 + $0xf0] sm:$0xff] }
 0x572   : > { %10224 = vst.msk [vmem:[%s15735_s12 + $0x48] sm:$0xf] %vm10205_vm10, %v11097_v63  ;;  %v11098_v9 = vpack.c.bf16 %v10034_v0, %v10034_v0  ;;  %v8777_v16 = vld [vmem:[#allocation2 + $0xf8] sm:$0xff] }
 0x573   : > { %v9952_v14 = vld [vmem:[#allocation2 + $0xa0] sm:$0xff]  ;;  %v9450_v15 = vld [vmem:[#allocation2 + $0xb8] sm:$0xff]  ;;  %9913 = vst.msk [vmem:[#allocation2 + $0xb0] sm:$0xff] %vm261_vm3, %v9875_v10  ;;  %9375 = vst.msk [vmem:[#allocation2 + $0xc8] sm:$0xff] %vm261_vm3, %v9337_v12 }
 0x574   : > { %10225 = vst.msk [vmem:[%s15735_s12 + $0x4c] sm:$0xf] %vm10205_vm10, %v11098_v9  ;;  %v9997_v17 = vadd.f32 %v15723_v18, %v9952_v14  ;;  %v9876_v19 = vadd.f32 %v9793_v11, %v9450_v15 }
 0x575   : > { %v9953_v20 = vld [vmem:[#allocation2 + $0xa8] sm:$0xff] }
 0x576   : > { %v10035_v21 = vmax.f32 %v9997_v17, 0.0  ;;  %v9998_v22 = vadd.f32 %v15723_v18, %v9953_v20  ;;  %9914 = vst.msk [vmem:[#allocation2 + $0xb8] sm:$0xff] %vm261_vm3, %v9876_v19  ;;  %v9265_v24 = vpop.f32.mrb[72].mxu0  ;;  %v9798_v28 = vpop.f32.mrb[68].mxu1 }
 0x577   : > { %v9338_v29 = vadd.f32 %v9265_v24, %v8772_v23  ;;  %v12585_v30 = vpop.f32.mrb[73].mxu0  ;;  %v12659_v32 = vpop.f32.mrb[69].mxu1 }
 0x578   : > { %v11099_v25 = vpack.c.bf16 %v10035_v21, %v10035_v21  ;;  %v10036_v26 = vmax.f32 %v9998_v22, 0.0  ;;  %v9451_v31 = vld [vmem:[#allocation2 + $0xc0] sm:$0xff]  ;;  %v9268_v34 = vpop.f32.mrb[74].mxu0  ;;  %v9801_v27 = vpop.f32.mrb[70].mxu1 }
 0x579   : > { %v9877_v36 = vadd.f32 %v9798_v28, %v9451_v31  ;;  %9376 = vst.msk [vmem:[#allocation2 + $0xd0] sm:$0xff] %vm261_vm3, %v9338_v29  ;;  %v9339_v37 = vadd.f32 %v9268_v34, %v8773_v33  ;;  %v12586_v38 = vpop.f32.mrb[75].mxu0  ;;  %v12660_v41 = vpop.f32.mrb[71].mxu1  ;;  %v8778_v33 = vld [vmem:[#allocation2 + $0x100] sm:$0xff] }
 0x57a   : > { %10226 = vst.msk [vmem:[%s15735_s12 + $0x50] sm:$0xf] %vm10205_vm10, %v11099_v25  ;;  %v11100_v35 = vpack.c.bf16 %v10036_v26, %v10036_v26  ;;  %v9954_v39 = vld [vmem:[#allocation2 + $0xb0] sm:$0xff]  ;;  %v9452_v40 = vld [vmem:[#allocation2 + $0xc8] sm:$0xff] }
 0x57b   : > { %v9999_v42 = vadd.f32 %v15723_v18, %v9954_v39  ;;  %9915 = vst.msk [vmem:[#allocation2 + $0xc0] sm:$0xff] %vm261_vm3, %v9877_v36  ;;  %v9878_v43 = vadd.f32 %v9801_v27, %v9452_v40  ;;  %9377 = vst.msk [vmem:[#allocation2 + $0xd8] sm:$0xff] %vm261_vm3, %v9339_v37  ;;  %v8779_v41 = vld [vmem:[#allocation2 + $0x108] sm:$0xff] }
 0x57c   : > { %10227 = vst.msk [vmem:[%s15735_s12 + $0x54] sm:$0xf] %vm10205_vm10, %v11100_v35 }
 0x57d   : > { %v9955_v44 = vld [vmem:[#allocation2 + $0xb8] sm:$0xff]  ;;  %v10037_v45 = vmax.f32 %v9999_v42, 0.0  ;;  %9916 = vst.msk [vmem:[#allocation2 + $0xc8] sm:$0xff] %vm261_vm3, %v9878_v43 }
 0x57e   : > { %v10000_v46 = vadd.f32 %v15723_v18, %v9955_v44  ;;  %v9273_v48 = vpop.f32.mrb[76].mxu0  ;;  %v9806_v51 = vpop.f32.mrb[72].mxu1 }
 0x57f   : > { %v11101_v49 = vpack.c.bf16 %v10037_v45, %v10037_v45  ;;  %v9340_v52 = vadd.f32 %v9273_v48, %v8774_v47  ;;  %v12589_v53 = vpop.f32.mrb[77].mxu0  ;;  %v12663_v55 = vpop.f32.mrb[73].mxu1 }
 0x580   : > { %v10038_v50 = vmax.f32 %v10000_v46, 0.0  ;;  %v9453_v54 = vld [vmem:[#allocation2 + $0xd0] sm:$0xff]  ;;  %v9276_v57 = vpop.f32.mrb[78].mxu0  ;;  %v9809_v59 = vpop.f32.mrb[74].mxu1 }
 0x581   : > { %10228 = vst.msk [vmem:[%s15735_s12 + $0x58] sm:$0xf] %vm10205_vm10, %v11101_v49  ;;  %v9879_v1 = vadd.f32 %v9806_v51, %v9453_v54  ;;  %v9341_v60 = vadd.f32 %v9276_v57, %v8775_v56  ;;  %v12590_v61 = vpop.f32.mrb[79].mxu0  ;;  %v12664_v0 = vpop.f32.mrb[75].mxu1  ;;  %v8780_v56 = vld [vmem:[#allocation2 + $0x110] sm:$0xff] }
 0x582   : > { %v11102_v58 = vpack.c.bf16 %v10038_v50, %v10038_v50  ;;  %9378 = vst.msk [vmem:[#allocation2 + $0xe0] sm:$0xff] %vm261_vm3, %v9340_v52  ;;  %v9956_v62 = vld [vmem:[#allocation2 + $0xc0] sm:$0xff]  ;;  %v9454_v63 = vld [vmem:[#allocation2 + $0xd8] sm:$0xff] }
 0x583   : > { %v10001_v2 = vadd.f32 %v15723_v18, %v9956_v62  ;;  %9917 = vst.msk [vmem:[#allocation2 + $0xd0] sm:$0xff] %vm261_vm3, %v9879_v1  ;;  %v9880_v3 = vadd.f32 %v9809_v59, %v9454_v63  ;;  %9379 = vst.msk [vmem:[#allocation2 + $0xe8] sm:$0xff] %vm261_vm3, %v9341_v60  ;;  %v8781_v0 = vld [vmem:[#allocation2 + $0x118] sm:$0xff] }
 0x584   : > { %10229 = vst.msk [vmem:[%s15735_s12 + $0x5c] sm:$0xf] %vm10205_vm10, %v11102_v58  ;;  %v9957_v4 = vld [vmem:[#allocation2 + $0xc8] sm:$0xff] }
 0x585   : > { %v10039_v5 = vmax.f32 %v10001_v2, 0.0  ;;  %v10002_v6 = vadd.f32 %v15723_v18, %v9957_v4  ;;  %9918 = vst.msk [vmem:[#allocation2 + $0xd8] sm:$0xff] %vm261_vm3, %v9880_v3 }
 0x586   : > { %v9281_v8 = vpop.f32.mrb[80].mxu0  ;;  %v9814_v11 = vpop.f32.mrb[76].mxu1 }
 0x587   : > { %v11103_v9 = vpack.c.bf16 %v10039_v5, %v10039_v5  ;;  %v10040_v10 = vmax.f32 %v10002_v6, 0.0  ;;  %v9342_v12 = vadd.f32 %v9281_v8, %v8776_v7  ;;  %v12593_v13 = vpop.f32.mrb[81].mxu0  ;;  %v12667_v15 = vpop.f32.mrb[77].mxu1 }
 0x588   : > { %v9284_v17 = vpop.f32.mrb[82].mxu0  ;;  %v9817_v21 = vpop.f32.mrb[78].mxu1 }
 0x589   : > { %v9455_v14 = vld [vmem:[#allocation2 + $0xe0] sm:$0xff]  ;;  %10230 = vst.msk [vmem:[%s15735_s12 + $0x60] sm:$0xf] %vm10205_vm10, %v11103_v9  ;;  %v11104_v19 = vpack.c.bf16 %v10040_v10, %v10040_v10  ;;  %v9343_v22 = vadd.f32 %v9284_v17, %v8777_v16  ;;  %v12594_v23 = vpop.f32.mrb[83].mxu0  ;;  %v12668_v26 = vpop.f32.mrb[79].mxu1 }
 0x58a   : > { %v9881_v20 = vadd.f32 %v9814_v11, %v9455_v14  ;;  %9380 = vst.msk [vmem:[#allocation2 + $0xf0] sm:$0xff] %vm261_vm3, %v9342_v12  ;;  %v9958_v24 = vld [vmem:[#allocation2 + $0xd0] sm:$0xff]  ;;  %v9456_v25 = vld [vmem:[#allocation2 + $0xe8] sm:$0xff]  ;;  %v8782_v16 = vld [vmem:[#allocation2 + $0x120] sm:$0xff] }
 0x58b   : > { %10231 = vst.msk [vmem:[%s15735_s12 + $0x64] sm:$0xf] %vm10205_vm10, %v11104_v19  ;;  %v10003_v28 = vadd.f32 %v15723_v18, %v9958_v24  ;;  %v9882_v29 = vadd.f32 %v9817_v21, %v9456_v25  ;;  %v8783_v26 = vld [vmem:[#allocation2 + $0x128] sm:$0xff] }
 0x58c   : > { %9919 = vst.msk [vmem:[#allocation2 + $0xe0] sm:$0xff] %vm261_vm3, %v9881_v20  ;;  %9381 = vst.msk [vmem:[#allocation2 + $0xf8] sm:$0xff] %vm261_vm3, %v9343_v22  ;;  %v9959_v30 = vld [vmem:[#allocation2 + $0xd8] sm:$0xff] }
 0x58d   : > { %v10041_v31 = vmax.f32 %v10003_v28, 0.0  ;;  %v10004_v32 = vadd.f32 %v15723_v18, %v9959_v30  ;;  %9920 = vst.msk [vmem:[#allocation2 + $0xe8] sm:$0xff] %vm261_vm3, %v9882_v29 }
 0x58e   : > { %v9289_v34 = vpop.f32.mrb[84].mxu0  ;;  %v9822_v27 = vpop.f32.mrb[80].mxu1 }
 0x58f   : > { %v11105_v35 = vpack.c.bf16 %v10041_v31, %v10041_v31  ;;  %v10042_v36 = vmax.f32 %v10004_v32, 0.0  ;;  %v9344_v37 = vadd.f32 %v9289_v34, %v8778_v33  ;;  %v12597_v38 = vpop.f32.mrb[85].mxu0  ;;  %v12671_v40 = vpop.f32.mrb[81].mxu1 }
 0x590   : > { %v9292_v42 = vpop.f32.mrb[86].mxu0  ;;  %v9825_v45 = vpop.f32.mrb[82].mxu1 }
 0x591   : > { %v9457_v39 = vld [vmem:[#allocation2 + $0xf0] sm:$0xff]  ;;  %10232 = vst.msk [vmem:[%s15735_s12 + $0x68] sm:$0xf] %vm10205_vm10, %v11105_v35  ;;  %v11106_v43 = vpack.c.bf16 %v10042_v36, %v10042_v36  ;;  %v9345_v46 = vadd.f32 %v9292_v42, %v8779_v41  ;;  %v12598_v47 = vpop.f32.mrb[87].mxu0  ;;  %v12672_v50 = vpop.f32.mrb[83].mxu1 }
 0x592   : > { %v9883_v44 = vadd.f32 %v9822_v27, %v9457_v39  ;;  %9382 = vst.msk [vmem:[#allocation2 + $0x100] sm:$0xff] %vm261_vm3, %v9344_v37 }
 0x593   : > { %v9960_v48 = vld [vmem:[#allocation2 + $0xe0] sm:$0xff]  ;;  %v9458_v49 = vld [vmem:[#allocation2 + $0xf8] sm:$0xff]  ;;  %10233 = vst.msk [vmem:[%s15735_s12 + $0x6c] sm:$0xf] %vm10205_vm10, %v11106_v43 }
 0x594   : > { %v10005_v51 = vadd.f32 %v15723_v18, %v9960_v48  ;;  %9921 = vst.msk [vmem:[#allocation2 + $0xf0] sm:$0xff] %vm261_vm3, %v9883_v44  ;;  %v9884_v52 = vadd.f32 %v9825_v45, %v9458_v49  ;;  %9383 = vst.msk [vmem:[#allocation2 + $0x108] sm:$0xff] %vm261_vm3, %v9345_v46  ;;  %v9961_v53 = vld [vmem:[#allocation2 + $0xe8] sm:$0xff] }
 0x595   : > { %v10006_v55 = vadd.f32 %v15723_v18, %v9961_v53 }
 0x596   : > { %v10043_v54 = vmax.f32 %v10005_v51, 0.0  ;;  %9922 = vst.msk [vmem:[#allocation2 + $0xf8] sm:$0xff] %vm261_vm3, %v9884_v52  ;;  %v9297_v57 = vpop.f32.mrb[88].mxu0  ;;  %v9830_v59 = vpop.f32.mrb[84].mxu1 }
 0x597   : > { %v10044_v1 = vmax.f32 %v10006_v55, 0.0  ;;  %v9346_v60 = vadd.f32 %v9297_v57, %v8780_v56  ;;  %v12601_v61 = vpop.f32.mrb[89].mxu0  ;;  %v12675_v63 = vpop.f32.mrb[85].mxu1 }
 0x598   : > { %v11107_v58 = vpack.c.bf16 %v10043_v54, %v10043_v54  ;;  %v9300_v2 = vpop.f32.mrb[90].mxu0  ;;  %v9833_v5 = vpop.f32.mrb[86].mxu1 }
 0x599   : > { %v9459_v62 = vld [vmem:[#allocation2 + $0x100] sm:$0xff]  ;;  %v11108_v3 = vpack.c.bf16 %v10044_v1, %v10044_v1  ;;  %9384 = vst.msk [vmem:[#allocation2 + $0x110] sm:$0xff] %vm261_vm3, %v9346_v60  ;;  %v9347_v6 = vadd.f32 %v9300_v2, %v8781_v0  ;;  %v12602_v7 = vpop.f32.mrb[91].mxu0  ;;  %v12676_v10 = vpop.f32.mrb[87].mxu1 }
 0x59a   : > { %10234 = vst.msk [vmem:[%s15735_s12 + $0x70] sm:$0xf] %vm10205_vm10, %v11107_v58  ;;  %v9885_v4 = vadd.f32 %v9830_v59, %v9459_v62 }
 0x59b   : > { %v9962_v8 = vld [vmem:[#allocation2 + $0xf0] sm:$0xff]  ;;  %v9460_v9 = vld [vmem:[#allocation2 + $0x108] sm:$0xff]  ;;  %10235 = vst.msk [vmem:[%s15735_s12 + $0x74] sm:$0xf] %vm10205_vm10, %v11108_v3 }
 0x59c   : > { %v10007_v11 = vadd.f32 %v15723_v18, %v9962_v8  ;;  %9923 = vst.msk [vmem:[#allocation2 + $0x100] sm:$0xff] %vm261_vm3, %v9885_v4  ;;  %v9886_v12 = vadd.f32 %v9833_v5, %v9460_v9  ;;  %9385 = vst.msk [vmem:[#allocation2 + $0x118] sm:$0xff] %vm261_vm3, %v9347_v6 }
 0x59d   : > { %v9963_v13 = vld [vmem:[#allocation2 + $0xf8] sm:$0xff] }
 0x59e   : > { %v10045_v14 = vmax.f32 %v10007_v11, 0.0  ;;  %v10008_v15 = vadd.f32 %v15723_v18, %v9963_v13  ;;  %9924 = vst.msk [vmem:[#allocation2 + $0x108] sm:$0xff] %vm261_vm3, %v9886_v12  ;;  %v9305_v17 = vpop.f32.mrb[92].mxu0  ;;  %v9838_v21 = vpop.f32.mrb[88].mxu1 }
 0x59f   : > { %v9348_v22 = vadd.f32 %v9305_v17, %v8782_v16  ;;  %v12605_v23 = vpop.f32.mrb[93].mxu0  ;;  %v12679_v25 = vpop.f32.mrb[89].mxu1 }
 0x5a0   : > { %v11109_v19 = vpack.c.bf16 %v10045_v14, %v10045_v14  ;;  %v10046_v20 = vmax.f32 %v10008_v15, 0.0  ;;  %v9461_v24 = vld [vmem:[#allocation2 + $0x110] sm:$0xff]  ;;  %v9308_v28 = vpop.f32.mrb[94].mxu0  ;;  %v9841_v31 = vpop.f32.mrb[90].mxu1 }
 0x5a1   : > { %v9887_v30 = vadd.f32 %v9838_v21, %v9461_v24  ;;  %9386 = vst.msk [vmem:[#allocation2 + $0x120] sm:$0xff] %vm261_vm3, %v9348_v22  ;;  %v9349_v32 = vadd.f32 %v9308_v28, %v8783_v26  ;;  %v12606_v33 = vpop.f32.mrb[95].mxu0  ;;  %v12680_v36 = vpop.f32.mrb[91].mxu1 }
 0x5a2   : > { %10236 = vst.msk [vmem:[%s15735_s12 + $0x78] sm:$0xf] %vm10205_vm10, %v11109_v19  ;;  %v11110_v29 = vpack.c.bf16 %v10046_v20, %v10046_v20 }
 0x5a3   : > { %v9964_v34 = vld [vmem:[#allocation2 + $0x100] sm:$0xff]  ;;  %v9462_v35 = vld [vmem:[#allocation2 + $0x118] sm:$0xff]  ;;  %9925 = vst.msk [vmem:[#allocation2 + $0x110] sm:$0xff] %vm261_vm3, %v9887_v30  ;;  %9387 = vst.msk [vmem:[#allocation2 + $0x128] sm:$0xff] %vm261_vm3, %v9349_v32 }
 0x5a4   : > { %10237 = vst.msk [vmem:[%s15735_s12 + $0x7c] sm:$0xf] %vm10205_vm10, %v11110_v29  ;;  %v10009_v27 = vadd.f32 %v15723_v18, %v9964_v34  ;;  %v9888_v37 = vadd.f32 %v9841_v31, %v9462_v35 }
 0x5a5   : > { %v9965_v38 = vld [vmem:[#allocation2 + $0x108] sm:$0xff] }
 0x5a6   : > { %v10047_v39 = vmax.f32 %v10009_v27, 0.0  ;;  %v10010_v40 = vadd.f32 %v15723_v18, %v9965_v38  ;;  %9926 = vst.msk [vmem:[#allocation2 + $0x118] sm:$0xff] %vm261_vm3, %v9888_v37  ;;  %v9846_v43 = vpop.f32.mrb[92].mxu1  ;;  %v13047_v18 = vld [vmem:[%s15925_s2] ss:$0 sm:$0xff] }
 0x5a7   : > { %v12683_v45 = vpop.f32.mrb[93].mxu1 }
 0x5a8   : > { %v11111_v41 = vpack.c.bf16 %v10047_v39, %v10047_v39  ;;  %v10048_v42 = vmax.f32 %v10010_v40, 0.0  ;;  %v9463_v44 = vld [vmem:[#allocation2 + $0x120] sm:$0xff]  ;;  %v9849_v48 = vpop.f32.mrb[94].mxu1 }
 0x5a9   : > { %v9889_v47 = vadd.f32 %v9846_v43, %v9463_v44  ;;  %v12684_v51 = vpop.f32.mrb[95].mxu1 }
 0x5aa   : > { %10238 = vst.msk [vmem:[%s15735_s12 + $0x80] sm:$0xf] %vm10205_vm10, %v11111_v41  ;;  %v11112_v46 = vpack.c.bf16 %v10048_v42, %v10048_v42  ;;  %v9966_v49 = vld [vmem:[#allocation2 + $0x110] sm:$0xff]  ;;  %v9464_v50 = vld [vmem:[#allocation2 + $0x128] sm:$0xff] }
 0x5ab   : > { %v10011_v52 = vadd.f32 %v13047_v18, %v9966_v49  ;;  %9927 = vst.msk [vmem:[#allocation2 + $0x120] sm:$0xff] %vm261_vm3, %v9889_v47  ;;  %v9890_v53 = vadd.f32 %v9849_v48, %v9464_v50 }
 0x5ac   : > { %10239 = vst.msk [vmem:[%s15735_s12 + $0x84] sm:$0xf] %vm10205_vm10, %v11112_v46 }
 0x5ad   : > { %v9967_v54 = vld [vmem:[#allocation2 + $0x118] sm:$0xff]  ;;  %v10049_v55 = vmax.f32 %v10011_v52, 0.0  ;;  %9928 = vst.msk [vmem:[#allocation2 + $0x128] sm:$0xff] %vm261_vm3, %v9890_v53 }
 0x5ae   : > { %v10012_v56 = vadd.f32 %v13047_v18, %v9967_v54 }
 0x5af   : > { %v11113_v57 = vpack.c.bf16 %v10049_v55, %v10049_v55 }
 0x5b0   : > { %v10050_v58 = vmax.f32 %v10012_v56, 0.0 }
 0x5b1   : > { %10240 = vst.msk [vmem:[%s15735_s12 + $0x88] sm:$0xf] %vm10205_vm10, %v11113_v57 }
 0x5b2   : > { %v11114_v1 = vpack.c.bf16 %v10050_v58, %v10050_v58  ;;  %v9968_v59 = vld [vmem:[#allocation2 + $0x120] sm:$0xff] }
 0x5b3   : > { %v10013_v60 = vadd.f32 %v13047_v18, %v9968_v59 }
 0x5b4   : > { %10241 = vst.msk [vmem:[%s15735_s12 + $0x8c] sm:$0xf] %vm10205_vm10, %v11114_v1  ;;  %v9969_v61 = vld [vmem:[#allocation2 + $0x128] sm:$0xff] }
 0x5b5   : > { %v10051_v62 = vmax.f32 %v10013_v60, 0.0  ;;  %v10014_v63 = vadd.f32 %v13047_v18, %v9969_v61 }
 0x5b7   : > { %v11115_v0 = vpack.c.bf16 %v10051_v62, %v10051_v62  ;;  %v10052_v2 = vmax.f32 %v10014_v63, 0.0 }
 0x5b9   : > { %10242 = vst.msk [vmem:[%s15735_s12 + $0x90] sm:$0xf] %vm10205_vm10, %v11115_v0  ;;  %v11116_v3 = vpack.c.bf16 %v10052_v2, %v10052_v2 }
 0x5bb   : > { %10243 = vst.msk [vmem:[%s15735_s12 + $0x94] sm:$0xf] %vm10205_vm10, %v11116_v3 }
 0x5bc PF: > { %s13_s14 = sadd.s32 1, %s13070_s14   ;;  %s15927_s12 = smov %s13066_s13 }
 0x5bd   : > { %p10_p5 = scmp.ge.s32.totalorder %s13_s14, 4   ;;  %s15928_s13 = smov %s15930_s15 }
 0x5bf   :  { %12 = sbr.rel (!%p10_p5) target bundleno = 2 (0x2), region = 91 }

</bundles_post_ra>
